<compile_context>
chip_gen: v5e
topology: v5e:2x2
jax: 0.10.0
libtpu: 0.0.40
codegen_flags: <defaults>
</compile_context>

<pallas_src>
import functools

import jax
import jax.numpy as jnp
from jax.experimental import pallas as pl
from jax.experimental.pallas import tpu as pltpu

NHEAD = 4
FFN_DIM = 2048       # nn.TransformerEncoderLayer default dim_feedforward
LN_EPS = 1e-5        # default layer_norm_eps

_PARAM_ORDER = (
    "w_q", "b_q", "w_k", "b_k", "w_v", "b_v",
    "w_out", "b_out", "ln1_w", "ln1_b",
    "w1", "b1", "w2", "b2", "ln2_w", "ln2_b",
)


def _layer_norm(x, w, b):
    mu = jnp.mean(x, axis=-1, keepdims=True)
    var = jnp.mean((x - mu) ** 2, axis=-1, keepdims=True)
    return (x - mu) * jax.lax.rsqrt(var + LN_EPS) * w + b


def _mode_encoder_kernel(x_ref,
                         w_q_ref, b_q_ref, w_k_ref, b_k_ref, w_v_ref, b_v_ref,
                         w_out_ref, b_out_ref, ln1_w_ref, ln1_b_ref,
                         w1_ref, b1_ref, w2_ref, b2_ref, ln2_w_ref, ln2_b_ref,
                         o_ref, *, nhead, num_layers):
    NB, S, D = x_ref.shape
    hd = D // nhead
    scale = float(hd) ** -0.5
    M = NB * S

    # Full-lane-width per-head masks (hoisted, loop-invariant).  Avoids width-hd lane
    # slicing of q/k/v and the lane-axis concatenate of head outputs.
    dim_ids = jax.lax.broadcasted_iota(jnp.int32, (1, 1, D), 2)
    head_masks = [
        ((dim_ids >= h * hd) & (dim_ids < (h + 1) * hd)).astype(jnp.float32)
        for h in range(nhead)
    ]

    x3 = x_ref[...].astype(jnp.float32)                      # (NB, S, D)

    for l in range(num_layers):                              # all layers fused in one kernel
        x2 = x3.reshape(M, D)                                # fold (NB, S) into GEMM M dim
        xb = x2.astype(jnp.bfloat16)

        # ---- self-attention projections (bf16 GEMMs, f32 accumulate) ------------------
        q = (jnp.dot(xb, w_q_ref[l], preferred_element_type=jnp.float32)
             + b_q_ref[l]).reshape(NB, S, D)
        k = (jnp.dot(xb, w_k_ref[l], preferred_element_type=jnp.float32)
             + b_k_ref[l]).reshape(NB, S, D)
        v = (jnp.dot(xb, w_v_ref[l], preferred_element_type=jnp.float32)
             + b_v_ref[l]).reshape(NB, S, D)

        # ---- multi-head attention via head masks (full-width batched einsums) ---------
        attn = jnp.zeros((NB, S, D), jnp.float32)
        for h in range(nhead):
            mask = head_masks[h]                                        # (1, 1, D)
            s = jnp.einsum("nqd,nkd->nqk", q * mask, k,
                           preferred_element_type=jnp.float32) * scale  # (NB, S, S)
            s = s - jnp.max(s, axis=-1, keepdims=True)
            p = jnp.exp(s)
            p = p * pl.reciprocal(jnp.sum(p, axis=-1, keepdims=True), approx=True)
            oh = jnp.einsum("nqk,nkd->nqd", p, v,
                            preferred_element_type=jnp.float32)         # (NB, S, D)
            attn = attn + oh * mask

        attn = (jnp.dot(attn.reshape(M, D).astype(jnp.bfloat16), w_out_ref[l],
                        preferred_element_type=jnp.float32) + b_out_ref[l])

        # ---- residual + LayerNorm 1 (post-norm, f32) -----------------------------------
        y = _layer_norm(x2 + attn, ln1_w_ref[l], ln1_b_ref[l])

        # ---- feed-forward: Linear -> ReLU -> Linear (bf16 GEMMs, f32 accumulate) -------
        h1 = (jnp.dot(y.astype(jnp.bfloat16), w1_ref[l],
                      preferred_element_type=jnp.float32) + b1_ref[l])
        h1 = jnp.maximum(h1, 0.0)
        h2 = (jnp.dot(h1.astype(jnp.bfloat16), w2_ref[l],
                      preferred_element_type=jnp.float32) + b2_ref[l])

        # ---- residual + LayerNorm 2 -----------------------------------------------------
        z = _layer_norm(y + h2, ln2_w_ref[l], ln2_b_ref[l])
        x3 = z.reshape(NB, S, D)

    o_ref[...] = x3.astype(o_ref.dtype)


def _choose_seq_block(n_seq, seq_len):
    """How many sequences per grid step: ~512 GEMM rows, but keep >= 2 blocks (v7x 2 TCs)."""
    target_rows = 512
    nb = max(1, target_rows // max(seq_len, 1))
    nb = min(nb, n_seq)
    if n_seq >= 2 and pl.cdiv(n_seq, nb) < 2:
        nb = pl.cdiv(n_seq, 2)
    return nb


def mode_encoder_forward(x_bchw, params):
    """Equivalent of ModeEncoder.forward: x (B, C, H, W) -> (B, C, H, W)."""
    B, C, H, W = x_bchw.shape
    if W % NHEAD != 0:
        raise ValueError(f"d_model={W} must be divisible by nhead={NHEAD}")
    N, S, D = B * C, H, W
    num_layers = params["w_q"].shape[0]

    x = x_bchw.reshape(N, S, D).astype(jnp.float32)

    nb = _choose_seq_block(N, S)
    n_blocks = pl.cdiv(N, nb)
    n_pad = n_blocks * nb
    if n_pad != N:
        # zero-padded sequences are numerically safe (LN eps, softmax on zeros) and sliced off.
        x = jnp.pad(x, ((0, n_pad - N), (0, 0), (0, 0)))

    def const_spec(shape):
        nd = len(shape)
        return pl.BlockSpec(shape, lambda i, _nd=nd: (0,) * _nd)

    in_specs = [pl.BlockSpec((nb, S, D), lambda i: (i, 0, 0))]
    in_specs += [const_spec(tuple(params[name].shape)) for name in _PARAM_ORDER]

    kernel = functools.partial(_mode_encoder_kernel, nhead=NHEAD, num_layers=num_layers)

    out = pl.pallas_call(
        kernel,
        out_shape=jax.ShapeDtypeStruct((n_pad, S, D), jnp.float32),
        grid=(n_blocks,),
        in_specs=in_specs,
        out_specs=pl.BlockSpec((nb, S, D), lambda i: (i, 0, 0)),
        compiler_params=pltpu.CompilerParams(
            dimension_semantics=("parallel",),
            vmem_limit_bytes=48 * 1024 * 1024,   # <= v7x's 64 MiB/TC; fine on v5e/v6e too
        ),
    )(x, *(params[name] for name in _PARAM_ORDER))

    return out[:N].reshape(B, C, H, W)


def init_mode_encoder_params(key, input_dim, num_layers, ffn_dim=FFN_DIM):
    """Deterministic synthetic parameters, PyTorch layout, pre-transposed so the kernel computes
    x @ W; stacked over layers; linear weights in bf16, biases/LayerNorm params in f32."""
    D, F, L = input_dim, ffn_dim, num_layers
    wq, wk, wv, wo, w1, w2 = [], [], [], [], [], []
    for l in range(L):
        k = jax.random.fold_in(key, l)
        k1, k2, k3, k4 = jax.random.split(k, 4)
        w_in = jax.random.normal(k1, (3 * D, D), jnp.float32) * 0.02     # in_proj_weight
        wq.append(w_in[0 * D:1 * D].T)
        wk.append(w_in[1 * D:2 * D].T)
        wv.append(w_in[2 * D:3 * D].T)
        wo.append((jax.random.normal(k2, (D, D), jnp.float32) * 0.02).T)  # out_proj.weight
        w1.append((jax.random.normal(k3, (F, D), jnp.float32) * 0.02).T)  # linear1.weight
        w2.append((jax.random.normal(k4, (D, F), jnp.float32) * 0.02).T)  # linear2.weight

    stack_bf16 = lambda ws: jnp.stack(ws).astype(jnp.bfloat16)
    zeros = lambda shape: jnp.zeros((L,) + shape, jnp.float32)
    ones = lambda shape: jnp.ones((L,) + shape, jnp.float32)

    return {
        "w_q": stack_bf16(wq), "b_q": zeros((1, D)),
        "w_k": stack_bf16(wk), "b_k": zeros((1, D)),
        "w_v": stack_bf16(wv), "b_v": zeros((1, D)),
        "w_out": stack_bf16(wo), "b_out": zeros((1, D)),
        "ln1_w": ones((1, D)), "ln1_b": zeros((1, D)),
        "w1": stack_bf16(w1), "b1": zeros((1, F)),
        "w2": stack_bf16(w2), "b2": zeros((1, D)),
        "ln2_w": ones((1, D)), "ln2_b": zeros((1, D)),
    }


if __name__ == "__main__":
    key = jax.random.PRNGKey(0)
    B, C, H, W = 2, 4, 16, 32                 # W = d_model, must be divisible by nhead=4
    num_layers = 2

    kx, kp = jax.random.split(key)
    x = jax.random.normal(kx, (B, C, H, W), jnp.float32)
    params = init_mode_encoder_params(kp, input_dim=W, num_layers=num_layers)

    out = jax.block_until_ready(mode_encoder_forward(x, params))
    assert out.shape == (B, C, H, W)
    assert jnp.all(jnp.isfinite(out))
    print("KERNEL_OK")
</pallas_src>

<mosaic_0001>
module attributes {stable_mosaic.version = 11 : i64} {
  func.func @_mode_encoder_kernel(%arg0: i32, %arg1: memref<4x16x32xf32, #tpu.memory_space<vmem>>, %arg2: memref<2x32x32xbf16, #tpu.memory_space<vmem>>, %arg3: memref<2x1x32xf32, #tpu.memory_space<vmem>>, %arg4: memref<2x32x32xbf16, #tpu.memory_space<vmem>>, %arg5: memref<2x1x32xf32, #tpu.memory_space<vmem>>, %arg6: memref<2x32x32xbf16, #tpu.memory_space<vmem>>, %arg7: memref<2x1x32xf32, #tpu.memory_space<vmem>>, %arg8: memref<2x32x32xbf16, #tpu.memory_space<vmem>>, %arg9: memref<2x1x32xf32, #tpu.memory_space<vmem>>, %arg10: memref<2x1x32xf32, #tpu.memory_space<vmem>>, %arg11: memref<2x1x32xf32, #tpu.memory_space<vmem>>, %arg12: memref<2x32x2048xbf16, #tpu.memory_space<vmem>>, %arg13: memref<2x1x2048xf32, #tpu.memory_space<vmem>>, %arg14: memref<2x2048x32xbf16, #tpu.memory_space<vmem>>, %arg15: memref<2x1x32xf32, #tpu.memory_space<vmem>>, %arg16: memref<2x1x32xf32, #tpu.memory_space<vmem>>, %arg17: memref<2x1x32xf32, #tpu.memory_space<vmem>>, %arg18: memref<4x16x32xf32, #tpu.memory_space<vmem>>) attributes {dimension_semantics = [#tpu.dimension_semantics<parallel>], iteration_bounds = array<i64: 2>, scalar_prefetch = 0 : i64, scratch_operands = 0 : i64, tpu.core_type = #tpu.core_type<tc>, window_params = [{transform_indices = @transform_0, window_bounds = array<i64: 4, 16, 32>}, {pipeline_mode = #tpu.pipeline_mode<synchronous>, transform_indices = @transform_1, window_bounds = array<i64: 2, 32, 32>}, {pipeline_mode = #tpu.pipeline_mode<synchronous>, transform_indices = @transform_2, window_bounds = array<i64: 2, 1, 32>}, {pipeline_mode = #tpu.pipeline_mode<synchronous>, transform_indices = @transform_3, window_bounds = array<i64: 2, 32, 32>}, {pipeline_mode = #tpu.pipeline_mode<synchronous>, transform_indices = @transform_4, window_bounds = array<i64: 2, 1, 32>}, {pipeline_mode = #tpu.pipeline_mode<synchronous>, transform_indices = @transform_5, window_bounds = array<i64: 2, 32, 32>}, {pipeline_mode = #tpu.pipeline_mode<synchronous>, transform_indices = @transform_6, window_bounds = array<i64: 2, 1, 32>}, {pipeline_mode = #tpu.pipeline_mode<synchronous>, transform_indices = @transform_7, window_bounds = array<i64: 2, 32, 32>}, {pipeline_mode = #tpu.pipeline_mode<synchronous>, transform_indices = @transform_8, window_bounds = array<i64: 2, 1, 32>}, {pipeline_mode = #tpu.pipeline_mode<synchronous>, transform_indices = @transform_9, window_bounds = array<i64: 2, 1, 32>}, {pipeline_mode = #tpu.pipeline_mode<synchronous>, transform_indices = @transform_10, window_bounds = array<i64: 2, 1, 32>}, {pipeline_mode = #tpu.pipeline_mode<synchronous>, transform_indices = @transform_11, window_bounds = array<i64: 2, 32, 2048>}, {pipeline_mode = #tpu.pipeline_mode<synchronous>, transform_indices = @transform_12, window_bounds = array<i64: 2, 1, 2048>}, {pipeline_mode = #tpu.pipeline_mode<synchronous>, transform_indices = @transform_13, window_bounds = array<i64: 2, 2048, 32>}, {pipeline_mode = #tpu.pipeline_mode<synchronous>, transform_indices = @transform_14, window_bounds = array<i64: 2, 1, 32>}, {pipeline_mode = #tpu.pipeline_mode<synchronous>, transform_indices = @transform_15, window_bounds = array<i64: 2, 1, 32>}, {pipeline_mode = #tpu.pipeline_mode<synchronous>, transform_indices = @transform_16, window_bounds = array<i64: 2, 1, 32>}, {transform_indices = @transform_17, window_bounds = array<i64: 4, 16, 32>}]} {
    %0 = tpu.iota {dimensions = array<i32: 2>} : vector<1x1x32xi32>
    %c0_i32 = arith.constant 0 : i32
    %1 = vector.broadcast %c0_i32 : i32 to vector<1x1x32xi32>
    %2 = arith.cmpi sge, %0, %1 : vector<1x1x32xi32>
    %c8_i32 = arith.constant 8 : i32
    %3 = vector.broadcast %c8_i32 : i32 to vector<1x1x32xi32>
    %4 = arith.cmpi slt, %0, %3 : vector<1x1x32xi32>
    %5 = arith.andi %2, %4 : vector<1x1x32xi1>
    %6 = arith.extui %5 : vector<1x1x32xi1> to vector<1x1x32xi32>
    %7 = arith.sitofp %6 : vector<1x1x32xi32> to vector<1x1x32xf32>
    %c8_i32_0 = arith.constant 8 : i32
    %8 = vector.broadcast %c8_i32_0 : i32 to vector<1x1x32xi32>
    %9 = arith.cmpi sge, %0, %8 : vector<1x1x32xi32>
    %c16_i32 = arith.constant 16 : i32
    %10 = vector.broadcast %c16_i32 : i32 to vector<1x1x32xi32>
    %11 = arith.cmpi slt, %0, %10 : vector<1x1x32xi32>
    %12 = arith.andi %9, %11 : vector<1x1x32xi1>
    %13 = arith.extui %12 : vector<1x1x32xi1> to vector<1x1x32xi32>
    %14 = arith.sitofp %13 : vector<1x1x32xi32> to vector<1x1x32xf32>
    %c16_i32_1 = arith.constant 16 : i32
    %15 = vector.broadcast %c16_i32_1 : i32 to vector<1x1x32xi32>
    %16 = arith.cmpi sge, %0, %15 : vector<1x1x32xi32>
    %c24_i32 = arith.constant 24 : i32
    %17 = vector.broadcast %c24_i32 : i32 to vector<1x1x32xi32>
    %18 = arith.cmpi slt, %0, %17 : vector<1x1x32xi32>
    %19 = arith.andi %16, %18 : vector<1x1x32xi1>
    %20 = arith.extui %19 : vector<1x1x32xi1> to vector<1x1x32xi32>
    %21 = arith.sitofp %20 : vector<1x1x32xi32> to vector<1x1x32xf32>
    %c24_i32_2 = arith.constant 24 : i32
    %22 = vector.broadcast %c24_i32_2 : i32 to vector<1x1x32xi32>
    %23 = arith.cmpi sge, %0, %22 : vector<1x1x32xi32>
    %c32_i32 = arith.constant 32 : i32
    %24 = vector.broadcast %c32_i32 : i32 to vector<1x1x32xi32>
    %25 = arith.cmpi slt, %0, %24 : vector<1x1x32xi32>
    %26 = arith.andi %23, %25 : vector<1x1x32xi1>
    %27 = arith.extui %26 : vector<1x1x32xi1> to vector<1x1x32xi32>
    %28 = arith.sitofp %27 : vector<1x1x32xi32> to vector<1x1x32xf32>
    %c0 = arith.constant 0 : index
    %c0_3 = arith.constant 0 : index
    %c0_4 = arith.constant 0 : index
    %29 = vector.load %arg1[%c0, %c0_3, %c0_4] : memref<4x16x32xf32, #tpu.memory_space<vmem>>, vector<4x16x32xf32>
    %30 = vector.shape_cast %29 : vector<4x16x32xf32> to vector<64x32xf32>
    %31 = arith.truncf %30 : vector<64x32xf32> to vector<64x32xbf16>
    %c0_5 = arith.constant 0 : index
    %c0_6 = arith.constant 0 : index
    %c0_7 = arith.constant 0 : index
    %32 = vector.load %arg2[%c0_5, %c0_6, %c0_7] : memref<2x32x32xbf16, #tpu.memory_space<vmem>>, vector<1x32x32xbf16>
    %33 = vector.shape_cast %32 : vector<1x32x32xbf16> to vector<32x32xbf16>
    %cst = arith.constant dense<0.000000e+00> : vector<64x32xf32>
    %34 = tpu.matmul %31, %33, %cst {dimension_numbers = #tpu.dot_dimension_numbers<[1], [0], [0], [1], [0, 0, 1, 1], [], []>} : vector<64x32xbf16>, vector<32x32xbf16>, vector<64x32xf32> -> vector<64x32xf32>
    %c0_8 = arith.constant 0 : index
    %c0_9 = arith.constant 0 : index
    %c0_10 = arith.constant 0 : index
    %35 = vector.load %arg3[%c0_8, %c0_9, %c0_10] : memref<2x1x32xf32, #tpu.memory_space<vmem>>, vector<1x1x32xf32>
    %36 = vector.shape_cast %35 : vector<1x1x32xf32> to vector<1x32xf32>
    %37 = vector.broadcast %36 : vector<1x32xf32> to vector<64x32xf32>
    %38 = arith.addf %34, %37 : vector<64x32xf32>
    %39 = vector.shape_cast %38 : vector<64x32xf32> to vector<4x16x32xf32>
    %c0_11 = arith.constant 0 : index
    %c0_12 = arith.constant 0 : index
    %c0_13 = arith.constant 0 : index
    %40 = vector.load %arg4[%c0_11, %c0_12, %c0_13] : memref<2x32x32xbf16, #tpu.memory_space<vmem>>, vector<1x32x32xbf16>
    %41 = vector.shape_cast %40 : vector<1x32x32xbf16> to vector<32x32xbf16>
    %cst_14 = arith.constant dense<0.000000e+00> : vector<64x32xf32>
    %42 = tpu.matmul %31, %41, %cst_14 {dimension_numbers = #tpu.dot_dimension_numbers<[1], [0], [0], [1], [0, 0, 1, 1], [], []>} : vector<64x32xbf16>, vector<32x32xbf16>, vector<64x32xf32> -> vector<64x32xf32>
    %c0_15 = arith.constant 0 : index
    %c0_16 = arith.constant 0 : index
    %c0_17 = arith.constant 0 : index
    %43 = vector.load %arg5[%c0_15, %c0_16, %c0_17] : memref<2x1x32xf32, #tpu.memory_space<vmem>>, vector<1x1x32xf32>
    %44 = vector.shape_cast %43 : vector<1x1x32xf32> to vector<1x32xf32>
    %45 = vector.broadcast %44 : vector<1x32xf32> to vector<64x32xf32>
    %46 = arith.addf %42, %45 : vector<64x32xf32>
    %47 = vector.shape_cast %46 : vector<64x32xf32> to vector<4x16x32xf32>
    %c0_18 = arith.constant 0 : index
    %c0_19 = arith.constant 0 : index
    %c0_20 = arith.constant 0 : index
    %48 = vector.load %arg6[%c0_18, %c0_19, %c0_20] : memref<2x32x32xbf16, #tpu.memory_space<vmem>>, vector<1x32x32xbf16>
    %49 = vector.shape_cast %48 : vector<1x32x32xbf16> to vector<32x32xbf16>
    %cst_21 = arith.constant dense<0.000000e+00> : vector<64x32xf32>
    %50 = tpu.matmul %31, %49, %cst_21 {dimension_numbers = #tpu.dot_dimension_numbers<[1], [0], [0], [1], [0, 0, 1, 1], [], []>} : vector<64x32xbf16>, vector<32x32xbf16>, vector<64x32xf32> -> vector<64x32xf32>
    %c0_22 = arith.constant 0 : index
    %c0_23 = arith.constant 0 : index
    %c0_24 = arith.constant 0 : index
    %51 = vector.load %arg7[%c0_22, %c0_23, %c0_24] : memref<2x1x32xf32, #tpu.memory_space<vmem>>, vector<1x1x32xf32>
    %52 = vector.shape_cast %51 : vector<1x1x32xf32> to vector<1x32xf32>
    %53 = vector.broadcast %52 : vector<1x32xf32> to vector<64x32xf32>
    %54 = arith.addf %50, %53 : vector<64x32xf32>
    %55 = vector.shape_cast %54 : vector<64x32xf32> to vector<4x16x32xf32>
    %cst_25 = arith.constant 0.000000e+00 : f32
    %56 = vector.broadcast %cst_25 : f32 to vector<4x16x32xf32>
    %57 = vector.broadcast %7 : vector<1x1x32xf32> to vector<4x16x32xf32>
    %58 = arith.mulf %39, %57 : vector<4x16x32xf32>
    "tpu.trace_start"() <{level = 10 : i32, message = "nqd,nkd->nqk"}> : () -> ()
    %cst_26 = arith.constant dense<0.000000e+00> : vector<4x16x16xf32>
    %59 = tpu.matmul %58, %47, %cst_26 {dimension_numbers = #tpu.dot_dimension_numbers<[2], [2], [1], [1], [0, 0, 0, 1, 1, 1], [0], [0]>} : vector<4x16x32xf32>, vector<4x16x32xf32>, vector<4x16x16xf32> -> vector<4x16x16xf32>
    "tpu.trace_stop"() : () -> ()
    %cst_27 = arith.constant 0.353553385 : f32
    %60 = vector.broadcast %cst_27 : f32 to vector<4x16x16xf32>
    %61 = arith.mulf %59, %60 : vector<4x16x16xf32>
    %cst_28 = arith.constant dense<0xFF800000> : vector<4x16xf32>
    %62 = vector.multi_reduction <maximumf>, %61, %cst_28 [2] : vector<4x16x16xf32> to vector<4x16xf32>
    %63 = vector.shape_cast %62 : vector<4x16xf32> to vector<4x16x1xf32>
    %64 = vector.broadcast %63 : vector<4x16x1xf32> to vector<4x16x16xf32>
    %65 = arith.subf %61, %64 : vector<4x16x16xf32>
    %66 = math.exp %65 : vector<4x16x16xf32>
    %cst_29 = arith.constant dense<0.000000e+00> : vector<4x16xf32>
    %67 = vector.multi_reduction <add>, %66, %cst_29 [2] : vector<4x16x16xf32> to vector<4x16xf32>
    %68 = vector.shape_cast %67 : vector<4x16xf32> to vector<4x16x1xf32>
    %69 = tpu.reciprocal %68 {approx = true} : vector<4x16x1xf32> -> vector<4x16x1xf32>
    %70 = vector.broadcast %69 : vector<4x16x1xf32> to vector<4x16x16xf32>
    %71 = arith.mulf %66, %70 : vector<4x16x16xf32>
    "tpu.trace_start"() <{level = 10 : i32, message = "nqk,nkd->nqd"}> : () -> ()
    %cst_30 = arith.constant dense<0.000000e+00> : vector<4x16x32xf32>
    %72 = tpu.matmul %71, %55, %cst_30 {dimension_numbers = #tpu.dot_dimension_numbers<[2], [1], [1], [2], [0, 0, 0, 1, 1, 2], [0], [0]>} : vector<4x16x16xf32>, vector<4x16x32xf32>, vector<4x16x32xf32> -> vector<4x16x32xf32>
    "tpu.trace_stop"() : () -> ()
    %73 = vector.broadcast %7 : vector<1x1x32xf32> to vector<4x16x32xf32>
    %74 = arith.mulf %72, %73 : vector<4x16x32xf32>
    %75 = arith.addf %56, %74 : vector<4x16x32xf32>
    %76 = vector.broadcast %14 : vector<1x1x32xf32> to vector<4x16x32xf32>
    %77 = arith.mulf %39, %76 : vector<4x16x32xf32>
    "tpu.trace_start"() <{level = 10 : i32, message = "nqd,nkd->nqk"}> : () -> ()
    %cst_31 = arith.constant dense<0.000000e+00> : vector<4x16x16xf32>
    %78 = tpu.matmul %77, %47, %cst_31 {dimension_numbers = #tpu.dot_dimension_numbers<[2], [2], [1], [1], [0, 0, 0, 1, 1, 1], [0], [0]>} : vector<4x16x32xf32>, vector<4x16x32xf32>, vector<4x16x16xf32> -> vector<4x16x16xf32>
    "tpu.trace_stop"() : () -> ()
    %cst_32 = arith.constant 0.353553385 : f32
    %79 = vector.broadcast %cst_32 : f32 to vector<4x16x16xf32>
    %80 = arith.mulf %78, %79 : vector<4x16x16xf32>
    %cst_33 = arith.constant dense<0xFF800000> : vector<4x16xf32>
    %81 = vector.multi_reduction <maximumf>, %80, %cst_33 [2] : vector<4x16x16xf32> to vector<4x16xf32>
    %82 = vector.shape_cast %81 : vector<4x16xf32> to vector<4x16x1xf32>
    %83 = vector.broadcast %82 : vector<4x16x1xf32> to vector<4x16x16xf32>
    %84 = arith.subf %80, %83 : vector<4x16x16xf32>
    %85 = math.exp %84 : vector<4x16x16xf32>
    %cst_34 = arith.constant dense<0.000000e+00> : vector<4x16xf32>
    %86 = vector.multi_reduction <add>, %85, %cst_34 [2] : vector<4x16x16xf32> to vector<4x16xf32>
    %87 = vector.shape_cast %86 : vector<4x16xf32> to vector<4x16x1xf32>
    %88 = tpu.reciprocal %87 {approx = true} : vector<4x16x1xf32> -> vector<4x16x1xf32>
    %89 = vector.broadcast %88 : vector<4x16x1xf32> to vector<4x16x16xf32>
    %90 = arith.mulf %85, %89 : vector<4x16x16xf32>
    "tpu.trace_start"() <{level = 10 : i32, message = "nqk,nkd->nqd"}> : () -> ()
    %cst_35 = arith.constant dense<0.000000e+00> : vector<4x16x32xf32>
    %91 = tpu.matmul %90, %55, %cst_35 {dimension_numbers = #tpu.dot_dimension_numbers<[2], [1], [1], [2], [0, 0, 0, 1, 1, 2], [0], [0]>} : vector<4x16x16xf32>, vector<4x16x32xf32>, vector<4x16x32xf32> -> vector<4x16x32xf32>
    "tpu.trace_stop"() : () -> ()
    %92 = vector.broadcast %14 : vector<1x1x32xf32> to vector<4x16x32xf32>
    %93 = arith.mulf %91, %92 : vector<4x16x32xf32>
    %94 = arith.addf %75, %93 : vector<4x16x32xf32>
    %95 = vector.broadcast %21 : vector<1x1x32xf32> to vector<4x16x32xf32>
    %96 = arith.mulf %39, %95 : vector<4x16x32xf32>
    "tpu.trace_start"() <{level = 10 : i32, message = "nqd,nkd->nqk"}> : () -> ()
    %cst_36 = arith.constant dense<0.000000e+00> : vector<4x16x16xf32>
    %97 = tpu.matmul %96, %47, %cst_36 {dimension_numbers = #tpu.dot_dimension_numbers<[2], [2], [1], [1], [0, 0, 0, 1, 1, 1], [0], [0]>} : vector<4x16x32xf32>, vector<4x16x32xf32>, vector<4x16x16xf32> -> vector<4x16x16xf32>
    "tpu.trace_stop"() : () -> ()
    %cst_37 = arith.constant 0.353553385 : f32
    %98 = vector.broadcast %cst_37 : f32 to vector<4x16x16xf32>
    %99 = arith.mulf %97, %98 : vector<4x16x16xf32>
    %cst_38 = arith.constant dense<0xFF800000> : vector<4x16xf32>
    %100 = vector.multi_reduction <maximumf>, %99, %cst_38 [2] : vector<4x16x16xf32> to vector<4x16xf32>
    %101 = vector.shape_cast %100 : vector<4x16xf32> to vector<4x16x1xf32>
    %102 = vector.broadcast %101 : vector<4x16x1xf32> to vector<4x16x16xf32>
    %103 = arith.subf %99, %102 : vector<4x16x16xf32>
    %104 = math.exp %103 : vector<4x16x16xf32>
    %cst_39 = arith.constant dense<0.000000e+00> : vector<4x16xf32>
    %105 = vector.multi_reduction <add>, %104, %cst_39 [2] : vector<4x16x16xf32> to vector<4x16xf32>
    %106 = vector.shape_cast %105 : vector<4x16xf32> to vector<4x16x1xf32>
    %107 = tpu.reciprocal %106 {approx = true} : vector<4x16x1xf32> -> vector<4x16x1xf32>
    %108 = vector.broadcast %107 : vector<4x16x1xf32> to vector<4x16x16xf32>
    %109 = arith.mulf %104, %108 : vector<4x16x16xf32>
    "tpu.trace_start"() <{level = 10 : i32, message = "nqk,nkd->nqd"}> : () -> ()
    %cst_40 = arith.constant dense<0.000000e+00> : vector<4x16x32xf32>
    %110 = tpu.matmul %109, %55, %cst_40 {dimension_numbers = #tpu.dot_dimension_numbers<[2], [1], [1], [2], [0, 0, 0, 1, 1, 2], [0], [0]>} : vector<4x16x16xf32>, vector<4x16x32xf32>, vector<4x16x32xf32> -> vector<4x16x32xf32>
    "tpu.trace_stop"() : () -> ()
    %111 = vector.broadcast %21 : vector<1x1x32xf32> to vector<4x16x32xf32>
    %112 = arith.mulf %110, %111 : vector<4x16x32xf32>
    %113 = arith.addf %94, %112 : vector<4x16x32xf32>
    %114 = vector.broadcast %28 : vector<1x1x32xf32> to vector<4x16x32xf32>
    %115 = arith.mulf %39, %114 : vector<4x16x32xf32>
    "tpu.trace_start"() <{level = 10 : i32, message = "nqd,nkd->nqk"}> : () -> ()
    %cst_41 = arith.constant dense<0.000000e+00> : vector<4x16x16xf32>
    %116 = tpu.matmul %115, %47, %cst_41 {dimension_numbers = #tpu.dot_dimension_numbers<[2], [2], [1], [1], [0, 0, 0, 1, 1, 1], [0], [0]>} : vector<4x16x32xf32>, vector<4x16x32xf32>, vector<4x16x16xf32> -> vector<4x16x16xf32>
    "tpu.trace_stop"() : () -> ()
    %cst_42 = arith.constant 0.353553385 : f32
    %117 = vector.broadcast %cst_42 : f32 to vector<4x16x16xf32>
    %118 = arith.mulf %116, %117 : vector<4x16x16xf32>
    %cst_43 = arith.constant dense<0xFF800000> : vector<4x16xf32>
    %119 = vector.multi_reduction <maximumf>, %118, %cst_43 [2] : vector<4x16x16xf32> to vector<4x16xf32>
    %120 = vector.shape_cast %119 : vector<4x16xf32> to vector<4x16x1xf32>
    %121 = vector.broadcast %120 : vector<4x16x1xf32> to vector<4x16x16xf32>
    %122 = arith.subf %118, %121 : vector<4x16x16xf32>
    %123 = math.exp %122 : vector<4x16x16xf32>
    %cst_44 = arith.constant dense<0.000000e+00> : vector<4x16xf32>
    %124 = vector.multi_reduction <add>, %123, %cst_44 [2] : vector<4x16x16xf32> to vector<4x16xf32>
    %125 = vector.shape_cast %124 : vector<4x16xf32> to vector<4x16x1xf32>
    %126 = tpu.reciprocal %125 {approx = true} : vector<4x16x1xf32> -> vector<4x16x1xf32>
    %127 = vector.broadcast %126 : vector<4x16x1xf32> to vector<4x16x16xf32>
    %128 = arith.mulf %123, %127 : vector<4x16x16xf32>
    "tpu.trace_start"() <{level = 10 : i32, message = "nqk,nkd->nqd"}> : () -> ()
    %cst_45 = arith.constant dense<0.000000e+00> : vector<4x16x32xf32>
    %129 = tpu.matmul %128, %55, %cst_45 {dimension_numbers = #tpu.dot_dimension_numbers<[2], [1], [1], [2], [0, 0, 0, 1, 1, 2], [0], [0]>} : vector<4x16x16xf32>, vector<4x16x32xf32>, vector<4x16x32xf32> -> vector<4x16x32xf32>
    "tpu.trace_stop"() : () -> ()
    %130 = vector.broadcast %28 : vector<1x1x32xf32> to vector<4x16x32xf32>
    %131 = arith.mulf %129, %130 : vector<4x16x32xf32>
    %132 = arith.addf %113, %131 : vector<4x16x32xf32>
    %133 = vector.shape_cast %132 : vector<4x16x32xf32> to vector<64x32xf32>
    %134 = arith.truncf %133 : vector<64x32xf32> to vector<64x32xbf16>
    %c0_46 = arith.constant 0 : index
    %c0_47 = arith.constant 0 : index
    %c0_48 = arith.constant 0 : index
    %135 = vector.load %arg8[%c0_46, %c0_47, %c0_48] : memref<2x32x32xbf16, #tpu.memory_space<vmem>>, vector<1x32x32xbf16>
    %136 = vector.shape_cast %135 : vector<1x32x32xbf16> to vector<32x32xbf16>
    %cst_49 = arith.constant dense<0.000000e+00> : vector<64x32xf32>
    %137 = tpu.matmul %134, %136, %cst_49 {dimension_numbers = #tpu.dot_dimension_numbers<[1], [0], [0], [1], [0, 0, 1, 1], [], []>} : vector<64x32xbf16>, vector<32x32xbf16>, vector<64x32xf32> -> vector<64x32xf32>
    %c0_50 = arith.constant 0 : index
    %c0_51 = arith.constant 0 : index
    %c0_52 = arith.constant 0 : index
    %138 = vector.load %arg9[%c0_50, %c0_51, %c0_52] : memref<2x1x32xf32, #tpu.memory_space<vmem>>, vector<1x1x32xf32>
    %139 = vector.shape_cast %138 : vector<1x1x32xf32> to vector<1x32xf32>
    %140 = vector.broadcast %139 : vector<1x32xf32> to vector<64x32xf32>
    %141 = arith.addf %137, %140 : vector<64x32xf32>
    %142 = arith.addf %30, %141 : vector<64x32xf32>
    %c0_53 = arith.constant 0 : index
    %c0_54 = arith.constant 0 : index
    %c0_55 = arith.constant 0 : index
    %143 = vector.load %arg10[%c0_53, %c0_54, %c0_55] : memref<2x1x32xf32, #tpu.memory_space<vmem>>, vector<1x1x32xf32>
    %144 = vector.shape_cast %143 : vector<1x1x32xf32> to vector<1x32xf32>
    %c0_56 = arith.constant 0 : index
    %c0_57 = arith.constant 0 : index
    %c0_58 = arith.constant 0 : index
    %145 = vector.load %arg11[%c0_56, %c0_57, %c0_58] : memref<2x1x32xf32, #tpu.memory_space<vmem>>, vector<1x1x32xf32>
    %146 = vector.shape_cast %145 : vector<1x1x32xf32> to vector<1x32xf32>
    %cst_59 = arith.constant dense<0.000000e+00> : vector<64xf32>
    %147 = vector.multi_reduction <add>, %142, %cst_59 [1] : vector<64x32xf32> to vector<64xf32>
    %148 = vector.shape_cast %147 : vector<64xf32> to vector<64x1xf32>
    %cst_60 = arith.constant 3.200000e+01 : f32
    %149 = vector.broadcast %cst_60 : f32 to vector<64x1xf32>
    %150 = arith.divf %148, %149 : vector<64x1xf32>
    %151 = vector.broadcast %150 : vector<64x1xf32> to vector<64x32xf32>
    %152 = arith.subf %142, %151 : vector<64x32xf32>
    %153 = arith.mulf %152, %152 : vector<64x32xf32>
    %cst_61 = arith.constant dense<0.000000e+00> : vector<64xf32>
    %154 = vector.multi_reduction <add>, %153, %cst_61 [1] : vector<64x32xf32> to vector<64xf32>
    %155 = vector.shape_cast %154 : vector<64xf32> to vector<64x1xf32>
    %cst_62 = arith.constant 3.200000e+01 : f32
    %156 = vector.broadcast %cst_62 : f32 to vector<64x1xf32>
    %157 = arith.divf %155, %156 : vector<64x1xf32>
    %158 = vector.broadcast %150 : vector<64x1xf32> to vector<64x32xf32>
    %159 = arith.subf %142, %158 : vector<64x32xf32>
    %cst_63 = arith.constant 9.99999974E-6 : f32
    %160 = vector.broadcast %cst_63 : f32 to vector<64x1xf32>
    %161 = arith.addf %157, %160 : vector<64x1xf32>
    %162 = math.rsqrt %161 : vector<64x1xf32>
    %163 = vector.broadcast %162 : vector<64x1xf32> to vector<64x32xf32>
    %164 = arith.mulf %159, %163 : vector<64x32xf32>
    %165 = vector.broadcast %144 : vector<1x32xf32> to vector<64x32xf32>
    %166 = arith.mulf %164, %165 : vector<64x32xf32>
    %167 = vector.broadcast %146 : vector<1x32xf32> to vector<64x32xf32>
    %168 = arith.addf %166, %167 : vector<64x32xf32>
    %169 = arith.truncf %168 : vector<64x32xf32> to vector<64x32xbf16>
    %c0_64 = arith.constant 0 : index
    %c0_65 = arith.constant 0 : index
    %c0_66 = arith.constant 0 : index
    %170 = vector.load %arg12[%c0_64, %c0_65, %c0_66] : memref<2x32x2048xbf16, #tpu.memory_space<vmem>>, vector<1x32x2048xbf16>
    %171 = vector.shape_cast %170 : vector<1x32x2048xbf16> to vector<32x2048xbf16>
    %cst_67 = arith.constant dense<0.000000e+00> : vector<64x2048xf32>
    %172 = tpu.matmul %169, %171, %cst_67 {dimension_numbers = #tpu.dot_dimension_numbers<[1], [0], [0], [1], [0, 0, 1, 1], [], []>} : vector<64x32xbf16>, vector<32x2048xbf16>, vector<64x2048xf32> -> vector<64x2048xf32>
    %c0_68 = arith.constant 0 : index
    %c0_69 = arith.constant 0 : index
    %c0_70 = arith.constant 0 : index
    %173 = vector.load %arg13[%c0_68, %c0_69, %c0_70] : memref<2x1x2048xf32, #tpu.memory_space<vmem>>, vector<1x1x2048xf32>
    %174 = vector.shape_cast %173 : vector<1x1x2048xf32> to vector<1x2048xf32>
    %175 = vector.broadcast %174 : vector<1x2048xf32> to vector<64x2048xf32>
    %176 = arith.addf %172, %175 : vector<64x2048xf32>
    %cst_71 = arith.constant 0.000000e+00 : f32
    %177 = vector.broadcast %cst_71 : f32 to vector<64x2048xf32>
    %178 = arith.maximumf %176, %177 : vector<64x2048xf32>
    %179 = arith.truncf %178 : vector<64x2048xf32> to vector<64x2048xbf16>
    %c0_72 = arith.constant 0 : index
    %c0_73 = arith.constant 0 : index
    %c0_74 = arith.constant 0 : index
    %180 = vector.load %arg14[%c0_72, %c0_73, %c0_74] : memref<2x2048x32xbf16, #tpu.memory_space<vmem>>, vector<1x2048x32xbf16>
    %181 = vector.shape_cast %180 : vector<1x2048x32xbf16> to vector<2048x32xbf16>
    %cst_75 = arith.constant dense<0.000000e+00> : vector<64x32xf32>
    %182 = tpu.matmul %179, %181, %cst_75 {dimension_numbers = #tpu.dot_dimension_numbers<[1], [0], [0], [1], [0, 0, 1, 1], [], []>} : vector<64x2048xbf16>, vector<2048x32xbf16>, vector<64x32xf32> -> vector<64x32xf32>
    %c0_76 = arith.constant 0 : index
    %c0_77 = arith.constant 0 : index
    %c0_78 = arith.constant 0 : index
    %183 = vector.load %arg15[%c0_76, %c0_77, %c0_78] : memref<2x1x32xf32, #tpu.memory_space<vmem>>, vector<1x1x32xf32>
    %184 = vector.shape_cast %183 : vector<1x1x32xf32> to vector<1x32xf32>
    %185 = vector.broadcast %184 : vector<1x32xf32> to vector<64x32xf32>
    %186 = arith.addf %182, %185 : vector<64x32xf32>
    %187 = arith.addf %168, %186 : vector<64x32xf32>
    %c0_79 = arith.constant 0 : index
    %c0_80 = arith.constant 0 : index
    %c0_81 = arith.constant 0 : index
    %188 = vector.load %arg16[%c0_79, %c0_80, %c0_81] : memref<2x1x32xf32, #tpu.memory_space<vmem>>, vector<1x1x32xf32>
    %189 = vector.shape_cast %188 : vector<1x1x32xf32> to vector<1x32xf32>
    %c0_82 = arith.constant 0 : index
    %c0_83 = arith.constant 0 : index
    %c0_84 = arith.constant 0 : index
    %190 = vector.load %arg17[%c0_82, %c0_83, %c0_84] : memref<2x1x32xf32, #tpu.memory_space<vmem>>, vector<1x1x32xf32>
    %191 = vector.shape_cast %190 : vector<1x1x32xf32> to vector<1x32xf32>
    %cst_85 = arith.constant dense<0.000000e+00> : vector<64xf32>
    %192 = vector.multi_reduction <add>, %187, %cst_85 [1] : vector<64x32xf32> to vector<64xf32>
    %193 = vector.shape_cast %192 : vector<64xf32> to vector<64x1xf32>
    %cst_86 = arith.constant 3.200000e+01 : f32
    %194 = vector.broadcast %cst_86 : f32 to vector<64x1xf32>
    %195 = arith.divf %193, %194 : vector<64x1xf32>
    %196 = vector.broadcast %195 : vector<64x1xf32> to vector<64x32xf32>
    %197 = arith.subf %187, %196 : vector<64x32xf32>
    %198 = arith.mulf %197, %197 : vector<64x32xf32>
    %cst_87 = arith.constant dense<0.000000e+00> : vector<64xf32>
    %199 = vector.multi_reduction <add>, %198, %cst_87 [1] : vector<64x32xf32> to vector<64xf32>
    %200 = vector.shape_cast %199 : vector<64xf32> to vector<64x1xf32>
    %cst_88 = arith.constant 3.200000e+01 : f32
    %201 = vector.broadcast %cst_88 : f32 to vector<64x1xf32>
    %202 = arith.divf %200, %201 : vector<64x1xf32>
    %203 = vector.broadcast %195 : vector<64x1xf32> to vector<64x32xf32>
    %204 = arith.subf %187, %203 : vector<64x32xf32>
    %cst_89 = arith.constant 9.99999974E-6 : f32
    %205 = vector.broadcast %cst_89 : f32 to vector<64x1xf32>
    %206 = arith.addf %202, %205 : vector<64x1xf32>
    %207 = math.rsqrt %206 : vector<64x1xf32>
    %208 = vector.broadcast %207 : vector<64x1xf32> to vector<64x32xf32>
    %209 = arith.mulf %204, %208 : vector<64x32xf32>
    %210 = vector.broadcast %189 : vector<1x32xf32> to vector<64x32xf32>
    %211 = arith.mulf %209, %210 : vector<64x32xf32>
    %212 = vector.broadcast %191 : vector<1x32xf32> to vector<64x32xf32>
    %213 = arith.addf %211, %212 : vector<64x32xf32>
    %214 = vector.shape_cast %213 : vector<64x32xf32> to vector<4x16x32xf32>
    %215 = vector.shape_cast %214 : vector<4x16x32xf32> to vector<64x32xf32>
    %216 = arith.truncf %215 : vector<64x32xf32> to vector<64x32xbf16>
    %c1 = arith.constant 1 : index
    %c0_90 = arith.constant 0 : index
    %c0_91 = arith.constant 0 : index
    %217 = vector.load %arg2[%c1, %c0_90, %c0_91] : memref<2x32x32xbf16, #tpu.memory_space<vmem>>, vector<1x32x32xbf16>
    %218 = vector.shape_cast %217 : vector<1x32x32xbf16> to vector<32x32xbf16>
    %cst_92 = arith.constant dense<0.000000e+00> : vector<64x32xf32>
    %219 = tpu.matmul %216, %218, %cst_92 {dimension_numbers = #tpu.dot_dimension_numbers<[1], [0], [0], [1], [0, 0, 1, 1], [], []>} : vector<64x32xbf16>, vector<32x32xbf16>, vector<64x32xf32> -> vector<64x32xf32>
    %c1_93 = arith.constant 1 : index
    %c0_94 = arith.constant 0 : index
    %c0_95 = arith.constant 0 : index
    %220 = vector.load %arg3[%c1_93, %c0_94, %c0_95] : memref<2x1x32xf32, #tpu.memory_space<vmem>>, vector<1x1x32xf32>
    %221 = vector.shape_cast %220 : vector<1x1x32xf32> to vector<1x32xf32>
    %222 = vector.broadcast %221 : vector<1x32xf32> to vector<64x32xf32>
    %223 = arith.addf %219, %222 : vector<64x32xf32>
    %224 = vector.shape_cast %223 : vector<64x32xf32> to vector<4x16x32xf32>
    %c1_96 = arith.constant 1 : index
    %c0_97 = arith.constant 0 : index
    %c0_98 = arith.constant 0 : index
    %225 = vector.load %arg4[%c1_96, %c0_97, %c0_98] : memref<2x32x32xbf16, #tpu.memory_space<vmem>>, vector<1x32x32xbf16>
    %226 = vector.shape_cast %225 : vector<1x32x32xbf16> to vector<32x32xbf16>
    %cst_99 = arith.constant dense<0.000000e+00> : vector<64x32xf32>
    %227 = tpu.matmul %216, %226, %cst_99 {dimension_numbers = #tpu.dot_dimension_numbers<[1], [0], [0], [1], [0, 0, 1, 1], [], []>} : vector<64x32xbf16>, vector<32x32xbf16>, vector<64x32xf32> -> vector<64x32xf32>
    %c1_100 = arith.constant 1 : index
    %c0_101 = arith.constant 0 : index
    %c0_102 = arith.constant 0 : index
    %228 = vector.load %arg5[%c1_100, %c0_101, %c0_102] : memref<2x1x32xf32, #tpu.memory_space<vmem>>, vector<1x1x32xf32>
    %229 = vector.shape_cast %228 : vector<1x1x32xf32> to vector<1x32xf32>
    %230 = vector.broadcast %229 : vector<1x32xf32> to vector<64x32xf32>
    %231 = arith.addf %227, %230 : vector<64x32xf32>
    %232 = vector.shape_cast %231 : vector<64x32xf32> to vector<4x16x32xf32>
    %c1_103 = arith.constant 1 : index
    %c0_104 = arith.constant 0 : index
    %c0_105 = arith.constant 0 : index
    %233 = vector.load %arg6[%c1_103, %c0_104, %c0_105] : memref<2x32x32xbf16, #tpu.memory_space<vmem>>, vector<1x32x32xbf16>
    %234 = vector.shape_cast %233 : vector<1x32x32xbf16> to vector<32x32xbf16>
    %cst_106 = arith.constant dense<0.000000e+00> : vector<64x32xf32>
    %235 = tpu.matmul %216, %234, %cst_106 {dimension_numbers = #tpu.dot_dimension_numbers<[1], [0], [0], [1], [0, 0, 1, 1], [], []>} : vector<64x32xbf16>, vector<32x32xbf16>, vector<64x32xf32> -> vector<64x32xf32>
    %c1_107 = arith.constant 1 : index
    %c0_108 = arith.constant 0 : index
    %c0_109 = arith.constant 0 : index
    %236 = vector.load %arg7[%c1_107, %c0_108, %c0_109] : memref<2x1x32xf32, #tpu.memory_space<vmem>>, vector<1x1x32xf32>
    %237 = vector.shape_cast %236 : vector<1x1x32xf32> to vector<1x32xf32>
    %238 = vector.broadcast %237 : vector<1x32xf32> to vector<64x32xf32>
    %239 = arith.addf %235, %238 : vector<64x32xf32>
    %240 = vector.shape_cast %239 : vector<64x32xf32> to vector<4x16x32xf32>
    %cst_110 = arith.constant 0.000000e+00 : f32
    %241 = vector.broadcast %cst_110 : f32 to vector<4x16x32xf32>
    %242 = vector.broadcast %7 : vector<1x1x32xf32> to vector<4x16x32xf32>
    %243 = arith.mulf %224, %242 : vector<4x16x32xf32>
    "tpu.trace_start"() <{level = 10 : i32, message = "nqd,nkd->nqk"}> : () -> ()
    %cst_111 = arith.constant dense<0.000000e+00> : vector<4x16x16xf32>
    %244 = tpu.matmul %243, %232, %cst_111 {dimension_numbers = #tpu.dot_dimension_numbers<[2], [2], [1], [1], [0, 0, 0, 1, 1, 1], [0], [0]>} : vector<4x16x32xf32>, vector<4x16x32xf32>, vector<4x16x16xf32> -> vector<4x16x16xf32>
    "tpu.trace_stop"() : () -> ()
    %cst_112 = arith.constant 0.353553385 : f32
    %245 = vector.broadcast %cst_112 : f32 to vector<4x16x16xf32>
    %246 = arith.mulf %244, %245 : vector<4x16x16xf32>
    %cst_113 = arith.constant dense<0xFF800000> : vector<4x16xf32>
    %247 = vector.multi_reduction <maximumf>, %246, %cst_113 [2] : vector<4x16x16xf32> to vector<4x16xf32>
    %248 = vector.shape_cast %247 : vector<4x16xf32> to vector<4x16x1xf32>
    %249 = vector.broadcast %248 : vector<4x16x1xf32> to vector<4x16x16xf32>
    %250 = arith.subf %246, %249 : vector<4x16x16xf32>
    %251 = math.exp %250 : vector<4x16x16xf32>
    %cst_114 = arith.constant dense<0.000000e+00> : vector<4x16xf32>
    %252 = vector.multi_reduction <add>, %251, %cst_114 [2] : vector<4x16x16xf32> to vector<4x16xf32>
    %253 = vector.shape_cast %252 : vector<4x16xf32> to vector<4x16x1xf32>
    %254 = tpu.reciprocal %253 {approx = true} : vector<4x16x1xf32> -> vector<4x16x1xf32>
    %255 = vector.broadcast %254 : vector<4x16x1xf32> to vector<4x16x16xf32>
    %256 = arith.mulf %251, %255 : vector<4x16x16xf32>
    "tpu.trace_start"() <{level = 10 : i32, message = "nqk,nkd->nqd"}> : () -> ()
    %cst_115 = arith.constant dense<0.000000e+00> : vector<4x16x32xf32>
    %257 = tpu.matmul %256, %240, %cst_115 {dimension_numbers = #tpu.dot_dimension_numbers<[2], [1], [1], [2], [0, 0, 0, 1, 1, 2], [0], [0]>} : vector<4x16x16xf32>, vector<4x16x32xf32>, vector<4x16x32xf32> -> vector<4x16x32xf32>
    "tpu.trace_stop"() : () -> ()
    %258 = vector.broadcast %7 : vector<1x1x32xf32> to vector<4x16x32xf32>
    %259 = arith.mulf %257, %258 : vector<4x16x32xf32>
    %260 = arith.addf %241, %259 : vector<4x16x32xf32>
    %261 = vector.broadcast %14 : vector<1x1x32xf32> to vector<4x16x32xf32>
    %262 = arith.mulf %224, %261 : vector<4x16x32xf32>
    "tpu.trace_start"() <{level = 10 : i32, message = "nqd,nkd->nqk"}> : () -> ()
    %cst_116 = arith.constant dense<0.000000e+00> : vector<4x16x16xf32>
    %263 = tpu.matmul %262, %232, %cst_116 {dimension_numbers = #tpu.dot_dimension_numbers<[2], [2], [1], [1], [0, 0, 0, 1, 1, 1], [0], [0]>} : vector<4x16x32xf32>, vector<4x16x32xf32>, vector<4x16x16xf32> -> vector<4x16x16xf32>
    "tpu.trace_stop"() : () -> ()
    %cst_117 = arith.constant 0.353553385 : f32
    %264 = vector.broadcast %cst_117 : f32 to vector<4x16x16xf32>
    %265 = arith.mulf %263, %264 : vector<4x16x16xf32>
    %cst_118 = arith.constant dense<0xFF800000> : vector<4x16xf32>
    %266 = vector.multi_reduction <maximumf>, %265, %cst_118 [2] : vector<4x16x16xf32> to vector<4x16xf32>
    %267 = vector.shape_cast %266 : vector<4x16xf32> to vector<4x16x1xf32>
    %268 = vector.broadcast %267 : vector<4x16x1xf32> to vector<4x16x16xf32>
    %269 = arith.subf %265, %268 : vector<4x16x16xf32>
    %270 = math.exp %269 : vector<4x16x16xf32>
    %cst_119 = arith.constant dense<0.000000e+00> : vector<4x16xf32>
    %271 = vector.multi_reduction <add>, %270, %cst_119 [2] : vector<4x16x16xf32> to vector<4x16xf32>
    %272 = vector.shape_cast %271 : vector<4x16xf32> to vector<4x16x1xf32>
    %273 = tpu.reciprocal %272 {approx = true} : vector<4x16x1xf32> -> vector<4x16x1xf32>
    %274 = vector.broadcast %273 : vector<4x16x1xf32> to vector<4x16x16xf32>
    %275 = arith.mulf %270, %274 : vector<4x16x16xf32>
    "tpu.trace_start"() <{level = 10 : i32, message = "nqk,nkd->nqd"}> : () -> ()
    %cst_120 = arith.constant dense<0.000000e+00> : vector<4x16x32xf32>
    %276 = tpu.matmul %275, %240, %cst_120 {dimension_numbers = #tpu.dot_dimension_numbers<[2], [1], [1], [2], [0, 0, 0, 1, 1, 2], [0], [0]>} : vector<4x16x16xf32>, vector<4x16x32xf32>, vector<4x16x32xf32> -> vector<4x16x32xf32>
    "tpu.trace_stop"() : () -> ()
    %277 = vector.broadcast %14 : vector<1x1x32xf32> to vector<4x16x32xf32>
    %278 = arith.mulf %276, %277 : vector<4x16x32xf32>
    %279 = arith.addf %260, %278 : vector<4x16x32xf32>
    %280 = vector.broadcast %21 : vector<1x1x32xf32> to vector<4x16x32xf32>
    %281 = arith.mulf %224, %280 : vector<4x16x32xf32>
    "tpu.trace_start"() <{level = 10 : i32, message = "nqd,nkd->nqk"}> : () -> ()
    %cst_121 = arith.constant dense<0.000000e+00> : vector<4x16x16xf32>
    %282 = tpu.matmul %281, %232, %cst_121 {dimension_numbers = #tpu.dot_dimension_numbers<[2], [2], [1], [1], [0, 0, 0, 1, 1, 1], [0], [0]>} : vector<4x16x32xf32>, vector<4x16x32xf32>, vector<4x16x16xf32> -> vector<4x16x16xf32>
    "tpu.trace_stop"() : () -> ()
    %cst_122 = arith.constant 0.353553385 : f32
    %283 = vector.broadcast %cst_122 : f32 to vector<4x16x16xf32>
    %284 = arith.mulf %282, %283 : vector<4x16x16xf32>
    %cst_123 = arith.constant dense<0xFF800000> : vector<4x16xf32>
    %285 = vector.multi_reduction <maximumf>, %284, %cst_123 [2] : vector<4x16x16xf32> to vector<4x16xf32>
    %286 = vector.shape_cast %285 : vector<4x16xf32> to vector<4x16x1xf32>
    %287 = vector.broadcast %286 : vector<4x16x1xf32> to vector<4x16x16xf32>
    %288 = arith.subf %284, %287 : vector<4x16x16xf32>
    %289 = math.exp %288 : vector<4x16x16xf32>
    %cst_124 = arith.constant dense<0.000000e+00> : vector<4x16xf32>
    %290 = vector.multi_reduction <add>, %289, %cst_124 [2] : vector<4x16x16xf32> to vector<4x16xf32>
    %291 = vector.shape_cast %290 : vector<4x16xf32> to vector<4x16x1xf32>
    %292 = tpu.reciprocal %291 {approx = true} : vector<4x16x1xf32> -> vector<4x16x1xf32>
    %293 = vector.broadcast %292 : vector<4x16x1xf32> to vector<4x16x16xf32>
    %294 = arith.mulf %289, %293 : vector<4x16x16xf32>
    "tpu.trace_start"() <{level = 10 : i32, message = "nqk,nkd->nqd"}> : () -> ()
    %cst_125 = arith.constant dense<0.000000e+00> : vector<4x16x32xf32>
    %295 = tpu.matmul %294, %240, %cst_125 {dimension_numbers = #tpu.dot_dimension_numbers<[2], [1], [1], [2], [0, 0, 0, 1, 1, 2], [0], [0]>} : vector<4x16x16xf32>, vector<4x16x32xf32>, vector<4x16x32xf32> -> vector<4x16x32xf32>
    "tpu.trace_stop"() : () -> ()
    %296 = vector.broadcast %21 : vector<1x1x32xf32> to vector<4x16x32xf32>
    %297 = arith.mulf %295, %296 : vector<4x16x32xf32>
    %298 = arith.addf %279, %297 : vector<4x16x32xf32>
    %299 = vector.broadcast %28 : vector<1x1x32xf32> to vector<4x16x32xf32>
    %300 = arith.mulf %224, %299 : vector<4x16x32xf32>
    "tpu.trace_start"() <{level = 10 : i32, message = "nqd,nkd->nqk"}> : () -> ()
    %cst_126 = arith.constant dense<0.000000e+00> : vector<4x16x16xf32>
    %301 = tpu.matmul %300, %232, %cst_126 {dimension_numbers = #tpu.dot_dimension_numbers<[2], [2], [1], [1], [0, 0, 0, 1, 1, 1], [0], [0]>} : vector<4x16x32xf32>, vector<4x16x32xf32>, vector<4x16x16xf32> -> vector<4x16x16xf32>
    "tpu.trace_stop"() : () -> ()
    %cst_127 = arith.constant 0.353553385 : f32
    %302 = vector.broadcast %cst_127 : f32 to vector<4x16x16xf32>
    %303 = arith.mulf %301, %302 : vector<4x16x16xf32>
    %cst_128 = arith.constant dense<0xFF800000> : vector<4x16xf32>
    %304 = vector.multi_reduction <maximumf>, %303, %cst_128 [2] : vector<4x16x16xf32> to vector<4x16xf32>
    %305 = vector.shape_cast %304 : vector<4x16xf32> to vector<4x16x1xf32>
    %306 = vector.broadcast %305 : vector<4x16x1xf32> to vector<4x16x16xf32>
    %307 = arith.subf %303, %306 : vector<4x16x16xf32>
    %308 = math.exp %307 : vector<4x16x16xf32>
    %cst_129 = arith.constant dense<0.000000e+00> : vector<4x16xf32>
    %309 = vector.multi_reduction <add>, %308, %cst_129 [2] : vector<4x16x16xf32> to vector<4x16xf32>
    %310 = vector.shape_cast %309 : vector<4x16xf32> to vector<4x16x1xf32>
    %311 = tpu.reciprocal %310 {approx = true} : vector<4x16x1xf32> -> vector<4x16x1xf32>
    %312 = vector.broadcast %311 : vector<4x16x1xf32> to vector<4x16x16xf32>
    %313 = arith.mulf %308, %312 : vector<4x16x16xf32>
    "tpu.trace_start"() <{level = 10 : i32, message = "nqk,nkd->nqd"}> : () -> ()
    %cst_130 = arith.constant dense<0.000000e+00> : vector<4x16x32xf32>
    %314 = tpu.matmul %313, %240, %cst_130 {dimension_numbers = #tpu.dot_dimension_numbers<[2], [1], [1], [2], [0, 0, 0, 1, 1, 2], [0], [0]>} : vector<4x16x16xf32>, vector<4x16x32xf32>, vector<4x16x32xf32> -> vector<4x16x32xf32>
    "tpu.trace_stop"() : () -> ()
    %315 = vector.broadcast %28 : vector<1x1x32xf32> to vector<4x16x32xf32>
    %316 = arith.mulf %314, %315 : vector<4x16x32xf32>
    %317 = arith.addf %298, %316 : vector<4x16x32xf32>
    %318 = vector.shape_cast %317 : vector<4x16x32xf32> to vector<64x32xf32>
    %319 = arith.truncf %318 : vector<64x32xf32> to vector<64x32xbf16>
    %c1_131 = arith.constant 1 : index
    %c0_132 = arith.constant 0 : index
    %c0_133 = arith.constant 0 : index
    %320 = vector.load %arg8[%c1_131, %c0_132, %c0_133] : memref<2x32x32xbf16, #tpu.memory_space<vmem>>, vector<1x32x32xbf16>
    %321 = vector.shape_cast %320 : vector<1x32x32xbf16> to vector<32x32xbf16>
    %cst_134 = arith.constant dense<0.000000e+00> : vector<64x32xf32>
    %322 = tpu.matmul %319, %321, %cst_134 {dimension_numbers = #tpu.dot_dimension_numbers<[1], [0], [0], [1], [0, 0, 1, 1], [], []>} : vector<64x32xbf16>, vector<32x32xbf16>, vector<64x32xf32> -> vector<64x32xf32>
    %c1_135 = arith.constant 1 : index
    %c0_136 = arith.constant 0 : index
    %c0_137 = arith.constant 0 : index
    %323 = vector.load %arg9[%c1_135, %c0_136, %c0_137] : memref<2x1x32xf32, #tpu.memory_space<vmem>>, vector<1x1x32xf32>
    %324 = vector.shape_cast %323 : vector<1x1x32xf32> to vector<1x32xf32>
    %325 = vector.broadcast %324 : vector<1x32xf32> to vector<64x32xf32>
    %326 = arith.addf %322, %325 : vector<64x32xf32>
    %327 = arith.addf %215, %326 : vector<64x32xf32>
    %c1_138 = arith.constant 1 : index
    %c0_139 = arith.constant 0 : index
    %c0_140 = arith.constant 0 : index
    %328 = vector.load %arg10[%c1_138, %c0_139, %c0_140] : memref<2x1x32xf32, #tpu.memory_space<vmem>>, vector<1x1x32xf32>
    %329 = vector.shape_cast %328 : vector<1x1x32xf32> to vector<1x32xf32>
    %c1_141 = arith.constant 1 : index
    %c0_142 = arith.constant 0 : index
    %c0_143 = arith.constant 0 : index
    %330 = vector.load %arg11[%c1_141, %c0_142, %c0_143] : memref<2x1x32xf32, #tpu.memory_space<vmem>>, vector<1x1x32xf32>
    %331 = vector.shape_cast %330 : vector<1x1x32xf32> to vector<1x32xf32>
    %cst_144 = arith.constant dense<0.000000e+00> : vector<64xf32>
    %332 = vector.multi_reduction <add>, %327, %cst_144 [1] : vector<64x32xf32> to vector<64xf32>
    %333 = vector.shape_cast %332 : vector<64xf32> to vector<64x1xf32>
    %cst_145 = arith.constant 3.200000e+01 : f32
    %334 = vector.broadcast %cst_145 : f32 to vector<64x1xf32>
    %335 = arith.divf %333, %334 : vector<64x1xf32>
    %336 = vector.broadcast %335 : vector<64x1xf32> to vector<64x32xf32>
    %337 = arith.subf %327, %336 : vector<64x32xf32>
    %338 = arith.mulf %337, %337 : vector<64x32xf32>
    %cst_146 = arith.constant dense<0.000000e+00> : vector<64xf32>
    %339 = vector.multi_reduction <add>, %338, %cst_146 [1] : vector<64x32xf32> to vector<64xf32>
    %340 = vector.shape_cast %339 : vector<64xf32> to vector<64x1xf32>
    %cst_147 = arith.constant 3.200000e+01 : f32
    %341 = vector.broadcast %cst_147 : f32 to vector<64x1xf32>
    %342 = arith.divf %340, %341 : vector<64x1xf32>
    %343 = vector.broadcast %335 : vector<64x1xf32> to vector<64x32xf32>
    %344 = arith.subf %327, %343 : vector<64x32xf32>
    %cst_148 = arith.constant 9.99999974E-6 : f32
    %345 = vector.broadcast %cst_148 : f32 to vector<64x1xf32>
    %346 = arith.addf %342, %345 : vector<64x1xf32>
    %347 = math.rsqrt %346 : vector<64x1xf32>
    %348 = vector.broadcast %347 : vector<64x1xf32> to vector<64x32xf32>
    %349 = arith.mulf %344, %348 : vector<64x32xf32>
    %350 = vector.broadcast %329 : vector<1x32xf32> to vector<64x32xf32>
    %351 = arith.mulf %349, %350 : vector<64x32xf32>
    %352 = vector.broadcast %331 : vector<1x32xf32> to vector<64x32xf32>
    %353 = arith.addf %351, %352 : vector<64x32xf32>
    %354 = arith.truncf %353 : vector<64x32xf32> to vector<64x32xbf16>
    %c1_149 = arith.constant 1 : index
    %c0_150 = arith.constant 0 : index
    %c0_151 = arith.constant 0 : index
    %355 = vector.load %arg12[%c1_149, %c0_150, %c0_151] : memref<2x32x2048xbf16, #tpu.memory_space<vmem>>, vector<1x32x2048xbf16>
    %356 = vector.shape_cast %355 : vector<1x32x2048xbf16> to vector<32x2048xbf16>
    %cst_152 = arith.constant dense<0.000000e+00> : vector<64x2048xf32>
    %357 = tpu.matmul %354, %356, %cst_152 {dimension_numbers = #tpu.dot_dimension_numbers<[1], [0], [0], [1], [0, 0, 1, 1], [], []>} : vector<64x32xbf16>, vector<32x2048xbf16>, vector<64x2048xf32> -> vector<64x2048xf32>
    %c1_153 = arith.constant 1 : index
    %c0_154 = arith.constant 0 : index
    %c0_155 = arith.constant 0 : index
    %358 = vector.load %arg13[%c1_153, %c0_154, %c0_155] : memref<2x1x2048xf32, #tpu.memory_space<vmem>>, vector<1x1x2048xf32>
    %359 = vector.shape_cast %358 : vector<1x1x2048xf32> to vector<1x2048xf32>
    %360 = vector.broadcast %359 : vector<1x2048xf32> to vector<64x2048xf32>
    %361 = arith.addf %357, %360 : vector<64x2048xf32>
    %cst_156 = arith.constant 0.000000e+00 : f32
    %362 = vector.broadcast %cst_156 : f32 to vector<64x2048xf32>
    %363 = arith.maximumf %361, %362 : vector<64x2048xf32>
    %364 = arith.truncf %363 : vector<64x2048xf32> to vector<64x2048xbf16>
    %c1_157 = arith.constant 1 : index
    %c0_158 = arith.constant 0 : index
    %c0_159 = arith.constant 0 : index
    %365 = vector.load %arg14[%c1_157, %c0_158, %c0_159] : memref<2x2048x32xbf16, #tpu.memory_space<vmem>>, vector<1x2048x32xbf16>
    %366 = vector.shape_cast %365 : vector<1x2048x32xbf16> to vector<2048x32xbf16>
    %cst_160 = arith.constant dense<0.000000e+00> : vector<64x32xf32>
    %367 = tpu.matmul %364, %366, %cst_160 {dimension_numbers = #tpu.dot_dimension_numbers<[1], [0], [0], [1], [0, 0, 1, 1], [], []>} : vector<64x2048xbf16>, vector<2048x32xbf16>, vector<64x32xf32> -> vector<64x32xf32>
    %c1_161 = arith.constant 1 : index
    %c0_162 = arith.constant 0 : index
    %c0_163 = arith.constant 0 : index
    %368 = vector.load %arg15[%c1_161, %c0_162, %c0_163] : memref<2x1x32xf32, #tpu.memory_space<vmem>>, vector<1x1x32xf32>
    %369 = vector.shape_cast %368 : vector<1x1x32xf32> to vector<1x32xf32>
    %370 = vector.broadcast %369 : vector<1x32xf32> to vector<64x32xf32>
    %371 = arith.addf %367, %370 : vector<64x32xf32>
    %372 = arith.addf %353, %371 : vector<64x32xf32>
    %c1_164 = arith.constant 1 : index
    %c0_165 = arith.constant 0 : index
    %c0_166 = arith.constant 0 : index
    %373 = vector.load %arg16[%c1_164, %c0_165, %c0_166] : memref<2x1x32xf32, #tpu.memory_space<vmem>>, vector<1x1x32xf32>
    %374 = vector.shape_cast %373 : vector<1x1x32xf32> to vector<1x32xf32>
    %c1_167 = arith.constant 1 : index
    %c0_168 = arith.constant 0 : index
    %c0_169 = arith.constant 0 : index
    %375 = vector.load %arg17[%c1_167, %c0_168, %c0_169] : memref<2x1x32xf32, #tpu.memory_space<vmem>>, vector<1x1x32xf32>
    %376 = vector.shape_cast %375 : vector<1x1x32xf32> to vector<1x32xf32>
    %cst_170 = arith.constant dense<0.000000e+00> : vector<64xf32>
    %377 = vector.multi_reduction <add>, %372, %cst_170 [1] : vector<64x32xf32> to vector<64xf32>
    %378 = vector.shape_cast %377 : vector<64xf32> to vector<64x1xf32>
    %cst_171 = arith.constant 3.200000e+01 : f32
    %379 = vector.broadcast %cst_171 : f32 to vector<64x1xf32>
    %380 = arith.divf %378, %379 : vector<64x1xf32>
    %381 = vector.broadcast %380 : vector<64x1xf32> to vector<64x32xf32>
    %382 = arith.subf %372, %381 : vector<64x32xf32>
    %383 = arith.mulf %382, %382 : vector<64x32xf32>
    %cst_172 = arith.constant dense<0.000000e+00> : vector<64xf32>
    %384 = vector.multi_reduction <add>, %383, %cst_172 [1] : vector<64x32xf32> to vector<64xf32>
    %385 = vector.shape_cast %384 : vector<64xf32> to vector<64x1xf32>
    %cst_173 = arith.constant 3.200000e+01 : f32
    %386 = vector.broadcast %cst_173 : f32 to vector<64x1xf32>
    %387 = arith.divf %385, %386 : vector<64x1xf32>
    %388 = vector.broadcast %380 : vector<64x1xf32> to vector<64x32xf32>
    %389 = arith.subf %372, %388 : vector<64x32xf32>
    %cst_174 = arith.constant 9.99999974E-6 : f32
    %390 = vector.broadcast %cst_174 : f32 to vector<64x1xf32>
    %391 = arith.addf %387, %390 : vector<64x1xf32>
    %392 = math.rsqrt %391 : vector<64x1xf32>
    %393 = vector.broadcast %392 : vector<64x1xf32> to vector<64x32xf32>
    %394 = arith.mulf %389, %393 : vector<64x32xf32>
    %395 = vector.broadcast %374 : vector<1x32xf32> to vector<64x32xf32>
    %396 = arith.mulf %394, %395 : vector<64x32xf32>
    %397 = vector.broadcast %376 : vector<1x32xf32> to vector<64x32xf32>
    %398 = arith.addf %396, %397 : vector<64x32xf32>
    %399 = vector.shape_cast %398 : vector<64x32xf32> to vector<4x16x32xf32>
    %c0_175 = arith.constant 0 : index
    %c0_176 = arith.constant 0 : index
    %c0_177 = arith.constant 0 : index
    %400 = vector.load %arg18[%c0_175, %c0_176, %c0_177] : memref<4x16x32xf32, #tpu.memory_space<vmem>>, vector<4x16x32xf32>
    tpu.vector_store %arg18[%c0_175, %c0_176, %c0_177], %399 {strides = array<i32>} : memref<4x16x32xf32, #tpu.memory_space<vmem>>, vector<4x16x32xf32>,
    return
  }
  func.func @transform_0(%arg0: i32) -> (i32, i32, i32) {
    %c0_i32 = arith.constant 0 : i32
    %c0_i32_0 = arith.constant 0 : i32
    %c0_i32_1 = arith.constant 0 : i32
    return %arg0, %c0_i32, %c0_i32_0 : i32, i32, i32
  }
  func.func @transform_1(%arg0: i32) -> (i32, i32, i32) {
    %c0_i32 = arith.constant 0 : i32
    %c0_i32_0 = arith.constant 0 : i32
    %c0_i32_1 = arith.constant 0 : i32
    %c0_i32_2 = arith.constant 0 : i32
    return %c0_i32, %c0_i32_0, %c0_i32_1 : i32, i32, i32
  }
  func.func @transform_2(%arg0: i32) -> (i32, i32, i32) {
    %c0_i32 = arith.constant 0 : i32
    %c0_i32_0 = arith.constant 0 : i32
    %c0_i32_1 = arith.constant 0 : i32
    %c0_i32_2 = arith.constant 0 : i32
    return %c0_i32, %c0_i32_0, %c0_i32_1 : i32, i32, i32
  }
  func.func @transform_3(%arg0: i32) -> (i32, i32, i32) {
    %c0_i32 = arith.constant 0 : i32
    %c0_i32_0 = arith.constant 0 : i32
    %c0_i32_1 = arith.constant 0 : i32
    %c0_i32_2 = arith.constant 0 : i32
    return %c0_i32, %c0_i32_0, %c0_i32_1 : i32, i32, i32
  }
  func.func @transform_4(%arg0: i32) -> (i32, i32, i32) {
    %c0_i32 = arith.constant 0 : i32
    %c0_i32_0 = arith.constant 0 : i32
    %c0_i32_1 = arith.constant 0 : i32
    %c0_i32_2 = arith.constant 0 : i32
    return %c0_i32, %c0_i32_0, %c0_i32_1 : i32, i32, i32
  }
  func.func @transform_5(%arg0: i32) -> (i32, i32, i32) {
    %c0_i32 = arith.constant 0 : i32
    %c0_i32_0 = arith.constant 0 : i32
    %c0_i32_1 = arith.constant 0 : i32
    %c0_i32_2 = arith.constant 0 : i32
    return %c0_i32, %c0_i32_0, %c0_i32_1 : i32, i32, i32
  }
  func.func @transform_6(%arg0: i32) -> (i32, i32, i32) {
    %c0_i32 = arith.constant 0 : i32
    %c0_i32_0 = arith.constant 0 : i32
    %c0_i32_1 = arith.constant 0 : i32
    %c0_i32_2 = arith.constant 0 : i32
    return %c0_i32, %c0_i32_0, %c0_i32_1 : i32, i32, i32
  }
  func.func @transform_7(%arg0: i32) -> (i32, i32, i32) {
    %c0_i32 = arith.constant 0 : i32
    %c0_i32_0 = arith.constant 0 : i32
    %c0_i32_1 = arith.constant 0 : i32
    %c0_i32_2 = arith.constant 0 : i32
    return %c0_i32, %c0_i32_0, %c0_i32_1 : i32, i32, i32
  }
  func.func @transform_8(%arg0: i32) -> (i32, i32, i32) {
    %c0_i32 = arith.constant 0 : i32
    %c0_i32_0 = arith.constant 0 : i32
    %c0_i32_1 = arith.constant 0 : i32
    %c0_i32_2 = arith.constant 0 : i32
    return %c0_i32, %c0_i32_0, %c0_i32_1 : i32, i32, i32
  }
  func.func @transform_9(%arg0: i32) -> (i32, i32, i32) {
    %c0_i32 = arith.constant 0 : i32
    %c0_i32_0 = arith.constant 0 : i32
    %c0_i32_1 = arith.constant 0 : i32
    %c0_i32_2 = arith.constant 0 : i32
    return %c0_i32, %c0_i32_0, %c0_i32_1 : i32, i32, i32
  }
  func.func @transform_10(%arg0: i32) -> (i32, i32, i32) {
    %c0_i32 = arith.constant 0 : i32
    %c0_i32_0 = arith.constant 0 : i32
    %c0_i32_1 = arith.constant 0 : i32
    %c0_i32_2 = arith.constant 0 : i32
    return %c0_i32, %c0_i32_0, %c0_i32_1 : i32, i32, i32
  }
  func.func @transform_11(%arg0: i32) -> (i32, i32, i32) {
    %c0_i32 = arith.constant 0 : i32
    %c0_i32_0 = arith.constant 0 : i32
    %c0_i32_1 = arith.constant 0 : i32
    %c0_i32_2 = arith.constant 0 : i32
    return %c0_i32, %c0_i32_0, %c0_i32_1 : i32, i32, i32
  }
  func.func @transform_12(%arg0: i32) -> (i32, i32, i32) {
    %c0_i32 = arith.constant 0 : i32
    %c0_i32_0 = arith.constant 0 : i32
    %c0_i32_1 = arith.constant 0 : i32
    %c0_i32_2 = arith.constant 0 : i32
    return %c0_i32, %c0_i32_0, %c0_i32_1 : i32, i32, i32
  }
  func.func @transform_13(%arg0: i32) -> (i32, i32, i32) {
    %c0_i32 = arith.constant 0 : i32
    %c0_i32_0 = arith.constant 0 : i32
    %c0_i32_1 = arith.constant 0 : i32
    %c0_i32_2 = arith.constant 0 : i32
    return %c0_i32, %c0_i32_0, %c0_i32_1 : i32, i32, i32
  }
  func.func @transform_14(%arg0: i32) -> (i32, i32, i32) {
    %c0_i32 = arith.constant 0 : i32
    %c0_i32_0 = arith.constant 0 : i32
    %c0_i32_1 = arith.constant 0 : i32
    %c0_i32_2 = arith.constant 0 : i32
    return %c0_i32, %c0_i32_0, %c0_i32_1 : i32, i32, i32
  }
  func.func @transform_15(%arg0: i32) -> (i32, i32, i32) {
    %c0_i32 = arith.constant 0 : i32
    %c0_i32_0 = arith.constant 0 : i32
    %c0_i32_1 = arith.constant 0 : i32
    %c0_i32_2 = arith.constant 0 : i32
    return %c0_i32, %c0_i32_0, %c0_i32_1 : i32, i32, i32
  }
  func.func @transform_16(%arg0: i32) -> (i32, i32, i32) {
    %c0_i32 = arith.constant 0 : i32
    %c0_i32_0 = arith.constant 0 : i32
    %c0_i32_1 = arith.constant 0 : i32
    %c0_i32_2 = arith.constant 0 : i32
    return %c0_i32, %c0_i32_0, %c0_i32_1 : i32, i32, i32
  }
  func.func @transform_17(%arg0: i32) -> (i32, i32, i32) {
    %c0_i32 = arith.constant 0 : i32
    %c0_i32_0 = arith.constant 0 : i32
    %c0_i32_1 = arith.constant 0 : i32
    return %arg0, %c0_i32, %c0_i32_0 : i32, i32, i32
  }
}

</mosaic_0001>

<bundles_post_ra>
// kernel: tpu_custom_call.1
= control target key start
LH: loop header
LB: loop body
LE: loop exit
PB: predicated region body
PF: predicated region fallthrough
CT: control target
= control target key end

     0   :  { %s16856_s0 = inlined_call_operand.vmem [shape: f32[8,16,32], index: 0, kind: input, shape index: {}]   ;;  %s16857_s1 = inlined_call_operand.vmem [shape: bf16[2,32,32], index: 1, kind: input, shape index: {}]   ;;  %s16858_s2 = inlined_call_operand.vmem [shape: f32[2,1,32], index: 2, kind: input, shape index: {}]   ;;  %s16859_s3 = inlined_call_operand.vmem [shape: bf16[2,32,32], index: 3, kind: input, shape index: {}]   ;;  %s16860_s4 = inlined_call_operand.vmem [shape: f32[2,1,32], index: 4, kind: input, shape index: {}]   ;;  %s16861_s5 = inlined_call_operand.vmem [shape: bf16[2,32,32], index: 5, kind: input, shape index: {}]   ;;  %s16862_s6 = inlined_call_operand.vmem [shape: f32[2,1,32], index: 6, kind: input, shape index: {}]   ;;  %s16863_s7 = inlined_call_operand.vmem [shape: bf16[2,32,32], index: 7, kind: input, shape index: {}]   ;;  %s16864_s8 = inlined_call_operand.vmem [shape: f32[2,1,32], index: 8, kind: input, shape index: {}]   ;;  %s16865_s9 = inlined_call_operand.vmem [shape: f32[2,1,32], index: 9, kind: input, shape index: {}]   ;;  %s16866_s10 = inlined_call_operand.vmem [shape: f32[2,1,32], index: 10, kind: input, shape index: {}]   ;;  %s16867_s11 = inlined_call_operand.vmem [shape: bf16[2,32,2048], index: 11, kind: input, shape index: {}]   ;;  %s16868_s12 = inlined_call_operand.vmem [shape: f32[2,1,2048], index: 12, kind: input, shape index: {}]   ;;  %s16869_s13 = inlined_call_operand.vmem [shape: bf16[2,2048,32], index: 13, kind: input, shape index: {}]   ;;  %s16870_s14 = inlined_call_operand.vmem [shape: f32[2,1,32], index: 14, kind: input, shape index: {}]   ;;  %s16871_s15 = inlined_call_operand.vmem [shape: f32[2,1,32], index: 15, kind: input, shape index: {}]   ;;  %s16872_s16 = inlined_call_operand.vmem [shape: f32[2,1,32], index: 16, kind: input, shape index: {}]   ;;  %s16873_s17 = inlined_call_operand.hbm [shape: f32[8,16,32], index: 17, kind: output, shape index: {}]  }
   0x1   :  { %16911 = sst [smem:[#allocation33_spill]] %s16856_s0 }
   0x2   :  { %16912 = sst [smem:[#allocation34_spill]] %s16857_s1 }
   0x3   :  { %16913 = sst [smem:[#allocation35_spill]] %s16858_s2 }
   0x4   :  { %16914 = sst [smem:[#allocation36_spill]] %s16859_s3 }
   0x5   :  { %16915 = sst [smem:[#allocation37_spill]] %s16860_s4 }
   0x6   :  { %22 = vsyncpa [#allocation3], 0 }
   0x7   :  { %24 = vsyncpa [#allocation3 + $0x1], 0  ;;  %s12555_s24 = smov 0   ;;  %s12557_s25 = smov 0  }
   0x8   :  { %s12559_s26 = smov 0   ;;  %s12561_s27 = smov 0  }
   0x9 LB: > { %16916 = sst [smem:[#allocation5_spill]] %s12447_s24  ;;  %s12576_s28 = sadd.s32 4294967295, %s12459_s27   ;;  %s12459_s27 = sphi %s12561_s27, %s17016_s27   ;;  %s12455_s26 = sphi %s12559_s26, %s17018_s26   ;;  %s12451_s25 = sphi %s12557_s25, %s17020_s25   ;;  %s12447_s24 = sphi %s12555_s24, %s17019_s24  }
   0xa   : > { %16917 = sst [smem:[#allocation6_spill]] %s12455_s26  ;;  %s9632_s29 = sadd.s32 4294967294, %s12459_s27  }
   0xb   : > { %16918 = sst [smem:[#allocation7_spill]] %s12459_s27  ;;  %s12580_s0 = sadd.s32 1, %s12459_s27  }
   0xc   : > { %16919 = sst [smem:[#allocation8_spill]] %s12580_s0  ;;  %s399_s30 = sadd.s32 1, %s12455_s26 }
   0xd   : > { %s396_s18 = ssub.s32 %s12459_s27, %s12580_s0  ;;  %p409_p0 = scmp.ne.s32.totalorder %s12455_s26, %s12451_s25 }
   0xe   : > { %p397_p1 = scmp.eq.s32.totalorder %s396_s18, 0  ;;  %p410_p2 = scmp.eq.s32.totalorder %s12576_s28, 1 }
   0xf   : > { %p415_p3 = scmp.ne.s32.totalorder %s12451_s25, %s12447_s24  ;;  %p416_p4 = scmp.eq.s32.totalorder %s9632_s29, 1 }
  0x10   : > { %s12591_s19 = scalar_select %p397_p1, %s12455_s26, %s399_s30  }
  0x11   : > { %p12593_p5 = por %p410_p2, %p409_p0  ;;  %p12597_p6 = por %p416_p4, %p415_p3 }
  0x12   : > { %16920 = sst [smem:[#allocation9_spill]] %s12591_s19  ;;  %p9635_p7 = scmp.ge.s32.totalorder %s12459_s27, 1 }
  0x13   : > { %s16922_s20 = scalar_select %p12597_p6, 1, 0 }
  0x14   : > { %p492_p8 = scmp.lt.s32.totalorder %s12459_s27, 3 }
  0x15   : > { %16923 = sst [smem:[#allocation10_spill]] %s16922_s20 }
  0x16   : > { %p493_p9 = pnand %p9635_p7, %p492_p8 }
  0x18   : > { %496 = sbr.rel (%p493_p9) target bundleno = 6580 (0x19b4), region = 88 }
  0x1d   : > { %s16924_s23 = sld [smem:[#allocation34_spill]]  ;;  %s9637_s18 = sshll.u32 %s12576_s28, 2  ;;  %v11667_v4 = vld [vmem:[%s16861_s5 + $0x8] sm:$0xff]  ;;  %vm608_vm0 = vcmask 261120   ;;  %v11666_v10 = vld [vmem:[%s16861_s5] sm:$0xff]  ;;  %v554_v18 = vlaneseq  ;;  %v12461_v20 = vmov 0.0  }
  0x1e   : > { %s16925_s3 = sld [smem:[#allocation36_spill]]  ;;  %p546_p10 = scmp.lt.s32.totalorder %s9637_s18, 7  ;;  %v12691_v44 = vld [vmem:[%s16862_s6] ss:$0 sm:$0xff]  ;;  %vm904_vm11 = vcmask 130048  }
  0x1f   : > { %s16926_s19 = sld [smem:[#allocation33_spill]]  ;;  %v555_v19 = vand.u32 127, %v554_v18  ;;  %s542_s21 = sand.u32 1, %s12451_s25  }
  0x20   : > { %s17022_s18 = smov (!%p546_p10, %s9637_s18), 7  ;;  %s16930_s2 = sld [smem:[#allocation35_spill]] }
  0x21   : > { %s11661_s29 = sshll.u32 %s17022_s18, 4  ;;  %vm561_vm1 = vcmp.ge.s32.totalorder %v555_v19, 8  ;;  %vm562_vm2 = vcmp.lt.s32.totalorder %v555_v19, 16  ;;  %vm566_vm3 = vcmp.ge.s32.totalorder %v555_v19, 16  ;;  %vm567_vm4 = vcmp.lt.s32.totalorder %v555_v19, 24  ;;  %s16931_s4 = sld [smem:[#allocation37_spill]] }
  0x22   : > { %vm563_vm5 = vmand %vm561_vm1, %vm562_vm2  ;;  %vm571_vm6 = vcmp.ge.s32.totalorder %v555_v19, 24  ;;  %vm572_vm7 = vcmp.lt.s32.totalorder %v555_v19, 32  ;;  %vm557_vm10 = vcmp.lt.s32.totalorder %v555_v19, 8  ;;  %s9636_s26 = sshll.u32 %s542_s21, 6  ;;  %s11999_s27 = sshll.u32 %s12576_s28, 6 }
  0x23   : > { %v11663_v0 = vld [vmem:[%s16924_s23 + $0x8] sm:$0xff]  ;;  %v11662_v2 = vld [vmem:[%s16924_s23] sm:$0xff]  ;;  %v12647_v21 = vsel %vm563_vm5, 1.0, %v12461_v20  ;;  %vm568_vm8 = vmand %vm566_vm3, %vm567_vm4  ;;  %v12668_v33 = vsel %vm557_vm10, 1.0, %v12461_v20  ;;  %s9566_s18 = scalar_lea.hbm %s16873_s17, %s11999_s27  ;;  %s9554_s28 = scalar_lea.sflag [#allocation3], %s542_s21 }
  0x24   : > { %v11665_v1 = vld [vmem:[%s16925_s3 + $0x8] sm:$0xff]  ;;  %v11664_v3 = vld [vmem:[%s16925_s3] sm:$0xff]  ;;  %12000 = vmatpush.bf16.msra.mxu2 %v11663_v0  ;;  %627 = vmatpush.bf16.msra.mxu0 %v11663_v0  ;;  %16927 = vst [vmem:[#allocation11_spill] sm:$0xff] %v12647_v21  ;;  %v12649_v22 = vsel %vm568_vm8, 1.0, %v12461_v20  ;;  %vm573_vm9 = vmand %vm571_vm6, %vm572_vm7  ;;  %s12417_s0 = scalar_lea.hbm %s16873_s17, 128 }
  0x25   : > { %676 = vmatpush.bf16.msra.mxu1 %v11665_v1  ;;  %12002 = vmatpush.bf16.msra.mxu3 %v11665_v1  ;;  %s12622_s24 = scalar_lea.vmem %s16926_s19, %s11661_s29  ;;  %16928 = vst [vmem:[#allocation12_spill] sm:$0xff] %v12649_v22  ;;  %v12651_v23 = vsel %vm573_vm9, 1.0, %v12461_v20  ;;  %s16779_s19 = scalar_lea.vmem [#allocation2], %s9636_s26 }
  0x26   : > { %v582_v5 = vld [vmem:[%s12622_s24 + $0x30] sm:$0xff]  ;;  %v583_v6 = vld [vmem:[%s12622_s24 + $0x38] sm:$0xff]  ;;  %v576_v7 = vld [vmem:[%s12622_s24] sm:$0xff]  ;;  %16929 = vst [vmem:[#allocation13_spill] sm:$0xff] %v12651_v23  ;;  %s9567_s22 = sshll.u32 %s16779_s19, 4  ;;  %s9568_s22 = int_to_ptr.vmem [resolvable:$true] %s9567_s22 }
  0x27   : > { %v587_v8 = vpack.c.bf16 %v583_v6, %v582_v5  ;;  %v577_v9 = vld [vmem:[%s12622_s24 + $0x8] sm:$0xff]  ;;  %v578_v12 = vld [vmem:[%s12622_s24 + $0x10] sm:$0xff]  ;;  %v579_v13 = vld [vmem:[%s12622_s24 + $0x18] sm:$0xff]  ;;  %16932 = vst [vmem:[#allocation14_spill] sm:$0xff] %v12668_v33 }
  0x28   : > { %12001 = vmatpush.bf16.msra.mxu2 %v11662_v2  ;;  %628 = vmatpush.bf16.msra.mxu0 %v11662_v2  ;;  %v584_v11 = vpack.c.bf16 %v577_v9, %v576_v7  ;;  %v585_v14 = vpack.c.bf16 %v579_v13, %v578_v12  ;;  %v580_v15 = vld [vmem:[%s12622_s24 + $0x20] sm:$0xff]  ;;  %v581_v16 = vld [vmem:[%s12622_s24 + $0x28] sm:$0xff] }
  0x29   : > { %677 = vmatpush.bf16.msra.mxu1 %v11664_v3  ;;  %12003 = vmatpush.bf16.msra.mxu3 %v11664_v3  ;;  %v586_v17 = vpack.c.bf16 %v581_v16, %v580_v15  ;;  %v12658_v27 = vld [vmem:[%s16930_s2] ss:$0 sm:$0xff] }
  0x2a   : > { %v12049_v28 = vld [vmem:[%s16931_s4] ss:$0 sm:$0xff] }
  0x2b   : > { %9655 = vmatmul.msk.bf16.vlgmr.msra.gmra.mxu2 %vm608_vm0, %v587_v8  ;;  %9652 = vmatmul.msk.bf16.vlgmr.msra.gmra.mxu0 %vm608_vm0, %v584_v11 }
  0x2c   : > { %725 = vmatpush.bf16.msrb.mxu2 %v11667_v4  ;;  %9664 = vmatmul.msk.bf16.vlgmr.msra.gmra.mxu1 %vm608_vm0, %v584_v11 }
  0x2d   : > { %9667 = vmatmul.msk.bf16.vlgmr.msra.gmra.mxu3 %vm608_vm0, %v587_v8 }
  0x30   : > { %726 = vmatpush.bf16.msrb.mxu2 %v11666_v10 }
  0x3b   : > { %9676 = vmatmul.msk.bf16.vlgmr.msrb.gmra.mxu2 %vm608_vm0, %v584_v11  ;;  %9653 = vmatmul.msk.bf16.gmra.mxu0 %vm608_vm0, %v585_v14 }
  0x3c   : > { %9665 = vmatmul.msk.bf16.gmra.mxu1 %vm608_vm0, %v585_v14 }
  0x4b   : > { %9677 = vmatmul.msk.bf16.gmra.mxu2 %vm608_vm0, %v585_v14  ;;  %9654 = vmatmul.msk.bf16.gmra.mxu0 %vm608_vm0, %v586_v17 }
  0x4c   : > { %9666 = vmatmul.msk.bf16.gmra.mxu1 %vm608_vm0, %v586_v17 }
  0x5b   : > { %9678 = vmatmul.msk.bf16.gmra.mxu2 %vm608_vm0, %v586_v17 }
  0x6b   : > { %9679 = vmatmul.msk.bf16.gmra.mxu2 %vm608_vm0, %v587_v8 }
  0xa8   : > { %v630_v25 = vpop.f32.mrf.mxu0 }
  0xa9   : > { %v679_v24 = vpop.f32.mrf.mxu1  ;;  %v12666_v32 = vadd.f32 %v12658_v27, %v630_v25 }
  0xaa   : > { %v12672_v34 = vadd.f32 %v12049_v28, %v679_v24 }
  0xab   : > { %v748_v36 = vmul.f32 %v12668_v33, %v12666_v32 }
  0xae   : > { %v12653_v26 = vpop.f32.mrf.mxu2 }
  0xaf   : > { %v12765_v9 = vadd.f32 %v12658_v27, %v12653_v26 }
  0xb0   : > { %v632_v31 = vpop.f32.mrf.mxu0  ;;  %v694_v52 = vpop.f32.mrf.mxu3 }
  0xb1   : > { %v681_v29 = vpop.f32.mrf.mxu1  ;;  %v12682_v39 = vadd.f32 %v12658_v27, %v632_v31  ;;  %v12745_v5 = vadd.f32 %v12049_v28, %v694_v52  ;;  %v754_v11 = vmul.f32 %v12668_v33, %v12765_v9 }
  0xb2   : > { %v12663_v30 = vadd.f32 %v12049_v28, %v681_v29 }
  0xb3   : > { %v749_v42 = vmul.f32 %v12668_v33, %v12682_v39 }
  0xb4   : > { %9680 = vmatpush.xpose.msk.msrb.mxu3 %vm608_vm0, %v12663_v30 }
  0xb6   : > { %v12674_v35 = vpop.f32.mrf.mxu2 }
  0xb7   : > { %v12779_v14 = vadd.f32 %v12658_v27, %v12674_v35 }
  0xb8   : > { %9681 = vmatpush.xpose.msk.msrb.mxu3 %vm608_vm0, %v12672_v34  ;;  %v635_v38 = vpop.f32.mrf.mxu0  ;;  %v696_v60 = vpop.f32.mrf.mxu3 }
  0xb9   : > { %v684_v37 = vpop.f32.mrf.mxu1  ;;  %v12695_v45 = vadd.f32 %v12658_v27, %v635_v38  ;;  %v12733_v63 = vadd.f32 %v12049_v28, %v696_v60  ;;  %v755_v16 = vmul.f32 %v12668_v33, %v12779_v14 }
  0xba   : > { %v12697_v46 = vadd.f32 %v12049_v28, %v684_v37 }
  0xbb   : > { %9682 = vmatmul.msk.f32.vlgmr.msrb.gmra.mxu3 %vm608_vm0, %v748_v36  ;;  %v750_v50 = vmul.f32 %v12668_v33, %v12695_v45 }
  0xbe   : > { %v728_v40 = vpop.f32.mrf.mxu2 }
  0xbf   : > { %v12702_v49 = vadd.f32 %v12691_v44, %v728_v40 }
  0xc0   : > { %v637_v47 = vpop.f32.mrf.mxu0 }
  0xc1   : > { %v686_v41 = vpop.f32.mrf.mxu1  ;;  %v12715_v54 = vadd.f32 %v12658_v27, %v637_v47 }
  0xc2   : > { %v12686_v43 = vadd.f32 %v12049_v28, %v686_v41 }
  0xc3   : > { %9683 = vmatmul.msk.f32.gmra.mxu3 %vm608_vm0, %v749_v42  ;;  %v751_v57 = vmul.f32 %v12668_v33, %v12715_v54 }
  0xc4   : > { %9684 = vmatpush.xpose.msk.msra.mxu3 %vm608_vm0, %v12686_v43 }
  0xc6   : > { %v730_v48 = vpop.f32.mrf.mxu2 }
  0xc7   : > { %v12707_v51 = vadd.f32 %v12691_v44, %v730_v48 }
  0xc8   : > { %9685 = vmatpush.xpose.msk.msra.mxu3 %vm608_vm0, %v12697_v46  ;;  %v640_v55 = vpop.f32.mrf.mxu0 }
  0xc9   : > { %v689_v53 = vpop.f32.mrf.mxu1  ;;  %1013 = vmatpush.msrb.mxu0 %v12707_v51  ;;  %v12727_v61 = vadd.f32 %v12658_v27, %v640_v55 }
  0xca   : > { %v12729_v62 = vadd.f32 %v12049_v28, %v689_v53 }
  0xcb   : > { %9686 = vmatmul.msk.f32.vlgmr.msra.gmra.mxu3 %vm608_vm0, %v750_v50  ;;  %1014 = vmatpush.msrb.mxu0 %v12702_v49  ;;  %v752_v1 = vmul.f32 %v12668_v33, %v12727_v61 }
  0xcd   : > { %9704 = vmatpush.xpose.msk.msra.mxu0 %vm608_vm0, %v12663_v30 }
  0xce   : > { %v733_v56 = vpop.f32.mrf.mxu2 }
  0xcf   : > { %v12738_v2 = vadd.f32 %v12691_v44, %v733_v56 }
  0xd0   : > { %v642_v4 = vpop.f32.mrf.mxu0 }
  0xd1   : > { %9705 = vmatpush.xpose.msk.msra.mxu0 %vm608_vm0, %v12672_v34  ;;  %v691_v58 = vpop.f32.mrf.mxu1  ;;  %v12752_v6 = vadd.f32 %v12658_v27, %v642_v4 }
  0xd2   : > { %v12723_v59 = vadd.f32 %v12049_v28, %v691_v58 }
  0xd3   : > { %9687 = vmatmul.msk.f32.gmra.mxu3 %vm608_vm0, %v751_v57  ;;  %v753_v8 = vmul.f32 %v12668_v33, %v12752_v6 }
  0xd4   : > { %9688 = vmatpush.xpose.msk.msrb.mxu3 %vm608_vm0, %v12723_v59 }
  0xd6   : > { %v735_v0 = vpop.f32.mrf.mxu2 }
  0xd7   : > { %v12741_v3 = vadd.f32 %v12691_v44, %v735_v0 }
  0xd8   : > { %9689 = vmatpush.xpose.msk.msrb.mxu3 %vm608_vm0, %v12729_v62 }
  0xd9   : > { %1042 = vmatpush.msrb.mxu1 %v12741_v3 }
  0xdb   : > { %9690 = vmatmul.msk.f32.vlgmr.msrb.gmra.mxu3 %vm608_vm0, %v752_v1  ;;  %1043 = vmatpush.msrb.mxu1 %v12738_v2 }
  0xdc   : > { %9692 = vmatpush.xpose.msk.msra.mxu3 %vm608_vm0, %v12733_v63 }
  0xdd   : > { %9708 = vmatpush.xpose.msk.msra.mxu1 %vm608_vm0, %v12686_v43 }
  0xde   : > { %v738_v7 = vpop.f32.mrf.mxu2 }
  0xdf   : > { %v12771_v12 = vadd.f32 %v12691_v44, %v738_v7 }
  0xe0   : > { %9693 = vmatpush.xpose.msk.msra.mxu3 %vm608_vm0, %v12745_v5 }
  0xe1   : > { %9709 = vmatpush.xpose.msk.msra.mxu1 %vm608_vm0, %v12697_v46 }
  0xe3   : > { %9691 = vmatmul.msk.f32.gmra.mxu3 %vm608_vm0, %v753_v8 }
  0xe6   : > { %v740_v10 = vpop.f32.mrf.mxu2 }
  0xe7   : > { %v12774_v13 = vadd.f32 %v12691_v44, %v740_v10 }
  0xe9   : > { %1071 = vmatpush.msra.mxu2 %v12774_v13 }
  0xeb   : > { %9694 = vmatmul.msk.f32.vlgmr.msra.gmra.mxu3 %vm608_vm0, %v754_v11  ;;  %1072 = vmatpush.msra.mxu2 %v12771_v12 }
  0xed   : > { %9712 = vmatpush.xpose.msk.msrb.mxu2 %vm608_vm0, %v12723_v59 }
  0xee   : > { %v743_v15 = vpop.f32.mrf.mxu2 }
  0xef   : > { %v12791_v18 = vadd.f32 %v12691_v44, %v743_v15 }
  0xf1   : > { %9713 = vmatpush.xpose.msk.msrb.mxu2 %vm608_vm0, %v12729_v62 }
  0xf3   : > { %9695 = vmatmul.msk.f32.gmra.mxu3 %vm608_vm0, %v755_v16 }
  0xf6   : > { %v745_v17 = vpop.f32.mrf.mxu2 }
  0xf7   : > { %v12794_v19 = vadd.f32 %v12691_v44, %v745_v17 }
  0xf9   : > { %1100 = vmatpush.msrb.mxu3 %v12794_v19 }
  0xfb   : > { %1101 = vmatpush.msrb.mxu3 %v12791_v18 }
  0xfd   : > { %9716 = vmatpush.xpose.msk.msra.mxu3 %vm608_vm0, %v12733_v63 }
 0x101   : > { %9717 = vmatpush.xpose.msk.msra.mxu3 %vm608_vm0, %v12745_v5 }
 0x13e   : > { %v785_v20 = vpop.f32.mrf.mxu3 }
 0x13f   : > { %v896_v24 = vmul.f32 0.35355338, %v785_v20 }
 0x141   : > { %v905_v25 = vsel %vm904_vm11, %v896_v24, -inf }
 0x142   : > { %906 = vmax.xlane.f32.xlu0 %v905_v25 }
 0x146   : > { %v788_v26 = vpop.f32.mrf.mxu3 }
 0x147   : > { %v897_v27 = vmul.f32 0.35355338, %v788_v26 }
 0x149   : > { %v908_v28 = vsel %vm904_vm11, %v897_v27, -inf }
 0x14a   : > { %909 = vmax.xlane.f32.xlu0 %v908_v28 }
 0x14e   : > { %v820_v29 = vpop.f32.mrf.mxu3 }
 0x14f   : > { %v898_v38 = vmul.f32 0.35355338, %v820_v29 }
 0x151   : > { %v911_v41 = vsel %vm904_vm11, %v898_v38, -inf }
 0x156   : > { %v823_v31 = vpop.f32.mrf.mxu3 }
 0x157   : > { %v899_v47 = vmul.f32 0.35355338, %v823_v31 }
 0x159   : > { %v914_v52 = vsel %vm904_vm11, %v899_v47, -inf }
 0x15e   : > { %v855_v35 = vpop.f32.mrf.mxu3 }
 0x15f   : > { %v900_v36 = vmul.f32 0.35355338, %v855_v35 }
 0x161   : > { %v917_v37 = vsel %vm904_vm11, %v900_v36, -inf }
 0x162   : > { %918 = vmax.xlane.f32.xlu1 %v917_v37 }
 0x166   : > { %v858_v40 = vpop.f32.mrf.mxu3 }
 0x167   : > { %v901_v42 = vmul.f32 0.35355338, %v858_v40 }
 0x169   : > { %v920_v44 = vsel %vm904_vm11, %v901_v42, -inf }
 0x16a   : > { %912 = vmax.xlane.f32.xlu1 %v911_v41  ;;  %921 = vmax.xlane.f32.xlu2 %v920_v44 }
 0x16e   : > { %v890_v48 = vpop.f32.mrf.mxu3 }
 0x16f   : > { %v902_v50 = vmul.f32 0.35355338, %v890_v48 }
 0x171   : > { %v923_v53 = vsel %vm904_vm11, %v902_v50, -inf }
 0x172   : > { %915 = vmax.xlane.f32.xlu2 %v914_v52  ;;  %924 = vmax.xlane.f32.xlu0 %v923_v53 }
 0x176   : > { %v893_v55 = vpop.f32.mrf.mxu3 }
 0x177   : > { %v903_v56 = vmul.f32 0.35355338, %v893_v55 }
 0x179   : > { %v926_v57 = vsel %vm904_vm11, %v903_v56, -inf }
 0x17a   : > { %927 = vmax.xlane.f32.xlu1 %v926_v57 }
 0x1b5   : > { %v907_v58 = vpop.xlane.xlu0 %906 }
 0x1b6   : > { %v929_v60 = vsub.f32 %v896_v24, %v907_v58 }
 0x1b8   : > { %v937_v0 = vmul.f32 1.442695, %v929_v60 }
 0x1ba   : > { %12067 = vpow2.f32 %v937_v0 }
 0x1bd   : > { %v910_v1 = vpop.xlane.xlu0 %909 }
 0x1be   : > { %v930_v4 = vsub.f32 %v897_v27, %v910_v1 }
 0x1c0   : > { %v12068_v7 = vpop.eup %12067  ;;  %v939_v8 = vmul.f32 1.442695, %v930_v4 }
 0x1c1   : > { %v953_v10 = vsel %vm904_vm11, %v12068_v7, 0.0 }
 0x1c2   : > { %12069 = vpow2.f32 %v939_v8  ;;  %954 = vadd.xlane.f32.xlu2 %v953_v10 }
 0x1c8   : > { %v12070_v11 = vpop.eup %12069 }
 0x1c9   : > { %v956_v15 = vsel %vm904_vm11, %v12070_v11, 0.0 }
 0x1ca   : > { %957 = vadd.xlane.f32.xlu0 %v956_v15 }
 0x1d5   : > { %v919_v16 = vpop.xlane.xlu1 %918 }
 0x1d6   : > { %v933_v17 = vsub.f32 %v900_v36, %v919_v16 }
 0x1d8   : > { %v945_v20 = vmul.f32 1.442695, %v933_v17 }
 0x1da   : > { %12071 = vpow2.f32 %v945_v20  ;;  %v1125_v20 = vmul.f32 %v12647_v21, %v12666_v32 }
 0x1dd   : > { %v913_v25 = vpop.xlane.xlu1 %912  ;;  %v922_v24 = vpop.xlane.xlu2 %921 }
 0x1de   : > { %v931_v26 = vsub.f32 %v898_v38, %v913_v25  ;;  %v934_v28 = vsub.f32 %v901_v42, %v922_v24  ;;  %v1126_v25 = vmul.f32 %v12647_v21, %v12682_v39 }
 0x1e0   : > { %v12072_v29 = vpop.eup %12071  ;;  %v941_v27 = vmul.f32 1.442695, %v931_v26  ;;  %v947_v31 = vmul.f32 1.442695, %v934_v28 }
 0x1e1   : > { %v965_v35 = vsel %vm904_vm11, %v12072_v29, 0.0 }
 0x1e2   : > { %12073 = vpow2.f32 %v941_v27  ;;  %966 = vadd.xlane.f32.xlu1 %v965_v35 }
 0x1e3   : > { %12075 = vpow2.f32 %v947_v31 }
 0x1e5   : > { %v916_v37 = vpop.xlane.xlu2 %915  ;;  %v925_v40 = vpop.xlane.xlu0 %924 }
 0x1e6   : > { %v932_v41 = vsub.f32 %v899_v47, %v916_v37  ;;  %v935_v44 = vsub.f32 %v902_v50, %v925_v40 }
 0x1e8   : > { %v12074_v48 = vpop.eup %12073  ;;  %v943_v36 = vmul.f32 1.442695, %v932_v41  ;;  %v949_v52 = vmul.f32 1.442695, %v935_v44 }
 0x1e9   : > { %v12076_v53 = vpop.eup %12075  ;;  %v959_v55 = vsel %vm904_vm11, %v12074_v48, 0.0 }
 0x1ea   : > { %12077 = vpow2.f32 %v943_v36  ;;  %960 = vadd.xlane.f32.xlu2 %v959_v55  ;;  %v968_v38 = vsel %vm904_vm11, %v12076_v53, 0.0  ;;  %v1129_v55 = vmul.f32 %v12647_v21, %v12727_v61 }
 0x1eb   : > { %12079 = vpow2.f32 %v949_v52  ;;  %969 = vadd.xlane.f32.xlu0 %v968_v38  ;;  %v1127_v38 = vmul.f32 %v12647_v21, %v12695_v45 }
 0x1ed   : > { %v928_v42 = vpop.xlane.xlu1 %927 }
 0x1ee   : > { %v936_v57 = vsub.f32 %v903_v56, %v928_v42 }
 0x1f0   : > { %v12078_v58 = vpop.eup %12077  ;;  %v951_v60 = vmul.f32 1.442695, %v936_v57  ;;  %v1130_v57 = vmul.f32 %v12647_v21, %v12752_v6 }
 0x1f1   : > { %v12080_v0 = vpop.eup %12079  ;;  %v962_v47 = vsel %vm904_vm11, %v12078_v58, 0.0 }
 0x1f2   : > { %12081 = vpow2.f32 %v951_v60  ;;  %v971_v50 = vsel %vm904_vm11, %v12080_v0, 0.0  ;;  %963 = vadd.xlane.f32.xlu1 %v962_v47  ;;  %v1131_v60 = vmul.f32 %v12647_v21, %v12765_v9 }
 0x1f3   : > { %972 = vadd.xlane.f32.xlu2 %v971_v50 }
 0x1f8   : > { %v12082_v1 = vpop.eup %12081 }
 0x1f9   : > { %v974_v4 = vsel %vm904_vm11, %v12082_v1, 0.0 }
 0x1fa   : > { %975 = vadd.xlane.f32.xlu0 %v974_v4 }
 0x235   : > { %v955_v8 = vpop.xlane.xlu2 %954 }
 0x236   : > { %12083 = vrcp.f32 %v955_v8 }
 0x23c   : > { %v12084_v10 = vpop.eup %12083 }
 0x23d   : > { %v958_v15 = vpop.xlane.xlu0 %957  ;;  %v985_v16 = vmul.f32 %v12084_v10, %v12068_v7 }
 0x23e   : > { %12085 = vrcp.f32 %v958_v15 }
 0x23f   : > { %9696 = vmatmul.msk.f32.vlgmr.msrb.gmra.mxu0 %vm904_vm11, %v985_v16 }
 0x240   : > { %1365 = vmatpush.msrb.mxu0 %v12707_v51 }
 0x242   : > { %1366 = vmatpush.msrb.mxu0 %v12702_v49 }
 0x244   : > { %v12086_v56 = vpop.eup %12085 }
 0x245   : > { %v986_v17 = vmul.f32 %v12086_v56, %v12070_v11 }
 0x247   : > { %9697 = vmatmul.msk.f32.gmra.mxu0 %vm904_vm11, %v986_v17 }
 0x24f   : > { %9706 = vmatmul.msk.f32.vlgmr.msra.gmra.mxu0 %vm608_vm0, %v1125_v20 }
 0x250   : > { %9728 = vmatpush.xpose.msk.msra.mxu0 %vm608_vm0, %v12663_v30 }
 0x254   : > { %9729 = vmatpush.xpose.msk.msra.mxu0 %vm608_vm0, %v12672_v34 }
 0x255   : > { %v967_v7 = vpop.xlane.xlu1 %966 }
 0x256   : > { %12087 = vrcp.f32 %v967_v7 }
 0x257   : > { %9707 = vmatmul.msk.f32.gmra.mxu0 %vm608_vm0, %v1126_v25 }
 0x25c   : > { %v12088_v11 = vpop.eup %12087 }
 0x25d   : > { %v989_v24 = vmul.f32 %v12088_v11, %v12072_v29  ;;  %v961_v26 = vpop.xlane.xlu2 %960 }
 0x25e   : > { %12089 = vrcp.f32 %v961_v26  ;;  %v970_v28 = vpop.xlane.xlu0 %969 }
 0x25f   : > { %12091 = vrcp.f32 %v970_v28  ;;  %9700 = vmatmul.msk.f32.vlgmr.msra.gmra.mxu2 %vm904_vm11, %v989_v24 }
 0x260   : > { %1423 = vmatpush.msra.mxu2 %v12774_v13 }
 0x262   : > { %1424 = vmatpush.msra.mxu2 %v12771_v12 }
 0x264   : > { %v12090_v27 = vpop.eup %12089 }
 0x265   : > { %v12092_v31 = vpop.eup %12091  ;;  %v964_v35 = vpop.xlane.xlu1 %963  ;;  %v987_v37 = vmul.f32 %v12090_v27, %v12074_v48 }
 0x266   : > { %v973_v40 = vpop.xlane.xlu2 %972  ;;  %12093 = vrcp.f32 %v964_v35  ;;  %v990_v41 = vmul.f32 %v12092_v31, %v12076_v53 }
 0x267   : > { %12095 = vrcp.f32 %v973_v40  ;;  %9698 = vmatmul.msk.f32.vlgmr.msrb.gmra.mxu1 %vm904_vm11, %v987_v37 }
 0x268   : > { %9701 = vmatmul.msk.f32.gmra.mxu2 %vm904_vm11, %v990_v41  ;;  %1394 = vmatpush.msrb.mxu1 %v12741_v3 }
 0x26a   : > { %1395 = vmatpush.msrb.mxu1 %v12738_v2 }
 0x26c   : > { %v12094_v29 = vpop.eup %12093 }
 0x26d   : > { %v12096_v44 = vpop.eup %12095  ;;  %v976_v36 = vpop.xlane.xlu0 %975  ;;  %v988_v52 = vmul.f32 %v12094_v29, %v12078_v58  ;;  %v1128_v58 = vmul.f32 %v12647_v21, %v12715_v54 }
 0x26e   : > { %v991_v48 = vmul.f32 %v12096_v44, %v12080_v0  ;;  %12097 = vrcp.f32 %v976_v36  ;;  %v1132_v0 = vmul.f32 %v12647_v21, %v12779_v14 }
 0x26f   : > { %9699 = vmatmul.msk.f32.gmra.mxu1 %vm904_vm11, %v988_v52 }
 0x270   : > { %9702 = vmatmul.msk.f32.vlgmr.msrb.gmra.mxu3 %vm904_vm11, %v991_v48  ;;  %9714 = vmatmul.msk.f32.vlgmr.msrb.gmra.mxu2 %vm608_vm0, %v1129_v55 }
 0x271   : > { %9736 = vmatpush.xpose.msk.msrb.mxu2 %vm608_vm0, %v12723_v59  ;;  %1452 = vmatpush.msrb.mxu3 %v12794_v19 }
 0x273   : > { %1453 = vmatpush.msrb.mxu3 %v12791_v18 }
 0x274   : > { %v12098_v53 = vpop.eup %12097 }
 0x275   : > { %9737 = vmatpush.xpose.msk.msrb.mxu2 %vm608_vm0, %v12729_v62  ;;  %v992_v42 = vmul.f32 %v12098_v53, %v12082_v1 }
 0x277   : > { %9710 = vmatmul.msk.f32.vlgmr.msra.gmra.mxu1 %vm608_vm0, %v1127_v38 }
 0x278   : > { %9703 = vmatmul.msk.f32.gmra.mxu3 %vm904_vm11, %v992_v42  ;;  %9715 = vmatmul.msk.f32.gmra.mxu2 %vm608_vm0, %v1130_v57 }
 0x279   : > { %9732 = vmatpush.xpose.msk.msra.mxu1 %vm608_vm0, %v12686_v43 }
 0x27d   : > { %9733 = vmatpush.xpose.msk.msra.mxu1 %vm608_vm0, %v12697_v46 }
 0x27f   : > { %9711 = vmatmul.msk.f32.gmra.mxu1 %vm608_vm0, %v1128_v58 }
 0x280   : > { %9718 = vmatmul.msk.f32.vlgmr.msra.gmra.mxu3 %vm608_vm0, %v1131_v60 }
 0x281   : > { %9740 = vmatpush.xpose.msk.msra.mxu3 %vm608_vm0, %v12733_v63 }
 0x285   : > { %9741 = vmatpush.xpose.msk.msra.mxu3 %vm608_vm0, %v12745_v5 }
 0x288   : > { %9719 = vmatmul.msk.f32.gmra.mxu3 %vm608_vm0, %v1132_v0 }
 0x2bc   : > { %v12874_v47 = vpop.f32.mrf.mxu0 }
 0x2c4   : > { %v12876_v50 = vpop.f32.mrf.mxu0 }
 0x2cc   : > { %v1156_v1 = vpop.f32.mrf.mxu0 }
 0x2cd   : > { %v1249_v4 = vmul.f32 0.35355338, %v1156_v1 }
 0x2cf   : > { %v1257_v8 = vsel %vm904_vm11, %v1249_v4, -inf }
 0x2d0   : > { %1258 = vmax.xlane.f32.xlu1 %v1257_v8 }
 0x2d4   : > { %v1159_v10 = vpop.f32.mrf.mxu0 }
 0x2d5   : > { %v1250_v15 = vmul.f32 0.35355338, %v1159_v10 }
 0x2d7   : > { %v1260_v16 = vsel %vm904_vm11, %v1250_v15, -inf }
 0x2d8   : > { %1261 = vmax.xlane.f32.xlu2 %v1260_v16 }
 0x2e2   : > { %v12880_v56 = vpop.f32.mrf.mxu2 }
 0x2e4   : > { %v12882_v17 = vpop.f32.mrf.mxu1 }
 0x2eb   : > { %v12884_v20 = vpop.f32.mrf.mxu2 }
 0x2ec   : > { %v12886_v7 = vpop.f32.mrf.mxu1 }
 0x2f3   : > { %v12888_v25 = vpop.f32.mrf.mxu3  ;;  %v1214_v11 = vpop.f32.mrf.mxu2 }
 0x2f4   : > { %v1253_v24 = vmul.f32 0.35355338, %v1214_v11  ;;  %v1185_v26 = vpop.f32.mrf.mxu1 }
 0x2f5   : > { %v1251_v28 = vmul.f32 0.35355338, %v1185_v26 }
 0x2f6   : > { %v1269_v27 = vsel %vm904_vm11, %v1253_v24, -inf }
 0x2f7   : > { %1270 = vmax.xlane.f32.xlu0 %v1269_v27  ;;  %v1263_v31 = vsel %vm904_vm11, %v1251_v28, -inf }
 0x2f8   : > { %1264 = vmax.xlane.f32.xlu1 %v1263_v31 }
 0x2fb   : > { %v12892_v35 = vpop.f32.mrf.mxu3  ;;  %v1217_v37 = vpop.f32.mrf.mxu2 }
 0x2fc   : > { %v1254_v40 = vmul.f32 0.35355338, %v1217_v37  ;;  %v1188_v41 = vpop.f32.mrf.mxu1 }
 0x2fd   : > { %v1252_v29 = vmul.f32 0.35355338, %v1188_v41 }
 0x2fe   : > { %v1272_v44 = vsel %vm904_vm11, %v1254_v40, -inf }
 0x2ff   : > { %1273 = vmax.xlane.f32.xlu2 %v1272_v44  ;;  %v1266_v36 = vsel %vm904_vm11, %v1252_v29, -inf }
 0x300   : > { %1267 = vmax.xlane.f32.xlu0 %v1266_v36 }
 0x303   : > { %v1243_v52 = vpop.f32.mrf.mxu3 }
 0x304   : > { %v1255_v55 = vmul.f32 0.35355338, %v1243_v52 }
 0x306   : > { %v1275_v48 = vsel %vm904_vm11, %v1255_v55, -inf }
 0x307   : > { %1276 = vmax.xlane.f32.xlu1 %v1275_v48 }
 0x30b   : > { %v1246_v53 = vpop.f32.mrf.mxu3 }
 0x30c   : > { %v1256_v38 = vmul.f32 0.35355338, %v1246_v53 }
 0x30e   : > { %v1278_v42 = vsel %vm904_vm11, %v1256_v38, -inf }
 0x30f   : > { %1279 = vmax.xlane.f32.xlu2 %v1278_v42 }
 0x343   : > { %v1259_v57 = vpop.xlane.xlu1 %1258 }
 0x344   : > { %v1281_v58 = vsub.f32 %v1249_v4, %v1259_v57 }
 0x346   : > { %v1289_v60 = vmul.f32 1.442695, %v1281_v58 }
 0x348   : > { %12099 = vpow2.f32 %v1289_v60 }
 0x34b   : > { %v1262_v0 = vpop.xlane.xlu2 %1261 }
 0x34c   : > { %v1282_v1 = vsub.f32 %v1250_v15, %v1262_v0 }
 0x34e   : > { %v12100_v8 = vpop.eup %12099  ;;  %v1291_v10 = vmul.f32 1.442695, %v1282_v1 }
 0x34f   : > { %v1305_v16 = vsel %vm904_vm11, %v12100_v8, 0.0 }
 0x350   : > { %12101 = vpow2.f32 %v1291_v10  ;;  %1306 = vadd.xlane.f32.xlu0 %v1305_v16 }
 0x356   : > { %v12102_v11 = vpop.eup %12101 }
 0x357   : > { %v1308_v26 = vsel %vm904_vm11, %v12102_v11, 0.0 }
 0x358   : > { %1309 = vadd.xlane.f32.xlu1 %v1308_v26 }
 0x36a   : > { %v1271_v27 = vpop.xlane.xlu0 %1270 }
 0x36b   : > { %v1285_v31 = vsub.f32 %v1253_v24, %v1271_v27  ;;  %v1265_v37 = vpop.xlane.xlu1 %1264 }
 0x36c   : > { %v1283_v41 = vsub.f32 %v1251_v28, %v1265_v37 }
 0x36d   : > { %v1297_v44 = vmul.f32 1.442695, %v1285_v31 }
 0x36e   : > { %v1293_v4 = vmul.f32 1.442695, %v1283_v41 }
 0x36f   : > { %12103 = vpow2.f32 %v1297_v44 }
 0x370   : > { %12105 = vpow2.f32 %v1293_v4 }
 0x372   : > { %v1274_v36 = vpop.xlane.xlu2 %1273 }
 0x373   : > { %v1286_v15 = vsub.f32 %v1254_v40, %v1274_v36  ;;  %v1268_v52 = vpop.xlane.xlu0 %1267 }
 0x374   : > { %v1284_v48 = vsub.f32 %v1252_v29, %v1268_v52 }
 0x375   : > { %v12104_v53 = vpop.eup %12103  ;;  %v1299_v42 = vmul.f32 1.442695, %v1286_v15 }
 0x376   : > { %v12106_v57 = vpop.eup %12105  ;;  %v1295_v58 = vmul.f32 1.442695, %v1284_v48  ;;  %v1317_v60 = vsel %vm904_vm11, %v12104_v53, 0.0 }
 0x377   : > { %12107 = vpow2.f32 %v1299_v42  ;;  %1318 = vadd.xlane.f32.xlu2 %v1317_v60  ;;  %v1311_v24 = vsel %vm904_vm11, %v12106_v57, 0.0  ;;  %v1477_v42 = vmul.f32 %v12649_v22, %v12666_v32 }
 0x378   : > { %12109 = vpow2.f32 %v1295_v58  ;;  %1312 = vadd.xlane.f32.xlu0 %v1311_v24 }
 0x37a   : > { %v1277_v28 = vpop.xlane.xlu1 %1276 }
 0x37b   : > { %v1287_v0 = vsub.f32 %v1255_v55, %v1277_v28 }
 0x37d   : > { %v12108_v1 = vpop.eup %12107  ;;  %v1301_v10 = vmul.f32 1.442695, %v1287_v0 }
 0x37e   : > { %v12110_v16 = vpop.eup %12109  ;;  %v1320_v40 = vsel %vm904_vm11, %v12108_v1, 0.0 }
 0x37f   : > { %12111 = vpow2.f32 %v1301_v10  ;;  %1321 = vadd.xlane.f32.xlu1 %v1320_v40  ;;  %v1314_v29 = vsel %vm904_vm11, %v12110_v16, 0.0 }
 0x380   : > { %1315 = vadd.xlane.f32.xlu2 %v1314_v29 }
 0x382   : > { %v1280_v26 = vpop.xlane.xlu2 %1279 }
 0x383   : > { %v1288_v27 = vsub.f32 %v1256_v38, %v1280_v26 }
 0x385   : > { %v12112_v31 = vpop.eup %12111  ;;  %v1303_v37 = vmul.f32 1.442695, %v1288_v27  ;;  %v1481_v27 = vmul.f32 %v12649_v22, %v12727_v61 }
 0x386   : > { %v1323_v41 = vsel %vm904_vm11, %v12112_v31, 0.0 }
 0x387   : > { %12113 = vpow2.f32 %v1303_v37  ;;  %1324 = vadd.xlane.f32.xlu0 %v1323_v41 }
 0x38d   : > { %v12114_v44 = vpop.eup %12113 }
 0x38e   : > { %v1326_v55 = vsel %vm904_vm11, %v12114_v44, 0.0 }
 0x38f   : > { %1327 = vadd.xlane.f32.xlu1 %v1326_v55  ;;  %v1479_v55 = vmul.f32 %v12649_v22, %v12695_v45 }
 0x3c3   : > { %v1307_v4 = vpop.xlane.xlu0 %1306 }
 0x3c4   : > { %12115 = vrcp.f32 %v1307_v4 }
 0x3ca   : > { %v12116_v36 = vpop.eup %12115 }
 0x3cb   : > { %v1337_v15 = vmul.f32 %v12116_v36, %v12100_v8  ;;  %v1310_v52 = vpop.xlane.xlu1 %1309  ;;  %v1478_v8 = vmul.f32 %v12649_v22, %v12682_v39 }
 0x3cc   : > { %12117 = vrcp.f32 %v1310_v52 }
 0x3cd   : > { %9720 = vmatmul.msk.f32.vlgmr.msrb.gmra.mxu0 %vm904_vm11, %v1337_v15 }
 0x3ce   : > { %1717 = vmatpush.msrb.mxu0 %v12707_v51 }
 0x3d0   : > { %1718 = vmatpush.msrb.mxu0 %v12702_v49 }
 0x3d2   : > { %v12118_v38 = vpop.eup %12117 }
 0x3d3   : > { %v1338_v48 = vmul.f32 %v12118_v38, %v12102_v11 }
 0x3d5   : > { %9721 = vmatmul.msk.f32.gmra.mxu0 %vm904_vm11, %v1338_v48 }
 0x3dd   : > { %9730 = vmatmul.msk.f32.vlgmr.msra.gmra.mxu0 %vm608_vm0, %v1477_v42 }
 0x3de   : > { %9752 = vmatpush.xpose.msk.msra.mxu0 %vm608_vm0, %v12663_v30 }
 0x3e2   : > { %9753 = vmatpush.xpose.msk.msra.mxu0 %vm608_vm0, %v12672_v34 }
 0x3e5   : > { %9731 = vmatmul.msk.f32.gmra.mxu0 %vm608_vm0, %v1478_v8 }
 0x3ea   : > { %v1319_v58 = vpop.xlane.xlu2 %1318 }
 0x3eb   : > { %12119 = vrcp.f32 %v1319_v58  ;;  %v1313_v11 = vpop.xlane.xlu0 %1312 }
 0x3ec   : > { %12121 = vrcp.f32 %v1313_v11 }
 0x3f1   : > { %v12120_v60 = vpop.eup %12119 }
 0x3f2   : > { %v12122_v24 = vpop.eup %12121  ;;  %v1341_v28 = vmul.f32 %v12120_v60, %v12104_v53  ;;  %v1322_v0 = vpop.xlane.xlu1 %1321 }
 0x3f3   : > { %v1339_v10 = vmul.f32 %v12122_v24, %v12106_v57  ;;  %12123 = vrcp.f32 %v1322_v0  ;;  %v1316_v40 = vpop.xlane.xlu2 %1315  ;;  %v1113_v24 = vmul.f32 %v12668_v33, %v12880_v56 }
 0x3f4   : > { %9724 = vmatmul.msk.f32.vlgmr.msra.gmra.mxu2 %vm904_vm11, %v1341_v28  ;;  %12125 = vrcp.f32 %v1316_v40 }
 0x3f5   : > { %1775 = vmatpush.msra.mxu2 %v12774_v13  ;;  %9722 = vmatmul.msk.f32.vlgmr.msrb.gmra.mxu1 %vm904_vm11, %v1339_v10 }
 0x3f6   : > { %1746 = vmatpush.msrb.mxu1 %v12741_v3 }
 0x3f7   : > { %1776 = vmatpush.msra.mxu2 %v12771_v12 }
 0x3f8   : > { %1747 = vmatpush.msrb.mxu1 %v12738_v2 }
 0x3f9   : > { %v12124_v30 = vpop.eup %12123 }
 0x3fa   : > { %v12126_v34 = vpop.eup %12125  ;;  %v1325_v53 = vpop.xlane.xlu0 %1324  ;;  %v1342_v29 = vmul.f32 %v12124_v30, %v12108_v1 }
 0x3fb   : > { %12127 = vrcp.f32 %v1325_v53  ;;  %v1340_v57 = vmul.f32 %v12126_v34, %v12110_v16 }
 0x3fc   : > { %9725 = vmatmul.msk.f32.gmra.mxu2 %vm904_vm11, %v1342_v29 }
 0x3fd   : > { %9723 = vmatmul.msk.f32.gmra.mxu1 %vm904_vm11, %v1340_v57  ;;  %v1115_v57 = vmul.f32 %v12668_v33, %v12888_v25 }
 0x401   : > { %v12128_v26 = vpop.eup %12127 }
 0x402   : > { %v1343_v37 = vmul.f32 %v12128_v26, %v12112_v31  ;;  %v1328_v41 = vpop.xlane.xlu1 %1327  ;;  %v1482_v31 = vmul.f32 %v12649_v22, %v12752_v6 }
 0x403   : > { %12129 = vrcp.f32 %v1328_v41 }
 0x404   : > { %9726 = vmatmul.msk.f32.vlgmr.msrb.gmra.mxu3 %vm904_vm11, %v1343_v37  ;;  %9738 = vmatmul.msk.f32.vlgmr.msrb.gmra.mxu2 %vm608_vm0, %v1481_v27 }
 0x405   : > { %1804 = vmatpush.msrb.mxu3 %v12794_v19  ;;  %9760 = vmatpush.xpose.msk.msrb.mxu2 %vm608_vm0, %v12723_v59  ;;  %v1480_v59 = vmul.f32 %v12649_v22, %v12715_v54 }
 0x406   : > { %9734 = vmatmul.msk.f32.vlgmr.msra.gmra.mxu1 %vm608_vm0, %v1479_v55 }
 0x407   : > { %1805 = vmatpush.msrb.mxu3 %v12791_v18  ;;  %9756 = vmatpush.xpose.msk.msra.mxu1 %vm608_vm0, %v12686_v43  ;;  %v1483_v43 = vmul.f32 %v12649_v22, %v12765_v9 }
 0x409   : > { %v12130_v1 = vpop.eup %12129  ;;  %9761 = vmatpush.xpose.msk.msrb.mxu2 %vm608_vm0, %v12729_v62 }
 0x40a   : > { %v1344_v16 = vmul.f32 %v12130_v1, %v12114_v44  ;;  %v1109_v44 = vmul.f32 %v12668_v33, %v12874_v47  ;;  %v1111_v47 = vmul.f32 %v12668_v33, %v12882_v17 }
 0x40b   : > { %9757 = vmatpush.xpose.msk.msra.mxu1 %vm608_vm0, %v12697_v46  ;;  %v1484_v46 = vmul.f32 %v12649_v22, %v12779_v14 }
 0x40c   : > { %9727 = vmatmul.msk.f32.gmra.mxu3 %vm904_vm11, %v1344_v16  ;;  %9739 = vmatmul.msk.f32.gmra.mxu2 %vm608_vm0, %v1482_v31 }
 0x40e   : > { %9735 = vmatmul.msk.f32.gmra.mxu1 %vm608_vm0, %v1480_v59 }
 0x414   : > { %9742 = vmatmul.msk.f32.vlgmr.msra.gmra.mxu3 %vm608_vm0, %v1483_v43 }
 0x415   : > { %9764 = vmatpush.xpose.msk.msra.mxu3 %vm608_vm0, %v12733_v63 }
 0x419   : > { %9765 = vmatpush.xpose.msk.msra.mxu3 %vm608_vm0, %v12745_v5 }
 0x41c   : > { %9743 = vmatmul.msk.f32.gmra.mxu3 %vm608_vm0, %v1484_v46 }
 0x44a   : > { %v1368_v62 = vpop.f32.mrf.mxu0 }
 0x44b   : > { %v1461_v4 = vmul.f32 %v12647_v21, %v1368_v62 }
 0x44d   : > { %v12965_v36 = vadd.f32 %v1461_v4, %v1109_v44 }
 0x452   : > { %v12967_v15 = vpop.f32.mrf.mxu0 }
 0x45a   : > { %v1508_v52 = vpop.f32.mrf.mxu0 }
 0x45b   : > { %v1601_v63 = vmul.f32 0.35355338, %v1508_v52 }
 0x45d   : > { %v1609_v38 = vsel %vm904_vm11, %v1601_v63, -inf }
 0x45e   : > { %1610 = vmax.xlane.f32.xlu2 %v1609_v38 }
 0x462   : > { %v1511_v5 = vpop.f32.mrf.mxu0 }
 0x463   : > { %v1602_v48 = vmul.f32 0.35355338, %v1511_v5 }
 0x465   : > { %v1612_v42 = vsel %vm904_vm11, %v1602_v48, -inf }
 0x466   : > { %1613 = vmax.xlane.f32.xlu0 %v1612_v42 }
 0x472   : > { %v1397_v8 = vpop.f32.mrf.mxu1 }
 0x473   : > { %v1463_v58 = vmul.f32 %v12647_v21, %v1397_v8 }
 0x475   : > { %v12974_v11 = vadd.f32 %v1463_v58, %v1111_v47 }
 0x477   : > { %v1426_v60 = vpop.f32.mrf.mxu2 }
 0x478   : > { %v1465_v28 = vmul.f32 %v12647_v21, %v1426_v60 }
 0x47a   : > { %v12979_v0 = vadd.f32 %v1465_v28, %v1113_v24  ;;  %v12981_v10 = vpop.f32.mrf.mxu1 }
 0x47f   : > { %v12983_v40 = vpop.f32.mrf.mxu2 }
 0x483   : > { %v1537_v30 = vpop.f32.mrf.mxu1 }
 0x484   : > { %v1603_v34 = vmul.f32 0.35355338, %v1537_v30 }
 0x486   : > { %v1615_v17 = vsel %vm904_vm11, %v1603_v34, -inf }
 0x487   : > { %1616 = vmax.xlane.f32.xlu1 %v1615_v17  ;;  %v1455_v53 = vpop.f32.mrf.mxu3  ;;  %v1566_v29 = vpop.f32.mrf.mxu2 }
 0x488   : > { %v1467_v56 = vmul.f32 %v12647_v21, %v1455_v53  ;;  %v1605_v26 = vmul.f32 0.35355338, %v1566_v29 }
 0x48a   : > { %v12989_v27 = vadd.f32 %v1467_v56, %v1115_v57  ;;  %v1621_v37 = vsel %vm904_vm11, %v1605_v26, -inf }
 0x48b   : > { %v1540_v41 = vpop.f32.mrf.mxu1  ;;  %1622 = vmax.xlane.f32.xlu2 %v1621_v37 }
 0x48c   : > { %v1604_v55 = vmul.f32 0.35355338, %v1540_v41 }
 0x48e   : > { %v1618_v1 = vsel %vm904_vm11, %v1604_v55, -inf }
 0x48f   : > { %1619 = vmax.xlane.f32.xlu0 %v1618_v1  ;;  %v12993_v16 = vpop.f32.mrf.mxu3  ;;  %v1569_v31 = vpop.f32.mrf.mxu2 }
 0x490   : > { %v1606_v59 = vmul.f32 0.35355338, %v1569_v31 }
 0x492   : > { %v1624_v43 = vsel %vm904_vm11, %v1606_v59, -inf }
 0x493   : > { %1625 = vmax.xlane.f32.xlu1 %v1624_v43 }
 0x497   : > { %v1595_v25 = vpop.f32.mrf.mxu3 }
 0x498   : > { %v1607_v46 = vmul.f32 0.35355338, %v1595_v25 }
 0x49a   : > { %v1627_v62 = vsel %vm904_vm11, %v1607_v46, -inf }
 0x49b   : > { %1628 = vmax.xlane.f32.xlu2 %v1627_v62 }
 0x49f   : > { %v1598_v44 = vpop.f32.mrf.mxu3 }
 0x4a0   : > { %v1608_v4 = vmul.f32 0.35355338, %v1598_v44 }
 0x4a2   : > { %v1630_v52 = vsel %vm904_vm11, %v1608_v4, -inf }
 0x4a3   : > { %1631 = vmax.xlane.f32.xlu0 %v1630_v52 }
 0x4d1   : > { %v1611_v38 = vpop.xlane.xlu2 %1610 }
 0x4d2   : > { %v1633_v5 = vsub.f32 %v1601_v63, %v1611_v38 }
 0x4d4   : > { %v1641_v42 = vmul.f32 1.442695, %v1633_v5 }
 0x4d6   : > { %12131 = vpow2.f32 %v1641_v42 }
 0x4d9   : > { %v1614_v8 = vpop.xlane.xlu0 %1613 }
 0x4da   : > { %v1634_v47 = vsub.f32 %v1602_v48, %v1614_v8 }
 0x4dc   : > { %v12132_v58 = vpop.eup %12131  ;;  %v1643_v60 = vmul.f32 1.442695, %v1634_v47 }
 0x4dd   : > { %v1657_v24 = vsel %vm904_vm11, %v12132_v58, 0.0 }
 0x4de   : > { %12133 = vpow2.f32 %v1643_v60  ;;  %1658 = vadd.xlane.f32.xlu1 %v1657_v24 }
 0x4e4   : > { %v12134_v28 = vpop.eup %12133 }
 0x4e5   : > { %v1660_v30 = vsel %vm904_vm11, %v12134_v28, 0.0 }
 0x4e6   : > { %1661 = vadd.xlane.f32.xlu2 %v1660_v30 }
 0x4fa   : > { %v1617_v17 = vpop.xlane.xlu1 %1616 }
 0x4fb   : > { %v1635_v53 = vsub.f32 %v1603_v34, %v1617_v17 }
 0x4fd   : > { %v1645_v29 = vmul.f32 1.442695, %v1635_v53 }
 0x4fe   : > { %v1623_v57 = vpop.xlane.xlu2 %1622 }
 0x4ff   : > { %12135 = vpow2.f32 %v1645_v29  ;;  %v1637_v63 = vsub.f32 %v1605_v26, %v1623_v57 }
 0x501   : > { %v1649_v56 = vmul.f32 1.442695, %v1637_v63 }
 0x502   : > { %v1620_v37 = vpop.xlane.xlu0 %1619 }
 0x503   : > { %12137 = vpow2.f32 %v1649_v56  ;;  %v1636_v48 = vsub.f32 %v1604_v55, %v1620_v37  ;;  %v1829_v37 = vmul.f32 %v12651_v23, %v12666_v32 }
 0x505   : > { %v12136_v41 = vpop.eup %12135  ;;  %v1647_v1 = vmul.f32 1.442695, %v1636_v48 }
 0x506   : > { %v1626_v31 = vpop.xlane.xlu1 %1625  ;;  %v1663_v43 = vsel %vm904_vm11, %v12136_v41, 0.0 }
 0x507   : > { %12139 = vpow2.f32 %v1647_v1  ;;  %v1638_v25 = vsub.f32 %v1606_v59, %v1626_v31  ;;  %1664 = vadd.xlane.f32.xlu0 %v1663_v43 }
 0x509   : > { %v12138_v62 = vpop.eup %12137  ;;  %v1651_v44 = vmul.f32 1.442695, %v1638_v25 }
 0x50a   : > { %v1669_v34 = vsel %vm904_vm11, %v12138_v62, 0.0 }
 0x50b   : > { %12141 = vpow2.f32 %v1651_v44  ;;  %1670 = vadd.xlane.f32.xlu1 %v1669_v34 }
 0x50d   : > { %v12140_v52 = vpop.eup %12139 }
 0x50e   : > { %v1629_v26 = vpop.xlane.xlu2 %1628  ;;  %v1666_v38 = vsel %vm904_vm11, %v12140_v52, 0.0 }
 0x50f   : > { %v1639_v5 = vsub.f32 %v1607_v46, %v1629_v26  ;;  %1667 = vadd.xlane.f32.xlu2 %v1666_v38  ;;  %v1835_v38 = vmul.f32 %v12651_v23, %v12765_v9 }
 0x511   : > { %v12142_v55 = vpop.eup %12141  ;;  %v1653_v42 = vmul.f32 1.442695, %v1639_v5 }
 0x512   : > { %v1672_v8 = vsel %vm904_vm11, %v12142_v55, 0.0 }
 0x513   : > { %12143 = vpow2.f32 %v1653_v42  ;;  %1673 = vadd.xlane.f32.xlu0 %v1672_v8 }
 0x516   : > { %v1632_v59 = vpop.xlane.xlu0 %1631 }
 0x517   : > { %v1640_v47 = vsub.f32 %v1608_v4, %v1632_v59 }
 0x519   : > { %v12144_v60 = vpop.eup %12143  ;;  %v1655_v24 = vmul.f32 1.442695, %v1640_v47 }
 0x51a   : > { %v1675_v30 = vsel %vm904_vm11, %v12144_v60, 0.0 }
 0x51b   : > { %12145 = vpow2.f32 %v1655_v24  ;;  %1676 = vadd.xlane.f32.xlu1 %v1675_v30 }
 0x521   : > { %v12146_v17 = vpop.eup %12145 }
 0x522   : > { %v1678_v53 = vsel %vm904_vm11, %v12146_v17, 0.0 }
 0x523   : > { %1679 = vadd.xlane.f32.xlu2 %v1678_v53 }
 0x551   : > { %v1659_v46 = vpop.xlane.xlu1 %1658 }
 0x552   : > { %12147 = vrcp.f32 %v1659_v46 }
 0x558   : > { %v12148_v29 = vpop.eup %12147 }
 0x559   : > { %v1689_v57 = vmul.f32 %v12148_v29, %v12132_v58  ;;  %v1662_v63 = vpop.xlane.xlu2 %1661  ;;  %v1830_v58 = vmul.f32 %v12651_v23, %v12682_v39 }
 0x55a   : > { %12149 = vrcp.f32 %v1662_v63 }
 0x55b   : > { %9744 = vmatmul.msk.f32.vlgmr.msrb.gmra.mxu0 %vm904_vm11, %v1689_v57 }
 0x55c   : > { %2069 = vmatpush.msrb.mxu0 %v12707_v51 }
 0x55e   : > { %2070 = vmatpush.msrb.mxu0 %v12702_v49 }
 0x560   : > { %v12150_v4 = vpop.eup %12149 }
 0x561   : > { %v1690_v56 = vmul.f32 %v12150_v4, %v12134_v28 }
 0x563   : > { %9745 = vmatmul.msk.f32.gmra.mxu0 %vm904_vm11, %v1690_v56 }
 0x56b   : > { %9754 = vmatmul.msk.f32.vlgmr.msra.gmra.mxu0 %vm608_vm0, %v1829_v37 }
 0x573   : > { %9755 = vmatmul.msk.f32.gmra.mxu0 %vm608_vm0, %v1830_v58 }
 0x57a   : > { %v1665_v48 = vpop.xlane.xlu0 %1664 }
 0x57b   : > { %12151 = vrcp.f32 %v1665_v48 }
 0x57e   : > { %v1671_v1 = vpop.xlane.xlu1 %1670 }
 0x57f   : > { %12153 = vrcp.f32 %v1671_v1 }
 0x581   : > { %v12152_v51 = vpop.eup %12151 }
 0x582   : > { %v1691_v49 = vmul.f32 %v12152_v51, %v12136_v41  ;;  %v1668_v31 = vpop.xlane.xlu2 %1667 }
 0x583   : > { %12155 = vrcp.f32 %v1668_v31 }
 0x584   : > { %9746 = vmatmul.msk.f32.vlgmr.msrb.gmra.mxu1 %vm904_vm11, %v1691_v49 }
 0x585   : > { %v12154_v28 = vpop.eup %12153  ;;  %2098 = vmatpush.msrb.mxu1 %v12741_v3 }
 0x586   : > { %v1693_v32 = vmul.f32 %v12154_v28, %v12138_v62  ;;  %v1674_v43 = vpop.xlane.xlu0 %1673 }
 0x587   : > { %2099 = vmatpush.msrb.mxu1 %v12738_v2  ;;  %12157 = vrcp.f32 %v1674_v43  ;;  %v1831_v2 = vmul.f32 %v12651_v23, %v12695_v45 }
 0x588   : > { %9748 = vmatmul.msk.f32.vlgmr.msra.gmra.mxu2 %vm904_vm11, %v1693_v32 }
 0x589   : > { %v12156_v39 = vpop.eup %12155  ;;  %2127 = vmatpush.msra.mxu2 %v12774_v13  ;;  %v1833_v13 = vmul.f32 %v12651_v23, %v12727_v61  ;;  %v1834_v61 = vmul.f32 %v12651_v23, %v12752_v6 }
 0x58a   : > { %v1692_v25 = vmul.f32 %v12156_v39, %v12140_v52 }
 0x58b   : > { %2128 = vmatpush.msra.mxu2 %v12771_v12  ;;  %v1832_v12 = vmul.f32 %v12651_v23, %v12715_v54  ;;  %v1836_v54 = vmul.f32 %v12651_v23, %v12779_v14 }
 0x58c   : > { %9747 = vmatmul.msk.f32.gmra.mxu1 %vm904_vm11, %v1692_v25 }
 0x58d   : > { %v12158_v41 = vpop.eup %12157 }
 0x58e   : > { %v1677_v44 = vpop.xlane.xlu1 %1676  ;;  %v1694_v34 = vmul.f32 %v12158_v41, %v12142_v55 }
 0x58f   : > { %12159 = vrcp.f32 %v1677_v44 }
 0x590   : > { %9749 = vmatmul.msk.f32.gmra.mxu2 %vm904_vm11, %v1694_v34 }
 0x594   : > { %9758 = vmatmul.msk.f32.vlgmr.msra.gmra.mxu1 %vm608_vm0, %v1831_v2 }
 0x595   : > { %v12160_v3 = vpop.eup %12159 }
 0x596   : > { %v1695_v62 = vmul.f32 %v12160_v3, %v12144_v60  ;;  %v1680_v52 = vpop.xlane.xlu2 %1679 }
 0x597   : > { %12161 = vrcp.f32 %v1680_v52 }
 0x598   : > { %9750 = vmatmul.msk.f32.vlgmr.msrb.gmra.mxu3 %vm904_vm11, %v1695_v62  ;;  %9762 = vmatmul.msk.f32.vlgmr.msrb.gmra.mxu2 %vm608_vm0, %v1833_v13 }
 0x599   : > { %2156 = vmatpush.msrb.mxu3 %v12794_v19 }
 0x59b   : > { %2157 = vmatpush.msrb.mxu3 %v12791_v18 }
 0x59c   : > { %9759 = vmatmul.msk.f32.gmra.mxu1 %vm608_vm0, %v1832_v12 }
 0x59d   : > { %v12162_v45 = vpop.eup %12161 }
 0x59e   : > { %v1696_v26 = vmul.f32 %v12162_v45, %v12146_v17 }
 0x5a0   : > { %9751 = vmatmul.msk.f32.gmra.mxu3 %vm904_vm11, %v1696_v26  ;;  %9763 = vmatmul.msk.f32.gmra.mxu2 %vm608_vm0, %v1834_v61 }
 0x5a8   : > { %9766 = vmatmul.msk.f32.vlgmr.msra.gmra.mxu3 %vm608_vm0, %v1835_v38 }
 0x5b0   : > { %9767 = vmatmul.msk.f32.gmra.mxu3 %vm608_vm0, %v1836_v54 }
 0x5d8   : > { %v1720_v18 = vpop.f32.mrf.mxu0 }
 0x5d9   : > { %v1813_v19 = vmul.f32 %v12649_v22, %v1720_v18 }
 0x5db   : > { %v13048_v5 = vadd.f32 %v1813_v19, %v12965_v36 }
 0x5e0   : > { %v13050_v6 = vpop.f32.mrf.mxu0 }
 0x5e8   : > { %v1860_v55 = vpop.f32.mrf.mxu0 }
 0x5e9   : > { %v1953_v42 = vmul.f32 0.35355338, %v1860_v55 }
 0x5eb   : > { %v1961_v8 = vsel %vm904_vm11, %v1953_v42, -inf }
 0x5ec   : > { %1962 = vmax.xlane.f32.xlu0 %v1961_v8 }
 0x5f0   : > { %v1863_v9 = vpop.f32.mrf.mxu0 }
 0x5f1   : > { %v1954_v59 = vmul.f32 0.35355338, %v1863_v9 }
 0x5f3   : > { %v1964_v47 = vsel %vm904_vm11, %v1954_v59, -inf }
 0x5f4   : > { %1965 = vmax.xlane.f32.xlu1 %v1964_v47 }
 0x601   : > { %v1749_v14 = vpop.f32.mrf.mxu1 }
 0x602   : > { %v1815_v60 = vmul.f32 %v12649_v22, %v1749_v14 }
 0x604   : > { %v13056_v24 = vadd.f32 %v1815_v60, %v12974_v11 }
 0x609   : > { %v13058_v36 = vpop.f32.mrf.mxu1 }
 0x60b   : > { %v1778_v30 = vpop.f32.mrf.mxu2 }
 0x60c   : > { %v1817_v17 = vmul.f32 %v12649_v22, %v1778_v30 }
 0x60e   : > { %v13062_v53 = vadd.f32 %v1817_v17, %v12979_v0 }
 0x611   : > { %v1889_v46 = vpop.f32.mrf.mxu1 }
 0x612   : > { %v1955_v29 = vmul.f32 0.35355338, %v1889_v46 }
 0x613   : > { %v13064_v57 = vpop.f32.mrf.mxu2 }
 0x614   : > { %v1967_v63 = vsel %vm904_vm11, %v1955_v29, -inf }
 0x615   : > { %1968 = vmax.xlane.f32.xlu2 %v1967_v63 }
 0x619   : > { %v1892_v4 = vpop.f32.mrf.mxu1 }
 0x61a   : > { %v1956_v56 = vmul.f32 0.35355338, %v1892_v4 }
 0x61b   : > { %v1807_v37 = vpop.f32.mrf.mxu3  ;;  %v1918_v11 = vpop.f32.mrf.mxu2 }
 0x61c   : > { %v1819_v58 = vmul.f32 %v12649_v22, %v1807_v37  ;;  %v1957_v48 = vmul.f32 0.35355338, %v1918_v11  ;;  %v1970_v1 = vsel %vm904_vm11, %v1956_v56, -inf }
 0x61d   : > { %1971 = vmax.xlane.f32.xlu0 %v1970_v1 }
 0x61e   : > { %v13070_v0 = vadd.f32 %v1819_v58, %v12989_v27  ;;  %v1973_v51 = vsel %vm904_vm11, %v1957_v48, -inf }
 0x61f   : > { %1974 = vmax.xlane.f32.xlu1 %v1973_v51 }
 0x623   : > { %v13073_v49 = vpop.f32.mrf.mxu3  ;;  %v1921_v31 = vpop.f32.mrf.mxu2 }
 0x624   : > { %v1958_v28 = vmul.f32 0.35355338, %v1921_v31 }
 0x626   : > { %v1976_v32 = vsel %vm904_vm11, %v1958_v28, -inf }
 0x627   : > { %1977 = vmax.xlane.f32.xlu2 %v1976_v32 }
 0x62b   : > { %v1947_v43 = vpop.f32.mrf.mxu3 }
 0x62c   : > { %v1959_v39 = vmul.f32 0.35355338, %v1947_v43 }
 0x62e   : > { %v1979_v25 = vsel %vm904_vm11, %v1959_v39, -inf }
 0x62f   : > { %1980 = vmax.xlane.f32.xlu0 %v1979_v25 }
 0x633   : > { %v1950_v41 = vpop.f32.mrf.mxu3 }
 0x634   : > { %v1960_v44 = vmul.f32 0.35355338, %v1950_v41 }
 0x636   : > { %v1982_v27 = vsel %vm904_vm11, %v1960_v44, -inf }
 0x637   : > { %1983 = vmax.xlane.f32.xlu1 %v1982_v27 }
 0x65f   : > { %v1963_v34 = vpop.xlane.xlu0 %1962 }
 0x660   : > { %v1985_v2 = vsub.f32 %v1953_v42, %v1963_v34 }
 0x662   : > { %v1993_v3 = vmul.f32 1.442695, %v1985_v2 }
 0x664   : > { %12163 = vpow2.f32 %v1993_v3 }
 0x667   : > { %v1966_v13 = vpop.xlane.xlu1 %1965 }
 0x668   : > { %v1986_v62 = vsub.f32 %v1954_v59, %v1966_v13 }
 0x66a   : > { %v12164_v52 = vpop.eup %12163  ;;  %v1995_v12 = vmul.f32 1.442695, %v1986_v62 }
 0x66b   : > { %v2009_v45 = vsel %vm904_vm11, %v12164_v52, 0.0 }
 0x66c   : > { %12165 = vpow2.f32 %v1995_v12  ;;  %2010 = vadd.xlane.f32.xlu2 %v2009_v45 }
 0x672   : > { %v12166_v26 = vpop.eup %12165 }
 0x673   : > { %v2012_v61 = vsel %vm904_vm11, %v12166_v26, 0.0 }
 0x674   : > { %2013 = vadd.xlane.f32.xlu0 %v2012_v61 }
 0x688   : > { %v1969_v38 = vpop.xlane.xlu2 %1968 }
 0x689   : > { %v1987_v54 = vsub.f32 %v1955_v29, %v1969_v38 }
 0x68b   : > { %v1997_v18 = vmul.f32 1.442695, %v1987_v54 }
 0x68d   : > { %12167 = vpow2.f32 %v1997_v18 }
 0x690   : > { %v1972_v19 = vpop.xlane.xlu0 %1971 }
 0x691   : > { %v1988_v55 = vsub.f32 %v1956_v56, %v1972_v19 }
 0x692   : > { %v1975_v42 = vpop.xlane.xlu1 %1974 }
 0x693   : > { %v12168_v8 = vpop.eup %12167  ;;  %v1999_v9 = vmul.f32 1.442695, %v1988_v55  ;;  %v1989_v59 = vsub.f32 %v1957_v48, %v1975_v42 }
 0x694   : > { %v2015_v47 = vsel %vm904_vm11, %v12168_v8, 0.0 }
 0x695   : > { %12169 = vpow2.f32 %v1999_v9  ;;  %v2001_v14 = vmul.f32 1.442695, %v1989_v59  ;;  %2016 = vadd.xlane.f32.xlu1 %v2015_v47 }
 0x697   : > { %12171 = vpow2.f32 %v2001_v14  ;;  %v11669_v14 = vld [vmem:[%s16863_s7 + $0x8] sm:$0xff] }
 0x698   : > { %2223 = vmatpush.bf16.msra.mxu0 %v11669_v14 }
 0x69a   : > { %v1978_v60 = vpop.xlane.xlu2 %1977 }
 0x69b   : > { %v12170_v30 = vpop.eup %12169  ;;  %v1990_v17 = vsub.f32 %v1958_v28, %v1978_v60  ;;  %v11668_v60 = vld [vmem:[%s16863_s7] sm:$0xff] }
 0x69c   : > { %v2018_v46 = vsel %vm904_vm11, %v12170_v30, 0.0  ;;  %2224 = vmatpush.bf16.msra.mxu0 %v11668_v60 }
 0x69d   : > { %v12172_v29 = vpop.eup %12171  ;;  %v2003_v63 = vmul.f32 1.442695, %v1990_v17  ;;  %2019 = vadd.xlane.f32.xlu2 %v2018_v46  ;;  %v1462_v17 = vmul.f32 %v12647_v21, %v12967_v15  ;;  %v1110_v46 = vmul.f32 %v12668_v33, %v12876_v50  ;;  %v1464_v50 = vmul.f32 %v12647_v21, %v12981_v10 }
 0x69e   : > { %v2021_v4 = vsel %vm904_vm11, %v12172_v29, 0.0 }
 0x69f   : > { %12173 = vpow2.f32 %v2003_v63  ;;  %2022 = vadd.xlane.f32.xlu0 %v2021_v4  ;;  %v1470_v63 = vadd.f32 %v1462_v17, %v1110_v46  ;;  %v12391_v17 = vld [vmem:[%s12622_s24 + $0x10] sm:$0xff] }
 0x6a2   : > { %v1981_v56 = vpop.xlane.xlu0 %1980 }
 0x6a3   : > { %v1991_v37 = vsub.f32 %v1959_v39, %v1981_v56 }
 0x6a5   : > { %v12174_v11 = vpop.eup %12173  ;;  %v2005_v58 = vmul.f32 1.442695, %v1991_v37 }
 0x6a6   : > { %v2024_v48 = vsel %vm904_vm11, %v12174_v11, 0.0 }
 0x6a7   : > { %12175 = vpow2.f32 %v2005_v58  ;;  %2025 = vadd.xlane.f32.xlu1 %v2024_v48 }
 0x6aa   : > { %v1984_v1 = vpop.xlane.xlu1 %1983 }
 0x6ab   : > { %v1992_v51 = vsub.f32 %v1960_v44, %v1984_v1 }
 0x6ad   : > { %v12176_v31 = vpop.eup %12175  ;;  %v2007_v28 = vmul.f32 1.442695, %v1992_v51  ;;  %v1816_v51 = vmul.f32 %v12649_v22, %v13058_v36  ;;  %v1114_v36 = vmul.f32 %v12668_v33, %v12884_v20  ;;  %v1468_v20 = vmul.f32 %v12647_v21, %v12993_v16 }
 0x6ae   : > { %v2027_v32 = vsel %vm904_vm11, %v12176_v31, 0.0 }
 0x6af   : > { %12177 = vpow2.f32 %v2007_v28  ;;  %2028 = vadd.xlane.f32.xlu2 %v2027_v32 }
 0x6b5   : > { %v12178_v43 = vpop.eup %12177 }
 0x6b6   : > { %v2030_v25 = vsel %vm904_vm11, %v12178_v43, 0.0 }
 0x6b7   : > { %2031 = vadd.xlane.f32.xlu0 %v2030_v25 }
 0x6df   : > { %v2011_v41 = vpop.xlane.xlu2 %2010 }
 0x6e0   : > { %12179 = vrcp.f32 %v2011_v41 }
 0x6e6   : > { %v12180_v39 = vpop.eup %12179 }
 0x6e7   : > { %v2041_v27 = vmul.f32 %v12180_v39, %v12164_v52  ;;  %v2014_v34 = vpop.xlane.xlu0 %2013 }
 0x6e8   : > { %12181 = vrcp.f32 %v2014_v34 }
 0x6e9   : > { %9768 = vmatmul.msk.f32.vlgmr.msrb.gmra.mxu0 %vm904_vm11, %v2041_v27  ;;  %v1818_v27 = vmul.f32 %v12649_v22, %v13064_v57  ;;  %v1116_v57 = vmul.f32 %v12668_v33, %v12892_v35  ;;  %v12052_v35 = vld [vmem:[%s16864_s8] ss:$0 sm:$0xff] }
 0x6ee   : > { %v12182_v2 = vpop.eup %12181 }
 0x6ef   : > { %v2042_v44 = vmul.f32 %v12182_v2, %v12166_v26 }
 0x6f1   : > { %9769 = vmatmul.msk.f32.gmra.mxu0 %vm904_vm11, %v2042_v44 }
 0x708   : > { %v2017_v3 = vpop.xlane.xlu1 %2016 }
 0x709   : > { %12183 = vrcp.f32 %v2017_v3 }
 0x70f   : > { %v12184_v13 = vpop.eup %12183 }
 0x710   : > { %v2043_v62 = vmul.f32 %v12184_v13, %v12168_v8  ;;  %v2020_v12 = vpop.xlane.xlu2 %2019 }
 0x711   : > { %12185 = vrcp.f32 %v2020_v12 }
 0x712   : > { %v2023_v45 = vpop.xlane.xlu0 %2022  ;;  %9770 = vmatmul.msk.f32.vlgmr.msrb.gmra.mxu1 %vm904_vm11, %v2043_v62 }
 0x713   : > { %12187 = vrcp.f32 %v2023_v45  ;;  %v1820_v45 = vmul.f32 %v12649_v22, %v13073_v49 }
 0x717   : > { %v12186_v61 = vpop.eup %12185 }
 0x718   : > { %v2044_v52 = vmul.f32 %v12186_v61, %v12170_v30  ;;  %v1476_v61 = vadd.f32 %v1468_v20, %v1116_v57 }
 0x719   : > { %v12188_v38 = vpop.eup %12187 }
 0x71a   : > { %v2045_v54 = vmul.f32 %v12188_v38, %v12172_v29  ;;  %9771 = vmatmul.msk.f32.gmra.mxu1 %vm904_vm11, %v2044_v52  ;;  %v2026_v18 = vpop.xlane.xlu1 %2025  ;;  %v1814_v29 = vmul.f32 %v12649_v22, %v13050_v6  ;;  %v1112_v6 = vmul.f32 %v12668_v33, %v12886_v7  ;;  %v1466_v7 = vmul.f32 %v12647_v21, %v12983_v40 }
 0x71b   : > { %12189 = vrcp.f32 %v2026_v18 }
 0x71c   : > { %9772 = vmatmul.msk.f32.vlgmr.msra.gmra.mxu2 %vm904_vm11, %v2045_v54  ;;  %v1822_v37 = vadd.f32 %v1814_v29, %v1470_v63  ;;  %v1474_v34 = vadd.f32 %v1466_v7, %v1114_v36 }
 0x71e   : > { %v1826_v3 = vadd.f32 %v1818_v27, %v1474_v34 }
 0x721   : > { %v12190_v26 = vpop.eup %12189 }
 0x722   : > { %v2029_v19 = vpop.xlane.xlu2 %2028  ;;  %v2046_v55 = vmul.f32 %v12190_v26, %v12174_v11 }
 0x723   : > { %12191 = vrcp.f32 %v2029_v19 }
 0x724   : > { %9773 = vmatmul.msk.f32.gmra.mxu2 %vm904_vm11, %v2046_v55  ;;  %v12389_v55 = vld [vmem:[%s12622_s24] sm:$0xff] }
 0x729   : > { %v12192_v42 = vpop.eup %12191 }
 0x72a   : > { %v2047_v8 = vmul.f32 %v12192_v42, %v12176_v31  ;;  %v2032_v9 = vpop.xlane.xlu0 %2031  ;;  %v1472_v31 = vadd.f32 %v1464_v50, %v1112_v6 }
 0x72b   : > { %12193 = vrcp.f32 %v2032_v9 }
 0x72c   : > { %9774 = vmatmul.msk.f32.vlgmr.msrb.gmra.mxu3 %vm904_vm11, %v2047_v8 }
 0x731   : > { %v12194_v59 = vpop.eup %12193 }
 0x732   : > { %v2048_v47 = vmul.f32 %v12194_v59, %v12178_v43  ;;  %v1824_v43 = vadd.f32 %v1816_v51, %v1472_v31  ;;  %v12394_v31 = vld [vmem:[%s12622_s24 + $0x28] sm:$0xff] }
 0x734   : > { %9775 = vmatmul.msk.f32.gmra.mxu3 %vm904_vm11, %v2048_v47 }
 0x766   : > { %v2072_v30 = vpop.f32.mrf.mxu0 }
 0x767   : > { %v2165_v4 = vmul.f32 %v12651_v23, %v2072_v30 }
 0x769   : > { %v2173_v58 = vadd.f32 %v2165_v4, %v13048_v5 }
 0x76e   : > { %v2075_v56 = vpop.f32.mrf.mxu0 }
 0x76f   : > { %v2166_v11 = vmul.f32 %v12651_v23, %v2075_v56  ;;  %v12392_v56 = vld [vmem:[%s12622_s24 + $0x18] sm:$0xff] }
 0x771   : > { %v2174_v48 = vadd.f32 %v2166_v11, %v1822_v37 }
 0x773   : > { %v2181_v1 = vpack.c.bf16 %v2174_v48, %v2173_v58 }
 0x775   : > { %9784 = vmatmul.msk.bf16.vlgmr.msra.gmra.mxu0 %vm608_vm0, %v2181_v1  ;;  %v12393_v1 = vld [vmem:[%s12622_s24 + $0x20] sm:$0xff] }
 0x78f   : > { %v2101_v15 = vpop.f32.mrf.mxu1 }
 0x790   : > { %v2167_v28 = vmul.f32 %v12651_v23, %v2101_v15 }
 0x792   : > { %v2175_v25 = vadd.f32 %v2167_v28, %v13056_v24 }
 0x797   : > { %v2104_v32 = vpop.f32.mrf.mxu1 }
 0x798   : > { %v2168_v5 = vmul.f32 %v12651_v23, %v2104_v32 }
 0x79a   : > { %v2176_v41 = vadd.f32 %v2168_v5, %v1824_v43 }
 0x79c   : > { %v2182_v39 = vpack.c.bf16 %v2176_v41, %v2175_v25  ;;  %v12395_v25 = vld [vmem:[%s12622_s24 + $0x30] sm:$0xff] }
 0x79e   : > { %9785 = vmatmul.msk.bf16.gmra.mxu0 %vm608_vm0, %v2182_v39 }
 0x79f   : > { %v2130_v10 = vpop.f32.mrf.mxu2 }
 0x7a0   : > { %v2169_v2 = vmul.f32 %v12651_v23, %v2130_v10  ;;  %v12462_v10 = vmov 32.0  }
 0x7a1   : > { %12195 = vrcp.f32 %v12462_v10 }
 0x7a2   : > { %v2177_v13 = vadd.f32 %v2169_v2, %v13062_v53  ;;  %v1828_v53 = vadd.f32 %v1820_v45, %v1476_v61 }
 0x7a7   : > { %v2133_v44 = vpop.f32.mrf.mxu2  ;;  %v12196_v7 = vpop.eup %12195 }
 0x7a8   : > { %v2170_v24 = vmul.f32 %v12651_v23, %v2133_v44  ;;  %v2281_v36 = vmul.f32 32.0, %v12196_v7  ;;  %vm2285_vm12 = vweird.f32 %v12196_v7 }
 0x7aa   : > { %v2178_v62 = vadd.f32 %v2170_v24, %v1826_v3  ;;  %v2282_v27 = vsub.f32 1.0, %v2281_v36  ;;  %v9790_v36 = vld [vmem:[%s16867_s11] sm:$0xf] }
 0x7ac   : > { %v2183_v12 = vpack.c.bf16 %v2178_v62, %v2177_v13  ;;  %v2283_v34 = vmul.f32 %v12196_v7, %v2282_v27  ;;  %v11678_v27 = vld [vmem:[%s16867_s11 + $0x3c] sm:$0xf0] }
 0x7ae   : > { %9786 = vmatmul.msk.bf16.gmra.mxu0 %vm608_vm0, %v2183_v12  ;;  %v2284_v2 = vadd.f32 %v12196_v7, %v2283_v34  ;;  %v9791_v34 = vor.u32 %v11678_v27, %v9790_v36 }
 0x7af   : > { %v2159_v40 = vpop.f32.mrf.mxu3 }
 0x7b0   : > { %v2171_v52 = vmul.f32 %v12651_v23, %v2159_v40  ;;  %v13157_v44 = vsel %vm2285_vm12, %v12196_v7, %v2284_v2  ;;  %v11670_v2 = vld [vmem:[%s16867_s11 + $0x4] sm:$0xf] }
 0x7b1   : > { %16933 = vst [vmem:[#allocation15_spill] sm:$0xff] %v13157_v44 }
 0x7b2   : > { %v2179_v18 = vadd.f32 %v2171_v52, %v13070_v0  ;;  %v12390_v0 = vld [vmem:[%s12622_s24 + $0x8] sm:$0xff]  ;;  %v12396_v52 = vld [vmem:[%s12622_s24 + $0x38] sm:$0xff]  ;;  %s9569_s24 = sshll.u32 %s9566_s18, 4  ;;  %s9570_s24 = int_to_ptr.hbm [resolvable:$true] %s9569_s24 }
 0x7b3   : > { %s12411_s29 = sshra.s32 %s9570_s24, 4  ;;  %s12412_s29 = int_to_ptr.hbm [resolvable:$true] %s12411_s29 }
 0x7b4   : > { %s12413_s30 = scalar_lea.hbm %s12412_s29, 64  ;;  %p12418_p0 = scmp.lt.s32.totalorder %s12412_s29, %s16873_s17 }
 0x7b5   : > { %p12414_p11 = scmp.ne.s32.totalorder %s12412_s29, %s12413_s30  ;;  %p12419_p1 = scmp.lt.s32.totalorder %s12417_s0, %s12413_s30 }
 0x7b7   : > { %v2162_v38 = vpop.f32.mrf.mxu3  ;;  %p12415_p12 = pnand %p12414_p11, %p12593_p5  ;;  %p12420_p2 = por %p12419_p1, %p12418_p0 }
 0x7b8   : > { %v2172_v54 = vmul.f32 %v12651_v23, %v2162_v38  ;;  %v11723_v23 = vld [vmem:[%s16869_s13 + $0xa8] sm:$0xff] }
 0x7b9   : > { %p12416_p13 = pneg %p12415_p12 }
 0x7ba   : > { %v2180_v26 = vadd.f32 %v2172_v54, %v1828_v53 }
 0x7bb   : > { %p12421_p3 = pnand %p12420_p2, %p12416_p13 }
 0x7bc   : > { %v2184_v19 = vpack.c.bf16 %v2180_v26, %v2179_v18 }
 0x7be   : > { %9787 = vmatmul.msk.bf16.gmra.mxu0 %vm608_vm0, %v2184_v19 }
 0x7f2   : > { %v2226_v16 = vpop.f32.mrf.mxu0 }
 0x7f3   : > { %v2227_v49 = vadd.f32 %v12052_v35, %v2226_v16 }
 0x7f5   : > { %v2246_v42 = vadd.f32 %v12389_v55, %v2227_v49 }
 0x7f7   : > { %v2256_v8 = vsel %vm608_vm0, %v2246_v42, 0.0 }
 0x7f8   : > { %2257 = vadd.xlane.f32.xlu1 %v2256_v8 }
 0x7fa   : > { %v2228_v9 = vpop.f32.mrf.mxu0 }
 0x7fb   : > { %v2229_v59 = vadd.f32 %v12052_v35, %v2228_v9 }
 0x7fd   : > { %v2247_v47 = vadd.f32 %v12390_v0, %v2229_v59 }
 0x7ff   : > { %v2259_v14 = vsel %vm608_vm0, %v2247_v47, 0.0 }
 0x800   : > { %2260 = vadd.xlane.f32.xlu2 %v2259_v14 }
 0x81b   : > { %v2231_v60 = vpop.f32.mrf.mxu0 }
 0x81c   : > { %v2232_v30 = vadd.f32 %v12052_v35, %v2231_v60 }
 0x81e   : > { %v2248_v46 = vadd.f32 %v12391_v17, %v2232_v30 }
 0x820   : > { %v2262_v29 = vsel %vm608_vm0, %v2248_v46, 0.0 }
 0x821   : > { %2263 = vadd.xlane.f32.xlu0 %v2262_v29 }
 0x823   : > { %v2233_v63 = vpop.f32.mrf.mxu0 }
 0x824   : > { %v2234_v4 = vadd.f32 %v12052_v35, %v2233_v63 }
 0x826   : > { %v2249_v37 = vadd.f32 %v12392_v56, %v2234_v4 }
 0x828   : > { %v2265_v11 = vsel %vm608_vm0, %v2249_v37, 0.0 }
 0x829   : > { %2266 = vadd.xlane.f32.xlu1 %v2265_v11 }
 0x82b   : > { %v2236_v58 = vpop.f32.mrf.mxu0 }
 0x82c   : > { %v2237_v48 = vadd.f32 %v12052_v35, %v2236_v58 }
 0x82e   : > { %v2250_v15 = vadd.f32 %v12393_v1, %v2237_v48  ;;  %v9854_v1 = vld [vmem:[%s16867_s11 + $0x80] sm:$0xf] }
 0x830   : > { %v2268_v50 = vsel %vm608_vm0, %v2250_v15, 0.0 }
 0x831   : > { %2269 = vadd.xlane.f32.xlu2 %v2268_v50  ;;  %v11686_v50 = vld [vmem:[%s16867_s11 + $0x84] sm:$0xf] }
 0x833   : > { %v2238_v6 = vpop.f32.mrf.mxu0 }
 0x834   : > { %v2239_v51 = vadd.f32 %v12052_v35, %v2238_v6 }
 0x836   : > { %v2251_v28 = vadd.f32 %v12394_v31, %v2239_v51  ;;  %v9856_v31 = vld [vmem:[%s16867_s11 + $0xc0] sm:$0xf0] }
 0x838   : > { %v2271_v32 = vsel %vm608_vm0, %v2251_v28, 0.0 }
 0x839   : > { %2272 = vadd.xlane.f32.xlu0 %v2271_v32  ;;  %v11695_v32 = vld [vmem:[%s16867_s11 + $0xc4] sm:$0xf0] }
 0x83b   : > { %v2241_v43 = vpop.f32.mrf.mxu0 }
 0x83c   : > { %v2242_v5 = vadd.f32 %v12052_v35, %v2241_v43 }
 0x83e   : > { %v2252_v41 = vadd.f32 %v12395_v25, %v2242_v5  ;;  %v9859_v5 = vor.u32 %v11686_v50, %v9856_v31 }
 0x840   : > { %v2274_v39 = vsel %vm608_vm0, %v2252_v41, 0.0  ;;  %2740 = vmatpush.bf16.msrb.mxu2 %v9859_v5 }
 0x841   : > { %2275 = vadd.xlane.f32.xlu0 %v2274_v39  ;;  %v9864_v39 = vld [vmem:[%s16867_s11 + $0xc8] sm:$0xf0] }
 0x843   : > { %v2243_v62 = vpop.f32.mrf.mxu0 }
 0x844   : > { %v2244_v40 = vadd.f32 %v12052_v35, %v2243_v62 }
 0x846   : > { %v13169_v38 = vadd.f32 %v12396_v52, %v2244_v40  ;;  %v11671_v40 = vld [vmem:[%s16867_s11 + $0xc] sm:$0xf] }
 0x848   : > { %v2277_v18 = vsel %vm608_vm0, %v13169_v38, 0.0 }
 0x86b   : > { %v2258_v3 = vpop.xlane.xlu1 %2257 }
 0x86c   : > { %v2287_v24 = vmul.f32 %v13157_v44, %v2258_v3  ;;  %v9792_v3 = vld [vmem:[%s16867_s11 + $0x40] sm:$0xf0] }
 0x86d   : > { %v9795_v62 = vor.u32 %v11670_v2, %v9792_v3 }
 0x86e   : > { %v13160_v13 = vsub.f32 %v2246_v42, %v2287_v24  ;;  %v9798_v24 = vld [vmem:[%s16867_s11 + $0x8] sm:$0xf] }
 0x86f   : > { %2741 = vmatpush.bf16.msrb.mxu2 %v9795_v62 }
 0x870   : > { %v2303_v12 = vmul.f32 %v13160_v13, %v13160_v13 }
 0x872   : > { %v2311_v20 = vsel %vm608_vm0, %v2303_v12, 0.0  ;;  %v11679_v12 = vld [vmem:[%s16867_s11 + $0x44] sm:$0xf0] }
 0x873   : > { %v2261_v57 = vpop.xlane.xlu2 %2260  ;;  %2312 = vadd.xlane.f32.xlu1 %v2311_v20  ;;  %v9800_v20 = vld [vmem:[%s16867_s11 + $0x48] sm:$0xf0] }
 0x874   : > { %v2288_v45 = vmul.f32 %v13157_v44, %v2261_v57  ;;  %v9799_v57 = vor.u32 %v11679_v12, %v9798_v24 }
 0x876   : > { %v13166_v61 = vsub.f32 %v2247_v47, %v2288_v45  ;;  %v9803_v45 = vor.u32 %v11671_v40, %v9800_v20 }
 0x878   : > { %v2304_v53 = vmul.f32 %v13166_v61, %v13166_v61 }
 0x87a   : > { %v2314_v54 = vsel %vm608_vm0, %v2304_v53, 0.0 }
 0x87b   : > { %2315 = vadd.xlane.f32.xlu2 %v2314_v54  ;;  %2278 = vadd.xlane.f32.xlu1 %v2277_v18 }
 0x894   : > { %v2264_v26 = vpop.xlane.xlu0 %2263 }
 0x895   : > { %v2289_v19 = vmul.f32 %v13157_v44, %v2264_v26 }
 0x897   : > { %v13177_v35 = vsub.f32 %v2248_v46, %v2289_v19 }
 0x899   : > { %v2305_v16 = vmul.f32 %v13177_v35, %v13177_v35 }
 0x89b   : > { %v2317_v49 = vsel %vm608_vm0, %v2305_v16, 0.0 }
 0x89c   : > { %2318 = vadd.xlane.f32.xlu2 %v2317_v49  ;;  %v2267_v55 = vpop.xlane.xlu1 %2266 }
 0x89d   : > { %v2290_v42 = vmul.f32 %v13157_v44, %v2267_v55 }
 0x89f   : > { %v13183_v8 = vsub.f32 %v2249_v37, %v2290_v42 }
 0x8a1   : > { %v2306_v9 = vmul.f32 %v13183_v8, %v13183_v8 }
 0x8a3   : > { %v2320_v59 = vsel %vm608_vm0, %v2306_v9, 0.0 }
 0x8a4   : > { %v2270_v0 = vpop.xlane.xlu2 %2269  ;;  %2321 = vadd.xlane.f32.xlu0 %v2320_v59 }
 0x8a5   : > { %v2291_v47 = vmul.f32 %v13157_v44, %v2270_v0 }
 0x8a7   : > { %v13189_v14 = vsub.f32 %v2250_v15, %v2291_v47  ;;  %v11694_v15 = vld [vmem:[%s16867_s11 + $0xbc] sm:$0xf0] }
 0x8a8   : > { %v9855_v51 = vor.u32 %v11694_v15, %v9854_v1 }
 0x8a9   : > { %v2307_v60 = vmul.f32 %v13189_v14, %v13189_v14 }
 0x8aa   : > { %2711 = vmatpush.bf16.msra.mxu1 %v9855_v51 }
 0x8ab   : > { %v2323_v30 = vsel %vm608_vm0, %v2307_v60, 0.0 }
 0x8ac   : > { %v2273_v17 = vpop.xlane.xlu0 %2272  ;;  %2324 = vadd.xlane.f32.xlu1 %v2323_v30 }
 0x8ad   : > { %v2292_v46 = vmul.f32 %v13157_v44, %v2273_v17 }
 0x8ae   : > { %2712 = vmatpush.bf16.msra.mxu1 %v9791_v34 }
 0x8af   : > { %v13195_v29 = vsub.f32 %v2251_v28, %v2292_v46  ;;  %v9862_v28 = vld [vmem:[%s16867_s11 + $0x88] sm:$0xf] }
 0x8b0   : > { %v9863_v25 = vor.u32 %v11695_v32, %v9862_v28 }
 0x8b1   : > { %v2308_v63 = vmul.f32 %v13195_v29, %v13195_v29 }
 0x8b2   : > { %2769 = vmatpush.bf16.msra.mxu3 %v9863_v25 }
 0x8b3   : > { %v2326_v4 = vsel %vm608_vm0, %v2308_v63, 0.0 }
 0x8b4   : > { %v2276_v56 = vpop.xlane.xlu0 %2275  ;;  %2327 = vadd.xlane.f32.xlu2 %v2326_v4  ;;  %v13266_v4 = vld [vmem:[%s16865_s9] ss:$0 sm:$0xff] }
 0x8b5   : > { %v2293_v37 = vmul.f32 %v13157_v44, %v2276_v56 }
 0x8b6   : > { %2770 = vmatpush.bf16.msra.mxu3 %v9799_v57 }
 0x8b7   : > { %v13201_v11 = vsub.f32 %v2252_v41, %v2293_v37  ;;  %v11687_v41 = vld [vmem:[%s16867_s11 + $0x8c] sm:$0xf] }
 0x8b8   : > { %v9867_v10 = vor.u32 %v11687_v41, %v9864_v39 }
 0x8b9   : > { %v2309_v58 = vmul.f32 %v13201_v11, %v13201_v11 }
 0x8ba   : > { %2798 = vmatpush.bf16.msrb.mxu0 %v9867_v10 }
 0x8bb   : > { %v2329_v48 = vsel %vm608_vm0, %v2309_v58, 0.0 }
 0x8bc   : > { %2330 = vadd.xlane.f32.xlu0 %v2329_v48  ;;  %v13272_v48 = vld [vmem:[%s16866_s10] ss:$0 sm:$0xff] }
 0x8be   : > { %2799 = vmatpush.bf16.msrb.mxu0 %v9803_v45 }
 0x8e6   : > { %v2313_v6 = vpop.xlane.xlu1 %2312 }
 0x8e7   : > { %v2335_v43 = vmul.f32 %v2313_v6, %v13157_v44 }
 0x8e9   : > { %v2343_v7 = vadd.f32 1e-05, %v2335_v43 }
 0x8eb   : > { %12197 = vrsqrt.f32 %v2343_v7  ;;  %vm2357_vm14 = vweird.f32 %v2343_v7 }
 0x8ee   : > { %v2316_v52 = vpop.xlane.xlu2 %2315  ;;  %v2279_v53 = vpop.xlane.xlu1 %2278 }
 0x8ef   : > { %v2336_v54 = vmul.f32 %v2316_v52, %v13157_v44  ;;  %v2294_v18 = vmul.f32 %v13157_v44, %v2279_v53 }
 0x8f1   : > { %v12198_v26 = vpop.eup %12197  ;;  %v2344_v19 = vadd.f32 1e-05, %v2336_v54  ;;  %v13258_v16 = vsub.f32 %v13169_v38, %v2294_v18 }
 0x8f2   : > { %v2352_v49 = vmul.f32 %v12198_v26, %v2343_v7  ;;  %vm2358_vm13 = vweird.f32 %v12198_v26 }
 0x8f3   : > { %12199 = vrsqrt.f32 %v2344_v19  ;;  %v2310_v55 = vmul.f32 %v13258_v16, %v13258_v16  ;;  %vm2359_vm15 = vmor %vm2357_vm14, %vm2358_vm13  ;;  %vm2367_vm2 = vweird.f32 %v2344_v19 }
 0x8f4   : > { %v2353_v42 = vmul.f32 %v12198_v26, %v2352_v49 }
 0x8f5   : > { %v2332_v9 = vsel %vm608_vm0, %v2310_v55, 0.0 }
 0x8f6   : > { %v2354_v59 = vmul.f32 0.5, %v2353_v42  ;;  %2333 = vadd.xlane.f32.xlu1 %v2332_v9 }
 0x8f8   : > { %v2355_v0 = vsub.f32 1.5, %v2354_v59 }
 0x8f9   : > { %v12200_v47 = vpop.eup %12199 }
 0x8fa   : > { %v2356_v60 = vmul.f32 %v12198_v26, %v2355_v0  ;;  %v2362_v30 = vmul.f32 %v12200_v47, %v2344_v19  ;;  %vm2368_vm1 = vweird.f32 %v12200_v47 }
 0x8fb   : > { %vm2369_vm3 = vmor %vm2367_vm2, %vm2368_vm1 }
 0x8fc   : > { %v2363_v17 = vmul.f32 %v12200_v47, %v2362_v30  ;;  %v2360_v38 = vsel %vm2359_vm15, %v12198_v26, %v2356_v60 }
 0x8fd   : > { %v2431_v56 = vmul.f32 %v2360_v38, %v13160_v13 }
 0x8fe   : > { %v2364_v46 = vmul.f32 0.5, %v2363_v17 }
 0x8ff   : > { %v2442_v1 = vmul.f32 %v13266_v4, %v2431_v56 }
 0x900   : > { %v2365_v63 = vsub.f32 1.5, %v2364_v46 }
 0x901   : > { %v13278_v6 = vadd.f32 %v13272_v48, %v2442_v1 }
 0x902   : > { %v2366_v37 = vmul.f32 %v12200_v47, %v2365_v63 }
 0x903   : > { %16934 = vst [vmem:[#allocation16_spill] sm:$0xff] %v13278_v6 }
 0x904   : > { %v2370_v58 = vsel %vm2369_vm3, %v12200_v47, %v2366_v37 }
 0x905   : > { %v2432_v15 = vmul.f32 %v2370_v58, %v13166_v61 }
 0x907   : > { %v2443_v50 = vmul.f32 %v13266_v4, %v2432_v15 }
 0x909   : > { %v13281_v13 = vadd.f32 %v13272_v48, %v2443_v50 }
 0x90b   : > { %16935 = vst [vmem:[#allocation17_spill] sm:$0xff] %v13281_v13  ;;  %v13285_v51 = vpack.c.bf16 %v13281_v13, %v13278_v6  ;;  %v11710_v13 = vld [vmem:[%s16869_s13 + $0x40] sm:$0xff] }
 0x90d   : > { %9916 = vmatmul.msk.bf16.vlgmr.msra.gmra.mxu1 %vm608_vm0, %v13285_v51  ;;  %9920 = vmatmul.msk.bf16.vlgmr.msrb.gmra.mxu2 %vm608_vm0, %v13285_v51 }
 0x90e   : > { %9924 = vmatmul.msk.bf16.vlgmr.msra.gmra.mxu3 %vm608_vm0, %v13285_v51  ;;  %9928 = vmatmul.msk.bf16.vlgmr.msrb.gmra.mxu0 %vm608_vm0, %v13285_v51 }
 0x90f   : > { %v2319_v61 = vpop.xlane.xlu2 %2318 }
 0x910   : > { %v2337_v31 = vmul.f32 %v2319_v61, %v13157_v44 }
 0x912   : > { %v2345_v28 = vadd.f32 1e-05, %v2337_v31 }
 0x914   : > { %12201 = vrsqrt.f32 %v2345_v28  ;;  %vm2377_vm5 = vweird.f32 %v2345_v28 }
 0x917   : > { %v2322_v32 = vpop.xlane.xlu0 %2321 }
 0x918   : > { %v2338_v43 = vmul.f32 %v2322_v32, %v13157_v44 }
 0x91a   : > { %v12202_v5 = vpop.eup %12201  ;;  %v2346_v25 = vadd.f32 1e-05, %v2338_v43 }
 0x91b   : > { %v2372_v41 = vmul.f32 %v12202_v5, %v2345_v28  ;;  %vm2378_vm4 = vweird.f32 %v12202_v5 }
 0x91c   : > { %12203 = vrsqrt.f32 %v2346_v25  ;;  %vm2379_vm6 = vmor %vm2377_vm5, %vm2378_vm4  ;;  %vm2387_vm8 = vweird.f32 %v2346_v25 }
 0x91d   : > { %v2373_v39 = vmul.f32 %v12202_v5, %v2372_v41 }
 0x91f   : > { %v2374_v10 = vmul.f32 0.5, %v2373_v39  ;;  %v2325_v7 = vpop.xlane.xlu1 %2324 }
 0x920   : > { %v2339_v36 = vmul.f32 %v2325_v7, %v13157_v44 }
 0x921   : > { %v2375_v27 = vsub.f32 1.5, %v2374_v10 }
 0x922   : > { %v12204_v34 = vpop.eup %12203  ;;  %v2347_v2 = vadd.f32 1e-05, %v2339_v36 }
 0x923   : > { %v2376_v3 = vmul.f32 %v12202_v5, %v2375_v27  ;;  %v2382_v24 = vmul.f32 %v12204_v34, %v2346_v25  ;;  %vm2388_vm7 = vweird.f32 %v12204_v34  ;;  %v9870_v27 = vld [vmem:[%s16867_s11 + $0x90] sm:$0xf] }
 0x924   : > { %12205 = vrsqrt.f32 %v2347_v2  ;;  %vm2389_vm9 = vmor %vm2387_vm8, %vm2388_vm7  ;;  %vm2397_vm12 = vweird.f32 %v2347_v2 }
 0x925   : > { %v2383_v62 = vmul.f32 %v12204_v34, %v2382_v24  ;;  %v2380_v12 = vsel %vm2379_vm6, %v12202_v5, %v2376_v3 }
 0x926   : > { %v2433_v53 = vmul.f32 %v2380_v12, %v13177_v35  ;;  %v9878_v12 = vld [vmem:[%s16867_s11 + $0x98] sm:$0xf] }
 0x927   : > { %v2384_v40 = vmul.f32 0.5, %v2383_v62  ;;  %v2328_v20 = vpop.xlane.xlu2 %2327  ;;  %v9872_v62 = vld [vmem:[%s16867_s11 + $0xd0] sm:$0xf0] }
 0x928   : > { %v2340_v57 = vmul.f32 %v2328_v20, %v13157_v44  ;;  %v2444_v55 = vmul.f32 %v13266_v4, %v2433_v53  ;;  %v11697_v20 = vld [vmem:[%s16867_s11 + $0xd4] sm:$0xf0] }
 0x929   : > { %v2385_v45 = vsub.f32 1.5, %v2384_v40 }
 0x92a   : > { %v12206_v52 = vpop.eup %12205  ;;  %v2348_v54 = vadd.f32 1e-05, %v2340_v57  ;;  %v13304_v60 = vadd.f32 %v13272_v48, %v2444_v55  ;;  %v11689_v57 = vld [vmem:[%s16867_s11 + $0x9c] sm:$0xf] }
 0x92b   : > { %v2386_v18 = vmul.f32 %v12204_v34, %v2385_v45  ;;  %v2392_v26 = vmul.f32 %v12206_v52, %v2347_v2  ;;  %vm2398_vm10 = vweird.f32 %v12206_v52  ;;  %v11688_v2 = vld [vmem:[%s16867_s11 + $0x94] sm:$0xf]  ;;  %v9880_v45 = vld [vmem:[%s16867_s11 + $0xd8] sm:$0xf0] }
 0x92c   : > { %12207 = vrsqrt.f32 %v2348_v54  ;;  %16936 = vst [vmem:[#allocation18_spill] sm:$0xff] %v13304_v60  ;;  %vm2399_vm13 = vmor %vm2397_vm12, %vm2398_vm10  ;;  %vm2407_vm15 = vweird.f32 %v2348_v54  ;;  %v9875_v40 = vor.u32 %v11688_v2, %v9872_v62  ;;  %v9883_v53 = vor.u32 %v11689_v57, %v9880_v45  ;;  %v11674_v62 = vld [vmem:[%s16867_s11 + $0x24] sm:$0xf]  ;;  %v11683_v57 = vld [vmem:[%s16867_s11 + $0x64] sm:$0xf0] }
 0x92d   : > { %v2390_v19 = vsel %vm2389_vm9, %v12204_v34, %v2386_v18  ;;  %v2393_v49 = vmul.f32 %v12206_v52, %v2392_v26  ;;  %v11696_v34 = vld [vmem:[%s16867_s11 + $0xcc] sm:$0xf0] }
 0x92e   : > { %v2434_v42 = vmul.f32 %v2390_v19, %v13183_v8  ;;  %v9871_v24 = vor.u32 %v11696_v34, %v9870_v27  ;;  %2856 = vmatpush.bf16.msra.mxu2 %v9875_v40  ;;  %v9806_v18 = vld [vmem:[%s16867_s11 + $0x10] sm:$0xf]  ;;  %v11672_v19 = vld [vmem:[%s16867_s11 + $0x14] sm:$0xf]  ;;  %2914 = vmatpush.bf16.msra.mxu0 %v9883_v53  ;;  %v11691_v27 = vld [vmem:[%s16867_s11 + $0xac] sm:$0xf] }
 0x92f   : > { %v2394_v9 = vmul.f32 0.5, %v2393_v49  ;;  %v11680_v26 = vld [vmem:[%s16867_s11 + $0x4c] sm:$0xf0]  ;;  %v9896_v34 = vld [vmem:[%s16867_s11 + $0xe8] sm:$0xf0] }
 0x930   : > { %v2445_v59 = vmul.f32 %v13266_v4, %v2434_v42  ;;  %2827 = vmatpush.bf16.msrb.mxu1 %v9871_v24  ;;  %v9807_v42 = vor.u32 %v11680_v26, %v9806_v18  ;;  %v9899_v2 = vor.u32 %v11691_v27, %v9896_v34  ;;  %v11682_v24 = vld [vmem:[%s16867_s11 + $0x5c] sm:$0xf0]  ;;  %v9824_v40 = vld [vmem:[%s16867_s11 + $0x60] sm:$0xf0]  ;;  %v11675_v53 = vld [vmem:[%s16867_s11 + $0x2c] sm:$0xf] }
 0x931   : > { %v2395_v0 = vsub.f32 1.5, %v2394_v9  ;;  %v9808_v9 = vld [vmem:[%s16867_s11 + $0x50] sm:$0xf0]  ;;  %v9827_v45 = vor.u32 %v11674_v62, %v9824_v40  ;;  %v11677_v40 = vld [vmem:[%s16867_s11 + $0x3c] sm:$0xf] }
 0x932   : > { %v12208_v47 = vpop.eup %12207  ;;  %v13307_v35 = vadd.f32 %v13272_v48, %v2445_v59  ;;  %v9814_v59 = vld [vmem:[%s16867_s11 + $0x18] sm:$0xf]  ;;  %v11676_v27 = vld [vmem:[%s16867_s11 + $0x34] sm:$0xf] }
 0x933   : > { %v2396_v30 = vmul.f32 %v12206_v52, %v2395_v0  ;;  %v2402_v17 = vmul.f32 %v12208_v47, %v2348_v54  ;;  %vm2408_vm14 = vweird.f32 %v12208_v47  ;;  %v11681_v0 = vld [vmem:[%s16867_s11 + $0x54] sm:$0xf0] }
 0x934   : > { %16937 = vst [vmem:[#allocation19_spill] sm:$0xff] %v13307_v35  ;;  %v13311_v38 = vpack.c.bf16 %v13307_v35, %v13304_v60  ;;  %vm2409_vm1 = vmor %vm2407_vm15, %vm2408_vm14  ;;  %2828 = vmatpush.bf16.msrb.mxu1 %v9807_v42 }
 0x935   : > { %v2403_v8 = vmul.f32 %v12208_v47, %v2402_v17  ;;  %v2400_v46 = vsel %vm2399_vm13, %v12206_v52, %v2396_v30  ;;  %v9879_v52 = vor.u32 %v11697_v20, %v9878_v12  ;;  %v9815_v30 = vor.u32 %v11681_v0, %v9814_v59  ;;  %v11673_v17 = vld [vmem:[%s16867_s11 + $0x1c] sm:$0xf]  ;;  %v9830_v20 = vld [vmem:[%s16867_s11 + $0x28] sm:$0xf] }
 0x936   : > { %9917 = vmatmul.msk.bf16.gmra.mxu1 %vm608_vm0, %v13311_v38  ;;  %9921 = vmatmul.msk.bf16.gmra.mxu2 %vm608_vm0, %v13311_v38  ;;  %v2435_v37 = vmul.f32 %v2400_v46, %v13189_v14  ;;  %v2331_v14 = vpop.xlane.xlu0 %2330 }
 0x937   : > { %v2404_v63 = vmul.f32 0.5, %v2403_v8  ;;  %9925 = vmatmul.msk.bf16.gmra.mxu3 %vm608_vm0, %v13311_v38  ;;  %9929 = vmatmul.msk.bf16.gmra.mxu0 %vm608_vm0, %v13311_v38  ;;  %v9816_v8 = vld [vmem:[%s16867_s11 + $0x58] sm:$0xf0] }
 0x938   : > { %v2446_v15 = vmul.f32 %v13266_v4, %v2435_v37  ;;  %2885 = vmatpush.bf16.msrb.mxu3 %v9879_v52  ;;  %v9831_v52 = vor.u32 %v11683_v57, %v9830_v20  ;;  %v9848_v20 = vld [vmem:[%s16867_s11 + $0x78] sm:$0xf0] }
 0x939   : > { %v2405_v56 = vsub.f32 1.5, %v2404_v63  ;;  %v9819_v63 = vor.u32 %v11673_v17, %v9816_v8  ;;  %v9851_v57 = vor.u32 %v11677_v40, %v9848_v20  ;;  %v11727_v20 = vld [vmem:[%s16869_s13 + $0xc8] sm:$0xff] }
 0x93a   : > { %v13326_v31 = vadd.f32 %v13272_v48, %v2446_v15 }
 0x93b   : > { %v2406_v58 = vmul.f32 %v12208_v47, %v2405_v56  ;;  %2915 = vmatpush.bf16.msra.mxu0 %v9819_v63 }
 0x93c   : > { %16938 = vst [vmem:[#allocation20_spill] sm:$0xff] %v13326_v31  ;;  %2886 = vmatpush.bf16.msrb.mxu3 %v9815_v30 }
 0x93d   : > { %v2410_v1 = vsel %vm2409_vm1, %v12208_v47, %v2406_v58  ;;  %v9811_v47 = vor.u32 %v11672_v19, %v9808_v9 }
 0x93e   : > { %v2436_v50 = vmul.f32 %v2410_v1, %v13195_v29  ;;  %v2341_v29 = vmul.f32 %v2331_v14, %v13157_v44 }
 0x93f   : > { %2857 = vmatpush.bf16.msra.mxu2 %v9811_v47  ;;  %3030 = vmatpush.bf16.msrb.mxu0 %v9899_v2  ;;  %v9840_v2 = vld [vmem:[%s16867_s11 + $0x70] sm:$0xf0] }
 0x940   : > { %v2447_v61 = vmul.f32 %v13266_v4, %v2436_v50  ;;  %v2349_v43 = vadd.f32 1e-05, %v2341_v29  ;;  %v9843_v62 = vor.u32 %v11676_v27, %v9840_v2  ;;  %v11728_v2 = vld [vmem:[%s16869_s13 + $0xd0] sm:$0xff] }
 0x942   : > { %v13329_v28 = vadd.f32 %v13272_v48, %v2447_v61  ;;  %12209 = vrsqrt.f32 %v2349_v43  ;;  %vm2417_vm3 = vweird.f32 %v2349_v43 }
 0x944   : > { %16939 = vst [vmem:[#allocation21_spill] sm:$0xff] %v13329_v28  ;;  %v13333_v32 = vpack.c.bf16 %v13329_v28, %v13326_v31 }
 0x946   : > { %9918 = vmatmul.msk.bf16.gmra.mxu1 %vm608_vm0, %v13333_v32  ;;  %9922 = vmatmul.msk.bf16.gmra.mxu2 %vm608_vm0, %v13333_v32 }
 0x947   : > { %9926 = vmatmul.msk.bf16.gmra.mxu3 %vm608_vm0, %v13333_v32  ;;  %9930 = vmatmul.msk.bf16.gmra.mxu0 %vm608_vm0, %v13333_v32 }
 0x948   : > { %v12210_v5 = vpop.eup %12209 }
 0x949   : > { %v2412_v25 = vmul.f32 %v12210_v5, %v2349_v43  ;;  %vm2418_vm2 = vweird.f32 %v12210_v5 }
 0x94a   : > { %vm2419_vm4 = vmor %vm2417_vm3, %vm2418_vm2 }
 0x94b   : > { %v2413_v41 = vmul.f32 %v12210_v5, %v2412_v25 }
 0x94d   : > { %v2414_v36 = vmul.f32 0.5, %v2413_v41  ;;  %v9888_v41 = vld [vmem:[%s16867_s11 + $0xe0] sm:$0xf0] }
 0x94f   : > { %v2415_v3 = vsub.f32 1.5, %v2414_v36 }
 0x951   : > { %v2416_v49 = vmul.f32 %v12210_v5, %v2415_v3  ;;  %v9822_v3 = vld [vmem:[%s16867_s11 + $0x20] sm:$0xf] }
 0x952   : > { %v9823_v12 = vor.u32 %v11682_v24, %v9822_v3  ;;  %v9846_v3 = vld [vmem:[%s16867_s11 + $0x38] sm:$0xf] }
 0x953   : > { %v2420_v56 = vsel %vm2419_vm4, %v12210_v5, %v2416_v49  ;;  %v11685_v24 = vld [vmem:[%s16867_s11 + $0x74] sm:$0xf0] }
 0x954   : > { %v2437_v1 = vmul.f32 %v2420_v56, %v13201_v11  ;;  %v9886_v11 = vld [vmem:[%s16867_s11 + $0xa0] sm:$0xf] }
 0x956   : > { %v2448_v61 = vmul.f32 %v13266_v4, %v2437_v1  ;;  %v11700_v1 = vld [vmem:[%s16867_s11 + $0xec] sm:$0xf0] }
 0x958   : > { %v13399_v43 = vadd.f32 %v13272_v48, %v2448_v61  ;;  %v9904_v61 = vld [vmem:[%s16867_s11 + $0xf0] sm:$0xf0] }
 0x95a   : > { %16940 = vst [vmem:[#allocation22_spill] sm:$0xff] %v13399_v43 }
 0x969   : > { %v2334_v39 = vpop.xlane.xlu1 %2333 }
 0x96a   : > { %v2342_v10 = vmul.f32 %v2334_v39, %v13157_v44  ;;  %v9894_v39 = vld [vmem:[%s16867_s11 + $0xa8] sm:$0xf] }
 0x96c   : > { %v2350_v7 = vadd.f32 1e-05, %v2342_v10  ;;  %v11699_v10 = vld [vmem:[%s16867_s11 + $0xe4] sm:$0xf0] }
 0x96d   : > { %v9895_v36 = vor.u32 %v11699_v10, %v9894_v39 }
 0x96e   : > { %12211 = vrsqrt.f32 %v2350_v7  ;;  %vm2427_vm6 = vweird.f32 %v2350_v7 }
 0x96f   : > { %3001 = vmatpush.bf16.msra.mxu3 %v9895_v36  ;;  %v11684_v36 = vld [vmem:[%s16867_s11 + $0x6c] sm:$0xf0] }
 0x973   : > { %3002 = vmatpush.bf16.msra.mxu3 %v9831_v52  ;;  %v11733_v52 = vld [vmem:[%s16869_s13 + $0xf8] sm:$0xff] }
 0x974   : > { %v12212_v54 = vpop.eup %12211 }
 0x975   : > { %v2422_v55 = vmul.f32 %v12212_v54, %v2350_v7  ;;  %vm2428_vm5 = vweird.f32 %v12212_v54 }
 0x976   : > { %vm2429_vm7 = vmor %vm2427_vm6, %vm2428_vm5 }
 0x977   : > { %v2423_v46 = vmul.f32 %v12212_v54, %v2422_v55 }
 0x979   : > { %v2424_v37 = vmul.f32 0.5, %v2423_v46 }
 0x97b   : > { %v2425_v58 = vsub.f32 1.5, %v2424_v37 }
 0x97d   : > { %v2426_v15 = vmul.f32 %v12212_v54, %v2425_v58  ;;  %v9902_v58 = vld [vmem:[%s16867_s11 + $0xb0] sm:$0xf] }
 0x97f   : > { %v2430_v50 = vsel %vm2429_vm7, %v12212_v54, %v2426_v15  ;;  %v9832_v54 = vld [vmem:[%s16867_s11 + $0x68] sm:$0xf0]  ;;  %v11692_v15 = vld [vmem:[%s16867_s11 + $0xb4] sm:$0xf] }
 0x980   : > { %v2438_v14 = vmul.f32 %v2430_v50, %v13258_v16  ;;  %v11698_v16 = vld [vmem:[%s16867_s11 + $0xdc] sm:$0xf0]  ;;  %v9835_v18 = vor.u32 %v11675_v53, %v9832_v54  ;;  %v9903_v50 = vor.u32 %v11700_v1, %v9902_v58  ;;  %v11731_v1 = vld [vmem:[%s16869_s13 + $0xe8] sm:$0xff] }
 0x982   : > { %v2449_v29 = vmul.f32 %v13266_v4, %v2438_v14  ;;  %v11690_v4 = vld [vmem:[%s16867_s11 + $0xa4] sm:$0xf]  ;;  %3031 = vmatpush.bf16.msrb.mxu0 %v9835_v18  ;;  %v9910_v14 = vld [vmem:[%s16867_s11 + $0xb8] sm:$0xf]  ;;  %v11732_v18 = vld [vmem:[%s16869_s13 + $0xf0] sm:$0xff] }
 0x983   : > { %v9891_v7 = vor.u32 %v11690_v4, %v9888_v41  ;;  %v11693_v4 = vld [vmem:[%s16867_s11 + $0xbc] sm:$0xf] }
 0x984   : > { %v13402_v5 = vadd.f32 %v13272_v48, %v2449_v29  ;;  %v9887_v48 = vor.u32 %v11698_v16, %v9886_v11  ;;  %v11701_v29 = vld [vmem:[%s16867_s11 + $0xf4] sm:$0xf0]  ;;  %v9907_v11 = vor.u32 %v11692_v15, %v9904_v61 }
 0x985   : > { %2972 = vmatpush.bf16.msrb.mxu2 %v9891_v7  ;;  %v9911_v16 = vor.u32 %v11701_v29, %v9910_v14  ;;  %v9838_v7 = vld [vmem:[%s16867_s11 + $0x30] sm:$0xf]  ;;  %v11730_v29 = vld [vmem:[%s16869_s13 + $0xe0] sm:$0xff] }
 0x986   : > { %16941 = vst [vmem:[#allocation23_spill] sm:$0xff] %v13402_v5  ;;  %v13406_v25 = vpack.c.bf16 %v13402_v5, %v13399_v43  ;;  %2943 = vmatpush.bf16.msra.mxu1 %v9887_v48  ;;  %v9912_v48 = vld [vmem:[%s16867_s11 + $0xf8] sm:$0xf0]  ;;  %v9839_v34 = vor.u32 %v11684_v36, %v9838_v7  ;;  %v11714_v5 = vld [vmem:[%s16869_s13 + $0x60] sm:$0xff]  ;;  %v11711_v43 = vld [vmem:[%s16869_s13 + $0x48] sm:$0xff] }
 0x987   : > { %v9915_v39 = vor.u32 %v11693_v4, %v9912_v48  ;;  %v11729_v4 = vld [vmem:[%s16869_s13 + $0xd8] sm:$0xff] }
 0x988   : > { %9919 = vmatmul.msk.bf16.gmra.mxu1 %vm608_vm0, %v13406_v25  ;;  %9923 = vmatmul.msk.bf16.gmra.mxu2 %vm608_vm0, %v13406_v25 }
 0x989   : > { %9927 = vmatmul.msk.bf16.gmra.mxu3 %vm608_vm0, %v13406_v25  ;;  %9931 = vmatmul.msk.bf16.gmra.mxu0 %vm608_vm0, %v13406_v25 }
 0x98a   : > { %2944 = vmatpush.bf16.msra.mxu1 %v9823_v12  ;;  %2973 = vmatpush.bf16.msrb.mxu2 %v9827_v45  ;;  %v13496_v26 = vpop.f32.mrf.mxu1  ;;  %v9847_v12 = vor.u32 %v11685_v24, %v9846_v3 }
 0x98b   : > { %v13498_v19 = vpop.f32.mrf.mxu0 }
 0x990   : > { %v13500_v49 = vpop.f32.mrf.mxu2 }
 0x991   : > { %v13502_v55 = vpop.f32.mrf.mxu3 }
 0x992   : > { %v13504_v42 = vpop.f32.mrf.mxu1 }
 0x993   : > { %v13506_v9 = vpop.f32.mrf.mxu0 }
 0x998   : > { %9932 = vmatmul.msk.bf16.vlgmr.msrb.gmra.mxu1 %vm608_vm0, %v13285_v51  ;;  %9936 = vmatmul.msk.bf16.vlgmr.msra.gmra.mxu2 %vm608_vm0, %v13285_v51  ;;  %v13516_v59 = vpop.f32.mrf.mxu2 }
 0x999   : > { %9940 = vmatmul.msk.bf16.vlgmr.msrb.gmra.mxu3 %vm608_vm0, %v13285_v51  ;;  %9944 = vmatmul.msk.bf16.vlgmr.msra.gmra.mxu0 %vm608_vm0, %v13285_v51  ;;  %v13518_v0 = vpop.f32.mrf.mxu3 }
 0x99a   : > { %3059 = vmatpush.bf16.msrb.mxu1 %v9903_v50  ;;  %3088 = vmatpush.bf16.msra.mxu2 %v9907_v11  ;;  %v13633_v11 = vld [vmem:[%s16868_s12] sm:$0xff] }
 0x99b   : > { %3117 = vmatpush.bf16.msrb.mxu3 %v9911_v16  ;;  %3146 = vmatpush.bf16.msra.mxu0 %v9915_v39  ;;  %v13644_v16 = vperm.slane %v13633_v11, 0  ;;  %v13657_v3 = vperm.slane %v13633_v11, 1 }
 0x99e   : > { %3060 = vmatpush.bf16.msrb.mxu1 %v9839_v34  ;;  %3089 = vmatpush.bf16.msra.mxu2 %v9843_v62 }
 0x99f   : > { %3118 = vmatpush.bf16.msrb.mxu3 %v9847_v12  ;;  %3147 = vmatpush.bf16.msra.mxu0 %v9851_v57  ;;  %v13660_v12 = vperm.slane %v13633_v11, 2 }
 0x9a8   : > { %9933 = vmatmul.msk.bf16.gmra.mxu1 %vm608_vm0, %v13311_v38  ;;  %9937 = vmatmul.msk.bf16.gmra.mxu2 %vm608_vm0, %v13311_v38 }
 0x9a9   : > { %9941 = vmatmul.msk.bf16.gmra.mxu3 %vm608_vm0, %v13311_v38  ;;  %9945 = vmatmul.msk.bf16.gmra.mxu0 %vm608_vm0, %v13311_v38 }
 0x9b3   : > { %v13520_v47 = vpop.f32.mrf.mxu1 }
 0x9b4   : > { %v13522_v30 = vpop.f32.mrf.mxu0 }
 0x9b8   : > { %9934 = vmatmul.msk.bf16.gmra.mxu1 %vm608_vm0, %v13333_v32  ;;  %9938 = vmatmul.msk.bf16.gmra.mxu2 %vm608_vm0, %v13333_v32 }
 0x9b9   : > { %9942 = vmatmul.msk.bf16.gmra.mxu3 %vm608_vm0, %v13333_v32  ;;  %9946 = vmatmul.msk.bf16.gmra.mxu0 %vm608_vm0, %v13333_v32  ;;  %v13524_v17 = vpop.f32.mrf.mxu2 }
 0x9ba   : > { %v13526_v8 = vpop.f32.mrf.mxu3 }
 0x9bb   : > { %v13532_v46 = vpop.f32.mrf.mxu1 }
 0x9bc   : > { %v13538_v63 = vpop.f32.mrf.mxu0 }
 0x9c1   : > { %v13540_v56 = vpop.f32.mrf.mxu2 }
 0x9c2   : > { %v13542_v37 = vpop.f32.mrf.mxu3 }
 0x9c3   : > { %v13568_v41 = vpop.f32.mrf.mxu1 }
 0x9c4   : > { %v13570_v10 = vpop.f32.mrf.mxu0 }
 0x9c8   : > { %9935 = vmatmul.msk.bf16.gmra.mxu1 %vm608_vm0, %v13406_v25  ;;  %9939 = vmatmul.msk.bf16.gmra.mxu2 %vm608_vm0, %v13406_v25 }
 0x9c9   : > { %9943 = vmatmul.msk.bf16.gmra.mxu3 %vm608_vm0, %v13406_v25  ;;  %9947 = vmatmul.msk.bf16.gmra.mxu0 %vm608_vm0, %v13406_v25  ;;  %v13600_v45 = vpop.f32.mrf.mxu2 }
 0x9ca   : > { %v13609_v53 = vpop.f32.mrf.mxu3 }
 0x9cb   : > { %v13611_v54 = vpop.f32.mrf.mxu1 }
 0x9cc   : > { %v13616_v58 = vpop.f32.mrf.mxu0 }
 0x9d1   : > { %v13621_v15 = vpop.f32.mrf.mxu2 }
 0x9d2   : > { %v13623_v50 = vpop.f32.mrf.mxu3 }
 0x9d8   : > { %9948 = vmatmul.msk.bf16.vlgmr.msra.gmra.mxu1 %vm608_vm0, %v13285_v51  ;;  %9952 = vmatmul.msk.bf16.vlgmr.msrb.gmra.mxu2 %vm608_vm0, %v13285_v51 }
 0x9d9   : > { %9956 = vmatmul.msk.bf16.vlgmr.msra.gmra.mxu3 %vm608_vm0, %v13285_v51  ;;  %9960 = vmatmul.msk.bf16.vlgmr.msrb.gmra.mxu0 %vm608_vm0, %v13285_v51 }
 0x9da   : > { %12004 = vmatpush.bf16.msra.mxu1 %v9915_v39  ;;  %4476 = vmatpush.bf16.msrb.mxu0 %v11733_v52 }
 0x9de   : > { %12005 = vmatpush.bf16.msra.mxu1 %v9851_v57  ;;  %4477 = vmatpush.bf16.msrb.mxu0 %v11732_v18 }
 0x9e2   : > { %4478 = vmatpush.bf16.msrb.mxu0 %v11731_v1 }
 0x9e6   : > { %4479 = vmatpush.bf16.msrb.mxu0 %v11730_v29 }
 0x9e8   : > { %9949 = vmatmul.msk.bf16.gmra.mxu1 %vm608_vm0, %v13311_v38  ;;  %9953 = vmatmul.msk.bf16.gmra.mxu2 %vm608_vm0, %v13311_v38 }
 0x9e9   : > { %9957 = vmatmul.msk.bf16.gmra.mxu3 %vm608_vm0, %v13311_v38  ;;  %9961 = vmatmul.msk.bf16.gmra.mxu0 %vm608_vm0, %v13311_v38 }
 0x9ea   : > { %4480 = vmatpush.bf16.msrb.mxu0 %v11729_v4 }
 0x9ee   : > { %4481 = vmatpush.bf16.msrb.mxu0 %v11728_v2 }
 0x9f2   : > { %4482 = vmatpush.bf16.msrb.mxu0 %v11727_v20  ;;  %v11725_v20 = vld [vmem:[%s16869_s13 + $0xb8] sm:$0xff] }
 0x9f3   : > { %4447 = vmatpush.bf16.msra.mxu3 %v11725_v20  ;;  %v11715_v20 = vld [vmem:[%s16869_s13 + $0x68] sm:$0xff] }
 0x9f8   : > { %9950 = vmatmul.msk.bf16.gmra.mxu1 %vm608_vm0, %v13333_v32  ;;  %9954 = vmatmul.msk.bf16.gmra.mxu2 %vm608_vm0, %v13333_v32 }
 0x9f9   : > { %9958 = vmatmul.msk.bf16.gmra.mxu3 %vm608_vm0, %v13333_v32  ;;  %9962 = vmatmul.msk.bf16.gmra.mxu0 %vm608_vm0, %v13333_v32 }
 0xa05   : > { %v2729_v61 = vpop.f32.mrf.mxu1 }
 0xa06   : > { %v13625_v14 = vpop.f32.mrf.mxu0  ;;  %v2730_v39 = vadd.f32 %v2729_v61, %v13644_v16 }
 0xa08   : > { %9951 = vmatmul.msk.bf16.gmra.mxu1 %vm608_vm0, %v13406_v25  ;;  %9955 = vmatmul.msk.bf16.gmra.mxu2 %vm608_vm0, %v13406_v25  ;;  %v3265_v24 = vmax.f32 %v2730_v39, 0.0 }
 0xa09   : > { %9959 = vmatmul.msk.bf16.gmra.mxu3 %vm608_vm0, %v13406_v25  ;;  %9963 = vmatmul.msk.bf16.gmra.mxu0 %vm608_vm0, %v13406_v25 }
 0xa0b   : > { %v2758_v48 = vpop.f32.mrf.mxu2 }
 0xa0c   : > { %v2787_v7 = vpop.f32.mrf.mxu3  ;;  %v2759_v40 = vadd.f32 %v2758_v48, %v13657_v3  ;;  %v11726_v48 = vld [vmem:[%s16869_s13 + $0xc0] sm:$0xff] }
 0xa0d   : > { %v2731_v36 = vpop.f32.mrf.mxu1  ;;  %v2788_v52 = vadd.f32 %v2787_v7, %v13660_v12  ;;  %v13677_v7 = vperm.slane %v13633_v11, 4  ;;  %4483 = vmatpush.bf16.msrb.mxu0 %v11726_v48 }
 0xa0e   : > { %v2732_v27 = vadd.f32 %v2731_v36, %v13644_v16  ;;  %v13651_v34 = vpop.f32.mrf.mxu0  ;;  %v3266_v39 = vmax.f32 %v2759_v40, 0.0  ;;  %v11717_v40 = vld [vmem:[%s16869_s13 + $0x78] sm:$0xff] }
 0xa0f   : > { %v3267_v2 = vmax.f32 %v2788_v52, 0.0  ;;  %4418 = vmatpush.bf16.msrb.mxu2 %v11717_v40 }
 0xa10   : > { %v3281_v62 = vmax.f32 %v2732_v27, 0.0 }
 0xa12   : > { %v13666_v57 = vpack.c.bf16 %v3281_v62, %v3265_v24 }
 0xa13   : > { %v2760_v18 = vpop.f32.mrf.mxu2 }
 0xa14   : > { %v2761_v1 = vadd.f32 %v2760_v18, %v13657_v3  ;;  %v2789_v61 = vpop.f32.mrf.mxu3 }
 0xa15   : > { %v2790_v29 = vadd.f32 %v2789_v61, %v13660_v12  ;;  %v2830_v4 = vpop.f32.mrf.mxu1 }
 0xa16   : > { %v3282_v36 = vmax.f32 %v2761_v1, 0.0  ;;  %v13671_v27 = vpop.f32.mrf.mxu0  ;;  %v2831_v1 = vadd.f32 %v2830_v4, %v13677_v7 }
 0xa17   : > { %v3283_v24 = vmax.f32 %v2790_v29, 0.0 }
 0xa18   : > { %9964 = vmatmul.msk.bf16.vlgmr.msrb.gmra.mxu1 %vm608_vm0, %v13285_v51  ;;  %9968 = vmatmul.msk.bf16.vlgmr.msra.gmra.mxu2 %vm608_vm0, %v13285_v51  ;;  %v13683_v62 = vpack.c.bf16 %v3282_v36, %v3266_v39  ;;  %v11724_v39 = vld [vmem:[%s16869_s13 + $0xb0] sm:$0xff]  ;;  %v13705_v36 = vperm.slane %v13633_v11, 5  ;;  %v3173_v4 = vmax.f32 %v2831_v1, 0.0 }
 0xa19   : > { %9972 = vmatmul.msk.bf16.vlgmr.msrb.gmra.mxu3 %vm608_vm0, %v13285_v51  ;;  %9976 = vmatmul.msk.bf16.vlgmr.msra.gmra.mxu0 %vm608_vm0, %v13285_v51  ;;  %v13695_v52 = vpack.c.bf16 %v3283_v24, %v3267_v2  ;;  %v11716_v51 = vld [vmem:[%s16869_s13 + $0x70] sm:$0xff]  ;;  %v13711_v24 = vperm.slane %v13633_v11, 6 }
 0xa1a   : > { %4419 = vmatpush.bf16.msrb.mxu2 %v11716_v51  ;;  %4448 = vmatpush.bf16.msra.mxu3 %v11724_v39 }
 0xa1b   : > { %v2859_v18 = vpop.f32.mrf.mxu2 }
 0xa1c   : > { %v2888_v61 = vpop.f32.mrf.mxu3  ;;  %v2860_v22 = vadd.f32 %v2859_v18, %v13705_v36  ;;  %v11722_v18 = vld [vmem:[%s16869_s13 + $0xa0] sm:$0xff] }
 0xa1d   : > { %v2832_v29 = vpop.f32.mrf.mxu1  ;;  %v2889_v21 = vadd.f32 %v2888_v61, %v13711_v24 }
 0xa1e   : > { %v2833_v48 = vadd.f32 %v2832_v29, %v13677_v7  ;;  %v13708_v2 = vpop.f32.mrf.mxu0  ;;  %4420 = vmatpush.bf16.msrb.mxu2 %v11715_v20  ;;  %4449 = vmatpush.bf16.msra.mxu3 %v11723_v23 }
 0xa1f   : > { %v3175_v20 = vmax.f32 %v2889_v21, 0.0  ;;  %v11713_v21 = vld [vmem:[%s16869_s13 + $0x58] sm:$0xff] }
 0xa20   : > { %v3189_v40 = vmax.f32 %v2833_v48, 0.0 }
 0xa22   : > { %v13720_v29 = vpack.c.bf16 %v3189_v40, %v3173_v4  ;;  %v3174_v4 = vmax.f32 %v2860_v22, 0.0  ;;  %4421 = vmatpush.bf16.msrb.mxu2 %v11714_v5  ;;  %4450 = vmatpush.bf16.msra.mxu3 %v11722_v18  ;;  %v11721_v22 = vld [vmem:[%s16869_s13 + $0x98] sm:$0xff]  ;;  %v13753_v18 = vperm.slane %v13633_v11, 3 }
 0xa23   : > { %v2861_v33 = vpop.f32.mrf.mxu2 }
 0xa24   : > { %16942 = vst [vmem:[#allocation24_spill] sm:$0xff] %v13720_v29  ;;  %v2862_v1 = vadd.f32 %v2861_v33, %v13705_v36  ;;  %v2890_v51 = vpop.f32.mrf.mxu3  ;;  %v2802_v44 = vadd.f32 %v13498_v19, %v13753_v18  ;;  %v11706_v29 = vld [vmem:[%s16869_s13 + $0x20] sm:$0xff] }
 0xa25   : > { %v2891_v39 = vadd.f32 %v2890_v51, %v13711_v24  ;;  %v2835_v48 = vpop.f32.mrf.mxu1 }
 0xa26   : > { %v3190_v40 = vmax.f32 %v2862_v1, 0.0  ;;  %v13731_v61 = vpop.f32.mrf.mxu0  ;;  %4422 = vmatpush.bf16.msrb.mxu2 %v11713_v21  ;;  %4451 = vmatpush.bf16.msra.mxu3 %v11721_v22  ;;  %v2836_v1 = vadd.f32 %v2835_v48, %v13677_v7  ;;  %v2804_v48 = vadd.f32 %v13506_v9, %v13753_v18 }
 0xa27   : > { %v3191_v23 = vmax.f32 %v2891_v39, 0.0 }
 0xa28   : > { %v13733_v33 = vpack.c.bf16 %v3190_v40, %v3174_v4  ;;  %9965 = vmatmul.msk.bf16.gmra.mxu1 %vm608_vm0, %v13311_v38  ;;  %9969 = vmatmul.msk.bf16.gmra.mxu2 %vm608_vm0, %v13311_v38  ;;  %v11720_v40 = vld [vmem:[%s16869_s13 + $0x90] sm:$0xff]  ;;  %v3205_v21 = vmax.f32 %v2836_v1, 0.0  ;;  %v3188_v9 = vmax.f32 %v2804_v48, 0.0 }
 0xa29   : > { %v13739_v51 = vpack.c.bf16 %v3191_v23, %v3175_v20  ;;  %9973 = vmatmul.msk.bf16.gmra.mxu3 %vm608_vm0, %v13311_v38  ;;  %9977 = vmatmul.msk.bf16.gmra.mxu0 %vm608_vm0, %v13311_v38  ;;  %v11712_v38 = vld [vmem:[%s16869_s13 + $0x50] sm:$0xff] }
 0xa2a   : > { %4423 = vmatpush.bf16.msrb.mxu2 %v11712_v38  ;;  %4452 = vmatpush.bf16.msra.mxu3 %v11720_v40 }
 0xa2b   : > { %v2864_v5 = vpop.f32.mrf.mxu2 }
 0xa2c   : > { %v2893_v39 = vpop.f32.mrf.mxu3  ;;  %v2865_v28 = vadd.f32 %v2864_v5, %v13705_v36  ;;  %v11718_v5 = vld [vmem:[%s16869_s13 + $0x80] sm:$0xff] }
 0xa2d   : > { %v2837_v4 = vpop.f32.mrf.mxu1  ;;  %v2894_v38 = vadd.f32 %v2893_v39, %v13711_v24 }
 0xa2e   : > { %v2838_v20 = vadd.f32 %v2837_v4, %v13677_v7  ;;  %v13762_v23 = vpop.f32.mrf.mxu0  ;;  %v11719_v4 = vld [vmem:[%s16869_s13 + $0x88] sm:$0xff]  ;;  %4424 = vmatpush.bf16.msrb.mxu2 %v11711_v43  ;;  %v3206_v48 = vmax.f32 %v2865_v28, 0.0  ;;  %v11709_v28 = vld [vmem:[%s16869_s13 + $0x38] sm:$0xff] }
 0xa2f   : > { %4453 = vmatpush.bf16.msra.mxu3 %v11719_v4  ;;  %4389 = vmatpush.bf16.msrb.mxu1 %v11709_v28  ;;  %v11763_v28 = vld [vmem:[%s16869_s13 + $0x1e8] sm:$0xff] }
 0xa30   : > { %v3221_v22 = vmax.f32 %v2838_v20, 0.0  ;;  %v3172_v20 = vmax.f32 %v2802_v44, 0.0 }
 0xa32   : > { %v13775_v31 = vpack.c.bf16 %v3221_v22, %v3205_v21  ;;  %v3300_v43 = vpack.c.bf16 %v3188_v9, %v3172_v20  ;;  %v3207_v22 = vmax.f32 %v2894_v38, 0.0  ;;  %4425 = vmatpush.bf16.msrb.mxu2 %v11710_v13  ;;  %v11765_v13 = vld [vmem:[%s16869_s13 + $0x1f8] sm:$0xff]  ;;  %v11764_v20 = vld [vmem:[%s16869_s13 + $0x1f0] sm:$0xff] }
 0xa33   : > { %v2866_v1 = vpop.f32.mrf.mxu2  ;;  %4454 = vmatpush.bf16.msra.mxu3 %v11718_v5  ;;  %4592 = vmatpush.bf16.msra.mxu0 %v11765_v13 }
 0xa34   : > { %16943 = vst [vmem:[#allocation25_spill] sm:$0xff] %v13775_v31  ;;  %v2867_v19 = vadd.f32 %v2866_v1, %v13705_v36  ;;  %v2895_v40 = vpop.f32.mrf.mxu3 }
 0xa35   : > { %v2896_v35 = vadd.f32 %v2895_v40, %v13711_v24  ;;  %v2840_v60 = vpop.f32.mrf.mxu1  ;;  %v11708_v40 = vld [vmem:[%s16869_s13 + $0x30] sm:$0xff] }
 0xa36   : > { %v3222_v39 = vmax.f32 %v2867_v19, 0.0  ;;  %v13786_v21 = vpop.f32.mrf.mxu0  ;;  %v2841_v38 = vadd.f32 %v2840_v60, %v13677_v7  ;;  %4390 = vmatpush.bf16.msrb.mxu1 %v11708_v40 }
 0xa37   : > { %v3223_v4 = vmax.f32 %v2896_v35, 0.0  ;;  %4593 = vmatpush.bf16.msra.mxu0 %v11764_v20 }
 0xa38   : > { %9966 = vmatmul.msk.bf16.gmra.mxu1 %vm608_vm0, %v13333_v32  ;;  %9970 = vmatmul.msk.bf16.gmra.mxu2 %vm608_vm0, %v13333_v32  ;;  %v13792_v44 = vpack.c.bf16 %v3222_v39, %v3206_v48  ;;  %v2809_v39 = vadd.f32 %v13538_v63, %v13753_v18  ;;  %v3237_v60 = vmax.f32 %v2841_v38, 0.0 }
 0xa39   : > { %9974 = vmatmul.msk.bf16.gmra.mxu3 %vm608_vm0, %v13333_v32  ;;  %4484 = vmatmul.bf16.vlgmr.msrb.gmra.mxu0 %v3300_v43  ;;  %v13802_v35 = vpack.c.bf16 %v3223_v4, %v3207_v22  ;;  %v2807_v22 = vadd.f32 %v13522_v30, %v13753_v18  ;;  %v11707_v4 = vld [vmem:[%s16869_s13 + $0x28] sm:$0xff] }
 0xa3a   : > { %v3220_v63 = vmax.f32 %v2809_v39, 0.0  ;;  %4391 = vmatpush.bf16.msrb.mxu1 %v11707_v4 }
 0xa3b   : > { %16944 = vst [vmem:[#allocation26_spill] sm:$0xff] %v13802_v35  ;;  %v2869_v9 = vpop.f32.mrf.mxu2  ;;  %4594 = vmatpush.bf16.msra.mxu0 %v11763_v28 }
 0xa3c   : > { %v2898_v1 = vpop.f32.mrf.mxu3  ;;  %v2870_v13 = vadd.f32 %v2869_v9, %v13705_v36  ;;  %v11762_v9 = vld [vmem:[%s16869_s13 + $0x1e0] sm:$0xff] }
 0xa3d   : > { %v2842_v19 = vpop.f32.mrf.mxu1  ;;  %v2899_v40 = vadd.f32 %v2898_v1, %v13711_v24 }
 0xa3e   : > { %v2843_v5 = vadd.f32 %v2842_v19, %v13677_v7  ;;  %v13812_v48 = vpop.f32.mrf.mxu0  ;;  %v3238_v39 = vmax.f32 %v2870_v13, 0.0  ;;  %4392 = vmatpush.bf16.msrb.mxu1 %v11706_v29  ;;  %v11705_v13 = vld [vmem:[%s16869_s13 + $0x18] sm:$0xff] }
 0xa3f   : > { %4595 = vmatpush.bf16.msra.mxu0 %v11762_v9  ;;  %v2746_v9 = vadd.f32 %v13516_v59, %v13657_v3  ;;  %v2773_v59 = vadd.f32 %v13502_v55, %v13660_v12 }
 0xa40   : > { %v3253_v43 = vmax.f32 %v2843_v5, 0.0  ;;  %v3204_v5 = vmax.f32 %v2807_v22, 0.0 }
 0xa42   : > { %v13825_v19 = vpack.c.bf16 %v3253_v43, %v3237_v60  ;;  %v3239_v43 = vmax.f32 %v2899_v40, 0.0  ;;  %v3316_v28 = vpack.c.bf16 %v3220_v63, %v3204_v5  ;;  %4393 = vmatpush.bf16.msrb.mxu1 %v11705_v13  ;;  %v11760_v5 = vld [vmem:[%s16869_s13 + $0x1d0] sm:$0xff] }
 0xa43   : > { %v2871_v38 = vpop.f32.mrf.mxu2 }
 0xa44   : > { %16945 = vst [vmem:[#allocation27_spill] sm:$0xff] %v13825_v19  ;;  %v2872_v30 = vadd.f32 %v2871_v38, %v13705_v36  ;;  %v2900_v20 = vpop.f32.mrf.mxu3 }
 0xa45   : > { %v2901_v6 = vadd.f32 %v2900_v20, %v13711_v24  ;;  %v2845_v31 = vpop.f32.mrf.mxu1  ;;  %v11704_v20 = vld [vmem:[%s16869_s13 + $0x10] sm:$0xff] }
 0xa46   : > { %v3254_v1 = vmax.f32 %v2872_v30, 0.0  ;;  %v13836_v60 = vpop.f32.mrf.mxu0  ;;  %v2846_v40 = vadd.f32 %v2845_v31, %v13677_v7  ;;  %v2775_v31 = vadd.f32 %v13518_v0, %v13660_v12  ;;  %4394 = vmatpush.bf16.msrb.mxu1 %v11704_v20  ;;  %v11703_v0 = vld [vmem:[%s16869_s13 + $0x8] sm:$0xff] }
 0xa47   : > { %v3255_v4 = vmax.f32 %v2901_v6, 0.0  ;;  %v11761_v6 = vld [vmem:[%s16869_s13 + $0x1d8] sm:$0xff] }
 0xa48   : > { %9967 = vmatmul.msk.bf16.gmra.mxu1 %vm608_vm0, %v13406_v25  ;;  %9971 = vmatmul.msk.bf16.gmra.mxu2 %vm608_vm0, %v13406_v25  ;;  %v13842_v22 = vpack.c.bf16 %v3254_v1, %v3238_v39 }
 0xa49   : > { %9975 = vmatmul.msk.bf16.gmra.mxu3 %vm608_vm0, %v13406_v25  ;;  %4489 = vmatmul.bf16.gmra.mxu0 %v3316_v28  ;;  %v13852_v29 = vpack.c.bf16 %v3255_v4, %v3239_v43  ;;  %v2814_v43 = vadd.f32 %v13616_v58, %v13753_v18  ;;  %v2744_v4 = vadd.f32 %v13500_v49, %v13657_v3  ;;  %v3269_v28 = vmax.f32 %v2846_v40, 0.0  ;;  %v11759_v58 = vld [vmem:[%s16869_s13 + $0x1c8] sm:$0xff] }
 0xa4a   : > { %16946 = vst [vmem:[#allocation28_spill] sm:$0xff] %v13842_v22  ;;  %4596 = vmatpush.bf16.msra.mxu0 %v11761_v6  ;;  %v3186_v6 = vmax.f32 %v2746_v9, 0.0  ;;  %v3187_v40 = vmax.f32 %v2775_v31, 0.0  ;;  %4395 = vmatpush.bf16.msrb.mxu1 %v11703_v0  ;;  %v11758_v31 = vld [vmem:[%s16869_s13 + $0x1c0] sm:$0xff] }
 0xa4b   : > { %16947 = vst [vmem:[#allocation29_spill] sm:$0xff] %v13852_v29  ;;  %v2874_v63 = vpop.f32.mrf.mxu2  ;;  %v3252_v20 = vmax.f32 %v2814_v43, 0.0  ;;  %v3171_v29 = vmax.f32 %v2773_v59, 0.0 }
 0xa4c   : > { %v2903_v38 = vpop.f32.mrf.mxu3 }
 0xa4d   : > { %v2847_v30 = vpop.f32.mrf.mxu1  ;;  %v2904_v55 = vadd.f32 %v2903_v38, %v13711_v24  ;;  %v11702_v38 = vld [vmem:[%s16869_s13] sm:$0xff] }
 0xa4e   : > { %v2848_v39 = vadd.f32 %v2847_v30, %v13677_v7  ;;  %v13864_v1 = vpop.f32.mrf.mxu0  ;;  %4597 = vmatpush.bf16.msra.mxu0 %v11760_v5  ;;  %v2812_v7 = vadd.f32 %v13570_v10, %v13753_v18  ;;  %v2875_v30 = vadd.f32 %v2874_v63, %v13705_v36  ;;  %v3170_v10 = vmax.f32 %v2744_v4, 0.0  ;;  %v13891_v63 = vld [vmem:[%s16868_s12 + $0x8] sm:$0xff]  ;;  %4396 = vmatpush.bf16.msrb.mxu1 %v11702_v38 }
 0xa4f   : > { %v2819_v38 = vadd.f32 %v13651_v34, %v13753_v18  ;;  %v11755_v34 = vld [vmem:[%s16869_s13 + $0x1a8] sm:$0xff] }
 0xa50   : > { %v3285_v13 = vmax.f32 %v2848_v39, 0.0  ;;  %v3236_v22 = vmax.f32 %v2812_v7, 0.0  ;;  %v3270_v43 = vmax.f32 %v2875_v30, 0.0  ;;  %v13902_v7 = vperm.slane %v13891_v63, 0 }
 0xa52   : > { %v13883_v49 = vpack.c.bf16 %v3285_v13, %v3269_v28  ;;  %4598 = vmatpush.bf16.msra.mxu0 %v11759_v58  ;;  %v3332_v59 = vpack.c.bf16 %v3252_v20, %v3236_v22  ;;  %v11756_v20 = vld [vmem:[%s16869_s13 + $0x1b0] sm:$0xff] }
 0xa53   : > { %v2876_v5 = vpop.f32.mrf.mxu2 }
 0xa54   : > { %v2877_v39 = vadd.f32 %v2876_v5, %v13705_v36  ;;  %v2905_v19 = vpop.f32.mrf.mxu3  ;;  %v3298_v36 = vpack.c.bf16 %v3186_v6, %v3170_v10  ;;  %v13926_v5 = vperm.slane %v13891_v63, 1 }
 0xa55   : > { %v2906_v35 = vadd.f32 %v2905_v19, %v13711_v24  ;;  %v2946_v9 = vpop.f32.mrf.mxu1  ;;  %v3299_v24 = vpack.c.bf16 %v3187_v40, %v3171_v29  ;;  %v3271_v19 = vmax.f32 %v2904_v55, 0.0  ;;  %v11749_v29 = vld [vmem:[%s16869_s13 + $0x178] sm:$0xff]  ;;  %v11748_v40 = vld [vmem:[%s16869_s13 + $0x170] sm:$0xff]  ;;  %v2751_v55 = vadd.f32 %v13540_v56, %v13657_v3 }
 0xa56   : > { %v3286_v4 = vmax.f32 %v2877_v39, 0.0  ;;  %v13899_v28 = vpop.f32.mrf.mxu0  ;;  %4599 = vmatpush.bf16.msra.mxu0 %v11758_v31  ;;  %4534 = vmatpush.bf16.msra.mxu2 %v11749_v29  ;;  %v13936_v31 = vperm.slane %v13891_v63, 2  ;;  %v2749_v56 = vadd.f32 %v13524_v17, %v13657_v3  ;;  %v3284_v29 = vmax.f32 %v2819_v38, 0.0 }
 0xa57   : > { %v3287_v13 = vmax.f32 %v2906_v35, 0.0  ;;  %v11757_v35 = vld [vmem:[%s16869_s13 + $0x1b8] sm:$0xff] }
 0xa58   : > { %9978 = vmatmul.msk.bf16.vlgmr.msra.gmra.mxu1 %vm608_vm0, %v13333_v32  ;;  %4426 = vmatmul.bf16.vlgmr.msrb.gmra.mxu2 %v3298_v36  ;;  %v13906_v0 = vpack.c.bf16 %v3286_v4, %v3270_v43  ;;  %v2947_v32 = vadd.f32 %v2946_v9, %v13902_v7  ;;  %v2780_v9 = vadd.f32 %v13542_v37, %v13660_v12  ;;  %v11747_v37 = vld [vmem:[%s16869_s13 + $0x168] sm:$0xff] }
 0xa59   : > { %4455 = vmatmul.bf16.vlgmr.msra.gmra.mxu3 %v3299_v24  ;;  %4494 = vmatmul.bf16.gmra.mxu0 %v3332_v59  ;;  %v13914_v22 = vpack.c.bf16 %v3287_v13, %v3271_v19  ;;  %v2778_v4 = vadd.f32 %v13526_v8, %v13660_v12  ;;  %v2817_v24 = vadd.f32 %v13625_v14, %v13753_v18  ;;  %v3218_v19 = vmax.f32 %v2751_v55, 0.0 }
 0xa5a   : > { %4563 = vmatpush.bf16.msrb.mxu3 %v11757_v35  ;;  %4535 = vmatpush.bf16.msra.mxu2 %v11748_v40  ;;  %v3177_v36 = vmax.f32 %v2947_v32, 0.0  ;;  %v3219_v59 = vmax.f32 %v2780_v9, 0.0  ;;  %v3202_v14 = vmax.f32 %v2749_v56, 0.0 }
 0xa5b   : > { %v2975_v58 = vpop.f32.mrf.mxu2  ;;  %v3268_v40 = vmax.f32 %v2817_v24, 0.0 }
 0xa5c   : > { %v3004_v6 = vpop.f32.mrf.mxu3  ;;  %v2976_v13 = vadd.f32 %v2975_v58, %v13926_v5  ;;  %v11746_v58 = vld [vmem:[%s16869_s13 + $0x160] sm:$0xff]  ;;  %v3314_v56 = vpack.c.bf16 %v3218_v19, %v3202_v14  ;;  %v11745_v19 = vld [vmem:[%s16869_s13 + $0x158] sm:$0xff]  ;;  %v11744_v14 = vld [vmem:[%s16869_s13 + $0x150] sm:$0xff] }
 0xa5d   : > { %v2948_v30 = vpop.f32.mrf.mxu1  ;;  %v3005_v8 = vadd.f32 %v3004_v6, %v13936_v31  ;;  %v11754_v6 = vld [vmem:[%s16869_s13 + $0x1a0] sm:$0xff]  ;;  %v3348_v24 = vpack.c.bf16 %v3284_v29, %v3268_v40 }
 0xa5e   : > { %v2949_v10 = vadd.f32 %v2948_v30, %v13902_v7  ;;  %v13929_v39 = vpop.f32.mrf.mxu0  ;;  %4564 = vmatpush.bf16.msrb.mxu3 %v11756_v20  ;;  %4536 = vmatpush.bf16.msra.mxu2 %v11747_v37  ;;  %v3203_v30 = vmax.f32 %v2778_v4, 0.0 }
 0xa60   : > { %v3193_v43 = vmax.f32 %v2949_v10, 0.0  ;;  %v3178_v10 = vmax.f32 %v2976_v13, 0.0  ;;  %v3315_v4 = vpack.c.bf16 %v3219_v59, %v3203_v30  ;;  %v11753_v13 = vld [vmem:[%s16869_s13 + $0x198] sm:$0xff]  ;;  %v2756_v30 = vadd.f32 %v13621_v15, %v13657_v3 }
 0xa62   : > { %v13951_v17 = vpack.c.bf16 %v3193_v43, %v3177_v36  ;;  %4565 = vmatpush.bf16.msrb.mxu3 %v11755_v34  ;;  %v3179_v36 = vmax.f32 %v3005_v8, 0.0  ;;  %4537 = vmatpush.bf16.msra.mxu2 %v11746_v58  ;;  %v2715_v58 = vadd.f32 %v13496_v26, %v13644_v16 }
 0xa63   : > { %v2977_v35 = vpop.f32.mrf.mxu2 }
 0xa64   : > { %v2978_v18 = vadd.f32 %v2977_v35, %v13926_v5  ;;  %v3006_v32 = vpop.f32.mrf.mxu3 }
 0xa65   : > { %v3007_v20 = vadd.f32 %v3006_v32, %v13936_v31  ;;  %v2951_v55 = vpop.f32.mrf.mxu1  ;;  %v2717_v32 = vadd.f32 %v13504_v42, %v13644_v16  ;;  %v2754_v42 = vadd.f32 %v13600_v45, %v13657_v3 }
 0xa66   : > { %v3194_v9 = vmax.f32 %v2978_v18, 0.0  ;;  %v13962_v38 = vpop.f32.mrf.mxu0  ;;  %4566 = vmatpush.bf16.msrb.mxu3 %v11754_v6  ;;  %4538 = vmatpush.bf16.msra.mxu2 %v11745_v19  ;;  %v2952_v29 = vadd.f32 %v2951_v55, %v13902_v7  ;;  %v11752_v18 = vld [vmem:[%s16869_s13 + $0x190] sm:$0xff] }
 0xa67   : > { %v3195_v43 = vmax.f32 %v3007_v20, 0.0  ;;  %v3185_v26 = vmax.f32 %v2717_v32, 0.0 }
 0xa68   : > { %v13964_v37 = vpack.c.bf16 %v3194_v9, %v3178_v10  ;;  %9979 = vmatmul.msk.bf16.gmra.mxu1 %vm608_vm0, %v13406_v25  ;;  %4431 = vmatmul.bf16.gmra.mxu2 %v3314_v56  ;;  %v13978_v25 = vperm.slane %v13633_v11, 7  ;;  %v2785_v11 = vadd.f32 %v13623_v50, %v13660_v12  ;;  %v3209_v6 = vmax.f32 %v2952_v29, 0.0  ;;  %v11743_v50 = vld [vmem:[%s16869_s13 + $0x148] sm:$0xff] }
 0xa69   : > { %v13968_v34 = vpack.c.bf16 %v3195_v43, %v3179_v36  ;;  %4460 = vmatmul.bf16.gmra.mxu3 %v3315_v4  ;;  %4499 = vmatmul.bf16.gmra.mxu0 %v3348_v24  ;;  %v2783_v10 = vadd.f32 %v13609_v53, %v13660_v12  ;;  %v3250_v56 = vmax.f32 %v2756_v30, 0.0  ;;  %v3234_v4 = vmax.f32 %v2754_v42, 0.0 }
 0xa6a   : > { %4567 = vmatpush.bf16.msrb.mxu3 %v11753_v13  ;;  %v2920_v55 = vadd.f32 %v13708_v2, %v13978_v25  ;;  %4539 = vmatpush.bf16.msra.mxu2 %v11744_v14  ;;  %v2918_v9 = vadd.f32 %v13671_v27, %v13978_v25  ;;  %v11751_v2 = vld [vmem:[%s16869_s13 + $0x188] sm:$0xff]  ;;  %v3251_v36 = vmax.f32 %v2785_v11, 0.0  ;;  %v3169_v27 = vmax.f32 %v2715_v58, 0.0 }
 0xa6b   : > { %v2980_v59 = vpop.f32.mrf.mxu2  ;;  %v3235_v13 = vmax.f32 %v2783_v10, 0.0  ;;  %v3330_v11 = vpack.c.bf16 %v3250_v56, %v3234_v4  ;;  %v11741_v10 = vld [vmem:[%s16869_s13 + $0x138] sm:$0xff]  ;;  %v2925_v4 = vadd.f32 %v13762_v23, %v13978_v25 }
 0xa6c   : > { %v3009_v8 = vpop.f32.mrf.mxu3  ;;  %v2981_v45 = vadd.f32 %v2980_v59, %v13926_v5  ;;  %v3192_v43 = vmax.f32 %v2920_v55, 0.0  ;;  %v3176_v29 = vmax.f32 %v2918_v9, 0.0  ;;  %v11742_v59 = vld [vmem:[%s16869_s13 + $0x140] sm:$0xff]  ;;  %v11797_v9 = vld [vmem:[%s16869_s13 + $0x2f8] sm:$0xff]  ;;  %4505 = vmatpush.bf16.msra.mxu1 %v11741_v10 }
 0xa6d   : > { %v2953_v35 = vpop.f32.mrf.mxu1  ;;  %v3010_v53 = vadd.f32 %v3009_v8, %v13936_v31  ;;  %v11750_v8 = vld [vmem:[%s16869_s13 + $0x180] sm:$0xff]  ;;  %4708 = vmatpush.bf16.msrb.mxu0 %v11797_v9 }
 0xa6e   : > { %v2954_v40 = vadd.f32 %v2953_v35, %v13902_v7  ;;  %v13991_v20 = vpop.f32.mrf.mxu0  ;;  %4568 = vmatpush.bf16.msrb.mxu3 %v11752_v18  ;;  %4540 = vmatpush.bf16.msra.mxu2 %v11743_v50  ;;  %v3297_v18 = vpack.c.bf16 %v3185_v26, %v3169_v27  ;;  %v3210_v32 = vmax.f32 %v2981_v45, 0.0  ;;  %v3304_v55 = vpack.c.bf16 %v3192_v43, %v3176_v29  ;;  %v11796_v43 = vld [vmem:[%s16869_s13 + $0x2f0] sm:$0xff] }
 0xa6f   : > { %v3211_v58 = vmax.f32 %v3010_v53, 0.0  ;;  %v2722_v53 = vadd.f32 %v13532_v46, %v13644_v16  ;;  %v2923_v29 = vadd.f32 %v13731_v61, %v13978_v25  ;;  %v11739_v46 = vld [vmem:[%s16869_s13 + $0x128] sm:$0xff] }
 0xa70   : > { %v3225_v15 = vmax.f32 %v2954_v40, 0.0 }
 0xa71   : > { %4709 = vmatpush.bf16.msrb.mxu0 %v11796_v43 }
 0xa72   : > { %v14012_v3 = vpack.c.bf16 %v3225_v15, %v3209_v6  ;;  %4569 = vmatpush.bf16.msrb.mxu3 %v11751_v2  ;;  %v3331_v6 = vpack.c.bf16 %v3251_v36, %v3235_v13  ;;  %4541 = vmatpush.bf16.msra.mxu2 %v11742_v59  ;;  %v11740_v36 = vld [vmem:[%s16869_s13 + $0x130] sm:$0xff] }
 0xa73   : > { %v2982_v12 = vpop.f32.mrf.mxu2  ;;  %4506 = vmatpush.bf16.msra.mxu1 %v11740_v36 }
 0xa74   : > { %v2983_v24 = vadd.f32 %v2982_v12, %v13926_v5  ;;  %v3011_v19 = vpop.f32.mrf.mxu3 }
 0xa75   : > { %v3012_v35 = vadd.f32 %v3011_v19, %v13936_v31  ;;  %v2956_v14 = vpop.f32.mrf.mxu1 }
 0xa76   : > { %v3226_v30 = vmax.f32 %v2983_v24, 0.0  ;;  %v14023_v40 = vpop.f32.mrf.mxu0  ;;  %4570 = vmatpush.bf16.msrb.mxu3 %v11750_v8  ;;  %v2957_v26 = vadd.f32 %v2956_v14, %v13902_v7  ;;  %v2720_v24 = vadd.f32 %v13520_v47, %v13644_v16  ;;  %v3217_v14 = vmax.f32 %v2722_v53, 0.0  ;;  %v11737_v53 = vld [vmem:[%s16869_s13 + $0x118] sm:$0xff] }
 0xa77   : > { %v3227_v42 = vmax.f32 %v3012_v35, 0.0  ;;  %v11795_v35 = vld [vmem:[%s16869_s13 + $0x2e8] sm:$0xff]  ;;  %v3224_v8 = vmax.f32 %v2925_v4, 0.0  ;;  %4507 = vmatpush.bf16.msra.mxu1 %v11739_v46  ;;  %v2727_v46 = vadd.f32 %v13611_v54, %v13644_v16 }
 0xa78   : > { %4397 = vmatmul.bf16.vlgmr.msrb.gmra.mxu1 %v3297_v18  ;;  %4436 = vmatmul.bf16.gmra.mxu2 %v3330_v11  ;;  %v14025_v15 = vpack.c.bf16 %v3226_v30, %v3210_v32  ;;  %v3241_v19 = vmax.f32 %v2957_v26, 0.0  ;;  %v3201_v61 = vmax.f32 %v2720_v24, 0.0  ;;  %v3208_v11 = vmax.f32 %v2923_v29, 0.0  ;;  %v11792_v29 = vld [vmem:[%s16869_s13 + $0x2d0] sm:$0xff]  ;;  %v11735_v54 = vld [vmem:[%s16869_s13 + $0x108] sm:$0xff] }
 0xa79   : > { %4465 = vmatmul.bf16.gmra.mxu3 %v3331_v6  ;;  %4600 = vmatmul.bf16.vlgmr.msra.gmra.mxu0 %v3304_v55  ;;  %v14033_v50 = vpack.c.bf16 %v3227_v42, %v3211_v58  ;;  %v11738_v42 = vld [vmem:[%s16869_s13 + $0x120] sm:$0xff] }
 0xa7a   : > { %4710 = vmatpush.bf16.msrb.mxu0 %v11795_v35  ;;  %v11794_v6 = vld [vmem:[%s16869_s13 + $0x2e0] sm:$0xff]  ;;  %v3313_v26 = vpack.c.bf16 %v3217_v14, %v3201_v61  ;;  %v3320_v36 = vpack.c.bf16 %v3224_v8, %v3208_v11  ;;  %v2725_v8 = vadd.f32 %v13568_v41, %v13644_v16  ;;  %v2928_v61 = vadd.f32 %v13786_v21, %v13978_v25 }
 0xa7b   : > { %v2985_v2 = vpop.f32.mrf.mxu2  ;;  %4508 = vmatpush.bf16.msra.mxu1 %v11738_v42 }
 0xa7c   : > { %v3014_v56 = vpop.f32.mrf.mxu3  ;;  %v2986_v23 = vadd.f32 %v2985_v2, %v13926_v5  ;;  %v3233_v21 = vmax.f32 %v2725_v8, 0.0  ;;  %v3240_v42 = vmax.f32 %v2928_v61, 0.0  ;;  %v14146_v8 = vperm.slane %v13891_v63, 5 }
 0xa7d   : > { %v2958_v45 = vpop.f32.mrf.mxu1  ;;  %v3015_v47 = vadd.f32 %v3014_v56, %v13936_v31  ;;  %v14152_v61 = vperm.slane %v13891_v63, 6 }
 0xa7e   : > { %v2959_v12 = vadd.f32 %v2958_v45, %v13902_v7  ;;  %v14045_v27 = vpop.f32.mrf.mxu0  ;;  %v3242_v10 = vmax.f32 %v2986_v23, 0.0  ;;  %4711 = vmatpush.bf16.msrb.mxu0 %v11794_v6  ;;  %v2930_v23 = vadd.f32 %v13812_v48, %v13978_v25 }
 0xa7f   : > { %v3243_v56 = vmax.f32 %v3015_v47, 0.0  ;;  %4509 = vmatpush.bf16.msra.mxu1 %v11737_v53 }
 0xa80   : > { %v3257_v13 = vmax.f32 %v2959_v12, 0.0  ;;  %v11793_v12 = vld [vmem:[%s16869_s13 + $0x2d8] sm:$0xff]  ;;  %v3256_v11 = vmax.f32 %v2930_v23, 0.0  ;;  %v11788_v23 = vld [vmem:[%s16869_s13 + $0x2b0] sm:$0xff] }
 0xa82   : > { %v14060_v59 = vpack.c.bf16 %v3257_v13, %v3241_v19  ;;  %4712 = vmatpush.bf16.msrb.mxu0 %v11793_v12 }
 0xa83   : > { %v2987_v18 = vpop.f32.mrf.mxu2 }
 0xa84   : > { %v2988_v32 = vadd.f32 %v2987_v18, %v13926_v5  ;;  %v3016_v30 = vpop.f32.mrf.mxu3 }
 0xa85   : > { %v3017_v55 = vadd.f32 %v3016_v30, %v13936_v31  ;;  %v2961_v58 = vpop.f32.mrf.mxu1 }
 0xa86   : > { %v3258_v9 = vmax.f32 %v2988_v32, 0.0  ;;  %v14071_v2 = vpop.f32.mrf.mxu0  ;;  %4713 = vmatpush.bf16.msrb.mxu0 %v11792_v29  ;;  %v3249_v32 = vmax.f32 %v2727_v46, 0.0 }
 0xa87   : > { %v3259_v45 = vmax.f32 %v3017_v55, 0.0 }
 0xa88   : > { %4402 = vmatmul.bf16.gmra.mxu1 %v3313_v26  ;;  %4441 = vmatmul.bf16.gmra.mxu2 %v13683_v62  ;;  %v14074_v43 = vpack.c.bf16 %v3258_v9, %v3242_v10  ;;  %v2962_v62 = vadd.f32 %v2961_v58, %v13902_v7  ;;  %v11734_v9 = vld [vmem:[%s16869_s13 + $0x100] sm:$0xff] }
 0xa89   : > { %4470 = vmatmul.bf16.gmra.mxu3 %v13695_v52  ;;  %4605 = vmatmul.bf16.gmra.mxu0 %v3320_v36  ;;  %v14083_v4 = vpack.c.bf16 %v3259_v45, %v3243_v56  ;;  %v11736_v52 = vld [vmem:[%s16869_s13 + $0x110] sm:$0xff]  ;;  %v11790_v26 = vld [vmem:[%s16869_s13 + $0x2c0] sm:$0xff]  ;;  %v3329_v36 = vpack.c.bf16 %v3249_v32, %v3233_v21  ;;  %v11779_v32 = vld [vmem:[%s16869_s13 + $0x268] sm:$0xff] }
 0xa8a   : > { %4510 = vmatpush.bf16.msra.mxu1 %v11736_v52  ;;  %v3273_v47 = vmax.f32 %v2962_v62, 0.0 }
 0xa8b   : > { %v2990_v24 = vpop.f32.mrf.mxu2 }
 0xa8c   : > { %v3019_v19 = vpop.f32.mrf.mxu3  ;;  %v2991_v48 = vadd.f32 %v2990_v24, %v13926_v5 }
 0xa8d   : > { %v2963_v13 = vpop.f32.mrf.mxu1  ;;  %v3020_v41 = vadd.f32 %v3019_v19, %v13936_v31  ;;  %v11781_v19 = vld [vmem:[%s16869_s13 + $0x278] sm:$0xff] }
 0xa8e   : > { %v2964_v35 = vadd.f32 %v2963_v13, %v13902_v7  ;;  %v14095_v14 = vpop.f32.mrf.mxu0  ;;  %v11791_v7 = vld [vmem:[%s16869_s13 + $0x2c8] sm:$0xff]  ;;  %4511 = vmatpush.bf16.msra.mxu1 %v11735_v54  ;;  %v3274_v56 = vmax.f32 %v2991_v48, 0.0  ;;  %v11789_v13 = vld [vmem:[%s16869_s13 + $0x2b8] sm:$0xff]  ;;  %4650 = vmatpush.bf16.msrb.mxu2 %v11781_v19 }
 0xa8f   : > { %4714 = vmatpush.bf16.msrb.mxu0 %v11791_v7  ;;  %v3275_v53 = vmax.f32 %v3020_v41, 0.0  ;;  %4679 = vmatpush.bf16.msra.mxu3 %v11789_v13  ;;  %v11787_v48 = vld [vmem:[%s16869_s13 + $0x2a8] sm:$0xff]  ;;  %v16948_v13 = vld [vmem:[#allocation26_spill] sm:$0xff] }
 0xa90   : > { %v3289_v18 = vmax.f32 %v2964_v35, 0.0 }
 0xa92   : > { %v14110_v30 = vpack.c.bf16 %v3289_v18, %v3273_v47  ;;  %4512 = vmatpush.bf16.msra.mxu1 %v11734_v9  ;;  %v2935_v18 = vadd.f32 %v13864_v1, %v13978_v25 }
 0xa93   : > { %v2992_v16 = vpop.f32.mrf.mxu2  ;;  %4715 = vmatpush.bf16.msrb.mxu0 %v11790_v26  ;;  %4680 = vmatpush.bf16.msra.mxu3 %v11788_v23 }
 0xa94   : > { %v2993_v55 = vadd.f32 %v2992_v16, %v13926_v5  ;;  %v3021_v58 = vpop.f32.mrf.mxu3  ;;  %v3336_v5 = vpack.c.bf16 %v3256_v11, %v3240_v42  ;;  %v2933_v11 = vadd.f32 %v13836_v60, %v13978_v25  ;;  %v3288_v21 = vmax.f32 %v2935_v18, 0.0  ;;  %v11778_v60 = vld [vmem:[%s16869_s13 + $0x260] sm:$0xff]  ;;  %v11784_v18 = vld [vmem:[%s16869_s13 + $0x290] sm:$0xff] }
 0xa95   : > { %v3022_v6 = vadd.f32 %v3021_v58, %v13936_v31  ;;  %v3062_v10 = vpop.f32.mrf.mxu1  ;;  %v14124_v31 = vperm.slane %v13891_v63, 4  ;;  %v11786_v25 = vld [vmem:[%s16869_s13 + $0x2a0] sm:$0xff] }
 0xa96   : > { %v3290_v45 = vmax.f32 %v2993_v55, 0.0  ;;  %v14121_v24 = vpop.f32.mrf.mxu0 }
 0xa97   : > { %v3291_v12 = vmax.f32 %v3022_v6, 0.0  ;;  %4681 = vmatpush.bf16.msra.mxu3 %v11787_v48 }
 0xa98   : > { %4407 = vmatmul.bf16.gmra.mxu1 %v3329_v36  ;;  %4542 = vmatmul.bf16.vlgmr.msra.gmra.mxu2 %v13733_v33  ;;  %v14127_v62 = vpack.c.bf16 %v3290_v45, %v3274_v56  ;;  %v3063_v33 = vadd.f32 %v3062_v10, %v14124_v31  ;;  %v3272_v10 = vmax.f32 %v2933_v11, 0.0  ;;  %v11775_v11 = vld [vmem:[%s16869_s13 + $0x248] sm:$0xff] }
 0xa99   : > { %4571 = vmatmul.bf16.vlgmr.msrb.gmra.mxu3 %v13739_v51  ;;  %4610 = vmatmul.bf16.gmra.mxu0 %v3336_v5  ;;  %v14136_v52 = vpack.c.bf16 %v3291_v12, %v3275_v53  ;;  %v11780_v51 = vld [vmem:[%s16869_s13 + $0x270] sm:$0xff] }
 0xa9a   : > { %4651 = vmatpush.bf16.msrb.mxu2 %v11780_v51  ;;  %v3181_v54 = vmax.f32 %v3063_v33, 0.0  ;;  %v3352_v12 = vpack.c.bf16 %v3288_v21, %v3272_v10  ;;  %v11785_v33 = vld [vmem:[%s16869_s13 + $0x298] sm:$0xff]  ;;  %v14193_v51 = vperm.slane %v13891_v63, 3 }
 0xa9b   : > { %v3091_v29 = vpop.f32.mrf.mxu2  ;;  %4682 = vmatpush.bf16.msra.mxu3 %v11786_v25 }
 0xa9c   : > { %v3120_v46 = vpop.f32.mrf.mxu3  ;;  %v3092_v1 = vadd.f32 %v3091_v29, %v14146_v8  ;;  %v11777_v29 = vld [vmem:[%s16869_s13 + $0x258] sm:$0xff]  ;;  %v3034_v21 = vadd.f32 %v13899_v28, %v14193_v51  ;;  %v11774_v28 = vld [vmem:[%s16869_s13 + $0x240] sm:$0xff] }
 0xa9d   : > { %v3064_v35 = vpop.f32.mrf.mxu1  ;;  %v3121_v55 = vadd.f32 %v3120_v46, %v14152_v61 }
 0xa9e   : > { %v3065_v47 = vadd.f32 %v3064_v35, %v14124_v31  ;;  %v14162_v41 = vpop.f32.mrf.mxu0  ;;  %4652 = vmatpush.bf16.msrb.mxu2 %v11779_v32  ;;  %v3182_v56 = vmax.f32 %v3092_v1, 0.0  ;;  %v11783_v1 = vld [vmem:[%s16869_s13 + $0x288] sm:$0xff] }
 0xa9f   : > { %v3183_v36 = vmax.f32 %v3121_v55, 0.0  ;;  %4683 = vmatpush.bf16.msra.mxu3 %v11785_v33  ;;  %v16949_v33 = vld [vmem:[#allocation24_spill] sm:$0xff] }
 0xaa0   : > { %v3197_v7 = vmax.f32 %v3065_v47, 0.0  ;;  %v11776_v47 = vld [vmem:[%s16869_s13 + $0x250] sm:$0xff] }
 0xaa2   : > { %v14165_v16 = vpack.c.bf16 %v3197_v7, %v3181_v54  ;;  %4653 = vmatpush.bf16.msrb.mxu2 %v11778_v60  ;;  %v3036_v7 = vadd.f32 %v13929_v39, %v14193_v51 }
 0xaa3   : > { %v3093_v58 = vpop.f32.mrf.mxu2  ;;  %4684 = vmatpush.bf16.msra.mxu3 %v11784_v18 }
 0xaa4   : > { %v3094_v42 = vadd.f32 %v3093_v58, %v14146_v8  ;;  %v3122_v6 = vpop.f32.mrf.mxu3  ;;  %v3196_v39 = vmax.f32 %v3036_v7, 0.0 }
 0xaa5   : > { %v3123_v9 = vadd.f32 %v3122_v6, %v14152_v61  ;;  %v3067_v26 = vpop.f32.mrf.mxu1 }
 0xaa6   : > { %v3198_v45 = vmax.f32 %v3094_v42, 0.0  ;;  %v14189_v46 = vpop.f32.mrf.mxu0  ;;  %4654 = vmatpush.bf16.msrb.mxu2 %v11777_v29 }
 0xaa7   : > { %v3199_v53 = vmax.f32 %v3123_v9, 0.0  ;;  %4685 = vmatpush.bf16.msra.mxu3 %v11783_v1  ;;  %v11828_v1 = vld [vmem:[%s16869_s13 + $0x3f0] sm:$0xff] }
 0xaa8   : > { %v14176_v5 = vpack.c.bf16 %v3198_v45, %v3182_v56  ;;  %4412 = vmatmul.bf16.gmra.mxu1 %v13666_v57  ;;  %4547 = vmatmul.bf16.gmra.mxu2 %v13792_v44  ;;  %v3068_v57 = vadd.f32 %v3067_v26, %v14124_v31  ;;  %v3180_v26 = vmax.f32 %v3034_v21, 0.0  ;;  %v11782_v45 = vld [vmem:[%s16869_s13 + $0x280] sm:$0xff] }
 0xaa9   : > { %v14180_v19 = vpack.c.bf16 %v3199_v53, %v3183_v36  ;;  %4576 = vmatmul.bf16.gmra.mxu3 %v16948_v13  ;;  %4615 = vmatmul.bf16.gmra.mxu0 %v3352_v12 }
 0xaaa   : > { %4655 = vmatpush.bf16.msrb.mxu2 %v11776_v47  ;;  %v3213_v32 = vmax.f32 %v3068_v57, 0.0  ;;  %v3308_v12 = vpack.c.bf16 %v3196_v39, %v3180_v26  ;;  %v11829_v47 = vld [vmem:[%s16869_s13 + $0x3f8] sm:$0xff]  ;;  %v3039_v26 = vadd.f32 %v13962_v38, %v14193_v51  ;;  %v11770_v38 = vld [vmem:[%s16869_s13 + $0x220] sm:$0xff] }
 0xaab   : > { %v3096_v35 = vpop.f32.mrf.mxu2  ;;  %4686 = vmatpush.bf16.msra.mxu3 %v11782_v45  ;;  %4824 = vmatpush.bf16.msra.mxu0 %v11829_v47 }
 0xaac   : > { %v3125_v44 = vpop.f32.mrf.mxu3  ;;  %v3097_v55 = vadd.f32 %v3096_v35, %v14146_v8  ;;  %v16950_v35 = vld [vmem:[#allocation28_spill] sm:$0xff] }
 0xaad   : > { %v3069_v23 = vpop.f32.mrf.mxu1  ;;  %v3126_v42 = vadd.f32 %v3125_v44, %v14152_v61  ;;  %v16951_v44 = vld [vmem:[#allocation29_spill] sm:$0xff] }
 0xaae   : > { %v3070_v54 = vadd.f32 %v3069_v23, %v14124_v31  ;;  %4656 = vmatpush.bf16.msrb.mxu2 %v11775_v11  ;;  %v14217_v60 = vpop.f32.mrf.mxu0  ;;  %v3214_v36 = vmax.f32 %v3097_v55, 0.0  ;;  %v11773_v23 = vld [vmem:[%s16869_s13 + $0x238] sm:$0xff]  ;;  %v11772_v11 = vld [vmem:[%s16869_s13 + $0x230] sm:$0xff]  ;;  %v3041_v55 = vadd.f32 %v13991_v20, %v14193_v51 }
 0xaaf   : > { %v3215_v13 = vmax.f32 %v3126_v42, 0.0  ;;  %4621 = vmatpush.bf16.msrb.mxu1 %v11773_v23  ;;  %4825 = vmatpush.bf16.msra.mxu0 %v11828_v1  ;;  %v11825_v1 = vld [vmem:[%s16869_s13 + $0x3d8] sm:$0xff] }
 0xab0   : > { %v3229_v48 = vmax.f32 %v3070_v54, 0.0 }
 0xab2   : > { %v14213_v58 = vpack.c.bf16 %v3229_v48, %v3213_v32  ;;  %4657 = vmatpush.bf16.msrb.mxu2 %v11774_v28 }
 0xab3   : > { %v3098_v6 = vpop.f32.mrf.mxu2  ;;  %4622 = vmatpush.bf16.msrb.mxu1 %v11772_v11  ;;  %v11769_v11 = vld [vmem:[%s16869_s13 + $0x218] sm:$0xff] }
 0xab4   : > { %v3099_v10 = vadd.f32 %v3098_v6, %v14146_v8  ;;  %v3127_v9 = vpop.f32.mrf.mxu3 }
 0xab5   : > { %v3128_v25 = vadd.f32 %v3127_v9, %v14152_v61  ;;  %v3072_v56 = vpop.f32.mrf.mxu1  ;;  %v11827_v9 = vld [vmem:[%s16869_s13 + $0x3e8] sm:$0xff] }
 0xab6   : > { %v3230_v53 = vmax.f32 %v3099_v10, 0.0  ;;  %v3073_v7 = vadd.f32 %v3072_v56, %v14124_v31  ;;  %v14249_v39 = vpop.f32.mrf.mxu0  ;;  %v11771_v10 = vld [vmem:[%s16869_s13 + $0x228] sm:$0xff]  ;;  %v3228_v56 = vmax.f32 %v3041_v55, 0.0  ;;  %4826 = vmatpush.bf16.msra.mxu0 %v11827_v9 }
 0xab7   : > { %v3231_v29 = vmax.f32 %v3128_v25, 0.0  ;;  %4623 = vmatpush.bf16.msrb.mxu1 %v11771_v10  ;;  %v11824_v10 = vld [vmem:[%s16869_s13 + $0x3d0] sm:$0xff] }
 0xab8   : > { %4513 = vmatmul.bf16.vlgmr.msra.gmra.mxu1 %v16949_v33  ;;  %4552 = vmatmul.bf16.gmra.mxu2 %v16950_v35  ;;  %v14228_v57 = vpack.c.bf16 %v3230_v53, %v3214_v36  ;;  %v3245_v42 = vmax.f32 %v3073_v7, 0.0  ;;  %v11826_v33 = vld [vmem:[%s16869_s13 + $0x3e0] sm:$0xff]  ;;  %v16952_v7 = vld [vmem:[#allocation25_spill] sm:$0xff] }
 0xab9   : > { %4581 = vmatmul.bf16.gmra.mxu3 %v16951_v44  ;;  %4716 = vmatmul.bf16.vlgmr.msrb.gmra.mxu0 %v3308_v12  ;;  %v14237_v18 = vpack.c.bf16 %v3231_v29, %v3215_v13  ;;  %v3212_v12 = vmax.f32 %v3039_v26, 0.0  ;;  %v3046_v26 = vadd.f32 %v14045_v27, %v14193_v51 }
 0xaba   : > { %4827 = vmatpush.bf16.msra.mxu0 %v11826_v33 }
 0xabb   : > { %v3101_v54 = vpop.f32.mrf.mxu2  ;;  %4624 = vmatpush.bf16.msrb.mxu1 %v11770_v38  ;;  %v3260_v27 = vmax.f32 %v3046_v26, 0.0  ;;  %v11820_v26 = vld [vmem:[%s16869_s13 + $0x3b0] sm:$0xff] }
 0xabc   : > { %v3130_v32 = vpop.f32.mrf.mxu3  ;;  %v3102_v25 = vadd.f32 %v3101_v54, %v14146_v8  ;;  %v3324_v54 = vpack.c.bf16 %v3228_v56, %v3212_v12 }
 0xabd   : > { %v3074_v48 = vpop.f32.mrf.mxu1  ;;  %v3131_v28 = vadd.f32 %v3130_v32, %v14152_v61 }
 0xabe   : > { %v3075_v21 = vadd.f32 %v3074_v48, %v14124_v31  ;;  %v3246_v35 = vmax.f32 %v3102_v25, 0.0  ;;  %v14275_v48 = vpop.f32.mrf.mxu0  ;;  %4828 = vmatpush.bf16.msra.mxu0 %v11825_v1 }
 0xabf   : > { %v3247_v23 = vmax.f32 %v3131_v28, 0.0  ;;  %4625 = vmatpush.bf16.msrb.mxu1 %v11769_v11  ;;  %v11767_v28 = vld [vmem:[%s16869_s13 + $0x208] sm:$0xff] }
 0xac0   : > { %v3261_v6 = vmax.f32 %v3075_v21, 0.0 }
 0xac2   : > { %v14260_v20 = vpack.c.bf16 %v3261_v6, %v3245_v42  ;;  %4829 = vmatpush.bf16.msra.mxu0 %v11824_v10 }
 0xac3   : > { %v3103_v45 = vpop.f32.mrf.mxu2 }
 0xac4   : > { %v3104_v36 = vadd.f32 %v3103_v45, %v14146_v8  ;;  %v3132_v53 = vpop.f32.mrf.mxu3  ;;  %v11823_v45 = vld [vmem:[%s16869_s13 + $0x3c8] sm:$0xff] }
 0xac5   : > { %v3133_v13 = vadd.f32 %v3132_v53, %v14152_v61  ;;  %v3077_v29 = vpop.f32.mrf.mxu1 }
 0xac6   : > { %v3262_v44 = vmax.f32 %v3104_v36, 0.0  ;;  %v3044_v36 = vadd.f32 %v14023_v40, %v14193_v51  ;;  %v14307_v12 = vpop.f32.mrf.mxu0  ;;  %4830 = vmatpush.bf16.msra.mxu0 %v11823_v45  ;;  %v11766_v40 = vld [vmem:[%s16869_s13 + $0x200] sm:$0xff]  ;;  %v3049_v45 = vadd.f32 %v14071_v2, %v14193_v51 }
 0xac7   : > { %v3263_v47 = vmax.f32 %v3133_v13, 0.0 }
 0xac8   : > { %4518 = vmatmul.bf16.gmra.mxu1 %v16952_v7  ;;  %4557 = vmatmul.bf16.gmra.mxu2 %v13906_v0  ;;  %v14273_v32 = vpack.c.bf16 %v3262_v44, %v3246_v35  ;;  %v3078_v0 = vadd.f32 %v3077_v29, %v14124_v31  ;;  %v3244_v35 = vmax.f32 %v3044_v36, 0.0 }
 0xac9   : > { %4586 = vmatmul.bf16.gmra.mxu3 %v13914_v22  ;;  %4721 = vmatmul.bf16.gmra.mxu0 %v3324_v54  ;;  %v14284_v21 = vpack.c.bf16 %v3263_v47, %v3247_v23  ;;  %v11768_v22 = vld [vmem:[%s16869_s13 + $0x210] sm:$0xff]  ;;  %v11822_v47 = vld [vmem:[%s16869_s13 + $0x3c0] sm:$0xff] }
 0xaca   : > { %4626 = vmatpush.bf16.msrb.mxu1 %v11768_v22  ;;  %v3277_v25 = vmax.f32 %v3078_v0, 0.0  ;;  %4831 = vmatpush.bf16.msra.mxu0 %v11822_v47  ;;  %v11813_v0 = vld [vmem:[%s16869_s13 + $0x378] sm:$0xff]  ;;  %v11816_v47 = vld [vmem:[%s16869_s13 + $0x390] sm:$0xff] }
 0xacb   : > { %v3106_v55 = vpop.f32.mrf.mxu2  ;;  %4766 = vmatpush.bf16.msra.mxu2 %v11813_v0 }
 0xacc   : > { %v3135_v42 = vpop.f32.mrf.mxu3 }
 0xacd   : > { %v3079_v6 = vpop.f32.mrf.mxu1  ;;  %v3136_v13 = vadd.f32 %v3135_v42, %v14152_v61  ;;  %v11821_v42 = vld [vmem:[%s16869_s13 + $0x3b8] sm:$0xff] }
 0xace   : > { %v3080_v9 = vadd.f32 %v3079_v6, %v14124_v31  ;;  %v3107_v31 = vadd.f32 %v3106_v55, %v14146_v8  ;;  %4627 = vmatpush.bf16.msrb.mxu1 %v11767_v28  ;;  %v3340_v55 = vpack.c.bf16 %v3260_v27, %v3244_v35  ;;  %4795 = vmatpush.bf16.msrb.mxu3 %v11821_v42  ;;  %v11819_v28 = vld [vmem:[%s16869_s13 + $0x3a8] sm:$0xff]  ;;  %v11817_v35 = vld [vmem:[%s16869_s13 + $0x398] sm:$0xff] }
 0xacf   : > { %v3279_v11 = vmax.f32 %v3136_v13, 0.0 }
 0xad0   : > { %v3293_v56 = vmax.f32 %v3080_v9, 0.0  ;;  %v3278_v54 = vmax.f32 %v3107_v31, 0.0 }
 0xad2   : > { %v14305_v53 = vpack.c.bf16 %v3293_v56, %v3277_v25  ;;  %4628 = vmatpush.bf16.msrb.mxu1 %v11766_v40  ;;  %v3051_v25 = vadd.f32 %v14095_v14, %v14193_v51  ;;  %4796 = vmatpush.bf16.msrb.mxu3 %v11820_v26  ;;  %v11811_v56 = vld [vmem:[%s16869_s13 + $0x368] sm:$0xff]  ;;  %v3276_v14 = vmax.f32 %v3049_v45, 0.0  ;;  %v11809_v51 = vld [vmem:[%s16869_s13 + $0x358] sm:$0xff]  ;;  %v11806_v26 = vld [vmem:[%s16869_s13 + $0x340] sm:$0xff] }
 0xad3   : > { %v3108_v29 = vpop.f32.mrf.mxu2  ;;  %v11805_v45 = vld [vmem:[%s16869_s13 + $0x338] sm:$0xff] }
 0xad4   : > { %v3109_v38 = vadd.f32 %v3108_v29, %v14146_v8  ;;  %v3137_v33 = vpop.f32.mrf.mxu3  ;;  %v16953_v8 = vld [vmem:[#allocation27_spill] sm:$0xff]  ;;  %v3292_v36 = vmax.f32 %v3051_v25, 0.0 }
 0xad5   : > { %v3138_v44 = vadd.f32 %v3137_v33, %v14152_v61  ;;  %v14312_v23 = vpop.f32.mrf.mxu1  ;;  %v11810_v29 = vld [vmem:[%s16869_s13 + $0x360] sm:$0xff] }
 0xad6   : > { %v3294_v7 = vmax.f32 %v3109_v38, 0.0  ;;  %4797 = vmatpush.bf16.msrb.mxu3 %v11819_v28  ;;  %v11818_v38 = vld [vmem:[%s16869_s13 + $0x3a0] sm:$0xff]  ;;  %v3356_v2 = vpack.c.bf16 %v3292_v36, %v3276_v14  ;;  %4737 = vmatpush.bf16.msra.mxu1 %v11805_v45 }
 0xad7   : > { %v3295_v1 = vmax.f32 %v3138_v44, 0.0 }
 0xad8   : > { %4523 = vmatmul.bf16.gmra.mxu1 %v16953_v8  ;;  %4658 = vmatmul.bf16.vlgmr.msrb.gmra.mxu2 %v13964_v37  ;;  %v14322_v61 = vpack.c.bf16 %v3294_v7, %v3278_v54  ;;  %v14335_v37 = vpop.f32.mrf.mxu0  ;;  %v11815_v7 = vld [vmem:[%s16869_s13 + $0x388] sm:$0xff] }
 0xad9   : > { %4687 = vmatmul.bf16.vlgmr.msra.gmra.mxu3 %v13968_v34  ;;  %4726 = vmatmul.bf16.gmra.mxu0 %v3340_v55  ;;  %v14331_v6 = vpack.c.bf16 %v3295_v1, %v3279_v11  ;;  %v11812_v34 = vld [vmem:[%s16869_s13 + $0x370] sm:$0xff]  ;;  %v14406_v55 = vld [vmem:[%s16870_s14] ss:$0 sm:$0xff] }
 0xada   : > { %4767 = vmatpush.bf16.msra.mxu2 %v11812_v34  ;;  %4798 = vmatpush.bf16.msrb.mxu3 %v11818_v38 }
 0xadb   : > { %v4427_v22 = vpop.f32.mrf.mxu2 }
 0xadc   : > { %v14333_v10 = vpop.f32.mrf.mxu3 }
 0xadd   : > { %v14337_v9 = vpop.f32.mrf.mxu1 }
 0xade   : > { %4768 = vmatpush.bf16.msra.mxu2 %v11811_v56  ;;  %4799 = vmatpush.bf16.msrb.mxu3 %v11817_v35 }
 0xae0   : > { %v14367_v33 = vpop.f32.mrf.mxu0 }
 0xae2   : > { %4769 = vmatpush.bf16.msra.mxu2 %v11810_v29  ;;  %4800 = vmatpush.bf16.msrb.mxu3 %v11816_v47 }
 0xae3   : > { %v14355_v31 = vpop.f32.mrf.mxu2 }
 0xae4   : > { %v14357_v27 = vpop.f32.mrf.mxu3 }
 0xae5   : > { %v14359_v13 = vpop.f32.mrf.mxu1 }
 0xae6   : > { %4770 = vmatpush.bf16.msra.mxu2 %v11809_v51  ;;  %4801 = vmatpush.bf16.msrb.mxu3 %v11815_v7  ;;  %v11803_v51 = vld [vmem:[%s16869_s13 + $0x328] sm:$0xff] }
 0xae8   : > { %4528 = vmatmul.bf16.gmra.mxu1 %v13883_v49  ;;  %4663 = vmatmul.bf16.gmra.mxu2 %v14025_v15  ;;  %v14381_v49 = vperm.slane %v13891_v63, 7  ;;  %v11807_v63 = vld [vmem:[%s16869_s13 + $0x348] sm:$0xff]  ;;  %v14401_v1 = vpop.f32.mrf.mxu0 }
 0xae9   : > { %4692 = vmatmul.bf16.gmra.mxu3 %v14033_v50  ;;  %4731 = vmatmul.bf16.gmra.mxu0 %v3356_v2  ;;  %v11808_v50 = vld [vmem:[%s16869_s13 + $0x350] sm:$0xff] }
 0xaea   : > { %v3152_v54 = vadd.f32 %v14162_v41, %v14381_v49  ;;  %4771 = vmatpush.bf16.msra.mxu2 %v11808_v50  ;;  %v3150_v11 = vadd.f32 %v14121_v24, %v14381_v49  ;;  %v11814_v24 = vld [vmem:[%s16869_s13 + $0x380] sm:$0xff]  ;;  %v3157_v2 = vadd.f32 %v14217_v60, %v14381_v49 }
 0xaeb   : > { %v4432_v44 = vpop.f32.mrf.mxu2  ;;  %4802 = vmatpush.bf16.msrb.mxu3 %v11814_v24 }
 0xaec   : > { %v14378_v40 = vpop.f32.mrf.mxu3  ;;  %v3200_v41 = vmax.f32 %v3152_v54, 0.0  ;;  %v3184_v42 = vmax.f32 %v3150_v11, 0.0  ;;  %v3232_v50 = vmax.f32 %v3157_v2, 0.0  ;;  %v11802_v11 = vld [vmem:[%s16869_s13 + $0x320] sm:$0xff] }
 0xaed   : > { %v14383_v15 = vpop.f32.mrf.mxu1 }
 0xaee   : > { %4772 = vmatpush.bf16.msra.mxu2 %v11807_v63  ;;  %v3312_v56 = vpack.c.bf16 %v3200_v41, %v3184_v42 }
 0xaf0   : > { %v14422_v14 = vpop.f32.mrf.mxu0 }
 0xaf2   : > { %4773 = vmatpush.bf16.msra.mxu2 %v11806_v26 }
 0xaf3   : > { %v4434_v8 = vpop.f32.mrf.mxu2 }
 0xaf4   : > { %v4463_v0 = vpop.f32.mrf.mxu3 }
 0xaf5   : > { %v4398_v34 = vpop.f32.mrf.mxu1 }
 0xaf6   : > { %v4399_v25 = vadd.f32 %v14406_v55, %v4398_v34 }
 0xaf8   : > { %v4428_v28 = vadd.f32 %v4427_v22, %v4399_v25  ;;  %4629 = vmatmul.bf16.vlgmr.msrb.gmra.mxu1 %v13951_v17  ;;  %4668 = vmatmul.bf16.gmra.mxu2 %v14074_v43  ;;  %v11804_v43 = vld [vmem:[%s16869_s13 + $0x330] sm:$0xff]  ;;  %v14443_v7 = vpop.f32.mrf.mxu0 }
 0xaf9   : > { %4697 = vmatmul.bf16.gmra.mxu3 %v14083_v4  ;;  %4832 = vmatmul.bf16.vlgmr.msra.gmra.mxu0 %v3312_v56  ;;  %v11799_v56 = vld [vmem:[%s16869_s13 + $0x308] sm:$0xff] }
 0xafa   : > { %v4457_v36 = vadd.f32 %v14333_v10, %v4428_v28  ;;  %4738 = vmatpush.bf16.msra.mxu1 %v11804_v43 }
 0xafb   : > { %v4437_v29 = vpop.f32.mrf.mxu2 }
 0xafc   : > { %v4466_v38 = vpop.f32.mrf.mxu3  ;;  %v14425_v22 = vadd.f32 %v14249_v39, %v4457_v36  ;;  %v3155_v39 = vadd.f32 %v14189_v46, %v14381_v49 }
 0xafd   : > { %v4400_v17 = vpop.f32.mrf.mxu1 }
 0xafe   : > { %v4401_v4 = vadd.f32 %v14406_v55, %v4400_v17  ;;  %4739 = vmatpush.bf16.msra.mxu1 %v11803_v51  ;;  %v3216_v60 = vmax.f32 %v3155_v39, 0.0 }
 0xb00   : > { %v4430_v10 = vadd.f32 %v14355_v31, %v4401_v4  ;;  %v3328_v46 = vpack.c.bf16 %v3232_v50, %v3216_v60  ;;  %v14465_v25 = vpop.f32.mrf.mxu0 }
 0xb02   : > { %v4459_v35 = vadd.f32 %v14357_v27, %v4430_v10  ;;  %4740 = vmatpush.bf16.msra.mxu1 %v11802_v11 }
 0xb03   : > { %v4439_v47 = vpop.f32.mrf.mxu2 }
 0xb04   : > { %v4468_v54 = vpop.f32.mrf.mxu3  ;;  %v14441_v63 = vadd.f32 %v14275_v48, %v4459_v35  ;;  %v11801_v48 = vld [vmem:[%s16869_s13 + $0x318] sm:$0xff] }
 0xb05   : > { %v4403_v31 = vpop.f32.mrf.mxu1 }
 0xb06   : > { %v4404_v41 = vadd.f32 %v14406_v55, %v4403_v31  ;;  %4741 = vmatpush.bf16.msra.mxu1 %v11801_v48 }
 0xb08   : > { %v4433_v27 = vadd.f32 %v4432_v44, %v4404_v41  ;;  %4634 = vmatmul.bf16.gmra.mxu1 %v14012_v3  ;;  %4673 = vmatmul.bf16.gmra.mxu2 %v14127_v62  ;;  %v11800_v3 = vld [vmem:[%s16869_s13 + $0x310] sm:$0xff] }
 0xb09   : > { %4702 = vmatmul.bf16.gmra.mxu3 %v14136_v52  ;;  %4837 = vmatmul.bf16.gmra.mxu0 %v3328_v46  ;;  %v3162_v52 = vadd.f32 %v14337_v9, %v14381_v49 }
 0xb0a   : > { %v4462_v42 = vadd.f32 %v14378_v40, %v4433_v27  ;;  %4742 = vmatpush.bf16.msra.mxu1 %v11800_v3 }
 0xb0b   : > { %v4442_v34 = vpop.f32.mrf.mxu2  ;;  %v3264_v45 = vmax.f32 %v3162_v52, 0.0 }
 0xb0c   : > { %v4471_v26 = vpop.f32.mrf.mxu3  ;;  %v14457_v24 = vadd.f32 %v14307_v12, %v4462_v42  ;;  %v3160_v12 = vadd.f32 %v14312_v23, %v14381_v49  ;;  %v14481_v23 = vpop.f32.mrf.mxu0 }
 0xb0d   : > { %v4405_v44 = vpop.f32.mrf.mxu1 }
 0xb0e   : > { %v4406_v62 = vadd.f32 %v14406_v55, %v4405_v44  ;;  %4743 = vmatpush.bf16.msra.mxu1 %v11799_v56  ;;  %v3248_v9 = vmax.f32 %v3160_v12, 0.0 }
 0xb10   : > { %v4435_v40 = vadd.f32 %v4434_v8, %v4406_v62  ;;  %v11798_v8 = vld [vmem:[%s16869_s13 + $0x300] sm:$0xff]  ;;  %v3344_v10 = vpack.c.bf16 %v3264_v45, %v3248_v9 }
 0xb12   : > { %v4464_v28 = vadd.f32 %v4463_v0, %v4435_v40  ;;  %4744 = vmatpush.bf16.msra.mxu1 %v11798_v8 }
 0xb13   : > { %v4444_v36 = vpop.f32.mrf.mxu2 }
 0xb14   : > { %v4473_v17 = vpop.f32.mrf.mxu3  ;;  %v14473_v43 = vadd.f32 %v14335_v37, %v4464_v28  ;;  %v14490_v41 = vpop.f32.mrf.mxu0 }
 0xb15   : > { %v4408_v4 = vpop.f32.mrf.mxu1 }
 0xb16   : > { %v4409_v2 = vadd.f32 %v14406_v55, %v4408_v4 }
 0xb18   : > { %v4438_v51 = vadd.f32 %v4437_v29, %v4409_v2  ;;  %4639 = vmatmul.bf16.gmra.mxu1 %v14060_v59  ;;  %4774 = vmatmul.bf16.vlgmr.msra.gmra.mxu2 %v14176_v5  ;;  %v3167_v29 = vadd.f32 %v14383_v15, %v14381_v49  ;;  %v3165_v59 = vadd.f32 %v14359_v13, %v14381_v49 }
 0xb19   : > { %4803 = vmatmul.bf16.vlgmr.msrb.gmra.mxu3 %v14180_v19  ;;  %4842 = vmatmul.bf16.gmra.mxu0 %v3344_v10 }
 0xb1a   : > { %v4467_v37 = vadd.f32 %v4466_v38, %v4438_v51  ;;  %v3296_v11 = vmax.f32 %v3167_v29, 0.0  ;;  %v3280_v46 = vmax.f32 %v3165_v59, 0.0 }
 0xb1b   : > { %v4543_v0 = vpop.f32.mrf.mxu2 }
 0xb1c   : > { %v4572_v39 = vpop.f32.mrf.mxu3  ;;  %v4496_v35 = vadd.f32 %v14367_v33, %v4467_v37  ;;  %v3360_v15 = vpack.c.bf16 %v3296_v11, %v3280_v46 }
 0xb1d   : > { %v4410_v50 = vpop.f32.mrf.mxu1 }
 0xb1e   : > { %v4411_v60 = vadd.f32 %v14406_v55, %v4410_v50 }
 0xb20   : > { %v4440_v31 = vadd.f32 %v4439_v47, %v4411_v60 }
 0xb22   : > { %v4469_v5 = vadd.f32 %v4468_v54, %v4440_v31 }
 0xb23   : > { %v14492_v19 = vpop.f32.mrf.mxu2 }
 0xb24   : > { %v14494_v38 = vpop.f32.mrf.mxu3  ;;  %v14497_v33 = vadd.f32 %v14401_v1, %v4469_v5  ;;  %v14504_v1 = vpop.f32.mrf.mxu0 }
 0xb25   : > { %v4413_v27 = vpop.f32.mrf.mxu1 }
 0xb26   : > { %v4414_v48 = vadd.f32 %v14406_v55, %v4413_v27 }
 0xb28   : > { %v4443_v47 = vadd.f32 %v4442_v34, %v4414_v48  ;;  %4644 = vmatmul.bf16.gmra.mxu1 %v14110_v30  ;;  %4779 = vmatmul.bf16.gmra.mxu2 %v14228_v57 }
 0xb29   : > { %4808 = vmatmul.bf16.gmra.mxu3 %v14237_v18  ;;  %4847 = vmatmul.bf16.gmra.mxu0 %v3360_v15 }
 0xb2a   : > { %v4472_v13 = vadd.f32 %v4471_v26, %v4443_v47 }
 0xb2b   : > { %v4548_v49 = vpop.f32.mrf.mxu2 }
 0xb2c   : > { %v4577_v54 = vpop.f32.mrf.mxu3  ;;  %v4501_v42 = vadd.f32 %v14422_v14, %v4472_v13  ;;  %v14515_v40 = vpop.f32.mrf.mxu0 }
 0xb2d   : > { %v4415_v44 = vpop.f32.mrf.mxu1 }
 0xb2e   : > { %v4416_v3 = vadd.f32 %v14406_v55, %v4415_v44 }
 0xb30   : > { %v4445_v62 = vadd.f32 %v4444_v36, %v4416_v3 }
 0xb32   : > { %v4474_v52 = vadd.f32 %v4473_v17, %v4445_v62 }
 0xb33   : > { %v14507_v34 = vpop.f32.mrf.mxu2 }
 0xb34   : > { %v14509_v30 = vpop.f32.mrf.mxu3  ;;  %v14512_v57 = vadd.f32 %v14443_v7, %v4474_v52  ;;  %v14522_v45 = vpop.f32.mrf.mxu0 }
 0xb35   : > { %v4514_v18 = vpop.f32.mrf.mxu1 }
 0xb36   : > { %16954 = vst [vmem:[#allocation26_spill] sm:$0xff] %v14512_v57  ;;  %v4515_v26 = vadd.f32 %v4514_v18, %v14425_v22 }
 0xb38   : > { %v4544_v14 = vadd.f32 %v4543_v0, %v4515_v26  ;;  %4745 = vmatmul.bf16.vlgmr.msra.gmra.mxu1 %v14165_v16  ;;  %4784 = vmatmul.bf16.gmra.mxu2 %v14273_v32 }
 0xb39   : > { %4813 = vmatmul.bf16.gmra.mxu3 %v14284_v21 }
 0xb3a   : > { %v14520_v55 = vadd.f32 %v4572_v39, %v4544_v14 }
 0xb3b   : > { %v4553_v56 = vpop.f32.mrf.mxu2 }
 0xb3c   : > { %v4582_v12 = vpop.f32.mrf.mxu3  ;;  %v14534_v32 = vpop.f32.mrf.mxu0 }
 0xb3d   : > { %v4516_v28 = vpop.f32.mrf.mxu1 }
 0xb43   : > { %v14524_v7 = vpop.f32.mrf.mxu2 }
 0xb44   : > { %v14526_v36 = vpop.f32.mrf.mxu3  ;;  %v14540_v51 = vpop.f32.mrf.mxu0 }
 0xb45   : > { %v4519_v22 = vpop.f32.mrf.mxu1  ;;  %16957 = vst [vmem:[#allocation29_spill] sm:$0xff] %v14540_v51 }
 0xb46   : > { %v4520_v17 = vadd.f32 %v4519_v22, %v14457_v24 }
 0xb48   : > { %v4549_v9 = vadd.f32 %v4548_v49, %v4520_v17  ;;  %4750 = vmatmul.bf16.gmra.mxu1 %v14213_v58  ;;  %4789 = vmatmul.bf16.gmra.mxu2 %v14322_v61 }
 0xb49   : > { %4818 = vmatmul.bf16.gmra.mxu3 %v14331_v6 }
 0xb4a   : > { %v14532_v16 = vadd.f32 %v4577_v54, %v4549_v9 }
 0xb4b   : > { %v4558_v21 = vpop.f32.mrf.mxu2 }
 0xb4c   : > { %v4587_v4 = vpop.f32.mrf.mxu3  ;;  %v4717_v50 = vpop.f32.mrf.mxu0 }
 0xb4d   : > { %v4521_v8 = vpop.f32.mrf.mxu1 }
 0xb53   : > { %v14536_v2 = vpop.f32.mrf.mxu2 }
 0xb54   : > { %16955 = vst [vmem:[#allocation24_spill] sm:$0xff] %v14536_v2  ;;  %v14538_v10 = vpop.f32.mrf.mxu3  ;;  %v4719_v11 = vpop.f32.mrf.mxu0 }
 0xb55   : > { %16956 = vst [vmem:[#allocation28_spill] sm:$0xff] %v14538_v10  ;;  %v4524_v24 = vpop.f32.mrf.mxu1 }
 0xb56   : > { %v4525_v37 = vadd.f32 %v4524_v24, %v4496_v35 }
 0xb58   : > { %v4554_v58 = vadd.f32 %v4553_v56, %v4525_v37  ;;  %4755 = vmatmul.bf16.gmra.mxu1 %v14260_v20 }
 0xb5a   : > { %v14543_v61 = vadd.f32 %v4582_v12, %v4554_v58 }
 0xb5b   : > { %v4659_v6 = vpop.f32.mrf.mxu2 }
 0xb5c   : > { %v4688_v0 = vpop.f32.mrf.mxu3  ;;  %v14554_v48 = vpop.f32.mrf.mxu0 }
 0xb5d   : > { %v14545_v39 = vpop.f32.mrf.mxu1 }
 0xb63   : > { %v4661_v60 = vpop.f32.mrf.mxu2 }
 0xb64   : > { %v4690_v59 = vpop.f32.mrf.mxu3  ;;  %v14560_v49 = vpop.f32.mrf.mxu0 }
 0xb65   : > { %v4529_v29 = vpop.f32.mrf.mxu1 }
 0xb66   : > { %v4530_v31 = vadd.f32 %v4529_v29, %v4501_v42  ;;  %v4602_v29 = vadd.f32 %v14465_v25, %v14520_v55 }
 0xb68   : > { %v4559_v5 = vadd.f32 %v4558_v21, %v4530_v31  ;;  %4760 = vmatmul.bf16.gmra.mxu1 %v14305_v53  ;;  %v4517_v21 = vadd.f32 %v4516_v28, %v14441_v63 }
 0xb6a   : > { %v14548_v46 = vadd.f32 %v4587_v4, %v4559_v5  ;;  %v4546_v58 = vadd.f32 %v14492_v19, %v4517_v21 }
 0xb6b   : > { %v4664_v20 = vpop.f32.mrf.mxu2 }
 0xb6c   : > { %v14552_v27 = vpop.f32.mrf.mxu3  ;;  %v14566_v3 = vpop.f32.mrf.mxu0  ;;  %v4575_v5 = vadd.f32 %v14494_v38, %v4546_v58  ;;  %v4607_v38 = vadd.f32 %v14490_v41, %v14532_v16 }
 0xb6d   : > { %v14550_v35 = vpop.f32.mrf.mxu1 }
 0xb6e   : > { %16958 = vst [vmem:[#allocation25_spill] sm:$0xff] %v14550_v35  ;;  %v4604_v63 = vadd.f32 %v14481_v23, %v4575_v5  ;;  %v4522_v35 = vadd.f32 %v4521_v8, %v14473_v43 }
 0xb70   : > { %v4551_v25 = vadd.f32 %v14507_v34, %v4522_v35  ;;  %v16963_v34 = vld [vmem:[#allocation16_spill] sm:$0xff] }
 0xb73   : > { %v14556_v47 = vpop.f32.mrf.mxu2 }
 0xb74   : > { %v14558_v13 = vpop.f32.mrf.mxu3  ;;  %v14572_v26 = vpop.f32.mrf.mxu0 }
 0xb75   : > { %v4630_v15 = vpop.f32.mrf.mxu1 }
 0xb76   : > { %v4631_v31 = vadd.f32 %v4630_v15, %v4602_v29 }
 0xb78   : > { %v4660_v10 = vadd.f32 %v4659_v6, %v4631_v31  ;;  %v4612_v31 = vadd.f32 %v14515_v40, %v14543_v61 }
 0xb7b   : > { %v14562_v42 = vpop.f32.mrf.mxu2 }
 0xb7c   : > { %v14564_v53 = vpop.f32.mrf.mxu3  ;;  %v14578_v22 = vpop.f32.mrf.mxu0 }
 0xb7d   : > { %v4632_v54 = vpop.f32.mrf.mxu1  ;;  %16959 = vst [vmem:[#allocation27_spill] sm:$0xff] %v14578_v22 }
 0xb83   : > { %v14568_v62 = vpop.f32.mrf.mxu2 }
 0xb84   : > { %v14570_v18 = vpop.f32.mrf.mxu3  ;;  %v14587_v24 = vpop.f32.mrf.mxu0 }
 0xb85   : > { %v4635_v44 = vpop.f32.mrf.mxu1  ;;  %16962 = vst [vmem:[#allocation32_spill] sm:$0xff] %v14587_v24  ;;  %v4689_v24 = vadd.f32 %v4688_v0, %v4660_v10 }
 0xb86   : > { %v4636_v15 = vadd.f32 %v4635_v44, %v4607_v38 }
 0xb87   : > { %v4718_v19 = vadd.f32 %v4717_v50, %v4689_v24 }
 0xb88   : > { %v4665_v0 = vadd.f32 %v4664_v20, %v4636_v15  ;;  %v16965_v15 = vld [vmem:[#allocation18_spill] sm:$0xff] }
 0xb8b   : > { %v14574_v56 = vpop.f32.mrf.mxu2 }
 0xb8c   : > { %v14576_v12 = vpop.f32.mrf.mxu3  ;;  %v4833_v28 = vpop.f32.mrf.mxu0 }
 0xb8d   : > { %v4637_v52 = vpop.f32.mrf.mxu1 }
 0xb93   : > { %v14582_v9 = vpop.f32.mrf.mxu2 }
 0xb94   : > { %16960 = vst [vmem:[#allocation30_spill] sm:$0xff] %v14582_v9  ;;  %v14585_v4 = vpop.f32.mrf.mxu3  ;;  %v4835_v23 = vpop.f32.mrf.mxu0 }
 0xb95   : > { %v4640_v14 = vpop.f32.mrf.mxu1  ;;  %16961 = vst [vmem:[#allocation31_spill] sm:$0xff] %v14585_v4  ;;  %v4633_v4 = vadd.f32 %v4632_v54, %v4604_v63  ;;  %v4580_v54 = vadd.f32 %v14509_v30, %v4551_v25 }
 0xb97   : > { %v4662_v57 = vadd.f32 %v4661_v60, %v4633_v4  ;;  %v4609_v60 = vadd.f32 %v14504_v1, %v4580_v54 }
 0xb99   : > { %v4691_v29 = vadd.f32 %v4690_v59, %v4662_v57  ;;  %v4638_v16 = vadd.f32 %v4637_v52, %v4609_v60 }
 0xb9b   : > { %v4775_v51 = vpop.f32.mrf.mxu2  ;;  %v4720_v43 = vadd.f32 %v4719_v11, %v4691_v29  ;;  %v4667_v1 = vadd.f32 %v14556_v47, %v4638_v16 }
 0xb9c   : > { %v4804_v2 = vpop.f32.mrf.mxu3  ;;  %v4838_v11 = vpop.f32.mrf.mxu0 }
 0xb9d   : > { %v14580_v17 = vpop.f32.mrf.mxu1 }
 0xba3   : > { %v4777_v21 = vpop.f32.mrf.mxu2 }
 0xba4   : > { %v4806_v6 = vpop.f32.mrf.mxu3  ;;  %v4840_v38 = vpop.f32.mrf.mxu0 }
 0xba5   : > { %v14589_v37 = vpop.f32.mrf.mxu1 }
 0xbab   : > { %v4780_v41 = vpop.f32.mrf.mxu2 }
 0xbac   : > { %v4809_v30 = vpop.f32.mrf.mxu3 }
 0xbad   : > { %v14595_v9 = vpop.f32.mrf.mxu1 }
 0xbb3   : > { %v4782_v47 = vpop.f32.mrf.mxu2 }
 0xbb5   : > { %v4746_v22 = vpop.f32.mrf.mxu1 }
 0xbb6   : > { %v4747_v55 = vadd.f32 %v4746_v22, %v4718_v19 }
 0xbb8   : > { %v4776_v58 = vadd.f32 %v4775_v51, %v4747_v55  ;;  %v4694_v51 = vadd.f32 %v14552_v27, %v4665_v0  ;;  %v16964_v27 = vld [vmem:[#allocation17_spill] sm:$0xff] }
 0xbba   : > { %v4805_v10 = vadd.f32 %v4804_v2, %v4776_v58  ;;  %v4527_v2 = vadd.f32 %v14545_v39, %v14497_v33  ;;  %v4723_v20 = vadd.f32 %v14554_v48, %v4694_v51  ;;  %v4696_v39 = vadd.f32 %v14558_v13, %v4667_v1 }
 0xbbc   : > { %v4834_v8 = vadd.f32 %v4833_v28, %v4805_v10  ;;  %v4556_v52 = vadd.f32 %v14524_v7, %v4527_v2  ;;  %v4641_v28 = vadd.f32 %v4640_v14, %v4612_v31  ;;  %v4811_v7 = vpop.f32.mrf.mxu3  ;;  %v4725_v40 = vadd.f32 %v14560_v49, %v4696_v39  ;;  %v4785_v49 = vpop.f32.mrf.mxu2  ;;  %v16969_v31 = vld [vmem:[#allocation21_spill] sm:$0xff] }
 0xbbd   : > { %v4748_v50 = vpop.f32.mrf.mxu1 }
 0xbbe   : > { %v4749_v4 = vadd.f32 %v4748_v50, %v4720_v43  ;;  %v14605_v35 = vadd.f32 %v4834_v8, %v16963_v34  ;;  %v4585_v48 = vadd.f32 %v14526_v36, %v4556_v52  ;;  %v4670_v25 = vadd.f32 %v14562_v42, %v4641_v28  ;;  %v16966_v50 = vld [vmem:[#allocation19_spill] sm:$0xff] }
 0xbbf   : > { %v4617_v8 = vadd.f32 %v14534_v32, %v14548_v46 }
 0xbc0   : > { %v4778_v22 = vadd.f32 %v4777_v21, %v4749_v4  ;;  %v4863_v57 = vsel %vm608_vm0, %v14605_v35, 0.0  ;;  %v4614_v14 = vadd.f32 %v14522_v45, %v4585_v48  ;;  %v4843_v4 = vpop.f32.mrf.mxu0  ;;  %v16970_v48 = vld [vmem:[#allocation22_spill] sm:$0xff] }
 0xbc1   : > { %4864 = vadd.xlane.f32.xlu2 %v4863_v57 }
 0xbc2   : > { %v4807_v59 = vadd.f32 %v4806_v6, %v4778_v22  ;;  %v4643_v13 = vadd.f32 %v14580_v17, %v4614_v14  ;;  %v16974_v14 = vld [vmem:[#allocation28_spill] sm:$0xff] }
 0xbc4   : > { %v4836_v44 = vadd.f32 %v4835_v23, %v4807_v59  ;;  %v4699_v23 = vadd.f32 %v14564_v53, %v4670_v25  ;;  %v4672_v54 = vadd.f32 %v14568_v62, %v4643_v13  ;;  %v4814_v0 = vpop.f32.mrf.mxu3  ;;  %v4646_v53 = vadd.f32 %v14589_v37, %v4617_v8  ;;  %v4787_v46 = vpop.f32.mrf.mxu2  ;;  %v16971_v25 = vld [vmem:[#allocation26_spill] sm:$0xff] }
 0xbc5   : > { %v4751_v24 = vpop.f32.mrf.mxu1 }
 0xbc6   : > { %v4752_v5 = vadd.f32 %v4751_v24, %v4723_v20  ;;  %v14618_v63 = vadd.f32 %v4836_v44, %v16964_v27  ;;  %v4728_v10 = vadd.f32 %v14566_v3, %v4699_v23  ;;  %v4701_v62 = vadd.f32 %v14570_v18, %v4672_v54 }
 0xbc7   : > { %v4675_v16 = vadd.f32 %v14574_v56, %v4646_v53  ;;  %v16968_v56 = vld [vmem:[#allocation27_spill] sm:$0xff] }
 0xbc8   : > { %v4781_v19 = vadd.f32 %v4780_v41, %v4752_v5  ;;  %v4866_v33 = vsel %vm608_vm0, %v14618_v63, 0.0  ;;  %v4730_v22 = vadd.f32 %v14572_v26, %v4701_v62  ;;  %v4845_v1 = vpop.f32.mrf.mxu0 }
 0xbc9   : > { %4867 = vadd.xlane.f32.xlu0 %v4866_v33  ;;  %v4704_v18 = vadd.f32 %v14576_v12, %v4675_v16 }
 0xbca   : > { %v4810_v21 = vadd.f32 %v4809_v30, %v4781_v19  ;;  %v16967_v30 = vld [vmem:[#allocation20_spill] sm:$0xff] }
 0xbcb   : > { %v4733_v44 = vadd.f32 %v16968_v56, %v4704_v18 }
 0xbcc   : > { %v4839_v61 = vadd.f32 %v4838_v11, %v4810_v21  ;;  %v4816_v37 = vpop.f32.mrf.mxu3  ;;  %v4790_v27 = vpop.f32.mrf.mxu2 }
 0xbcd   : > { %v4753_v55 = vpop.f32.mrf.mxu1 }
 0xbce   : > { %v4754_v6 = vadd.f32 %v4753_v55, %v4725_v40  ;;  %v14628_v58 = vadd.f32 %v4839_v61, %v16965_v15  ;;  %v16972_v40 = vld [vmem:[#allocation25_spill] sm:$0xff] }
 0xbcf   : > { %v4532_v61 = vadd.f32 %v16972_v40, %v16971_v25  ;;  %v16975_v15 = vld [vmem:[#allocation29_spill] sm:$0xff] }
 0xbd0   : > { %v4783_v29 = vadd.f32 %v4782_v47, %v4754_v6  ;;  %v4869_v36 = vsel %vm608_vm0, %v14628_v58, 0.0  ;;  %v4848_v12 = vpop.f32.mrf.mxu0 }
 0xbd1   : > { %4870 = vadd.xlane.f32.xlu1 %v4869_v36  ;;  %v16976_v36 = vld [vmem:[#allocation30_spill] sm:$0xff] }
 0xbd2   : > { %v4812_v42 = vadd.f32 %v4811_v7, %v4783_v29 }
 0xbd4   : > { %v4841_v45 = vadd.f32 %v4840_v38, %v4812_v42  ;;  %v4819_v33 = vpop.f32.mrf.mxu3  ;;  %v16973_v38 = vld [vmem:[#allocation24_spill] sm:$0xff]  ;;  %v16977_v42 = vld [vmem:[#allocation31_spill] sm:$0xff] }
 0xbd5   : > { %v4756_v43 = vpop.f32.mrf.mxu1  ;;  %v4561_v55 = vadd.f32 %v16973_v38, %v4532_v61  ;;  %v11833_v61 = vld [vmem:[%s16925_s3 + $0x18] sm:$0xff] }
 0xbd6   : > { %v4757_v17 = vadd.f32 %v4756_v43, %v4728_v10  ;;  %v14639_v60 = vadd.f32 %v4841_v45, %v16966_v50  ;;  %v16978_v10 = vld [vmem:[#allocation32_spill] sm:$0xff]  ;;  %v4792_v43 = vpop.f32.mrf.mxu2  ;;  %v16979_v50 = vld [vmem:[#allocation15_spill] sm:$0xff]  ;;  %5156 = vmatpush.bf16.msrb.mxu2 %v11833_v61 }
 0xbd7   : > { %v4590_v6 = vadd.f32 %v16974_v14, %v4561_v55  ;;  %v11830_v14 = vld [vmem:[%s16924_s23 + $0x10] sm:$0xff] }
 0xbd8   : > { %v4786_v34 = vadd.f32 %v4785_v49, %v4757_v17  ;;  %v4872_v41 = vsel %vm608_vm0, %v14639_v60, 0.0  ;;  %v4850_v62 = vpop.f32.mrf.mxu0 }
 0xbd9   : > { %4873 = vadd.xlane.f32.xlu2 %v4872_v41  ;;  %v4619_v13 = vadd.f32 %v16975_v15, %v4590_v6  ;;  %v11832_v6 = vld [vmem:[%s16925_s3 + $0x10] sm:$0xff] }
 0xbda   : > { %v4815_v3 = vadd.f32 %v4814_v0, %v4786_v34  ;;  %v11834_v15 = vld [vmem:[%s16861_s5 + $0x10] sm:$0xff]  ;;  %5157 = vmatpush.bf16.msrb.mxu2 %v11832_v6 }
 0xbdb   : > { %v4648_v29 = vadd.f32 %v14595_v9, %v4619_v13 }
 0xbdc   : > { %v4844_v32 = vadd.f32 %v4843_v4, %v4815_v3  ;;  %v4821_v53 = vpop.f32.mrf.mxu3 }
 0xbdd   : > { %v4758_v57 = vpop.f32.mrf.mxu1  ;;  %v4677_v23 = vadd.f32 %v16976_v36, %v4648_v29 }
 0xbde   : > { %v4759_v51 = vadd.f32 %v4758_v57, %v4730_v22  ;;  %v14648_v2 = vadd.f32 %v4844_v32, %v16967_v30  ;;  %v16980_v57 = vld [vmem:[#allocation23_spill] sm:$0xff] }
 0xbdf   : > { %v4706_v49 = vadd.f32 %v16977_v42, %v4677_v23 }
 0xbe0   : > { %v4788_v59 = vadd.f32 %v4787_v46, %v4759_v51  ;;  %v4875_v11 = vsel %vm608_vm0, %v14648_v2, 0.0 }
 0xbe1   : > { %4876 = vadd.xlane.f32.xlu0 %v4875_v11  ;;  %v4735_v45 = vadd.f32 %v16978_v10, %v4706_v49 }
 0xbe2   : > { %v4817_v20 = vadd.f32 %v4816_v37, %v4788_v59 }
 0xbe4   : > { %v4846_v26 = vadd.f32 %v4845_v1, %v4817_v20 }
 0xbe5   : > { %v4761_v24 = vpop.f32.mrf.mxu1 }
 0xbe6   : > { %v4762_v52 = vadd.f32 %v4761_v24, %v4733_v44  ;;  %v14655_v5 = vadd.f32 %v4846_v26, %v16969_v31 }
 0xbe8   : > { %v4791_v28 = vadd.f32 %v4790_v27, %v4762_v52  ;;  %v4878_v19 = vsel %vm608_vm0, %v14655_v5, 0.0 }
 0xbe9   : > { %4879 = vadd.xlane.f32.xlu1 %v4878_v19 }
 0xbea   : > { %v4820_v39 = vadd.f32 %v4819_v33, %v4791_v28 }
 0xbec   : > { %v4849_v47 = vadd.f32 %v4848_v12, %v4820_v39 }
 0xbed   : > { %v4763_v54 = vpop.f32.mrf.mxu1 }
 0xbee   : > { %v4859_v21 = vadd.f32 %v4849_v47, %v16970_v48  ;;  %v4764_v0 = vadd.f32 %v4763_v54, %v4735_v45 }
 0xbf0   : > { %v4881_v7 = vsel %vm608_vm0, %v4859_v21, 0.0  ;;  %v4793_v8 = vadd.f32 %v4792_v43, %v4764_v0 }
 0xbf1   : > { %4882 = vadd.xlane.f32.xlu1 %v4881_v7 }
 0xbf2   : > { %v4822_v34 = vadd.f32 %v4821_v53, %v4793_v8 }
 0xbf4   : > { %v4851_v16 = vadd.f32 %v4850_v62, %v4822_v34 }
 0xbf6   : > { %v4860_v51 = vadd.f32 %v4851_v16, %v16980_v57 }
 0xbf8   : > { %v4884_v37 = vsel %vm608_vm0, %v4860_v51, 0.0 }
 0xc34   : > { %v4865_v17 = vpop.xlane.xlu2 %4864 }
 0xc35   : > { %v4887_v4 = vmul.f32 %v4865_v17, %v16979_v50 }
 0xc37   : > { %v14672_v41 = vsub.f32 %v14605_v35, %v4887_v4 }
 0xc39   : > { %v4903_v9 = vmul.f32 %v14672_v41, %v14672_v41 }
 0xc3b   : > { %v4911_v3 = vsel %vm608_vm0, %v4903_v9, 0.0 }
 0xc3c   : > { %v4868_v22 = vpop.xlane.xlu0 %4867  ;;  %4912 = vadd.xlane.f32.xlu2 %v4911_v3 }
 0xc3d   : > { %v4888_v32 = vmul.f32 %v4868_v22, %v16979_v50 }
 0xc3f   : > { %v14679_v46 = vsub.f32 %v14618_v63, %v4888_v32 }
 0xc41   : > { %v4904_v35 = vmul.f32 %v14679_v46, %v14679_v46 }
 0xc43   : > { %v4914_v30 = vsel %vm608_vm0, %v4904_v35, 0.0 }
 0xc44   : > { %v4871_v59 = vpop.xlane.xlu1 %4870  ;;  %4915 = vadd.xlane.f32.xlu0 %v4914_v30  ;;  %4885 = vadd.xlane.f32.xlu2 %v4884_v37  ;;  %v14751_v37 = vld [vmem:[%s16871_s15] ss:$0 sm:$0xff] }
 0xc45   : > { %v4889_v11 = vmul.f32 %v4871_v59, %v16979_v50 }
 0xc47   : > { %v14688_v18 = vsub.f32 %v14628_v58, %v4889_v11 }
 0xc49   : > { %v4905_v63 = vmul.f32 %v14688_v18, %v14688_v18 }
 0xc4b   : > { %v4917_v1 = vsel %vm608_vm0, %v4905_v63, 0.0 }
 0xc4c   : > { %4918 = vadd.xlane.f32.xlu0 %v4917_v1  ;;  %v4874_v20 = vpop.xlane.xlu2 %4873 }
 0xc4d   : > { %v4890_v56 = vmul.f32 %v4874_v20, %v16979_v50 }
 0xc4f   : > { %v14695_v44 = vsub.f32 %v14639_v60, %v4890_v56 }
 0xc51   : > { %v4906_v26 = vmul.f32 %v14695_v44, %v14695_v44 }
 0xc53   : > { %v4920_v24 = vsel %vm608_vm0, %v4906_v26, 0.0  ;;  %v14757_v26 = vld [vmem:[%s16872_s16] ss:$0 sm:$0xff] }
 0xc54   : > { %v4877_v52 = vpop.xlane.xlu0 %4876  ;;  %4921 = vadd.xlane.f32.xlu1 %v4920_v24 }
 0xc55   : > { %v4891_v58 = vmul.f32 %v4877_v52, %v16979_v50 }
 0xc57   : > { %v14702_v31 = vsub.f32 %v14648_v2, %v4891_v58 }
 0xc59   : > { %v4907_v27 = vmul.f32 %v14702_v31, %v14702_v31 }
 0xc5b   : > { %v4923_v28 = vsel %vm608_vm0, %v4907_v27, 0.0 }
 0xc5c   : > { %v4880_v19 = vpop.xlane.xlu1 %4879  ;;  %4924 = vadd.xlane.f32.xlu2 %v4923_v28 }
 0xc5d   : > { %v4892_v60 = vmul.f32 %v4880_v19, %v16979_v50 }
 0xc5f   : > { %v14709_v33 = vsub.f32 %v14655_v5, %v4892_v60  ;;  %v11831_v5 = vld [vmem:[%s16924_s23 + $0x18] sm:$0xff] }
 0xc60   : > { %5105 = vmatpush.bf16.msrb.mxu1 %v11831_v5 }
 0xc61   : > { %v4908_v39 = vmul.f32 %v14709_v33, %v14709_v33 }
 0xc63   : > { %v4926_v12 = vsel %vm608_vm0, %v4908_v39, 0.0 }
 0xc64   : > { %4927 = vadd.xlane.f32.xlu0 %v4926_v12  ;;  %v4883_v2 = vpop.xlane.xlu1 %4882  ;;  %5106 = vmatpush.bf16.msrb.mxu1 %v11830_v14 }
 0xc65   : > { %v4893_v47 = vmul.f32 %v4883_v2, %v16979_v50 }
 0xc67   : > { %v14715_v48 = vsub.f32 %v4859_v21, %v4893_v47  ;;  %v11835_v21 = vld [vmem:[%s16861_s5 + $0x18] sm:$0xff] }
 0xc68   : > { %5207 = vmatpush.bf16.msra.mxu3 %v11835_v21 }
 0xc69   : > { %v4909_v7 = vmul.f32 %v14715_v48, %v14715_v48 }
 0xc6b   : > { %v4929_v25 = vsel %vm608_vm0, %v4909_v7, 0.0 }
 0xc6c   : > { %4930 = vadd.xlane.f32.xlu1 %v4929_v25  ;;  %5208 = vmatpush.bf16.msra.mxu3 %v11834_v15 }
 0xcaf   : > { %v4913_v40 = vpop.xlane.xlu2 %4912 }
 0xcb0   : > { %v4935_v38 = vmul.f32 %v4913_v40, %v16979_v50 }
 0xcb2   : > { %v4943_v55 = vadd.f32 1e-05, %v4935_v38 }
 0xcb4   : > { %12213 = vrsqrt.f32 %v4943_v55  ;;  %vm4957_vm9 = vweird.f32 %v4943_v55 }
 0xcb7   : > { %v4916_v13 = vpop.xlane.xlu0 %4915  ;;  %v4886_v29 = vpop.xlane.xlu2 %4885 }
 0xcb8   : > { %v4936_v36 = vmul.f32 %v4916_v13, %v16979_v50  ;;  %v4894_v23 = vmul.f32 %v4886_v29, %v16979_v50 }
 0xcba   : > { %v12214_v42 = vpop.eup %12213  ;;  %v4944_v49 = vadd.f32 1e-05, %v4936_v36  ;;  %v14741_v54 = vsub.f32 %v4860_v51, %v4894_v23 }
 0xcbb   : > { %v4952_v10 = vmul.f32 %v12214_v42, %v4943_v55  ;;  %vm4958_vm8 = vweird.f32 %v12214_v42 }
 0xcbc   : > { %12215 = vrsqrt.f32 %v4944_v49  ;;  %v4910_v45 = vmul.f32 %v14741_v54, %v14741_v54  ;;  %vm4959_vm10 = vmor %vm4957_vm9, %vm4958_vm8  ;;  %vm4967_vm13 = vweird.f32 %v4944_v49 }
 0xcbd   : > { %v4953_v0 = vmul.f32 %v12214_v42, %v4952_v10 }
 0xcbe   : > { %v4932_v43 = vsel %vm608_vm0, %v4910_v45, 0.0 }
 0xcbf   : > { %v4954_v8 = vmul.f32 0.5, %v4953_v0  ;;  %v4919_v17 = vpop.xlane.xlu0 %4918  ;;  %4933 = vadd.xlane.f32.xlu2 %v4932_v43 }
 0xcc0   : > { %v4937_v4 = vmul.f32 %v4919_v17, %v16979_v50 }
 0xcc1   : > { %v4955_v53 = vsub.f32 1.5, %v4954_v8 }
 0xcc2   : > { %v12216_v34 = vpop.eup %12215  ;;  %v4945_v9 = vadd.f32 1e-05, %v4937_v4 }
 0xcc3   : > { %v4956_v62 = vmul.f32 %v12214_v42, %v4955_v53  ;;  %v4962_v3 = vmul.f32 %v12216_v34, %v4944_v49  ;;  %vm4968_vm12 = vweird.f32 %v12216_v34 }
 0xcc4   : > { %12217 = vrsqrt.f32 %v4945_v9  ;;  %vm4969_vm14 = vmor %vm4967_vm13, %vm4968_vm12  ;;  %vm4977_vm1 = vweird.f32 %v4945_v9 }
 0xcc5   : > { %v4963_v16 = vmul.f32 %v12216_v34, %v4962_v3  ;;  %v4960_v22 = vsel %vm4959_vm10, %v12214_v42, %v4956_v62 }
 0xcc6   : > { %v5031_v59 = vmul.f32 %v4960_v22, %v14672_v41 }
 0xcc7   : > { %v4964_v32 = vmul.f32 0.5, %v4963_v16  ;;  %v4922_v57 = vpop.xlane.xlu1 %4921 }
 0xcc8   : > { %v4938_v51 = vmul.f32 %v4922_v57, %v16979_v50  ;;  %v5042_v24 = vmul.f32 %v14751_v37, %v5031_v59 }
 0xcc9   : > { %v4965_v35 = vsub.f32 1.5, %v4964_v32 }
 0xcca   : > { %v12218_v30 = vpop.eup %12217  ;;  %v4946_v11 = vadd.f32 1e-05, %v4938_v51  ;;  %v14764_v39 = vadd.f32 %v14757_v26, %v5042_v24 }
 0xccb   : > { %v4966_v63 = vmul.f32 %v12216_v34, %v4965_v35  ;;  %v4972_v1 = vmul.f32 %v12218_v30, %v4945_v9  ;;  %vm4978_vm15 = vweird.f32 %v12218_v30 }
 0xccc   : > { %12219 = vrsqrt.f32 %v4946_v11  ;;  %vm4979_vm2 = vmor %vm4977_vm1, %vm4978_vm15  ;;  %vm4987_vm4 = vweird.f32 %v4946_v11 }
 0xccd   : > { %v4970_v20 = vsel %vm4969_vm14, %v12216_v34, %v4966_v63  ;;  %v4973_v56 = vmul.f32 %v12218_v30, %v4972_v1 }
 0xcce   : > { %v5032_v52 = vmul.f32 %v4970_v20, %v14679_v46 }
 0xccf   : > { %v4974_v58 = vmul.f32 0.5, %v4973_v56  ;;  %v4925_v27 = vpop.xlane.xlu2 %4924 }
 0xcd0   : > { %v5043_v41 = vmul.f32 %v14751_v37, %v5032_v52  ;;  %v4939_v28 = vmul.f32 %v4925_v27, %v16979_v50 }
 0xcd1   : > { %v4975_v19 = vsub.f32 1.5, %v4974_v58 }
 0xcd2   : > { %v12220_v60 = vpop.eup %12219  ;;  %v14767_v12 = vadd.f32 %v14757_v26, %v5043_v41  ;;  %v4947_v2 = vadd.f32 1e-05, %v4939_v28 }
 0xcd3   : > { %v4976_v47 = vmul.f32 %v12218_v30, %v4975_v19  ;;  %v4982_v7 = vmul.f32 %v12220_v60, %v4946_v11  ;;  %vm4988_vm3 = vweird.f32 %v12220_v60 }
 0xcd4   : > { %v5061_v46 = vpack.c.bf16 %v14767_v12, %v14764_v39  ;;  %12221 = vrsqrt.f32 %v4947_v2  ;;  %vm4989_vm5 = vmor %vm4987_vm4, %vm4988_vm3  ;;  %vm4997_vm7 = vweird.f32 %v4947_v2 }
 0xcd5   : > { %v4983_v25 = vmul.f32 %v12220_v60, %v4982_v7  ;;  %v4980_v40 = vsel %vm4979_vm2, %v12218_v30, %v4976_v47 }
 0xcd6   : > { %10505 = vmatmul.msk.bf16.vlgmr.msrb.gmra.mxu1 %vm608_vm0, %v5061_v46  ;;  %10522 = vmatmul.msk.bf16.vlgmr.msrb.gmra.mxu2 %vm608_vm0, %v5061_v46  ;;  %v5033_v14 = vmul.f32 %v4980_v40, %v14688_v18 }
 0xcd7   : > { %v4984_v5 = vmul.f32 0.5, %v4983_v25  ;;  %10539 = vmatmul.msk.bf16.vlgmr.msra.gmra.mxu3 %vm608_vm0, %v5061_v46  ;;  %v4928_v61 = vpop.xlane.xlu0 %4927 }
 0xcd8   : > { %v4940_v21 = vmul.f32 %v4928_v61, %v16979_v50  ;;  %v5044_v42 = vmul.f32 %v14751_v37, %v5033_v14 }
 0xcd9   : > { %v4985_v38 = vsub.f32 1.5, %v4984_v5 }
 0xcda   : > { %v12222_v55 = vpop.eup %12221  ;;  %v4948_v6 = vadd.f32 1e-05, %v4940_v21  ;;  %v14780_v43 = vadd.f32 %v14757_v26, %v5044_v42 }
 0xcdb   : > { %v4986_v15 = vmul.f32 %v12220_v60, %v4985_v38  ;;  %v4992_v13 = vmul.f32 %v12222_v55, %v4947_v2  ;;  %vm4998_vm6 = vweird.f32 %v12222_v55 }
 0xcdc   : > { %12223 = vrsqrt.f32 %v4948_v6  ;;  %vm4999_vm8 = vmor %vm4997_vm7, %vm4998_vm6  ;;  %vm5007_vm10 = vweird.f32 %v4948_v6 }
 0xcdd   : > { %v4990_v29 = vsel %vm4989_vm5, %v12220_v60, %v4986_v15  ;;  %v4993_v36 = vmul.f32 %v12222_v55, %v4992_v13 }
 0xcde   : > { %v5034_v23 = vmul.f32 %v4990_v29, %v14695_v44 }
 0xcdf   : > { %v4994_v49 = vmul.f32 0.5, %v4993_v36 }
 0xce0   : > { %v5045_v10 = vmul.f32 %v14751_v37, %v5034_v23  ;;  %v14843_v23 = vld [vmem:[%s16862_s6 + $0x1] ss:$0 sm:$0xff] }
 0xce1   : > { %v4995_v45 = vsub.f32 1.5, %v4994_v49 }
 0xce2   : > { %v12224_v0 = vpop.eup %12223  ;;  %v14783_v18 = vadd.f32 %v14757_v26, %v5045_v10  ;;  %v16983_v10 = vld [vmem:[#allocation14_spill] sm:$0xff] }
 0xce3   : > { %v4996_v8 = vmul.f32 %v12222_v55, %v4995_v45  ;;  %v5002_v17 = vmul.f32 %v12224_v0, %v4948_v6  ;;  %vm5008_vm9 = vweird.f32 %v12224_v0 }
 0xce4   : > { %v5062_v4 = vpack.c.bf16 %v14783_v18, %v14780_v43  ;;  %vm5009_vm12 = vmor %vm5007_vm10, %vm5008_vm9 }
 0xce5   : > { %v5003_v44 = vmul.f32 %v12224_v0, %v5002_v17  ;;  %v5000_v53 = vsel %vm4999_vm8, %v12222_v55, %v4996_v8 }
 0xce6   : > { %10506 = vmatmul.msk.bf16.gmra.mxu1 %vm608_vm0, %v5062_v4  ;;  %10523 = vmatmul.msk.bf16.gmra.mxu2 %vm608_vm0, %v5062_v4  ;;  %v5035_v62 = vmul.f32 %v5000_v53, %v14702_v31  ;;  %v4931_v31 = vpop.xlane.xlu1 %4930 }
 0xce7   : > { %v5004_v34 = vmul.f32 0.5, %v5003_v44  ;;  %10540 = vmatmul.msk.bf16.gmra.mxu3 %vm608_vm0, %v5062_v4 }
 0xce8   : > { %v5046_v32 = vmul.f32 %v14751_v37, %v5035_v62 }
 0xce9   : > { %v5005_v9 = vsub.f32 1.5, %v5004_v34 }
 0xcea   : > { %v14795_v51 = vadd.f32 %v14757_v26, %v5046_v32 }
 0xceb   : > { %v5006_v3 = vmul.f32 %v12224_v0, %v5005_v9 }
 0xced   : > { %v5010_v16 = vsel %vm5009_vm12, %v12224_v0, %v5006_v3 }
 0xcee   : > { %v5036_v22 = vmul.f32 %v5010_v16, %v14709_v33  ;;  %v4941_v33 = vmul.f32 %v4931_v31, %v16979_v50 }
 0xcf0   : > { %v5047_v57 = vmul.f32 %v14751_v37, %v5036_v22  ;;  %v4949_v59 = vadd.f32 1e-05, %v4941_v33 }
 0xcf2   : > { %v14798_v35 = vadd.f32 %v14757_v26, %v5047_v57  ;;  %12225 = vrsqrt.f32 %v4949_v59  ;;  %vm5017_vm14 = vweird.f32 %v4949_v59 }
 0xcf4   : > { %v5063_v30 = vpack.c.bf16 %v14798_v35, %v14795_v51 }
 0xcf6   : > { %10507 = vmatmul.msk.bf16.gmra.mxu1 %vm608_vm0, %v5063_v30  ;;  %10524 = vmatmul.msk.bf16.gmra.mxu2 %vm608_vm0, %v5063_v30 }
 0xcf7   : > { %10541 = vmatmul.msk.bf16.gmra.mxu3 %vm608_vm0, %v5063_v30 }
 0xcf8   : > { %v12226_v11 = vpop.eup %12225 }
 0xcf9   : > { %v5012_v63 = vmul.f32 %v12226_v11, %v4949_v59  ;;  %vm5018_vm13 = vweird.f32 %v12226_v11 }
 0xcfa   : > { %vm5019_vm15 = vmor %vm5017_vm14, %vm5018_vm13 }
 0xcfb   : > { %v5013_v1 = vmul.f32 %v12226_v11, %v5012_v63 }
 0xcfd   : > { %v5014_v52 = vmul.f32 0.5, %v5013_v1 }
 0xcff   : > { %v5015_v58 = vsub.f32 1.5, %v5014_v52 }
 0xd01   : > { %v5016_v41 = vmul.f32 %v12226_v11, %v5015_v58 }
 0xd03   : > { %v5020_v60 = vsel %vm5019_vm15, %v12226_v11, %v5016_v41 }
 0xd04   : > { %v5037_v7 = vmul.f32 %v5020_v60, %v14715_v48 }
 0xd06   : > { %v5048_v5 = vmul.f32 %v14751_v37, %v5037_v7 }
 0xd08   : > { %v14812_v21 = vadd.f32 %v14757_v26, %v5048_v5 }
 0xd0a   : > { %16981 = vst [vmem:[#allocation16_spill] sm:$0xff] %v14812_v21 }
 0xd32   : > { %v4934_v20 = vpop.xlane.xlu2 %4933 }
 0xd33   : > { %v4942_v56 = vmul.f32 %v4934_v20, %v16979_v50 }
 0xd35   : > { %v4950_v24 = vadd.f32 1e-05, %v4942_v56 }
 0xd37   : > { %12227 = vrsqrt.f32 %v4950_v24  ;;  %vm5027_vm2 = vweird.f32 %v4950_v24 }
 0xd3d   : > { %v12228_v27 = vpop.eup %12227 }
 0xd3e   : > { %v5022_v28 = vmul.f32 %v12228_v27, %v4950_v24  ;;  %vm5028_vm1 = vweird.f32 %v12228_v27 }
 0xd3f   : > { %vm5029_vm3 = vmor %vm5027_vm2, %vm5028_vm1 }
 0xd40   : > { %v5023_v19 = vmul.f32 %v12228_v27, %v5022_v28 }
 0xd42   : > { %v5024_v2 = vmul.f32 0.5, %v5023_v19 }
 0xd44   : > { %v5025_v47 = vsub.f32 1.5, %v5024_v2 }
 0xd46   : > { %v5026_v46 = vmul.f32 %v12228_v27, %v5025_v47 }
 0xd48   : > { %v5030_v25 = vsel %vm5029_vm3, %v12228_v27, %v5026_v46 }
 0xd49   : > { %v5038_v40 = vmul.f32 %v5030_v25, %v14741_v54 }
 0xd4b   : > { %v5049_v61 = vmul.f32 %v14751_v37, %v5038_v40  ;;  %v14825_v37 = vld [vmem:[%s16931_s4 + $0x1] ss:$0 sm:$0xff] }
 0xd4d   : > { %v14815_v38 = vadd.f32 %v14757_v26, %v5049_v61  ;;  %v14830_v26 = vld [vmem:[%s16930_s2 + $0x1] ss:$0 sm:$0xff] }
 0xd4f   : > { %16982 = vst [vmem:[#allocation17_spill] sm:$0xff] %v14815_v38  ;;  %v5064_v55 = vpack.c.bf16 %v14815_v38, %v14812_v21 }
 0xd51   : > { %10508 = vmatmul.msk.bf16.gmra.mxu1 %vm608_vm0, %v5064_v55  ;;  %10525 = vmatmul.msk.bf16.gmra.mxu2 %vm608_vm0, %v5064_v55 }
 0xd52   : > { %10542 = vmatmul.msk.bf16.gmra.mxu3 %vm608_vm0, %v5064_v55 }
 0xd53   : > { %v5108_v48 = vpop.f32.mrf.mxu1 }
 0xd54   : > { %v14838_v36 = vadd.f32 %v14830_v26, %v5108_v48 }
 0xd56   : > { %v5230_v45 = vmul.f32 %v16983_v10, %v14838_v36 }
 0xd59   : > { %v5159_v54 = vpop.f32.mrf.mxu2 }
 0xd5a   : > { %v5210_v14 = vpop.f32.mrf.mxu3  ;;  %v14846_v42 = vadd.f32 %v14825_v37, %v5159_v54 }
 0xd5b   : > { %v5110_v15 = vpop.f32.mrf.mxu1  ;;  %v14857_v8 = vadd.f32 %v14843_v23, %v5210_v14 }
 0xd5c   : > { %v14862_v44 = vadd.f32 %v14830_v26, %v5110_v15 }
 0xd5e   : > { %v5231_v34 = vmul.f32 %v16983_v10, %v14862_v44 }
 0xd61   : > { %v5161_v6 = vpop.f32.mrf.mxu2 }
 0xd62   : > { %v14833_v13 = vadd.f32 %v14825_v37, %v5161_v6  ;;  %v5212_v29 = vpop.f32.mrf.mxu3 }
 0xd63   : > { %v14849_v49 = vadd.f32 %v14843_v23, %v5212_v29  ;;  %v5113_v4 = vpop.f32.mrf.mxu1 }
 0xd64   : > { %10543 = vmatpush.xpose.msk.msrb.mxu0 %vm608_vm0, %v14833_v13  ;;  %v14877_v3 = vadd.f32 %v14830_v26, %v5113_v4 }
 0xd66   : > { %v5232_v57 = vmul.f32 %v16983_v10, %v14877_v3 }
 0xd68   : > { %10544 = vmatpush.xpose.msk.msrb.mxu0 %vm608_vm0, %v14846_v42 }
 0xd69   : > { %v5164_v0 = vpop.f32.mrf.mxu2 }
 0xd6a   : > { %v5215_v17 = vpop.f32.mrf.mxu3  ;;  %v14880_v16 = vadd.f32 %v14825_v37, %v5164_v0 }
 0xd6b   : > { %10545 = vmatmul.msk.f32.vlgmr.msrb.gmra.mxu0 %vm608_vm0, %v5230_v45  ;;  %v5115_v22 = vpop.f32.mrf.mxu1  ;;  %v14891_v31 = vadd.f32 %v14843_v23, %v5215_v17 }
 0xd6c   : > { %5494 = vmatpush.msra.mxu0 %v14849_v49  ;;  %v14896_v59 = vadd.f32 %v14830_v26, %v5115_v22 }
 0xd6e   : > { %5495 = vmatpush.msra.mxu0 %v14857_v8  ;;  %v5233_v1 = vmul.f32 %v16983_v10, %v14896_v59 }
 0xd70   : > { %10567 = vmatpush.xpose.msk.msrb.mxu0 %vm608_vm0, %v14833_v13 }
 0xd71   : > { %v5166_v53 = vpop.f32.mrf.mxu2 }
 0xd72   : > { %v14871_v9 = vadd.f32 %v14825_v37, %v5166_v53  ;;  %v5217_v62 = vpop.f32.mrf.mxu3 }
 0xd73   : > { %10546 = vmatmul.msk.f32.gmra.mxu0 %vm608_vm0, %v5231_v34  ;;  %v14883_v32 = vadd.f32 %v14843_v23, %v5217_v62  ;;  %v5118_v11 = vpop.f32.mrf.mxu1 }
 0xd74   : > { %10568 = vmatpush.xpose.msk.msrb.mxu0 %vm608_vm0, %v14846_v42  ;;  %10547 = vmatpush.xpose.msk.msra.mxu1 %vm608_vm0, %v14871_v9  ;;  %v14911_v24 = vadd.f32 %v14830_v26, %v5118_v11 }
 0xd76   : > { %v5234_v27 = vmul.f32 %v16983_v10, %v14911_v24 }
 0xd78   : > { %10548 = vmatpush.xpose.msk.msra.mxu1 %vm608_vm0, %v14880_v16 }
 0xd79   : > { %v5169_v30 = vpop.f32.mrf.mxu2 }
 0xd7a   : > { %v5220_v33 = vpop.f32.mrf.mxu3  ;;  %v14914_v52 = vadd.f32 %v14825_v37, %v5169_v30 }
 0xd7b   : > { %10549 = vmatmul.msk.f32.vlgmr.msra.gmra.mxu1 %vm608_vm0, %v5232_v57  ;;  %v14925_v41 = vadd.f32 %v14843_v23, %v5220_v33  ;;  %v5120_v28 = vpop.f32.mrf.mxu1 }
 0xd7c   : > { %5523 = vmatpush.msrb.mxu1 %v14883_v32  ;;  %v14930_v19 = vadd.f32 %v14830_v26, %v5120_v28 }
 0xd7e   : > { %5524 = vmatpush.msrb.mxu1 %v14891_v31  ;;  %v5235_v60 = vmul.f32 %v16983_v10, %v14930_v19 }
 0xd80   : > { %10571 = vmatpush.xpose.msk.msra.mxu1 %vm608_vm0, %v14871_v9 }
 0xd81   : > { %v5171_v63 = vpop.f32.mrf.mxu2 }
 0xd82   : > { %v14905_v20 = vadd.f32 %v14825_v37, %v5171_v63  ;;  %v5222_v56 = vpop.f32.mrf.mxu3 }
 0xd83   : > { %10550 = vmatmul.msk.f32.gmra.mxu1 %vm608_vm0, %v5233_v1  ;;  %v14917_v58 = vadd.f32 %v14843_v23, %v5222_v56 }
 0xd84   : > { %10572 = vmatpush.xpose.msk.msra.mxu1 %vm608_vm0, %v14880_v16  ;;  %10551 = vmatpush.xpose.msk.msra.mxu2 %vm608_vm0, %v14905_v20 }
 0xd88   : > { %10552 = vmatpush.xpose.msk.msra.mxu2 %vm608_vm0, %v14914_v52 }
 0xd8b   : > { %10553 = vmatmul.msk.f32.vlgmr.msra.gmra.mxu2 %vm608_vm0, %v5234_v27 }
 0xd8c   : > { %5552 = vmatpush.msrb.mxu2 %v14917_v58 }
 0xd8e   : > { %5553 = vmatpush.msrb.mxu2 %v14925_v41 }
 0xd90   : > { %10575 = vmatpush.xpose.msk.msra.mxu2 %vm608_vm0, %v14905_v20 }
 0xd93   : > { %10554 = vmatmul.msk.f32.gmra.mxu2 %vm608_vm0, %v5235_v60 }
 0xd94   : > { %10576 = vmatpush.xpose.msk.msra.mxu2 %vm608_vm0, %v14914_v52 }
 0xdce   : > { %v5123_v7 = vpop.f32.mrf.mxu1 }
 0xdcf   : > { %v14945_v5 = vadd.f32 %v14830_v26, %v5123_v7 }
 0xdd1   : > { %v5236_v48 = vmul.f32 %v16983_v10, %v14945_v5 }
 0xdd4   : > { %v5174_v2 = vpop.f32.mrf.mxu2 }
 0xdd5   : > { %v5225_v47 = vpop.f32.mrf.mxu3  ;;  %v14948_v61 = vadd.f32 %v14825_v37, %v5174_v2 }
 0xdd6   : > { %v14959_v54 = vadd.f32 %v14843_v23, %v5225_v47  ;;  %v5125_v14 = vpop.f32.mrf.mxu1 }
 0xddc   : > { %v5176_v46 = vpop.f32.mrf.mxu2 }
 0xddd   : > { %v14940_v25 = vadd.f32 %v14825_v37, %v5176_v46  ;;  %v5227_v40 = vpop.f32.mrf.mxu3  ;;  %v14964_v37 = vadd.f32 %v14830_v26, %v5125_v14 }
 0xdde   : > { %v14951_v55 = vadd.f32 %v14843_v23, %v5227_v40 }
 0xddf   : > { %10555 = vmatpush.xpose.msk.msrb.mxu3 %vm608_vm0, %v14940_v25  ;;  %v5237_v23 = vmul.f32 %v16983_v10, %v14964_v37 }
 0xde3   : > { %10556 = vmatpush.xpose.msk.msrb.mxu3 %vm608_vm0, %v14948_v61 }
 0xde6   : > { %10557 = vmatmul.msk.f32.vlgmr.msrb.gmra.mxu3 %vm608_vm0, %v5236_v48 }
 0xde7   : > { %5581 = vmatpush.msra.mxu3 %v14951_v55 }
 0xde8   : > { %v5267_v6 = vpop.f32.mrf.mxu0 }
 0xde9   : > { %5582 = vmatpush.msra.mxu3 %v14959_v54  ;;  %v5378_v15 = vmul.f32 0.35355338, %v5267_v6 }
 0xdeb   : > { %10579 = vmatpush.xpose.msk.msrb.mxu3 %vm608_vm0, %v14940_v25  ;;  %v5386_v29 = vsel %vm904_vm11, %v5378_v15, -inf }
 0xdec   : > { %5387 = vmax.xlane.f32.xlu0 %v5386_v29 }
 0xdee   : > { %10558 = vmatmul.msk.f32.gmra.mxu3 %vm608_vm0, %v5237_v23 }
 0xdef   : > { %10580 = vmatpush.xpose.msk.msrb.mxu3 %vm608_vm0, %v14948_v61 }
 0xdf0   : > { %v5270_v45 = vpop.f32.mrf.mxu0 }
 0xdf1   : > { %v5379_v0 = vmul.f32 0.35355338, %v5270_v45 }
 0xdf3   : > { %v5389_v26 = vsel %vm904_vm11, %v5379_v0, -inf }
 0xdf4   : > { %5390 = vmax.xlane.f32.xlu1 %v5389_v26 }
 0xdf8   : > { %v5302_v17 = vpop.f32.mrf.mxu1 }
 0xdf9   : > { %v5380_v4 = vmul.f32 0.35355338, %v5302_v17 }
 0xdfb   : > { %v5392_v53 = vsel %vm904_vm11, %v5380_v4, -inf }
 0xdfc   : > { %5393 = vmax.xlane.f32.xlu0 %v5392_v53 }
 0xe00   : > { %v5305_v57 = vpop.f32.mrf.mxu1 }
 0xe01   : > { %v5381_v30 = vmul.f32 0.35355338, %v5305_v57 }
 0xe03   : > { %v5395_v1 = vsel %vm904_vm11, %v5381_v30, -inf }
 0xe0e   : > { %v5337_v34 = vpop.f32.mrf.mxu2 }
 0xe0f   : > { %v5382_v62 = vmul.f32 0.35355338, %v5337_v34 }
 0xe11   : > { %v5398_v22 = vsel %vm904_vm11, %v5382_v62, -inf }
 0xe12   : > { %5399 = vmax.xlane.f32.xlu2 %v5398_v22 }
 0xe16   : > { %v5340_v33 = vpop.f32.mrf.mxu2 }
 0xe17   : > { %v5383_v11 = vmul.f32 0.35355338, %v5340_v33 }
 0xe19   : > { %v5401_v63 = vsel %vm904_vm11, %v5383_v11, -inf }
 0xe1a   : > { %5402 = vmax.xlane.f32.xlu1 %v5401_v63  ;;  %5396 = vmax.xlane.f32.xlu2 %v5395_v1 }
 0xe5f   : > { %v5388_v56 = vpop.xlane.xlu0 %5387 }
 0xe60   : > { %v5410_v27 = vsub.f32 %v5378_v15, %v5388_v56 }
 0xe62   : > { %v5418_v28 = vmul.f32 1.442695, %v5410_v27 }
 0xe64   : > { %12229 = vpow2.f32 %v5418_v28 }
 0xe67   : > { %v5391_v60 = vpop.xlane.xlu1 %5390 }
 0xe68   : > { %v5411_v2 = vsub.f32 %v5379_v0, %v5391_v60 }
 0xe69   : > { %v5372_v47 = vpop.f32.mrf.mxu3 }
 0xe6a   : > { %v12230_v7 = vpop.eup %12229  ;;  %v5420_v46 = vmul.f32 1.442695, %v5411_v2  ;;  %v5384_v40 = vmul.f32 0.35355338, %v5372_v47 }
 0xe6b   : > { %v5434_v48 = vsel %vm904_vm11, %v12230_v7, 0.0 }
 0xe6c   : > { %12231 = vpow2.f32 %v5420_v46  ;;  %5435 = vadd.xlane.f32.xlu2 %v5434_v48  ;;  %v5404_v14 = vsel %vm904_vm11, %v5384_v40, -inf }
 0xe6d   : > { %5405 = vmax.xlane.f32.xlu0 %v5404_v14 }
 0xe6f   : > { %v5394_v6 = vpop.xlane.xlu0 %5393 }
 0xe70   : > { %v5412_v29 = vsub.f32 %v5380_v4, %v5394_v6 }
 0xe71   : > { %v5375_v23 = vpop.f32.mrf.mxu3 }
 0xe72   : > { %v12232_v45 = vpop.eup %12231  ;;  %v5422_v15 = vmul.f32 1.442695, %v5412_v29  ;;  %v5385_v26 = vmul.f32 0.35355338, %v5375_v23 }
 0xe73   : > { %v5437_v17 = vsel %vm904_vm11, %v12232_v45, 0.0 }
 0xe74   : > { %12233 = vpow2.f32 %v5422_v15  ;;  %v5407_v0 = vsel %vm904_vm11, %v5385_v26, -inf }
 0xe75   : > { %5408 = vmax.xlane.f32.xlu1 %v5407_v0  ;;  %5438 = vadd.xlane.f32.xlu0 %v5437_v17 }
 0xe7a   : > { %v12234_v53 = vpop.eup %12233 }
 0xe7b   : > { %v5440_v34 = vsel %vm904_vm11, %v12234_v53, 0.0 }
 0xe7c   : > { %5441 = vadd.xlane.f32.xlu2 %v5440_v34 }
 0xe85   : > { %v5400_v22 = vpop.xlane.xlu2 %5399 }
 0xe86   : > { %v5414_v57 = vsub.f32 %v5382_v62, %v5400_v22 }
 0xe88   : > { %v5426_v33 = vmul.f32 1.442695, %v5414_v57 }
 0xe8a   : > { %12235 = vpow2.f32 %v5426_v33 }
 0xe8d   : > { %v5397_v4 = vpop.xlane.xlu2 %5396  ;;  %v5403_v63 = vpop.xlane.xlu1 %5402 }
 0xe8e   : > { %v5413_v1 = vsub.f32 %v5381_v30, %v5397_v4  ;;  %v5415_v56 = vsub.f32 %v5383_v11, %v5403_v63 }
 0xe90   : > { %v12236_v27 = vpop.eup %12235  ;;  %v5424_v28 = vmul.f32 1.442695, %v5413_v1  ;;  %v5428_v60 = vmul.f32 1.442695, %v5415_v56  ;;  %v16984_v56 = vld [vmem:[#allocation11_spill] sm:$0xff] }
 0xe91   : > { %v5446_v2 = vsel %vm904_vm11, %v12236_v27, 0.0 }
 0xe92   : > { %12237 = vpow2.f32 %v5424_v28  ;;  %5447 = vadd.xlane.f32.xlu1 %v5446_v2  ;;  %v5606_v28 = vmul.f32 %v16984_v56, %v14838_v36 }
 0xe93   : > { %12239 = vpow2.f32 %v5428_v60 }
 0xe98   : > { %v12238_v47 = vpop.eup %12237 }
 0xe99   : > { %v12240_v46 = vpop.eup %12239  ;;  %v5443_v48 = vsel %vm904_vm11, %v12238_v47, 0.0 }
 0xe9a   : > { %5444 = vadd.xlane.f32.xlu1 %v5443_v48  ;;  %v5449_v62 = vsel %vm904_vm11, %v12240_v46, 0.0 }
 0xe9b   : > { %5450 = vadd.xlane.f32.xlu0 %v5449_v62 }
 0xedf   : > { %v5436_v14 = vpop.xlane.xlu2 %5435 }
 0xee0   : > { %12241 = vrcp.f32 %v5436_v14  ;;  %v5406_v30 = vpop.xlane.xlu0 %5405 }
 0xee1   : > { %v5416_v11 = vsub.f32 %v5384_v40, %v5406_v30 }
 0xee3   : > { %v5430_v6 = vmul.f32 1.442695, %v5416_v11 }
 0xee5   : > { %12243 = vpow2.f32 %v5430_v6 }
 0xee6   : > { %v12242_v29 = vpop.eup %12241 }
 0xee7   : > { %v5466_v23 = vmul.f32 %v12242_v29, %v12230_v7  ;;  %v5610_v29 = vmul.f32 %v16984_v56, %v14911_v24 }
 0xee8   : > { %v5439_v15 = vpop.xlane.xlu0 %5438  ;;  %v5409_v17 = vpop.xlane.xlu1 %5408 }
 0xee9   : > { %12245 = vrcp.f32 %v5439_v15  ;;  %v5417_v0 = vsub.f32 %v5385_v26, %v5409_v17  ;;  %10559 = vmatmul.msk.f32.vlgmr.msra.gmra.mxu0 %vm904_vm11, %v5466_v23 }
 0xeea   : > { %5846 = vmatpush.msra.mxu0 %v14849_v49 }
 0xeeb   : > { %v12244_v34 = vpop.eup %12243  ;;  %v5432_v22 = vmul.f32 1.442695, %v5417_v0 }
 0xeec   : > { %5847 = vmatpush.msra.mxu0 %v14857_v8  ;;  %v5452_v57 = vsel %vm904_vm11, %v12244_v34, 0.0 }
 0xeed   : > { %12247 = vpow2.f32 %v5432_v22  ;;  %5453 = vadd.xlane.f32.xlu2 %v5452_v57 }
 0xeef   : > { %v12246_v40 = vpop.eup %12245  ;;  %v5442_v33 = vpop.xlane.xlu2 %5441 }
 0xef0   : > { %12249 = vrcp.f32 %v5442_v33  ;;  %v5467_v7 = vmul.f32 %v12246_v40, %v12232_v45  ;;  %v5607_v45 = vmul.f32 %v16984_v56, %v14862_v44 }
 0xef2   : > { %10560 = vmatmul.msk.f32.gmra.mxu0 %vm904_vm11, %v5467_v7 }
 0xef3   : > { %v12248_v4 = vpop.eup %12247 }
 0xef4   : > { %v5455_v26 = vsel %vm904_vm11, %v12248_v4, 0.0 }
 0xef5   : > { %5456 = vadd.xlane.f32.xlu0 %v5455_v26  ;;  %v5612_v26 = vmul.f32 %v16984_v56, %v14945_v5 }
 0xef6   : > { %v12250_v63 = vpop.eup %12249 }
 0xef7   : > { %v5468_v1 = vmul.f32 %v12250_v63, %v12234_v53 }
 0xef9   : > { %10561 = vmatmul.msk.f32.vlgmr.msrb.gmra.mxu1 %vm904_vm11, %v5468_v1 }
 0xefa   : > { %5875 = vmatpush.msrb.mxu1 %v14883_v32  ;;  %10569 = vmatmul.msk.f32.vlgmr.msrb.gmra.mxu0 %vm608_vm0, %v5606_v28  ;;  %v5613_v28 = vmul.f32 %v16984_v56, %v14964_v37 }
 0xefb   : > { %10591 = vmatpush.xpose.msk.msrb.mxu0 %vm608_vm0, %v14833_v13 }
 0xefc   : > { %5876 = vmatpush.msrb.mxu1 %v14891_v31 }
 0xeff   : > { %10592 = vmatpush.xpose.msk.msrb.mxu0 %vm608_vm0, %v14846_v42 }
 0xf02   : > { %10570 = vmatmul.msk.f32.gmra.mxu0 %vm608_vm0, %v5607_v45 }
 0xf05   : > { %v5448_v53 = vpop.xlane.xlu1 %5447 }
 0xf06   : > { %12251 = vrcp.f32 %v5448_v53 }
 0xf0c   : > { %v12252_v60 = vpop.eup %12251 }
 0xf0d   : > { %v5470_v2 = vmul.f32 %v12252_v60, %v12236_v27  ;;  %v5445_v48 = vpop.xlane.xlu1 %5444  ;;  %v5608_v27 = vmul.f32 %v16984_v56, %v14877_v3 }
 0xf0e   : > { %v5451_v62 = vpop.xlane.xlu0 %5450  ;;  %12253 = vrcp.f32 %v5445_v48 }
 0xf0f   : > { %12255 = vrcp.f32 %v5451_v62  ;;  %10563 = vmatmul.msk.f32.vlgmr.msrb.gmra.mxu2 %vm904_vm11, %v5470_v2 }
 0xf10   : > { %5904 = vmatpush.msrb.mxu2 %v14917_v58 }
 0xf12   : > { %5905 = vmatpush.msrb.mxu2 %v14925_v41 }
 0xf14   : > { %v12254_v14 = vpop.eup %12253 }
 0xf15   : > { %v12256_v30 = vpop.eup %12255  ;;  %v5469_v11 = vmul.f32 %v12254_v14, %v12238_v47  ;;  %v5609_v47 = vmul.f32 %v16984_v56, %v14896_v59 }
 0xf16   : > { %v5471_v6 = vmul.f32 %v12256_v30, %v12240_v46  ;;  %v5611_v46 = vmul.f32 %v16984_v56, %v14930_v19 }
 0xf17   : > { %10562 = vmatmul.msk.f32.gmra.mxu1 %vm904_vm11, %v5469_v11 }
 0xf18   : > { %10564 = vmatmul.msk.f32.gmra.mxu2 %vm904_vm11, %v5471_v6 }
 0xf1f   : > { %10573 = vmatmul.msk.f32.vlgmr.msra.gmra.mxu1 %vm608_vm0, %v5608_v27 }
 0xf20   : > { %10577 = vmatmul.msk.f32.vlgmr.msra.gmra.mxu2 %vm608_vm0, %v5610_v29  ;;  %10595 = vmatpush.xpose.msk.msra.mxu1 %vm608_vm0, %v14871_v9 }
 0xf21   : > { %10599 = vmatpush.xpose.msk.msra.mxu2 %vm608_vm0, %v14905_v20 }
 0xf24   : > { %10596 = vmatpush.xpose.msk.msra.mxu1 %vm608_vm0, %v14880_v16 }
 0xf25   : > { %10600 = vmatpush.xpose.msk.msra.mxu2 %vm608_vm0, %v14914_v52 }
 0xf27   : > { %10574 = vmatmul.msk.f32.gmra.mxu1 %vm608_vm0, %v5609_v47 }
 0xf28   : > { %10578 = vmatmul.msk.f32.gmra.mxu2 %vm608_vm0, %v5611_v46 }
 0xf60   : > { %v5454_v23 = vpop.xlane.xlu2 %5453 }
 0xf61   : > { %12257 = vrcp.f32 %v5454_v23 }
 0xf66   : > { %v15031_v15 = vpop.f32.mrf.mxu0 }
 0xf67   : > { %v12258_v17 = vpop.eup %12257 }
 0xf68   : > { %v5472_v0 = vmul.f32 %v12258_v17, %v12244_v34  ;;  %v5457_v22 = vpop.xlane.xlu0 %5456 }
 0xf69   : > { %12259 = vrcp.f32 %v5457_v22 }
 0xf6a   : > { %10565 = vmatmul.msk.f32.vlgmr.msra.gmra.mxu3 %vm904_vm11, %v5472_v0 }
 0xf6b   : > { %5933 = vmatpush.msra.mxu3 %v14951_v55 }
 0xf6d   : > { %5934 = vmatpush.msra.mxu3 %v14959_v54 }
 0xf6f   : > { %v12260_v57 = vpop.eup %12259  ;;  %v15036_v40 = vpop.f32.mrf.mxu0 }
 0xf70   : > { %v5473_v33 = vmul.f32 %v12260_v57, %v12248_v4 }
 0xf72   : > { %10566 = vmatmul.msk.f32.gmra.mxu3 %vm904_vm11, %v5473_v33 }
 0xf76   : > { %v15051_v53 = vpop.f32.mrf.mxu1 }
 0xf77   : > { %v5637_v7 = vpop.f32.mrf.mxu0 }
 0xf78   : > { %v5730_v63 = vmul.f32 0.35355338, %v5637_v7 }
 0xf7a   : > { %10581 = vmatmul.msk.f32.vlgmr.msrb.gmra.mxu3 %vm608_vm0, %v5612_v26  ;;  %v5738_v34 = vsel %vm904_vm11, %v5730_v63, -inf }
 0xf7b   : > { %10603 = vmatpush.xpose.msk.msrb.mxu3 %vm608_vm0, %v14940_v25  ;;  %5739 = vmax.xlane.f32.xlu1 %v5738_v34 }
 0xf7f   : > { %10604 = vmatpush.xpose.msk.msrb.mxu3 %vm608_vm0, %v14948_v61  ;;  %v5640_v1 = vpop.f32.mrf.mxu0 }
 0xf80   : > { %v5731_v4 = vmul.f32 0.35355338, %v5640_v1 }
 0xf82   : > { %10582 = vmatmul.msk.f32.gmra.mxu3 %vm608_vm0, %v5613_v28  ;;  %v5741_v45 = vsel %vm904_vm11, %v5731_v4, -inf }
 0xf83   : > { %5742 = vmax.xlane.f32.xlu2 %v5741_v45 }
 0xf92   : > { %v15053_v60 = vpop.f32.mrf.mxu2 }
 0xf94   : > { %v15055_v2 = vpop.f32.mrf.mxu1 }
 0xf9b   : > { %v15057_v48 = vpop.f32.mrf.mxu2 }
 0xf9c   : > { %v5666_v62 = vpop.f32.mrf.mxu1 }
 0xf9d   : > { %v5732_v14 = vmul.f32 0.35355338, %v5666_v62 }
 0xf9f   : > { %v5744_v30 = vsel %vm904_vm11, %v5732_v14, -inf }
 0xfa0   : > { %5745 = vmax.xlane.f32.xlu1 %v5744_v30 }
 0xfa3   : > { %v5695_v11 = vpop.f32.mrf.mxu2 }
 0xfa4   : > { %v5734_v6 = vmul.f32 0.35355338, %v5695_v11  ;;  %v5669_v29 = vpop.f32.mrf.mxu1 }
 0xfa5   : > { %v5733_v47 = vmul.f32 0.35355338, %v5669_v29 }
 0xfa6   : > { %v5750_v27 = vsel %vm904_vm11, %v5734_v6, -inf }
 0xfa7   : > { %5751 = vmax.xlane.f32.xlu0 %v5750_v27  ;;  %v5747_v0 = vsel %vm904_vm11, %v5733_v47, -inf }
 0xfab   : > { %v5698_v46 = vpop.f32.mrf.mxu2 }
 0xfac   : > { %v5735_v23 = vmul.f32 0.35355338, %v5698_v46 }
 0xfae   : > { %v5753_v17 = vsel %vm904_vm11, %v5735_v23, -inf }
 0xfaf   : > { %5754 = vmax.xlane.f32.xlu2 %v5753_v17  ;;  %5748 = vmax.xlane.f32.xlu0 %v5747_v0 }
 0xfed   : > { %v15063_v22 = vpop.f32.mrf.mxu3 }
 0xfee   : > { %v5740_v57 = vpop.xlane.xlu1 %5739 }
 0xfef   : > { %v5762_v33 = vsub.f32 %v5730_v63, %v5740_v57 }
 0xff1   : > { %v5770_v7 = vmul.f32 1.442695, %v5762_v33 }
 0xff3   : > { %12261 = vpow2.f32 %v5770_v7 }
 0xff5   : > { %v15065_v26 = vpop.f32.mrf.mxu3 }
 0xff6   : > { %v5743_v34 = vpop.xlane.xlu2 %5742 }
 0xff7   : > { %v5763_v1 = vsub.f32 %v5731_v4, %v5743_v34 }
 0xff9   : > { %v12262_v28 = vpop.eup %12261  ;;  %v5772_v62 = vmul.f32 1.442695, %v5763_v1 }
 0xffa   : > { %v5786_v45 = vsel %vm904_vm11, %v12262_v28, 0.0 }
 0xffb   : > { %5787 = vadd.xlane.f32.xlu0 %v5786_v45  ;;  %12263 = vpow2.f32 %v5772_v62 }
 0xffd   : > { %v5724_v30 = vpop.f32.mrf.mxu3 }
 0xffe   : > { %v5736_v11 = vmul.f32 0.35355338, %v5724_v30 }
0x1000   : > { %v5756_v27 = vsel %vm904_vm11, %v5736_v11, -inf }
0x1001   : > { %5757 = vmax.xlane.f32.xlu1 %v5756_v27  ;;  %v12264_v29 = vpop.eup %12263 }
0x1002   : > { %v5789_v0 = vsel %vm904_vm11, %v12264_v29, 0.0 }
0x1005   : > { %v5727_v46 = vpop.f32.mrf.mxu3 }
0x1006   : > { %v5737_v63 = vmul.f32 0.35355338, %v5727_v46 }
0x1008   : > { %v5759_v17 = vsel %vm904_vm11, %v5737_v63, -inf }
0x1009   : > { %5760 = vmax.xlane.f32.xlu2 %v5759_v17  ;;  %5790 = vadd.xlane.f32.xlu1 %v5789_v0 }
0x1013   : > { %v5746_v4 = vpop.xlane.xlu1 %5745 }
0x1014   : > { %v5764_v57 = vsub.f32 %v5732_v14, %v5746_v4 }
0x1016   : > { %v5774_v33 = vmul.f32 1.442695, %v5764_v57 }
0x1018   : > { %12265 = vpow2.f32 %v5774_v33 }
0x101a   : > { %v5752_v7 = vpop.xlane.xlu0 %5751 }
0x101b   : > { %v5766_v34 = vsub.f32 %v5734_v6, %v5752_v7 }
0x101d   : > { %v5778_v1 = vmul.f32 1.442695, %v5766_v34 }
0x101e   : > { %v12266_v45 = vpop.eup %12265 }
0x101f   : > { %12267 = vpow2.f32 %v5778_v1  ;;  %v5792_v62 = vsel %vm904_vm11, %v12266_v45, 0.0 }
0x1020   : > { %5793 = vadd.xlane.f32.xlu0 %v5792_v62 }
0x1022   : > { %v5755_v30 = vpop.xlane.xlu2 %5754  ;;  %v5749_v27 = vpop.xlane.xlu0 %5748 }
0x1023   : > { %v5767_v46 = vsub.f32 %v5735_v23, %v5755_v30  ;;  %v5765_v38 = vsub.f32 %v5733_v47, %v5749_v27 }
0x1025   : > { %v12268_v21 = vpop.eup %12267  ;;  %v5780_v50 = vmul.f32 1.442695, %v5767_v46  ;;  %v5776_v17 = vmul.f32 1.442695, %v5765_v38 }
0x1026   : > { %v5798_v0 = vsel %vm904_vm11, %v12268_v21, 0.0 }
0x1027   : > { %12269 = vpow2.f32 %v5780_v50  ;;  %5799 = vadd.xlane.f32.xlu2 %v5798_v0 }
0x1028   : > { %12271 = vpow2.f32 %v5776_v17 }
0x102d   : > { %v12270_v14 = vpop.eup %12269 }
0x102e   : > { %v12272_v6 = vpop.eup %12271  ;;  %v5801_v4 = vsel %vm904_vm11, %v12270_v14, 0.0 }
0x102f   : > { %5802 = vadd.xlane.f32.xlu1 %v5801_v4  ;;  %v5795_v57 = vsel %vm904_vm11, %v12272_v6, 0.0  ;;  %v16985_v4 = vld [vmem:[#allocation12_spill] sm:$0xff] }
0x1030   : > { %5796 = vadd.xlane.f32.xlu2 %v5795_v57  ;;  %v5958_v57 = vmul.f32 %v16985_v4, %v14838_v36 }
0x106e   : > { %v5788_v33 = vpop.xlane.xlu0 %5787 }
0x106f   : > { %12273 = vrcp.f32 %v5788_v33 }
0x1074   : > { %v5758_v23 = vpop.xlane.xlu1 %5757 }
0x1075   : > { %v12274_v47 = vpop.eup %12273  ;;  %v5768_v7 = vsub.f32 %v5736_v11, %v5758_v23 }
0x1076   : > { %v5818_v34 = vmul.f32 %v12274_v47, %v12262_v28 }
0x1077   : > { %v5782_v38 = vmul.f32 1.442695, %v5768_v7 }
0x1078   : > { %10583 = vmatmul.msk.f32.vlgmr.msra.gmra.mxu0 %vm904_vm11, %v5818_v34 }
0x1079   : > { %12275 = vpow2.f32 %v5782_v38  ;;  %6198 = vmatpush.msra.mxu0 %v14849_v49 }
0x107b   : > { %6199 = vmatpush.msra.mxu0 %v14857_v8 }
0x107c   : > { %v5761_v50 = vpop.xlane.xlu2 %5760  ;;  %v5791_v1 = vpop.xlane.xlu1 %5790 }
0x107d   : > { %v5769_v62 = vsub.f32 %v5737_v63, %v5761_v50  ;;  %12277 = vrcp.f32 %v5791_v1 }
0x107f   : > { %v12276_v30 = vpop.eup %12275  ;;  %v5784_v27 = vmul.f32 1.442695, %v5769_v62  ;;  %v5960_v62 = vmul.f32 %v16985_v4, %v14877_v3 }
0x1080   : > { %v5804_v46 = vsel %vm904_vm11, %v12276_v30, 0.0 }
0x1081   : > { %12279 = vpow2.f32 %v5784_v27  ;;  %5805 = vadd.xlane.f32.xlu0 %v5804_v46 }
0x1083   : > { %v12278_v11 = vpop.eup %12277 }
0x1084   : > { %v5819_v28 = vmul.f32 %v12278_v11, %v12264_v29  ;;  %v5959_v29 = vmul.f32 %v16985_v4, %v14862_v44 }
0x1086   : > { %10584 = vmatmul.msk.f32.gmra.mxu0 %vm904_vm11, %v5819_v28 }
0x1087   : > { %v12280_v17 = vpop.eup %12279 }
0x1088   : > { %v5807_v0 = vsel %vm904_vm11, %v12280_v17, 0.0 }
0x1089   : > { %5808 = vadd.xlane.f32.xlu1 %v5807_v0 }
0x108e   : > { %10593 = vmatmul.msk.f32.vlgmr.msrb.gmra.mxu0 %vm608_vm0, %v5958_v57 }
0x108f   : > { %10615 = vmatpush.xpose.msk.msrb.mxu0 %vm608_vm0, %v14833_v13 }
0x1093   : > { %10616 = vmatpush.xpose.msk.msrb.mxu0 %vm608_vm0, %v14846_v42  ;;  %v5794_v63 = vpop.xlane.xlu0 %5793 }
0x1094   : > { %12281 = vrcp.f32 %v5794_v63 }
0x1096   : > { %10594 = vmatmul.msk.f32.gmra.mxu0 %vm608_vm0, %v5959_v29  ;;  %v5964_v29 = vmul.f32 %v16985_v4, %v14945_v5 }
0x109a   : > { %v12282_v33 = vpop.eup %12281  ;;  %v5800_v23 = vpop.xlane.xlu2 %5799 }
0x109b   : > { %v5820_v47 = vmul.f32 %v12282_v33, %v12266_v45  ;;  %12283 = vrcp.f32 %v5800_v23 }
0x109d   : > { %10585 = vmatmul.msk.f32.vlgmr.msrb.gmra.mxu1 %vm904_vm11, %v5820_v47  ;;  %v5965_v47 = vmul.f32 %v16985_v4, %v14964_v37 }
0x109e   : > { %6227 = vmatpush.msrb.mxu1 %v14883_v32 }
0x10a0   : > { %6228 = vmatpush.msrb.mxu1 %v14891_v31 }
0x10a1   : > { %v12284_v13 = vpop.eup %12283 }
0x10a2   : > { %v5822_v7 = vmul.f32 %v12284_v13, %v12268_v21  ;;  %v5803_v42 = vpop.xlane.xlu1 %5802  ;;  %v5962_v21 = vmul.f32 %v16985_v4, %v14911_v24 }
0x10a3   : > { %v5797_v34 = vpop.xlane.xlu2 %5796  ;;  %12285 = vrcp.f32 %v5803_v42  ;;  %v5592_v42 = vmul.f32 %v16983_v10, %v15051_v53 }
0x10a4   : > { %12287 = vrcp.f32 %v5797_v34  ;;  %10587 = vmatmul.msk.f32.vlgmr.msrb.gmra.mxu2 %vm904_vm11, %v5822_v7 }
0x10a5   : > { %6256 = vmatpush.msrb.mxu2 %v14917_v58 }
0x10a7   : > { %6257 = vmatpush.msrb.mxu2 %v14925_v41 }
0x10a9   : > { %v12286_v45 = vpop.eup %12285 }
0x10aa   : > { %v12288_v38 = vpop.eup %12287  ;;  %v5823_v50 = vmul.f32 %v12286_v45, %v12270_v14  ;;  %v5963_v14 = vmul.f32 %v16985_v4, %v14930_v19 }
0x10ab   : > { %v5821_v1 = vmul.f32 %v12288_v38, %v12272_v6  ;;  %v5961_v6 = vmul.f32 %v16985_v4, %v14896_v59 }
0x10ac   : > { %10588 = vmatmul.msk.f32.gmra.mxu2 %vm904_vm11, %v5823_v50 }
0x10ad   : > { %10586 = vmatmul.msk.f32.gmra.mxu1 %vm904_vm11, %v5821_v1 }
0x10b4   : > { %10601 = vmatmul.msk.f32.vlgmr.msra.gmra.mxu2 %vm608_vm0, %v5962_v21 }
0x10b5   : > { %10597 = vmatmul.msk.f32.vlgmr.msra.gmra.mxu1 %vm608_vm0, %v5960_v62  ;;  %10623 = vmatpush.xpose.msk.msra.mxu2 %vm608_vm0, %v14905_v20 }
0x10b6   : > { %10619 = vmatpush.xpose.msk.msra.mxu1 %vm608_vm0, %v14871_v9  ;;  %v5590_v9 = vmul.f32 %v16983_v10, %v15031_v15 }
0x10b9   : > { %10624 = vmatpush.xpose.msk.msra.mxu2 %vm608_vm0, %v14914_v52 }
0x10ba   : > { %10620 = vmatpush.xpose.msk.msra.mxu1 %vm608_vm0, %v14880_v16 }
0x10bc   : > { %10602 = vmatmul.msk.f32.gmra.mxu2 %vm608_vm0, %v5963_v14 }
0x10bd   : > { %10598 = vmatmul.msk.f32.gmra.mxu1 %vm608_vm0, %v5961_v6 }
0x10f4   : > { %v5806_v20 = vpop.xlane.xlu0 %5805 }
0x10f5   : > { %12289 = vrcp.f32 %v5806_v20  ;;  %v5849_v27 = vpop.f32.mrf.mxu0 }
0x10f6   : > { %v5942_v52 = vmul.f32 %v16984_v56, %v5849_v27 }
0x10f8   : > { %v15122_v46 = vadd.f32 %v5942_v52, %v5590_v9 }
0x10fb   : > { %v12290_v16 = vpop.eup %12289 }
0x10fc   : > { %v5824_v11 = vmul.f32 %v12290_v16, %v12276_v30  ;;  %v5809_v28 = vpop.xlane.xlu1 %5808 }
0x10fd   : > { %12291 = vrcp.f32 %v5809_v28 }
0x10fe   : > { %10589 = vmatmul.msk.f32.vlgmr.msra.gmra.mxu3 %vm904_vm11, %v5824_v11 }
0x10ff   : > { %6285 = vmatpush.msra.mxu3 %v14951_v55 }
0x1101   : > { %6286 = vmatpush.msra.mxu3 %v14959_v54 }
0x1103   : > { %v12292_v0 = vpop.eup %12291  ;;  %v15127_v57 = vpop.f32.mrf.mxu0 }
0x1104   : > { %v5825_v63 = vmul.f32 %v12292_v0, %v12280_v17 }
0x1106   : > { %10590 = vmatmul.msk.f32.gmra.mxu3 %vm904_vm11, %v5825_v63  ;;  %v5596_v63 = vmul.f32 %v16983_v10, %v15063_v22 }
0x110b   : > { %v5989_v15 = vpop.f32.mrf.mxu0 }
0x110c   : > { %v6082_v33 = vmul.f32 0.35355338, %v5989_v15 }
0x110e   : > { %10605 = vmatmul.msk.f32.vlgmr.msrb.gmra.mxu3 %vm608_vm0, %v5964_v29  ;;  %v6090_v30 = vsel %vm904_vm11, %v6082_v33, -inf }
0x110f   : > { %10627 = vmatpush.xpose.msk.msrb.mxu3 %vm608_vm0, %v14940_v25  ;;  %6091 = vmax.xlane.f32.xlu2 %v6090_v30 }
0x1113   : > { %10628 = vmatpush.xpose.msk.msrb.mxu3 %vm608_vm0, %v14948_v61  ;;  %v5992_v23 = vpop.f32.mrf.mxu0  ;;  %v5594_v61 = vmul.f32 %v16983_v10, %v15053_v60 }
0x1114   : > { %v6083_v17 = vmul.f32 0.35355338, %v5992_v23 }
0x1116   : > { %10606 = vmatmul.msk.f32.gmra.mxu3 %vm608_vm0, %v5965_v47  ;;  %v6093_v13 = vsel %vm904_vm11, %v6083_v17, -inf }
0x1117   : > { %6094 = vmax.xlane.f32.xlu0 %v6093_v13 }
0x111a   : > { %v5878_v7 = vpop.f32.mrf.mxu1 }
0x111b   : > { %v5944_v25 = vmul.f32 %v16984_v56, %v5878_v7 }
0x111d   : > { %v15145_v34 = vadd.f32 %v5944_v25, %v5592_v42 }
0x1127   : > { %v5907_v45 = vpop.f32.mrf.mxu2 }
0x1128   : > { %v5946_v38 = vmul.f32 %v16984_v56, %v5907_v45 }
0x112a   : > { %v15150_v50 = vadd.f32 %v5946_v38, %v5594_v61  ;;  %v15152_v1 = vpop.f32.mrf.mxu1 }
0x112f   : > { %v15154_v21 = vpop.f32.mrf.mxu2 }
0x1132   : > { %v6018_v62 = vpop.f32.mrf.mxu1 }
0x1133   : > { %v6084_v14 = vmul.f32 0.35355338, %v6018_v62 }
0x1135   : > { %v6096_v53 = vsel %vm904_vm11, %v6084_v14, -inf }
0x1136   : > { %6097 = vmax.xlane.f32.xlu1 %v6096_v53 }
0x1137   : > { %v6047_v6 = vpop.f32.mrf.mxu2 }
0x1138   : > { %v6086_v20 = vmul.f32 0.35355338, %v6047_v6 }
0x113a   : > { %v6021_v27 = vpop.f32.mrf.mxu1  ;;  %v6102_v9 = vsel %vm904_vm11, %v6086_v20, -inf }
0x113b   : > { %v6085_v52 = vmul.f32 0.35355338, %v6021_v27  ;;  %6103 = vmax.xlane.f32.xlu2 %v6102_v9 }
0x113d   : > { %v6099_v60 = vsel %vm904_vm11, %v6085_v52, -inf }
0x113e   : > { %6100 = vmax.xlane.f32.xlu0 %v6099_v60 }
0x113f   : > { %v6050_v16 = vpop.f32.mrf.mxu2 }
0x1140   : > { %v6087_v11 = vmul.f32 0.35355338, %v6050_v16 }
0x1142   : > { %v6105_v28 = vsel %vm904_vm11, %v6087_v11, -inf }
0x1143   : > { %6106 = vmax.xlane.f32.xlu1 %v6105_v28 }
0x1181   : > { %v5936_v0 = vpop.f32.mrf.mxu3 }
0x1182   : > { %v5948_v15 = vmul.f32 %v16984_v56, %v5936_v0  ;;  %v6092_v29 = vpop.xlane.xlu2 %6091 }
0x1183   : > { %v6114_v30 = vsub.f32 %v6082_v33, %v6092_v29 }
0x1184   : > { %v15163_v23 = vadd.f32 %v5948_v15, %v5596_v63 }
0x1185   : > { %v6122_v47 = vmul.f32 1.442695, %v6114_v30 }
0x1187   : > { %12293 = vpow2.f32 %v6122_v47 }
0x1189   : > { %v15165_v13 = vpop.f32.mrf.mxu3 }
0x118a   : > { %v6095_v7 = vpop.xlane.xlu0 %6094 }
0x118b   : > { %v6115_v42 = vsub.f32 %v6083_v17, %v6095_v7 }
0x118d   : > { %v12294_v25 = vpop.eup %12293  ;;  %v6124_v61 = vmul.f32 1.442695, %v6115_v42 }
0x118e   : > { %v6138_v45 = vsel %vm904_vm11, %v12294_v25, 0.0 }
0x118f   : > { %6139 = vadd.xlane.f32.xlu1 %v6138_v45  ;;  %12295 = vpow2.f32 %v6124_v61 }
0x1191   : > { %v6076_v38 = vpop.f32.mrf.mxu3 }
0x1192   : > { %v6088_v62 = vmul.f32 0.35355338, %v6076_v38 }
0x1194   : > { %v6108_v22 = vsel %vm904_vm11, %v6088_v62, -inf }
0x1195   : > { %6109 = vmax.xlane.f32.xlu2 %v6108_v22  ;;  %v12296_v33 = vpop.eup %12295 }
0x1196   : > { %v6141_v27 = vsel %vm904_vm11, %v12296_v33, 0.0 }
0x1199   : > { %v6079_v53 = vpop.f32.mrf.mxu3 }
0x119a   : > { %v6089_v6 = vmul.f32 0.35355338, %v6079_v53 }
0x119c   : > { %v6111_v9 = vsel %vm904_vm11, %v6089_v6, -inf }
0x119d   : > { %6142 = vadd.xlane.f32.xlu2 %v6141_v27  ;;  %6112 = vmax.xlane.f32.xlu0 %v6111_v9 }
0x11a9   : > { %v6098_v17 = vpop.xlane.xlu1 %6097 }
0x11aa   : > { %v6116_v60 = vsub.f32 %v6084_v14, %v6098_v17 }
0x11ac   : > { %v6126_v16 = vmul.f32 1.442695, %v6116_v60 }
0x11ae   : > { %12297 = vpow2.f32 %v6126_v16  ;;  %v6104_v28 = vpop.xlane.xlu2 %6103 }
0x11af   : > { %v6118_v0 = vsub.f32 %v6086_v20, %v6104_v28 }
0x11b1   : > { %v6130_v63 = vmul.f32 1.442695, %v6118_v0  ;;  %v6101_v15 = vpop.xlane.xlu0 %6100 }
0x11b2   : > { %v6117_v29 = vsub.f32 %v6085_v52, %v6101_v15 }
0x11b3   : > { %12299 = vpow2.f32 %v6130_v63 }
0x11b4   : > { %v12298_v30 = vpop.eup %12297  ;;  %v6128_v47 = vmul.f32 1.442695, %v6117_v29 }
0x11b5   : > { %v6144_v7 = vsel %vm904_vm11, %v12298_v30, 0.0 }
0x11b6   : > { %12301 = vpow2.f32 %v6128_v47  ;;  %6145 = vadd.xlane.f32.xlu0 %v6144_v7  ;;  %v6107_v42 = vpop.xlane.xlu1 %6106 }
0x11b7   : > { %v6119_v45 = vsub.f32 %v6087_v11, %v6107_v42 }
0x11b9   : > { %v12300_v61 = vpop.eup %12299  ;;  %v6132_v38 = vmul.f32 1.442695, %v6119_v45 }
0x11ba   : > { %v6150_v14 = vsel %vm904_vm11, %v12300_v61, 0.0 }
0x11bb   : > { %12303 = vpow2.f32 %v6132_v38  ;;  %6151 = vadd.xlane.f32.xlu1 %v6150_v14 }
0x11bc   : > { %v12302_v22 = vpop.eup %12301 }
0x11bd   : > { %v6147_v20 = vsel %vm904_vm11, %v12302_v22, 0.0 }
0x11be   : > { %6148 = vadd.xlane.f32.xlu2 %v6147_v20 }
0x11c1   : > { %v12304_v52 = vpop.eup %12303 }
0x11c2   : > { %v6153_v53 = vsel %vm904_vm11, %v12304_v52, 0.0 }
0x11c3   : > { %6154 = vadd.xlane.f32.xlu0 %v6153_v53 }
0x1202   : > { %v6140_v27 = vpop.xlane.xlu1 %6139 }
0x1203   : > { %12305 = vrcp.f32 %v6140_v27 }
0x1208   : > { %v6110_v9 = vpop.xlane.xlu2 %6109 }
0x1209   : > { %v12306_v17 = vpop.eup %12305  ;;  %v6120_v60 = vsub.f32 %v6088_v62, %v6110_v9 }
0x120a   : > { %v6170_v11 = vmul.f32 %v12306_v17, %v12294_v25 }
0x120b   : > { %v6134_v16 = vmul.f32 1.442695, %v6120_v60 }
0x120c   : > { %10607 = vmatmul.msk.f32.vlgmr.msra.gmra.mxu0 %vm904_vm11, %v6170_v11 }
0x120d   : > { %12307 = vpow2.f32 %v6134_v16  ;;  %6550 = vmatpush.msra.mxu0 %v14849_v49  ;;  %v16986_v49 = vld [vmem:[#allocation13_spill] sm:$0xff] }
0x120f   : > { %6551 = vmatpush.msra.mxu0 %v14857_v8  ;;  %v6310_v8 = vmul.f32 %v16986_v49, %v14838_v36 }
0x1210   : > { %v6143_v28 = vpop.xlane.xlu2 %6142  ;;  %v6113_v0 = vpop.xlane.xlu0 %6112 }
0x1211   : > { %12309 = vrcp.f32 %v6143_v28  ;;  %v6121_v63 = vsub.f32 %v6089_v6, %v6113_v0  ;;  %v6311_v6 = vmul.f32 %v16986_v49, %v14862_v44 }
0x1213   : > { %v12308_v15 = vpop.eup %12307  ;;  %v6136_v29 = vmul.f32 1.442695, %v6121_v63 }
0x1214   : > { %v6156_v47 = vsel %vm904_vm11, %v12308_v15, 0.0 }
0x1215   : > { %12311 = vpow2.f32 %v6136_v29  ;;  %6157 = vadd.xlane.f32.xlu1 %v6156_v47 }
0x1217   : > { %v12310_v62 = vpop.eup %12309 }
0x1218   : > { %v6171_v25 = vmul.f32 %v12310_v62, %v12296_v33 }
0x121a   : > { %10608 = vmatmul.msk.f32.gmra.mxu0 %vm904_vm11, %v6171_v25 }
0x121b   : > { %v12312_v7 = vpop.eup %12311 }
0x121c   : > { %v6159_v42 = vsel %vm904_vm11, %v12312_v7, 0.0 }
0x121d   : > { %6160 = vadd.xlane.f32.xlu2 %v6159_v42 }
0x1222   : > { %10617 = vmatmul.msk.f32.vlgmr.msrb.gmra.mxu0 %vm608_vm0, %v6310_v8 }
0x1229   : > { %v6146_v45 = vpop.xlane.xlu0 %6145 }
0x122a   : > { %12313 = vrcp.f32 %v6146_v45  ;;  %10618 = vmatmul.msk.f32.gmra.mxu0 %vm608_vm0, %v6311_v6 }
0x122e   : > { %v6152_v38 = vpop.xlane.xlu1 %6151 }
0x122f   : > { %12315 = vrcp.f32 %v6152_v38 }
0x1230   : > { %v12314_v33 = vpop.eup %12313 }
0x1231   : > { %v6172_v14 = vmul.f32 %v12314_v33, %v12298_v30  ;;  %v6149_v20 = vpop.xlane.xlu2 %6148 }
0x1232   : > { %12317 = vrcp.f32 %v6149_v20 }
0x1233   : > { %10609 = vmatmul.msk.f32.vlgmr.msrb.gmra.mxu1 %vm904_vm11, %v6172_v14 }
0x1234   : > { %6579 = vmatpush.msrb.mxu1 %v14883_v32  ;;  %v6312_v32 = vmul.f32 %v16986_v49, %v14877_v3 }
0x1235   : > { %v12316_v36 = vpop.eup %12315 }
0x1236   : > { %v6174_v53 = vmul.f32 %v12316_v36, %v12300_v61  ;;  %6580 = vmatpush.msrb.mxu1 %v14891_v31  ;;  %v6155_v27 = vpop.xlane.xlu0 %6154  ;;  %v6314_v31 = vmul.f32 %v16986_v49, %v14911_v24 }
0x1237   : > { %12319 = vrcp.f32 %v6155_v27 }
0x1238   : > { %v12318_v44 = vpop.eup %12317  ;;  %10611 = vmatmul.msk.f32.vlgmr.msrb.gmra.mxu2 %vm904_vm11, %v6174_v53 }
0x1239   : > { %6608 = vmatpush.msrb.mxu2 %v14917_v58  ;;  %v6173_v9 = vmul.f32 %v12318_v44, %v12302_v22  ;;  %v6313_v58 = vmul.f32 %v16986_v49, %v14896_v59 }
0x123b   : > { %10610 = vmatmul.msk.f32.gmra.mxu1 %vm904_vm11, %v6173_v9  ;;  %6609 = vmatpush.msrb.mxu2 %v14925_v41  ;;  %v6315_v41 = vmul.f32 %v16986_v49, %v14930_v19 }
0x123d   : > { %v12320_v30 = vpop.eup %12319 }
0x123e   : > { %v6175_v17 = vmul.f32 %v12320_v30, %v12304_v52 }
0x1240   : > { %10612 = vmatmul.msk.f32.gmra.mxu2 %vm904_vm11, %v6175_v17 }
0x1243   : > { %10621 = vmatmul.msk.f32.vlgmr.msra.gmra.mxu1 %vm608_vm0, %v6312_v32 }
0x1248   : > { %10625 = vmatmul.msk.f32.vlgmr.msra.gmra.mxu2 %vm608_vm0, %v6314_v31 }
0x124b   : > { %10622 = vmatmul.msk.f32.gmra.mxu1 %vm608_vm0, %v6313_v58 }
0x1250   : > { %10626 = vmatmul.msk.f32.gmra.mxu2 %vm608_vm0, %v6315_v41 }
0x1288   : > { %v6158_v61 = vpop.xlane.xlu1 %6157 }
0x1289   : > { %12321 = vrcp.f32 %v6158_v61  ;;  %v6201_v3 = vpop.f32.mrf.mxu0 }
0x128a   : > { %v6294_v22 = vmul.f32 %v16985_v4, %v6201_v3 }
0x128c   : > { %v15209_v52 = vadd.f32 %v6294_v22, %v15122_v46  ;;  %v6316_v46 = vmul.f32 %v16986_v49, %v14945_v5 }
0x128f   : > { %v12322_v24 = vpop.eup %12321 }
0x1290   : > { %v6176_v60 = vmul.f32 %v12322_v24, %v12308_v15  ;;  %v6161_v11 = vpop.xlane.xlu2 %6160 }
0x1291   : > { %12323 = vrcp.f32 %v6161_v11 }
0x1292   : > { %10613 = vmatmul.msk.f32.vlgmr.msra.gmra.mxu3 %vm904_vm11, %v6176_v60 }
0x1293   : > { %6637 = vmatpush.msra.mxu3 %v14951_v55 }
0x1295   : > { %6638 = vmatpush.msra.mxu3 %v14959_v54  ;;  %v6317_v54 = vmul.f32 %v16986_v49, %v14964_v37 }
0x1297   : > { %v12324_v59 = vpop.eup %12323  ;;  %v15214_v19 = vpop.f32.mrf.mxu0 }
0x1298   : > { %v6177_v16 = vmul.f32 %v12324_v59, %v12312_v7 }
0x129a   : > { %10614 = vmatmul.msk.f32.gmra.mxu3 %vm904_vm11, %v6177_v16 }
0x129f   : > { %v6341_v28 = vpop.f32.mrf.mxu0 }
0x12a0   : > { %v6434_v0 = vmul.f32 0.35355338, %v6341_v28 }
0x12a2   : > { %10629 = vmatmul.msk.f32.vlgmr.msrb.gmra.mxu3 %vm608_vm0, %v6316_v46  ;;  %v6442_v63 = vsel %vm904_vm11, %v6434_v0, -inf }
0x12a3   : > { %6443 = vmax.xlane.f32.xlu0 %v6442_v63 }
0x12a7   : > { %v6344_v15 = vpop.f32.mrf.mxu0 }
0x12a8   : > { %v6435_v55 = vmul.f32 0.35355338, %v6344_v15 }
0x12aa   : > { %10630 = vmatmul.msk.f32.gmra.mxu3 %vm608_vm0, %v6317_v54  ;;  %v6445_v29 = vsel %vm904_vm11, %v6435_v55, -inf }
0x12ab   : > { %6446 = vmax.xlane.f32.xlu1 %v6445_v29 }
0x12b0   : > { %v6230_v47 = vpop.f32.mrf.mxu1 }
0x12b1   : > { %v6296_v62 = vmul.f32 %v16985_v4, %v6230_v47 }
0x12b3   : > { %v15227_v5 = vadd.f32 %v6296_v62, %v15145_v34 }
0x12b8   : > { %v15229_v25 = vpop.f32.mrf.mxu1 }
0x12bb   : > { %v6259_v7 = vpop.f32.mrf.mxu2 }
0x12bc   : > { %v6298_v42 = vmul.f32 %v16985_v4, %v6259_v7 }
0x12be   : > { %v15233_v8 = vadd.f32 %v6298_v42, %v15150_v50 }
0x12c0   : > { %v6370_v37 = vpop.f32.mrf.mxu1 }
0x12c1   : > { %v6436_v6 = vmul.f32 0.35355338, %v6370_v37 }
0x12c3   : > { %v6448_v45 = vsel %vm904_vm11, %v6436_v6, -inf  ;;  %v15236_v38 = vpop.f32.mrf.mxu2 }
0x12c4   : > { %6449 = vmax.xlane.f32.xlu2 %v6448_v45 }
0x12c8   : > { %v6373_v33 = vpop.f32.mrf.mxu1 }
0x12c9   : > { %v6437_v14 = vmul.f32 0.35355338, %v6373_v33 }
0x12cb   : > { %v6451_v34 = vsel %vm904_vm11, %v6437_v14, -inf  ;;  %v6399_v20 = vpop.f32.mrf.mxu2 }
0x12cc   : > { %6452 = vmax.xlane.f32.xlu0 %v6451_v34  ;;  %v6438_v36 = vmul.f32 0.35355338, %v6399_v20 }
0x12ce   : > { %v6454_v53 = vsel %vm904_vm11, %v6438_v36, -inf }
0x12cf   : > { %6455 = vmax.xlane.f32.xlu1 %v6454_v53 }
0x12d3   : > { %v6402_v27 = vpop.f32.mrf.mxu2 }
0x12d4   : > { %v6439_v50 = vmul.f32 0.35355338, %v6402_v27 }
0x12d6   : > { %v6457_v44 = vsel %vm904_vm11, %v6439_v50, -inf }
0x12d7   : > { %6458 = vmax.xlane.f32.xlu2 %v6457_v44 }
0x1315   : > { %v6288_v9 = vpop.f32.mrf.mxu3 }
0x1316   : > { %v6300_v30 = vmul.f32 %v16985_v4, %v6288_v9  ;;  %v6444_v17 = vpop.xlane.xlu0 %6443 }
0x1317   : > { %v6466_v32 = vsub.f32 %v6434_v0, %v6444_v17 }
0x1318   : > { %v15243_v31 = vadd.f32 %v6300_v30, %v15163_v23 }
0x1319   : > { %v6474_v58 = vmul.f32 1.442695, %v6466_v32 }
0x131b   : > { %12325 = vpow2.f32 %v6474_v58 }
0x131d   : > { %v15245_v41 = vpop.f32.mrf.mxu3 }
0x131e   : > { %v6447_v61 = vpop.xlane.xlu1 %6446 }
0x131f   : > { %v6467_v3 = vsub.f32 %v6435_v55, %v6447_v61 }
0x1321   : > { %v12326_v22 = vpop.eup %12325  ;;  %v6476_v60 = vmul.f32 1.442695, %v6467_v3 }
0x1322   : > { %v6490_v24 = vsel %vm904_vm11, %v12326_v22, 0.0 }
0x1323   : > { %6491 = vadd.xlane.f32.xlu2 %v6490_v24  ;;  %12327 = vpow2.f32 %v6476_v60 }
0x1325   : > { %v6428_v11 = vpop.f32.mrf.mxu3 }
0x1326   : > { %v6440_v59 = vmul.f32 0.35355338, %v6428_v11 }
0x1328   : > { %v6460_v16 = vsel %vm904_vm11, %v6440_v59, -inf }
0x1329   : > { %6461 = vmax.xlane.f32.xlu0 %v6460_v16  ;;  %v12328_v28 = vpop.eup %12327 }
0x132a   : > { %v6493_v63 = vsel %vm904_vm11, %v12328_v28, 0.0 }
0x132d   : > { %v6431_v23 = vpop.f32.mrf.mxu3 }
0x132e   : > { %v6441_v46 = vmul.f32 0.35355338, %v6431_v23 }
0x1330   : > { %v6463_v0 = vsel %vm904_vm11, %v6441_v46, -inf }
0x1331   : > { %6464 = vmax.xlane.f32.xlu1 %v6463_v0  ;;  %6494 = vadd.xlane.f32.xlu0 %v6493_v63 }
0x1337   : > { %v6450_v15 = vpop.xlane.xlu2 %6449 }
0x1338   : > { %v6468_v55 = vsub.f32 %v6436_v6, %v6450_v15 }
0x133a   : > { %v6478_v54 = vmul.f32 1.442695, %v6468_v55 }
0x133c   : > { %12329 = vpow2.f32 %v6478_v54 }
0x133f   : > { %v6453_v29 = vpop.xlane.xlu0 %6452 }
0x1340   : > { %v6469_v47 = vsub.f32 %v6437_v14, %v6453_v29 }
0x1342   : > { %v12330_v62 = vpop.eup %12329  ;;  %v6480_v7 = vmul.f32 1.442695, %v6469_v47  ;;  %v6456_v42 = vpop.xlane.xlu1 %6455 }
0x1343   : > { %v6470_v37 = vsub.f32 %v6438_v36, %v6456_v42  ;;  %v6496_v45 = vsel %vm904_vm11, %v12330_v62, 0.0 }
0x1344   : > { %12331 = vpow2.f32 %v6480_v7  ;;  %6497 = vadd.xlane.f32.xlu1 %v6496_v45 }
0x1345   : > { %v6482_v33 = vmul.f32 1.442695, %v6470_v37 }
0x1347   : > { %12333 = vpow2.f32 %v6482_v33 }
0x134a   : > { %v12332_v34 = vpop.eup %12331  ;;  %v6459_v20 = vpop.xlane.xlu2 %6458 }
0x134b   : > { %v6471_v53 = vsub.f32 %v6439_v50, %v6459_v20  ;;  %v6499_v27 = vsel %vm904_vm11, %v12332_v34, 0.0 }
0x134c   : > { %6500 = vadd.xlane.f32.xlu2 %v6499_v27 }
0x134d   : > { %v12334_v6 = vpop.eup %12333  ;;  %v6484_v44 = vmul.f32 1.442695, %v6471_v53 }
0x134e   : > { %v6502_v14 = vsel %vm904_vm11, %v12334_v6, 0.0 }
0x134f   : > { %12335 = vpow2.f32 %v6484_v44  ;;  %6503 = vadd.xlane.f32.xlu0 %v6502_v14  ;;  %v5943_v14 = vmul.f32 %v16984_v56, %v15127_v57 }
0x1355   : > { %v12336_v9 = vpop.eup %12335 }
0x1356   : > { %v6505_v36 = vsel %vm904_vm11, %v12336_v9, 0.0 }
0x1357   : > { %6506 = vadd.xlane.f32.xlu1 %v6505_v36  ;;  %v6295_v36 = vmul.f32 %v16985_v4, %v15214_v19  ;;  %v5945_v19 = vmul.f32 %v16984_v56, %v15152_v1 }
0x1396   : > { %v6492_v30 = vpop.xlane.xlu2 %6491 }
0x1397   : > { %12337 = vrcp.f32 %v6492_v30 }
0x139c   : > { %v6462_v17 = vpop.xlane.xlu0 %6461 }
0x139d   : > { %v12338_v32 = vpop.eup %12337  ;;  %v6472_v58 = vsub.f32 %v6440_v59, %v6462_v17 }
0x139e   : > { %v6522_v61 = vmul.f32 %v12338_v32, %v12326_v22 }
0x139f   : > { %v6486_v50 = vmul.f32 1.442695, %v6472_v58 }
0x13a0   : > { %10631 = vmatmul.msk.f32.vlgmr.msra.gmra.mxu0 %vm904_vm11, %v6522_v61 }
0x13a1   : > { %12339 = vpow2.f32 %v6486_v50 }
0x13a4   : > { %v6495_v3 = vpop.xlane.xlu0 %6494  ;;  %v6465_v24 = vpop.xlane.xlu1 %6464 }
0x13a5   : > { %12341 = vrcp.f32 %v6495_v3  ;;  %v6473_v60 = vsub.f32 %v6441_v46, %v6465_v24 }
0x13a7   : > { %v12340_v11 = vpop.eup %12339  ;;  %v6488_v16 = vmul.f32 1.442695, %v6473_v60 }
0x13a8   : > { %v6508_v23 = vsel %vm904_vm11, %v12340_v11, 0.0 }
0x13a9   : > { %12343 = vpow2.f32 %v6488_v16  ;;  %6509 = vadd.xlane.f32.xlu2 %v6508_v23  ;;  %v6297_v16 = vmul.f32 %v16985_v4, %v15229_v25  ;;  %v5595_v25 = vmul.f32 %v16983_v10, %v15057_v48  ;;  %v5949_v48 = vmul.f32 %v16984_v56, %v15165_v13 }
0x13ab   : > { %v12342_v0 = vpop.eup %12341 }
0x13ac   : > { %v6523_v63 = vmul.f32 %v12342_v0, %v12328_v28 }
0x13ae   : > { %10632 = vmatmul.msk.f32.gmra.mxu0 %vm904_vm11, %v6523_v63 }
0x13af   : > { %v12344_v59 = vpop.eup %12343 }
0x13b0   : > { %v6511_v22 = vsel %vm904_vm11, %v12344_v59, 0.0 }
0x13b1   : > { %6512 = vadd.xlane.f32.xlu0 %v6511_v22 }
0x13b7   : > { %v6498_v15 = vpop.xlane.xlu1 %6497 }
0x13b8   : > { %12345 = vrcp.f32 %v6498_v15 }
0x13be   : > { %v12346_v55 = vpop.eup %12345 }
0x13bf   : > { %v6524_v54 = vmul.f32 %v12346_v55, %v12330_v62  ;;  %v6501_v29 = vpop.xlane.xlu2 %6500  ;;  %v11837_v62 = vld [vmem:[%s16863_s7 + $0x18] sm:$0xff] }
0x13c0   : > { %12347 = vrcp.f32 %v6501_v29  ;;  %6706 = vmatpush.bf16.msrb.mxu0 %v11837_v62 }
0x13c1   : > { %10633 = vmatmul.msk.f32.vlgmr.msrb.gmra.mxu1 %vm904_vm11, %v6524_v54  ;;  %v6299_v54 = vmul.f32 %v16985_v4, %v15236_v38  ;;  %v12061_v38 = vld [vmem:[%s16864_s8 + $0x1] ss:$0 sm:$0xff] }
0x13c2   : > { %v6504_v46 = vpop.xlane.xlu0 %6503 }
0x13c3   : > { %12349 = vrcp.f32 %v6504_v46 }
0x13c6   : > { %v12348_v47 = vpop.eup %12347 }
0x13c7   : > { %v6525_v7 = vmul.f32 %v12348_v47, %v12332_v34  ;;  %v11836_v34 = vld [vmem:[%s16863_s7 + $0x10] sm:$0xff] }
0x13c8   : > { %6707 = vmatpush.bf16.msrb.mxu0 %v11836_v34 }
0x13c9   : > { %v12350_v42 = vpop.eup %12349  ;;  %10634 = vmatmul.msk.f32.gmra.mxu1 %vm904_vm11, %v6525_v7 }
0x13ca   : > { %v6526_v28 = vmul.f32 %v12350_v42, %v12334_v6  ;;  %v6507_v37 = vpop.xlane.xlu1 %6506 }
0x13cb   : > { %12351 = vrcp.f32 %v6507_v37 }
0x13cc   : > { %10635 = vmatmul.msk.f32.vlgmr.msrb.gmra.mxu2 %vm904_vm11, %v6526_v28 }
0x13d1   : > { %v12352_v45 = vpop.eup %12351 }
0x13d2   : > { %v6527_v33 = vmul.f32 %v12352_v45, %v12336_v9  ;;  %v5591_v9 = vmul.f32 %v16983_v10, %v15036_v40  ;;  %v5597_v45 = vmul.f32 %v16983_v10, %v15065_v26 }
0x13d4   : > { %10636 = vmatmul.msk.f32.gmra.mxu2 %vm904_vm11, %v6527_v33  ;;  %v5951_v30 = vadd.f32 %v5943_v14, %v5591_v9  ;;  %v6301_v33 = vmul.f32 %v16985_v4, %v15245_v41 }
0x13d6   : > { %v6303_v61 = vadd.f32 %v6295_v36, %v5951_v30 }
0x141c   : > { %v6510_v20 = vpop.xlane.xlu2 %6509 }
0x141d   : > { %12353 = vrcp.f32 %v6510_v20  ;;  %v6553_v27 = vpop.f32.mrf.mxu0 }
0x141e   : > { %v6646_v17 = vmul.f32 %v16986_v49, %v6553_v27 }
0x1420   : > { %v6654_v24 = vadd.f32 %v6646_v17, %v15209_v52 }
0x1423   : > { %v12354_v53 = vpop.eup %12353 }
0x1424   : > { %v6528_v6 = vmul.f32 %v12354_v53, %v12340_v11  ;;  %v6513_v44 = vpop.xlane.xlu0 %6512  ;;  %v5593_v11 = vmul.f32 %v16983_v10, %v15055_v2  ;;  %v5947_v2 = vmul.f32 %v16984_v56, %v15154_v21 }
0x1425   : > { %12355 = vrcp.f32 %v6513_v44 }
0x1426   : > { %10637 = vmatmul.msk.f32.vlgmr.msra.gmra.mxu3 %vm904_vm11, %v6528_v6  ;;  %v5953_v23 = vadd.f32 %v5945_v19, %v5593_v11  ;;  %v5955_v29 = vadd.f32 %v5947_v2, %v5595_v25  ;;  %v16987_v19 = vld [vmem:[#allocation15_spill] sm:$0xff] }
0x1428   : > { %v6305_v63 = vadd.f32 %v6297_v16, %v5953_v23  ;;  %v6307_v7 = vadd.f32 %v6299_v54, %v5955_v29  ;;  %v16989_v54 = vld [vmem:[#allocation17_spill] sm:$0xff] }
0x142b   : > { %v12356_v32 = vpop.eup %12355  ;;  %v6556_v58 = vpop.f32.mrf.mxu0 }
0x142c   : > { %v6647_v50 = vmul.f32 %v16986_v49, %v6556_v58  ;;  %v6529_v3 = vmul.f32 %v12356_v32, %v12344_v59 }
0x142e   : > { %v6655_v57 = vadd.f32 %v6647_v50, %v6303_v61  ;;  %10638 = vmatmul.msk.f32.gmra.mxu3 %vm904_vm11, %v6529_v3 }
0x1430   : > { %v6662_v60 = vpack.c.bf16 %v6655_v57, %v6654_v24 }
0x1432   : > { %10652 = vmatmul.msk.bf16.vlgmr.msrb.gmra.mxu0 %vm608_vm0, %v6662_v60 }
0x143e   : > { %v6582_v40 = vpop.f32.mrf.mxu1 }
0x143f   : > { %v6648_v0 = vmul.f32 %v16986_v49, %v6582_v40 }
0x1441   : > { %v6656_v22 = vadd.f32 %v6648_v0, %v15227_v5 }
0x1446   : > { %v6585_v52 = vpop.f32.mrf.mxu1 }
0x1447   : > { %v6649_v59 = vmul.f32 %v16986_v49, %v6585_v52 }
0x1449   : > { %v6657_v15 = vadd.f32 %v6649_v59, %v6305_v63 }
0x144b   : > { %v6663_v55 = vpack.c.bf16 %v6657_v15, %v6656_v22  ;;  %v16988_v15 = vld [vmem:[#allocation16_spill] sm:$0xff] }
0x144d   : > { %10653 = vmatmul.msk.bf16.gmra.mxu0 %vm608_vm0, %v6663_v55 }
0x144f   : > { %v6611_v1 = vpop.f32.mrf.mxu2 }
0x1450   : > { %v6650_v46 = vmul.f32 %v16986_v49, %v6611_v1 }
0x1452   : > { %v6658_v42 = vadd.f32 %v6650_v46, %v15233_v8  ;;  %v5957_v8 = vadd.f32 %v5949_v48, %v5597_v45 }
0x1454   : > { %v6309_v27 = vadd.f32 %v6301_v33, %v5957_v8 }
0x1457   : > { %v6614_v47 = vpop.f32.mrf.mxu2 }
0x1458   : > { %v6651_v5 = vmul.f32 %v16986_v49, %v6614_v47 }
0x145a   : > { %v6659_v28 = vadd.f32 %v6651_v5, %v6307_v7 }
0x145c   : > { %v6664_v37 = vpack.c.bf16 %v6659_v28, %v6658_v42 }
0x145e   : > { %10654 = vmatmul.msk.bf16.gmra.mxu0 %vm608_vm0, %v6664_v37 }
0x14a9   : > { %v6640_v21 = vpop.f32.mrf.mxu3 }
0x14aa   : > { %v6652_v34 = vmul.f32 %v16986_v49, %v6640_v21 }
0x14ac   : > { %v6660_v13 = vadd.f32 %v6652_v34, %v15243_v31 }
0x14af   : > { %v6709_v62 = vpop.f32.mrf.mxu0 }
0x14b0   : > { %v6710_v20 = vadd.f32 %v12061_v38, %v6709_v62 }
0x14b1   : > { %v6643_v53 = vpop.f32.mrf.mxu3 }
0x14b2   : > { %v6729_v6 = vadd.f32 %v6710_v20, %v14764_v39  ;;  %v6653_v56 = vmul.f32 %v16986_v49, %v6643_v53 }
0x14b4   : > { %v6661_v44 = vadd.f32 %v6653_v56, %v6309_v27  ;;  %v6741_v14 = vsel %vm608_vm0, %v6729_v6, 0.0 }
0x14b5   : > { %6742 = vadd.xlane.f32.xlu1 %v6741_v14  ;;  %v10758_v14 = vld [vmem:[%s16867_s11 + $0x180] sm:$0xf] }
0x14b6   : > { %v6665_v10 = vpack.c.bf16 %v6661_v44, %v6660_v13 }
0x14b7   : > { %v6711_v26 = vpop.f32.mrf.mxu0 }
0x14b8   : > { %v6712_v4 = vadd.f32 %v12061_v38, %v6711_v26  ;;  %10655 = vmatmul.msk.bf16.gmra.mxu0 %vm608_vm0, %v6665_v10  ;;  %v11862_v10 = vld [vmem:[%s16867_s11 + $0x1bc] sm:$0xf0]  ;;  %v11854_v26 = vld [vmem:[%s16867_s11 + $0x184] sm:$0xf] }
0x14ba   : > { %v6730_v41 = vadd.f32 %v6712_v4, %v14767_v12 }
0x14bc   : > { %v6744_v9 = vsel %vm608_vm0, %v6730_v41, 0.0 }
0x14bd   : > { %6745 = vadd.xlane.f32.xlu2 %v6744_v9  ;;  %v10760_v9 = vld [vmem:[%s16867_s11 + $0x1c0] sm:$0xf0] }
0x14ca   : > { %v6714_v36 = vpop.f32.mrf.mxu0 }
0x14cb   : > { %v6715_v39 = vadd.f32 %v12061_v38, %v6714_v36  ;;  %v10766_v36 = vld [vmem:[%s16867_s11 + $0x188] sm:$0xf] }
0x14cd   : > { %v6731_v49 = vadd.f32 %v6715_v39, %v14780_v43  ;;  %v11863_v39 = vld [vmem:[%s16867_s11 + $0x1c4] sm:$0xf0] }
0x14cf   : > { %v6747_v31 = vsel %vm608_vm0, %v6731_v49, 0.0 }
0x14d0   : > { %6748 = vadd.xlane.f32.xlu0 %v6747_v31  ;;  %v10767_v31 = vor.u32 %v11863_v39, %v10766_v36 }
0x14d2   : > { %v6716_v30 = vpop.f32.mrf.mxu0  ;;  %7249 = vmatpush.bf16.msrb.mxu3 %v10767_v31 }
0x14d3   : > { %v6717_v17 = vadd.f32 %v12061_v38, %v6716_v30  ;;  %v11855_v30 = vld [vmem:[%s16867_s11 + $0x18c] sm:$0xf] }
0x14d5   : > { %v6732_v32 = vadd.f32 %v6717_v17, %v14783_v18  ;;  %v10768_v17 = vld [vmem:[%s16867_s11 + $0x1c8] sm:$0xf0] }
0x14d7   : > { %v6750_v58 = vsel %vm608_vm0, %v6732_v32, 0.0 }
0x14d8   : > { %6751 = vadd.xlane.f32.xlu1 %v6750_v58  ;;  %v10771_v58 = vor.u32 %v11855_v30, %v10768_v17 }
0x14da   : > { %7278 = vmatpush.bf16.msra.mxu0 %v10771_v58 }
0x14db   : > { %v6719_v61 = vpop.f32.mrf.mxu0 }
0x14dc   : > { %v6720_v50 = vadd.f32 %v12061_v38, %v6719_v61  ;;  %v10694_v61 = vld [vmem:[%s16867_s11 + $0x100] sm:$0xf] }
0x14de   : > { %v6733_v12 = vadd.f32 %v6720_v50, %v14795_v51  ;;  %v11846_v50 = vld [vmem:[%s16867_s11 + $0x13c] sm:$0xf0] }
0x14e0   : > { %v6753_v3 = vsel %vm608_vm0, %v6733_v12, 0.0 }
0x14e1   : > { %6754 = vadd.xlane.f32.xlu2 %v6753_v3  ;;  %v10695_v3 = vor.u32 %v11846_v50, %v10694_v61 }
0x14e3   : > { %v6721_v24 = vpop.f32.mrf.mxu0 }
0x14e4   : > { %v6722_v57 = vadd.f32 %v12061_v38, %v6721_v24  ;;  %v10696_v24 = vld [vmem:[%s16867_s11 + $0x140] sm:$0xf0] }
0x14e6   : > { %v6734_v43 = vadd.f32 %v6722_v57, %v14798_v35  ;;  %v10702_v57 = vld [vmem:[%s16867_s11 + $0x108] sm:$0xf] }
0x14e8   : > { %v6756_v60 = vsel %vm608_vm0, %v6734_v43, 0.0 }
0x14e9   : > { %6757 = vadd.xlane.f32.xlu0 %v6756_v60 }
0x1528   : > { %v6743_v40 = vpop.xlane.xlu1 %6742 }
0x1529   : > { %v6765_v18 = vmul.f32 %v6743_v40, %v16987_v19 }
0x152b   : > { %v15327_v11 = vsub.f32 %v6729_v6, %v6765_v18  ;;  %v11839_v18 = vld [vmem:[%s16867_s11 + $0x10c] sm:$0xf] }
0x152d   : > { %v6781_v16 = vmul.f32 %v15327_v11, %v15327_v11 }
0x152f   : > { %v6789_v51 = vsel %vm608_vm0, %v6781_v16, 0.0  ;;  %v10704_v16 = vld [vmem:[%s16867_s11 + $0x148] sm:$0xf0] }
0x1530   : > { %v6746_v23 = vpop.xlane.xlu2 %6745  ;;  %6790 = vadd.xlane.f32.xlu1 %v6789_v51  ;;  %v10707_v51 = vor.u32 %v11839_v18, %v10704_v16 }
0x1531   : > { %v6766_v0 = vmul.f32 %v6746_v23, %v16987_v19 }
0x1532   : > { %7279 = vmatpush.bf16.msra.mxu0 %v10707_v51 }
0x1533   : > { %v15333_v52 = vsub.f32 %v6730_v41, %v6766_v0  ;;  %v10759_v41 = vor.u32 %v11862_v10, %v10758_v14  ;;  %v15446_v10 = vld [vmem:[%s16866_s10 + $0x1] ss:$0 sm:$0xff] }
0x1535   : > { %v6724_v35 = vpop.f32.mrf.mxu0  ;;  %v6782_v63 = vmul.f32 %v15333_v52, %v15333_v52  ;;  %7191 = vmatpush.bf16.msra.mxu1 %v10759_v41 }
0x1536   : > { %v6725_v59 = vadd.f32 %v12061_v38, %v6724_v35 }
0x1537   : > { %v6792_v22 = vsel %vm608_vm0, %v6782_v63, 0.0 }
0x1538   : > { %v15339_v55 = vadd.f32 %v6725_v59, %v16988_v15  ;;  %6793 = vadd.xlane.f32.xlu2 %v6792_v22 }
0x1539   : > { %7192 = vmatpush.bf16.msra.mxu1 %v10695_v3 }
0x153a   : > { %v6759_v1 = vsel %vm608_vm0, %v15339_v55, 0.0 }
0x153b   : > { %6760 = vadd.xlane.f32.xlu0 %v6759_v1 }
0x153d   : > { %v6726_v2 = vpop.f32.mrf.mxu0 }
0x153e   : > { %v6727_v25 = vadd.f32 %v12061_v38, %v6726_v2 }
0x1540   : > { %v15344_v29 = vadd.f32 %v6727_v25, %v16989_v54 }
0x1542   : > { %v6762_v46 = vsel %vm608_vm0, %v15344_v29, 0.0 }
0x1543   : > { %v6749_v47 = vpop.xlane.xlu0 %6748  ;;  %6763 = vadd.xlane.f32.xlu1 %v6762_v46 }
0x1544   : > { %v6767_v7 = vmul.f32 %v6749_v47, %v16987_v19 }
0x1546   : > { %v15349_v5 = vsub.f32 %v6731_v49, %v6767_v7  ;;  %v10763_v49 = vor.u32 %v11854_v26, %v10760_v9 }
0x1548   : > { %v6783_v42 = vmul.f32 %v15349_v5, %v15349_v5  ;;  %7220 = vmatpush.bf16.msra.mxu2 %v10763_v49 }
0x154a   : > { %v6795_v28 = vsel %vm608_vm0, %v6783_v42, 0.0 }
0x154b   : > { %6796 = vadd.xlane.f32.xlu2 %v6795_v28  ;;  %v6752_v37 = vpop.xlane.xlu1 %6751 }
0x154c   : > { %v6768_v21 = vmul.f32 %v6752_v37, %v16987_v19 }
0x154e   : > { %v15355_v48 = vsub.f32 %v6732_v32, %v6768_v21 }
0x1550   : > { %v6784_v38 = vmul.f32 %v15355_v48, %v15355_v48 }
0x1552   : > { %v6798_v45 = vsel %vm608_vm0, %v6784_v38, 0.0 }
0x1553   : > { %6799 = vadd.xlane.f32.xlu0 %v6798_v45 }
0x1554   : > { %v6755_v33 = vpop.xlane.xlu2 %6754 }
0x1555   : > { %v6769_v62 = vmul.f32 %v6755_v33, %v16987_v19 }
0x1557   : > { %v15361_v8 = vsub.f32 %v6733_v12, %v6769_v62  ;;  %v11838_v12 = vld [vmem:[%s16867_s11 + $0x104] sm:$0xf] }
0x1558   : > { %v10699_v60 = vor.u32 %v11838_v12, %v10696_v24 }
0x1559   : > { %v6785_v34 = vmul.f32 %v15361_v8, %v15361_v8 }
0x155a   : > { %7221 = vmatpush.bf16.msra.mxu2 %v10699_v60 }
0x155b   : > { %v6801_v20 = vsel %vm608_vm0, %v6785_v34, 0.0 }
0x155c   : > { %v6758_v53 = vpop.xlane.xlu0 %6757  ;;  %6802 = vadd.xlane.f32.xlu1 %v6801_v20 }
0x155d   : > { %v6770_v27 = vmul.f32 %v6758_v53, %v16987_v19  ;;  %v15439_v53 = vld [vmem:[%s16865_s9 + $0x1] ss:$0 sm:$0xff] }
0x155f   : > { %v15367_v6 = vsub.f32 %v6734_v43, %v6770_v27  ;;  %v11847_v43 = vld [vmem:[%s16867_s11 + $0x144] sm:$0xf0] }
0x1560   : > { %v10703_v40 = vor.u32 %v11847_v43, %v10702_v57 }
0x1561   : > { %v6786_v56 = vmul.f32 %v15367_v6, %v15367_v6 }
0x1562   : > { %7250 = vmatpush.bf16.msrb.mxu3 %v10703_v40 }
0x1563   : > { %v6804_v13 = vsel %vm608_vm0, %v6786_v56, 0.0 }
0x1564   : > { %6805 = vadd.xlane.f32.xlu2 %v6804_v13 }
0x15a3   : > { %v6791_v44 = vpop.xlane.xlu1 %6790 }
0x15a4   : > { %v6813_v4 = vmul.f32 %v6791_v44, %v16987_v19 }
0x15a6   : > { %v6821_v32 = vadd.f32 1e-05, %v6813_v4 }
0x15a8   : > { %12357 = vrsqrt.f32 %v6821_v32  ;;  %vm6835_vm4 = vweird.f32 %v6821_v32 }
0x15ab   : > { %v6794_v23 = vpop.xlane.xlu2 %6793 }
0x15ac   : > { %v6814_v0 = vmul.f32 %v6794_v23, %v16987_v19 }
0x15ae   : > { %v12358_v35 = vpop.eup %12357  ;;  %v6822_v63 = vadd.f32 1e-05, %v6814_v0  ;;  %v6761_v59 = vpop.xlane.xlu0 %6760 }
0x15af   : > { %v6830_v22 = vmul.f32 %v12358_v35, %v6821_v32  ;;  %v6771_v15 = vmul.f32 %v6761_v59, %v16987_v19  ;;  %vm6836_vm11 = vweird.f32 %v12358_v35 }
0x15b0   : > { %12359 = vrsqrt.f32 %v6822_v63  ;;  %vm6837_vm5 = vmor %vm6835_vm4, %vm6836_vm11  ;;  %vm6845_vm7 = vweird.f32 %v6822_v63 }
0x15b1   : > { %v6831_v1 = vmul.f32 %v12358_v35, %v6830_v22  ;;  %v15424_v2 = vsub.f32 %v15339_v55, %v6771_v15 }
0x15b3   : > { %v6832_v25 = vmul.f32 0.5, %v6831_v1  ;;  %v6787_v54 = vmul.f32 %v15424_v2, %v15424_v2 }
0x15b5   : > { %v6833_v46 = vsub.f32 1.5, %v6832_v25  ;;  %v6807_v47 = vsel %vm608_vm0, %v6787_v54, 0.0 }
0x15b6   : > { %v12360_v7 = vpop.eup %12359  ;;  %6808 = vadd.xlane.f32.xlu0 %v6807_v47  ;;  %v6764_v42 = vpop.xlane.xlu1 %6763 }
0x15b7   : > { %v6834_v28 = vmul.f32 %v12358_v35, %v6833_v46  ;;  %v6840_v37 = vmul.f32 %v12360_v7, %v6822_v63  ;;  %v6772_v21 = vmul.f32 %v6764_v42, %v16987_v19  ;;  %vm6846_vm6 = vweird.f32 %v12360_v7 }
0x15b8   : > { %vm6847_vm8 = vmor %vm6845_vm7, %vm6846_vm6 }
0x15b9   : > { %v6841_v38 = vmul.f32 %v12360_v7, %v6840_v37  ;;  %v15431_v55 = vsub.f32 %v15344_v29, %v6772_v21  ;;  %v6838_v45 = vsel %vm6837_vm5, %v12358_v35, %v6834_v28 }
0x15ba   : > { %v6909_v27 = vmul.f32 %v6838_v45, %v15327_v11 }
0x15bb   : > { %v6842_v33 = vmul.f32 0.5, %v6841_v38  ;;  %v6788_v62 = vmul.f32 %v15431_v55, %v15431_v55 }
0x15bc   : > { %v6920_v26 = vmul.f32 %v15439_v53, %v6909_v27 }
0x15bd   : > { %v6843_v34 = vsub.f32 1.5, %v6842_v33  ;;  %v6810_v20 = vsel %vm608_vm0, %v6788_v62, 0.0 }
0x15be   : > { %v6797_v56 = vpop.xlane.xlu2 %6796  ;;  %6811 = vadd.xlane.f32.xlu1 %v6810_v20  ;;  %v15452_v41 = vadd.f32 %v15446_v10, %v6920_v26 }
0x15bf   : > { %v6844_v29 = vmul.f32 %v12360_v7, %v6843_v34  ;;  %v6815_v13 = vmul.f32 %v6797_v56, %v16987_v19 }
0x15c0   : > { %16990 = vst [vmem:[#allocation18_spill] sm:$0xff] %v15452_v41 }
0x15c1   : > { %v6848_v44 = vsel %vm6847_vm8, %v12360_v7, %v6844_v29  ;;  %v6823_v14 = vadd.f32 1e-05, %v6815_v13 }
0x15c2   : > { %v6910_v4 = vmul.f32 %v6848_v44, %v15333_v52 }
0x15c3   : > { %12361 = vrsqrt.f32 %v6823_v14  ;;  %vm6855_vm10 = vweird.f32 %v6823_v14 }
0x15c4   : > { %v6921_v11 = vmul.f32 %v15439_v53, %v6910_v4 }
0x15c6   : > { %v15455_v9 = vadd.f32 %v15446_v10, %v6921_v11  ;;  %v6800_v36 = vpop.xlane.xlu0 %6799 }
0x15c7   : > { %v6816_v39 = vmul.f32 %v6800_v36, %v16987_v19 }
0x15c8   : > { %16991 = vst [vmem:[#allocation19_spill] sm:$0xff] %v15455_v9  ;;  %v15460_v49 = vpack.c.bf16 %v15455_v9, %v15452_v41 }
0x15c9   : > { %v12362_v31 = vpop.eup %12361  ;;  %v6824_v30 = vadd.f32 1e-05, %v6816_v39 }
0x15ca   : > { %v6850_v17 = vmul.f32 %v12362_v31, %v6823_v14  ;;  %10820 = vmatmul.msk.bf16.vlgmr.msra.gmra.mxu1 %vm608_vm0, %v15460_v49  ;;  %10824 = vmatmul.msk.bf16.vlgmr.msra.gmra.mxu2 %vm608_vm0, %v15460_v49  ;;  %vm6856_vm9 = vweird.f32 %v12362_v31 }
0x15cb   : > { %12363 = vrsqrt.f32 %v6824_v30  ;;  %10828 = vmatmul.msk.bf16.vlgmr.msrb.gmra.mxu3 %vm608_vm0, %v15460_v49  ;;  %10832 = vmatmul.msk.bf16.vlgmr.msra.gmra.mxu0 %vm608_vm0, %v15460_v49  ;;  %vm6857_vm12 = vmor %vm6855_vm10, %vm6856_vm9  ;;  %vm6865_vm14 = vweird.f32 %v6824_v30 }
0x15cc   : > { %v6851_v52 = vmul.f32 %v12362_v31, %v6850_v17 }
0x15ce   : > { %v6852_v32 = vmul.f32 0.5, %v6851_v52  ;;  %v10774_v52 = vld [vmem:[%s16867_s11 + $0x190] sm:$0xf] }
0x15cf   : > { %v6803_v58 = vpop.xlane.xlu1 %6802 }
0x15d0   : > { %v6853_v61 = vsub.f32 1.5, %v6852_v32  ;;  %v6817_v50 = vmul.f32 %v6803_v58, %v16987_v19  ;;  %v11864_v32 = vld [vmem:[%s16867_s11 + $0x1cc] sm:$0xf0] }
0x15d1   : > { %v12364_v12 = vpop.eup %12363  ;;  %v10775_v58 = vor.u32 %v11864_v32, %v10774_v52  ;;  %v11850_v52 = vld [vmem:[%s16867_s11 + $0x15c] sm:$0xf0] }
0x15d2   : > { %v6854_v3 = vmul.f32 %v12362_v31, %v6853_v61  ;;  %v6860_v24 = vmul.f32 %v12364_v12, %v6824_v30  ;;  %v6825_v57 = vadd.f32 1e-05, %v6817_v50  ;;  %vm6866_vm13 = vweird.f32 %v12364_v12  ;;  %v11856_v61 = vld [vmem:[%s16867_s11 + $0x194] sm:$0xf] }
0x15d3   : > { %vm6867_vm15 = vmor %vm6865_vm14, %vm6866_vm13  ;;  %v10776_v50 = vld [vmem:[%s16867_s11 + $0x1d0] sm:$0xf0]  ;;  %7307 = vmatpush.bf16.msrb.mxu1 %v10775_v58  ;;  %v11842_v58 = vld [vmem:[%s16867_s11 + $0x124] sm:$0xf] }
0x15d4   : > { %v6861_v43 = vmul.f32 %v12364_v12, %v6860_v24  ;;  %12365 = vrsqrt.f32 %v6825_v57  ;;  %v6858_v60 = vsel %vm6857_vm12, %v12362_v31, %v6854_v3  ;;  %vm6875_vm2 = vweird.f32 %v6825_v57 }
0x15d5   : > { %v6911_v23 = vmul.f32 %v6858_v60, %v15349_v5  ;;  %v10779_v24 = vor.u32 %v11856_v61, %v10776_v50  ;;  %v10728_v61 = vld [vmem:[%s16867_s11 + $0x160] sm:$0xf0]  ;;  %v10734_v50 = vld [vmem:[%s16867_s11 + $0x128] sm:$0xf] }
0x15d6   : > { %v6862_v40 = vmul.f32 0.5, %v6861_v43  ;;  %v11857_v43 = vld [vmem:[%s16867_s11 + $0x19c] sm:$0xf] }
0x15d7   : > { %v6806_v18 = vpop.xlane.xlu2 %6805  ;;  %v6922_v15 = vmul.f32 %v15439_v53, %v6911_v23  ;;  %7336 = vmatpush.bf16.msrb.mxu2 %v10779_v24  ;;  %v11843_v24 = vld [vmem:[%s16867_s11 + $0x12c] sm:$0xf] }
0x15d8   : > { %v6863_v16 = vsub.f32 1.5, %v6862_v40  ;;  %v6818_v51 = vmul.f32 %v6806_v18, %v16987_v19  ;;  %v10784_v18 = vld [vmem:[%s16867_s11 + $0x1d8] sm:$0xf0] }
0x15d9   : > { %v15477_v47 = vadd.f32 %v15446_v10, %v6922_v15 }
0x15da   : > { %v12366_v0 = vpop.eup %12365  ;;  %v6864_v35 = vmul.f32 %v12364_v12, %v6863_v16  ;;  %v6826_v63 = vadd.f32 1e-05, %v6818_v51  ;;  %v10710_v16 = vld [vmem:[%s16867_s11 + $0x110] sm:$0xf] }
0x15db   : > { %v6870_v59 = vmul.f32 %v12366_v0, %v6825_v57  ;;  %16992 = vst [vmem:[#allocation20_spill] sm:$0xff] %v15477_v47  ;;  %vm6876_vm1 = vweird.f32 %v12366_v0  ;;  %v11865_v57 = vld [vmem:[%s16867_s11 + $0x1d4] sm:$0xf0]  ;;  %v11848_v51 = vld [vmem:[%s16867_s11 + $0x14c] sm:$0xf0] }
0x15dc   : > { %v6868_v22 = vsel %vm6867_vm15, %v12364_v12, %v6864_v35  ;;  %12367 = vrsqrt.f32 %v6826_v63  ;;  %vm6877_vm3 = vmor %vm6875_vm2, %vm6876_vm1  ;;  %vm6885_vm4 = vweird.f32 %v6826_v63  ;;  %v10782_v12 = vld [vmem:[%s16867_s11 + $0x198] sm:$0xf]  ;;  %v10787_v35 = vor.u32 %v11857_v43, %v10784_v18  ;;  %v10736_v43 = vld [vmem:[%s16867_s11 + $0x168] sm:$0xf0] }
0x15dd   : > { %v6912_v1 = vmul.f32 %v6868_v22, %v15355_v48  ;;  %v6871_v25 = vmul.f32 %v12366_v0, %v6870_v59  ;;  %v10783_v40 = vor.u32 %v11865_v57, %v10782_v12  ;;  %v10712_v59 = vld [vmem:[%s16867_s11 + $0x150] sm:$0xf0]  ;;  %v10718_v22 = vld [vmem:[%s16867_s11 + $0x118] sm:$0xf]  ;;  %v10711_v15 = vor.u32 %v11848_v51, %v10710_v16 }
0x15de   : > { %7394 = vmatpush.bf16.msrb.mxu0 %v10787_v35  ;;  %v10731_v12 = vor.u32 %v11842_v58, %v10728_v61 }
0x15df   : > { %v6923_v54 = vmul.f32 %v15439_v53, %v6912_v1  ;;  %v6872_v46 = vmul.f32 0.5, %v6871_v25  ;;  %7365 = vmatpush.bf16.msra.mxu3 %v10783_v40  ;;  %v11849_v25 = vld [vmem:[%s16867_s11 + $0x154] sm:$0xf0]  ;;  %7308 = vmatpush.bf16.msrb.mxu1 %v10711_v15 }
0x15e1   : > { %v15480_v5 = vadd.f32 %v15446_v10, %v6923_v54  ;;  %v6873_v7 = vsub.f32 1.5, %v6872_v46  ;;  %v11841_v54 = vld [vmem:[%s16867_s11 + $0x11c] sm:$0xf] }
0x15e2   : > { %v12368_v42 = vpop.eup %12367 }
0x15e3   : > { %16993 = vst [vmem:[#allocation27_spill] sm:$0xff] %v15480_v5  ;;  %v15484_v28 = vpack.c.bf16 %v15480_v5, %v15477_v47  ;;  %v6874_v37 = vmul.f32 %v12366_v0, %v6873_v7  ;;  %v6880_v21 = vmul.f32 %v12368_v42, %v6826_v63  ;;  %vm6886_vm11 = vweird.f32 %v12368_v42  ;;  %v11840_v63 = vld [vmem:[%s16867_s11 + $0x114] sm:$0xf] }
0x15e4   : > { %vm6887_vm5 = vmor %vm6885_vm4, %vm6886_vm11  ;;  %v10715_v1 = vor.u32 %v11840_v63, %v10712_v59  ;;  %v10719_v7 = vor.u32 %v11849_v25, %v10718_v22 }
0x15e5   : > { %v6881_v48 = vmul.f32 %v12368_v42, %v6880_v21  ;;  %10821 = vmatmul.msk.bf16.gmra.mxu1 %vm608_vm0, %v15484_v28  ;;  %10825 = vmatmul.msk.bf16.gmra.mxu2 %vm608_vm0, %v15484_v28  ;;  %v6878_v38 = vsel %vm6877_vm3, %v12366_v0, %v6874_v37 }
0x15e6   : > { %10829 = vmatmul.msk.bf16.gmra.mxu3 %vm608_vm0, %v15484_v28  ;;  %10833 = vmatmul.msk.bf16.gmra.mxu0 %vm608_vm0, %v15484_v28  ;;  %v6913_v62 = vmul.f32 %v6878_v38, %v15361_v8 }
0x15e7   : > { %v6882_v45 = vmul.f32 0.5, %v6881_v48  ;;  %7337 = vmatpush.bf16.msrb.mxu2 %v10715_v1  ;;  %7366 = vmatpush.bf16.msra.mxu3 %v10719_v7  ;;  %v10806_v7 = vld [vmem:[%s16867_s11 + $0x1b0] sm:$0xf] }
0x15e8   : > { %v6924_v27 = vmul.f32 %v15439_v53, %v6913_v62 }
0x15e9   : > { %v6883_v33 = vsub.f32 1.5, %v6882_v45 }
0x15ea   : > { %v15499_v13 = vadd.f32 %v15446_v10, %v6924_v27 }
0x15eb   : > { %v6884_v34 = vmul.f32 %v12368_v42, %v6883_v33 }
0x15ec   : > { %16994 = vst [vmem:[#allocation21_spill] sm:$0xff] %v15499_v13 }
0x15ed   : > { %v6888_v20 = vsel %vm6887_vm5, %v12368_v42, %v6884_v34  ;;  %v10720_v42 = vld [vmem:[%s16867_s11 + $0x158] sm:$0xf0] }
0x15ee   : > { %v6914_v56 = vmul.f32 %v6888_v20, %v15367_v6  ;;  %v10723_v37 = vor.u32 %v11841_v54, %v10720_v42  ;;  %v11868_v42 = vld [vmem:[%s16867_s11 + $0x1ec] sm:$0xf0] }
0x15f0   : > { %v6925_v29 = vmul.f32 %v15439_v53, %v6914_v56  ;;  %7395 = vmatpush.bf16.msrb.mxu0 %v10723_v37  ;;  %v11860_v37 = vld [vmem:[%s16867_s11 + $0x1b4] sm:$0xf] }
0x15f2   : > { %v15502_v44 = vadd.f32 %v15446_v10, %v6925_v29 }
0x15f4   : > { %16995 = vst [vmem:[#allocation22_spill] sm:$0xff] %v15502_v44  ;;  %v15506_v14 = vpack.c.bf16 %v15502_v44, %v15499_v13 }
0x15f6   : > { %10822 = vmatmul.msk.bf16.gmra.mxu1 %vm608_vm0, %v15506_v14  ;;  %10826 = vmatmul.msk.bf16.gmra.mxu2 %vm608_vm0, %v15506_v14 }
0x15f7   : > { %10830 = vmatmul.msk.bf16.gmra.mxu3 %vm608_vm0, %v15506_v14  ;;  %10834 = vmatmul.msk.bf16.gmra.mxu0 %vm608_vm0, %v15506_v14 }
0x1629   : > { %v6809_v8 = vpop.xlane.xlu0 %6808 }
0x162a   : > { %v6819_v6 = vmul.f32 %v6809_v8, %v16987_v19 }
0x162c   : > { %v6827_v26 = vadd.f32 1e-05, %v6819_v6  ;;  %v10792_v6 = vld [vmem:[%s16867_s11 + $0x1e0] sm:$0xf0] }
0x162e   : > { %12369 = vrsqrt.f32 %v6827_v26  ;;  %vm6895_vm7 = vweird.f32 %v6827_v26 }
0x1631   : > { %v6812_v4 = vpop.xlane.xlu1 %6811 }
0x1632   : > { %v6820_v11 = vmul.f32 %v6812_v4, %v16987_v19  ;;  %v11867_v4 = vld [vmem:[%s16867_s11 + $0x1e4] sm:$0xf0] }
0x1633   : > { %v11875_v19 = vld [vmem:[%s16869_s13 + $0x428] sm:$0xff] }
0x1634   : > { %v12370_v36 = vpop.eup %12369  ;;  %v6828_v39 = vadd.f32 1e-05, %v6820_v11 }
0x1635   : > { %v6890_v31 = vmul.f32 %v12370_v36, %v6827_v26  ;;  %vm6896_vm6 = vweird.f32 %v12370_v36  ;;  %v10798_v26 = vld [vmem:[%s16867_s11 + $0x1a8] sm:$0xf] }
0x1636   : > { %12371 = vrsqrt.f32 %v6828_v39  ;;  %vm6897_vm8 = vmor %vm6895_vm7, %vm6896_vm6  ;;  %vm6905_vm10 = vweird.f32 %v6828_v39 }
0x1637   : > { %v6891_v30 = vmul.f32 %v12370_v36, %v6890_v31  ;;  %v10800_v31 = vld [vmem:[%s16867_s11 + $0x1e8] sm:$0xf0] }
0x1639   : > { %v6892_v17 = vmul.f32 0.5, %v6891_v30 }
0x163b   : > { %v6893_v3 = vsub.f32 1.5, %v6892_v17  ;;  %v10726_v17 = vld [vmem:[%s16867_s11 + $0x120] sm:$0xf] }
0x163c   : > { %v12372_v60 = vpop.eup %12371  ;;  %v10727_v32 = vor.u32 %v11850_v52, %v10726_v17  ;;  %v11845_v17 = vld [vmem:[%s16867_s11 + $0x13c] sm:$0xf] }
0x163d   : > { %v6894_v23 = vmul.f32 %v12370_v36, %v6893_v3  ;;  %v6900_v0 = vmul.f32 %v12372_v60, %v6828_v39  ;;  %vm6906_vm9 = vweird.f32 %v12372_v60  ;;  %v11859_v39 = vld [vmem:[%s16867_s11 + $0x1ac] sm:$0xf]  ;;  %v11851_v3 = vld [vmem:[%s16867_s11 + $0x164] sm:$0xf0]  ;;  %v10752_v52 = vld [vmem:[%s16867_s11 + $0x178] sm:$0xf0] }
0x163e   : > { %vm6907_vm12 = vmor %vm6905_vm10, %vm6906_vm9  ;;  %v10803_v30 = vor.u32 %v11859_v39, %v10800_v31  ;;  %v10735_v57 = vor.u32 %v11851_v3, %v10734_v50  ;;  %v11853_v39 = vld [vmem:[%s16867_s11 + $0x174] sm:$0xf0] }
0x163f   : > { %v6901_v46 = vmul.f32 %v12372_v60, %v6900_v0  ;;  %v6898_v21 = vsel %vm6897_vm8, %v12370_v36, %v6894_v23  ;;  %v10799_v36 = vor.u32 %v11867_v4, %v10798_v26  ;;  %v11844_v26 = vld [vmem:[%s16867_s11 + $0x134] sm:$0xf] }
0x1640   : > { %v6915_v45 = vmul.f32 %v6898_v21, %v15424_v2  ;;  %v10790_v2 = vld [vmem:[%s16867_s11 + $0x1a0] sm:$0xf]  ;;  %7510 = vmatpush.bf16.msra.mxu0 %v10803_v30 }
0x1641   : > { %v6902_v48 = vmul.f32 0.5, %v6901_v46  ;;  %7481 = vmatpush.bf16.msrb.mxu3 %v10799_v36  ;;  %v10750_v36 = vld [vmem:[%s16867_s11 + $0x138] sm:$0xf] }
0x1642   : > { %v6926_v34 = vmul.f32 %v15439_v53, %v6915_v45  ;;  %v10814_v45 = vld [vmem:[%s16867_s11 + $0x1b8] sm:$0xf]  ;;  %v10751_v30 = vor.u32 %v11853_v39, %v10750_v36 }
0x1643   : > { %v6903_v38 = vsub.f32 1.5, %v6902_v48  ;;  %v10807_v48 = vor.u32 %v11868_v42, %v10806_v7 }
0x1644   : > { %v15572_v56 = vadd.f32 %v15446_v10, %v6926_v34 }
0x1645   : > { %v6904_v33 = vmul.f32 %v12372_v60, %v6903_v38  ;;  %7482 = vmatpush.bf16.msrb.mxu3 %v10735_v57  ;;  %v10808_v38 = vld [vmem:[%s16867_s11 + $0x1f0] sm:$0xf0] }
0x1646   : > { %16996 = vst [vmem:[#allocation26_spill] sm:$0xff] %v15572_v56  ;;  %v10811_v34 = vor.u32 %v11860_v37, %v10808_v38 }
0x1647   : > { %v6908_v62 = vsel %vm6907_vm12, %v12372_v60, %v6904_v33  ;;  %v10739_v60 = vor.u32 %v11843_v24, %v10736_v43  ;;  %v15669_v40 = vpop.f32.mrf.mxu1  ;;  %v11869_v33 = vld [vmem:[%s16867_s11 + $0x1f4] sm:$0xf0] }
0x1648   : > { %v6916_v20 = vmul.f32 %v6908_v62, %v15431_v55  ;;  %v11866_v55 = vld [vmem:[%s16867_s11 + $0x1dc] sm:$0xf0]  ;;  %v15671_v18 = vpop.f32.mrf.mxu0 }
0x1649   : > { %7511 = vmatpush.bf16.msra.mxu0 %v10739_v60  ;;  %v10690_v60 = vld [vmem:[%s16868_s12 + $0x10] sm:$0xff] }
0x164a   : > { %v6927_v27 = vmul.f32 %v15439_v53, %v6916_v20  ;;  %v11858_v53 = vld [vmem:[%s16867_s11 + $0x1a4] sm:$0xf]  ;;  %v10815_v20 = vor.u32 %v11869_v33, %v10814_v45  ;;  %v15800_v7 = vperm.slane %v10690_v60, 0  ;;  %v15802_v42 = vperm.slane %v10690_v60, 3 }
0x164b   : > { %v10795_v11 = vor.u32 %v11858_v53, %v10792_v6  ;;  %v11852_v6 = vld [vmem:[%s16867_s11 + $0x16c] sm:$0xf0] }
0x164c   : > { %v15575_v29 = vadd.f32 %v15446_v10, %v6927_v27  ;;  %v10791_v10 = vor.u32 %v11866_v55, %v10790_v2  ;;  %v11861_v27 = vld [vmem:[%s16867_s11 + $0x1bc] sm:$0xf] }
0x164d   : > { %7452 = vmatpush.bf16.msra.mxu2 %v10795_v11  ;;  %v15673_v16 = vpop.f32.mrf.mxu2  ;;  %v10816_v2 = vld [vmem:[%s16867_s11 + $0x1f8] sm:$0xf0]  ;;  %v10744_v11 = vld [vmem:[%s16867_s11 + $0x170] sm:$0xf0] }
0x164e   : > { %16997 = vst [vmem:[#allocation25_spill] sm:$0xff] %v15575_v29  ;;  %v15579_v8 = vpack.c.bf16 %v15575_v29, %v15572_v56  ;;  %7423 = vmatpush.bf16.msra.mxu1 %v10791_v10  ;;  %v15675_v51 = vpop.f32.mrf.mxu3  ;;  %v10819_v53 = vor.u32 %v11861_v27, %v10816_v2  ;;  %v10742_v10 = vld [vmem:[%s16867_s11 + $0x130] sm:$0xf]  ;;  %v10747_v31 = vor.u32 %v11844_v26, %v10744_v11  ;;  %v15808_v2 = vperm.slane %v10690_v60, 1 }
0x164f   : > { %v15681_v23 = vpop.f32.mrf.mxu1  ;;  %v10743_v4 = vor.u32 %v11852_v6, %v10742_v10  ;;  %v15810_v6 = vperm.slane %v10690_v60, 2 }
0x1650   : > { %10823 = vmatmul.msk.bf16.gmra.mxu1 %vm608_vm0, %v15579_v8  ;;  %10827 = vmatmul.msk.bf16.gmra.mxu2 %vm608_vm0, %v15579_v8  ;;  %v15687_v0 = vpop.f32.mrf.mxu0 }
0x1651   : > { %10831 = vmatmul.msk.bf16.gmra.mxu3 %vm608_vm0, %v15579_v8  ;;  %10835 = vmatmul.msk.bf16.gmra.mxu0 %vm608_vm0, %v15579_v8 }
0x1652   : > { %7424 = vmatpush.bf16.msra.mxu1 %v10727_v32  ;;  %7453 = vmatpush.bf16.msra.mxu2 %v10731_v12  ;;  %v10755_v32 = vor.u32 %v11845_v17, %v10752_v52 }
0x1655   : > { %v15689_v35 = vpop.f32.mrf.mxu2 }
0x1656   : > { %v15691_v63 = vpop.f32.mrf.mxu3 }
0x1660   : > { %10836 = vmatmul.msk.bf16.vlgmr.msrb.gmra.mxu1 %vm608_vm0, %v15460_v49  ;;  %10840 = vmatmul.msk.bf16.vlgmr.msrb.gmra.mxu2 %vm608_vm0, %v15460_v49 }
0x1661   : > { %10844 = vmatmul.msk.bf16.vlgmr.msra.gmra.mxu3 %vm608_vm0, %v15460_v49  ;;  %10848 = vmatmul.msk.bf16.vlgmr.msrb.gmra.mxu0 %vm608_vm0, %v15460_v49 }
0x1662   : > { %v15693_v59 = vpop.f32.mrf.mxu1  ;;  %7539 = vmatpush.bf16.msrb.mxu1 %v10807_v48  ;;  %7568 = vmatpush.bf16.msrb.mxu2 %v10811_v34 }
0x1663   : > { %v15695_v22 = vpop.f32.mrf.mxu0  ;;  %7597 = vmatpush.bf16.msra.mxu3 %v10815_v20  ;;  %7626 = vmatpush.bf16.msrb.mxu0 %v10819_v53 }
0x1666   : > { %7540 = vmatpush.bf16.msrb.mxu1 %v10743_v4  ;;  %7569 = vmatpush.bf16.msrb.mxu2 %v10747_v31 }
0x1667   : > { %7598 = vmatpush.bf16.msra.mxu3 %v10751_v30  ;;  %7627 = vmatpush.bf16.msrb.mxu0 %v10755_v32 }
0x1668   : > { %v15697_v15 = vpop.f32.mrf.mxu2 }
0x1669   : > { %v15699_v1 = vpop.f32.mrf.mxu3 }
0x166a   : > { %v15709_v25 = vpop.f32.mrf.mxu1 }
0x166b   : > { %v15711_v54 = vpop.f32.mrf.mxu0 }
0x1670   : > { %10837 = vmatmul.msk.bf16.gmra.mxu1 %vm608_vm0, %v15484_v28  ;;  %10841 = vmatmul.msk.bf16.gmra.mxu2 %vm608_vm0, %v15484_v28  ;;  %v15713_v46 = vpop.f32.mrf.mxu2 }
0x1671   : > { %10845 = vmatmul.msk.bf16.gmra.mxu3 %vm608_vm0, %v15484_v28  ;;  %10849 = vmatmul.msk.bf16.gmra.mxu0 %vm608_vm0, %v15484_v28  ;;  %v15724_v21 = vpop.f32.mrf.mxu3 }
0x1673   : > { %v15735_v62 = vpop.f32.mrf.mxu1 }
0x1674   : > { %v15743_v55 = vpop.f32.mrf.mxu0 }
0x1679   : > { %v15773_v58 = vpop.f32.mrf.mxu2 }
0x167a   : > { %v15779_v61 = vpop.f32.mrf.mxu3 }
0x167b   : > { %v15781_v50 = vpop.f32.mrf.mxu1 }
0x167c   : > { %v15783_v12 = vpop.f32.mrf.mxu0 }
0x1680   : > { %10838 = vmatmul.msk.bf16.gmra.mxu1 %vm608_vm0, %v15506_v14  ;;  %10842 = vmatmul.msk.bf16.gmra.mxu2 %vm608_vm0, %v15506_v14 }
0x1681   : > { %10846 = vmatmul.msk.bf16.gmra.mxu3 %vm608_vm0, %v15506_v14  ;;  %10850 = vmatmul.msk.bf16.gmra.mxu0 %vm608_vm0, %v15506_v14  ;;  %v15785_v3 = vpop.f32.mrf.mxu2 }
0x1682   : > { %v15787_v24 = vpop.f32.mrf.mxu3 }
0x1690   : > { %10839 = vmatmul.msk.bf16.gmra.mxu1 %vm608_vm0, %v15579_v8  ;;  %10843 = vmatmul.msk.bf16.gmra.mxu2 %vm608_vm0, %v15579_v8 }
0x1691   : > { %10847 = vmatmul.msk.bf16.gmra.mxu3 %vm608_vm0, %v15579_v8  ;;  %10851 = vmatmul.msk.bf16.gmra.mxu0 %vm608_vm0, %v15579_v8 }
0x16a0   : > { %10852 = vmatmul.msk.bf16.vlgmr.msra.gmra.mxu1 %vm608_vm0, %v15460_v49  ;;  %10856 = vmatmul.msk.bf16.vlgmr.msra.gmra.mxu2 %vm608_vm0, %v15460_v49 }
0x16a1   : > { %10860 = vmatmul.msk.bf16.vlgmr.msrb.gmra.mxu3 %vm608_vm0, %v15460_v49  ;;  %10864 = vmatmul.msk.bf16.vlgmr.msra.gmra.mxu0 %vm608_vm0, %v15460_v49 }
0x16b0   : > { %10853 = vmatmul.msk.bf16.gmra.mxu1 %vm608_vm0, %v15484_v28  ;;  %10857 = vmatmul.msk.bf16.gmra.mxu2 %vm608_vm0, %v15484_v28 }
0x16b1   : > { %10861 = vmatmul.msk.bf16.gmra.mxu3 %vm608_vm0, %v15484_v28  ;;  %10865 = vmatmul.msk.bf16.gmra.mxu0 %vm608_vm0, %v15484_v28 }
0x16c0   : > { %10854 = vmatmul.msk.bf16.gmra.mxu1 %vm608_vm0, %v15506_v14  ;;  %10858 = vmatmul.msk.bf16.gmra.mxu2 %vm608_vm0, %v15506_v14 }
0x16c1   : > { %10862 = vmatmul.msk.bf16.gmra.mxu3 %vm608_vm0, %v15506_v14  ;;  %10866 = vmatmul.msk.bf16.gmra.mxu0 %vm608_vm0, %v15506_v14 }
0x16cd   : > { %v7209_v57 = vpop.f32.mrf.mxu1 }
0x16ce   : > { %v7296_v43 = vpop.f32.mrf.mxu0  ;;  %v7210_v48 = vadd.f32 %v7209_v57, %v15800_v7 }
0x16cf   : > { %v7297_v45 = vadd.f32 %v7296_v43, %v15802_v42 }
0x16d0   : > { %10855 = vmatmul.msk.bf16.gmra.mxu1 %vm608_vm0, %v15579_v8  ;;  %10859 = vmatmul.msk.bf16.gmra.mxu2 %vm608_vm0, %v15579_v8  ;;  %v7745_v53 = vmax.f32 %v7210_v48, 0.0 }
0x16d1   : > { %10863 = vmatmul.msk.bf16.gmra.mxu3 %vm608_vm0, %v15579_v8  ;;  %10867 = vmatmul.msk.bf16.gmra.mxu0 %vm608_vm0, %v15579_v8  ;;  %v7748_v26 = vmax.f32 %v7297_v45, 0.0 }
0x16d3   : > { %v7238_v37 = vpop.f32.mrf.mxu2 }
0x16d4   : > { %v7267_v38 = vpop.f32.mrf.mxu3  ;;  %v7239_v11 = vadd.f32 %v7238_v37, %v15808_v2 }
0x16d5   : > { %v7211_v33 = vpop.f32.mrf.mxu1  ;;  %v7268_v39 = vadd.f32 %v7267_v38, %v15810_v6  ;;  %v15828_v38 = vperm.slane %v10690_v60, 7 }
0x16d6   : > { %v7212_v34 = vadd.f32 %v7211_v33, %v15800_v7  ;;  %v7298_v20 = vpop.f32.mrf.mxu0  ;;  %v7746_v43 = vmax.f32 %v7239_v11, 0.0 }
0x16d7   : > { %v7299_v27 = vadd.f32 %v7298_v20, %v15802_v42  ;;  %v7747_v45 = vmax.f32 %v7268_v39, 0.0  ;;  %v15820_v20 = vperm.slane %v10690_v60, 4 }
0x16d8   : > { %v7761_v10 = vmax.f32 %v7212_v34, 0.0 }
0x16d9   : > { %v7764_v4 = vmax.f32 %v7299_v27, 0.0  ;;  %v11877_v27 = vld [vmem:[%s16869_s13 + $0x438] sm:$0xff] }
0x16da   : > { %v15813_v36 = vpack.c.bf16 %v7761_v10, %v7745_v53  ;;  %v11885_v53 = vld [vmem:[%s16869_s13 + $0x478] sm:$0xff]  ;;  %8871 = vmatpush.bf16.msra.mxu1 %v11877_v27  ;;  %v11900_v27 = vld [vmem:[%s16869_s13 + $0x4f0] sm:$0xff] }
0x16db   : > { %v7240_v31 = vpop.f32.mrf.mxu2  ;;  %v15816_v30 = vpack.c.bf16 %v7764_v4, %v7748_v26  ;;  %v11893_v10 = vld [vmem:[%s16869_s13 + $0x4b8] sm:$0xff]  ;;  %8900 = vmatpush.bf16.msra.mxu2 %v11885_v53 }
0x16dc   : > { %v7241_v17 = vadd.f32 %v7240_v31, %v15808_v2  ;;  %v7269_v52 = vpop.f32.mrf.mxu3  ;;  %v11901_v4 = vld [vmem:[%s16869_s13 + $0x4f8] sm:$0xff]  ;;  %8929 = vmatpush.bf16.msrb.mxu3 %v11893_v10 }
0x16dd   : > { %v7270_v32 = vadd.f32 %v7269_v52, %v15810_v6  ;;  %v7310_v57 = vpop.f32.mrf.mxu1  ;;  %8958 = vmatpush.bf16.msra.mxu0 %v11901_v4  ;;  %v15850_v52 = vperm.slane %v10690_v60, 5 }
0x16de   : > { %v7762_v48 = vmax.f32 %v7241_v17, 0.0  ;;  %v7397_v33 = vpop.f32.mrf.mxu0 }
0x16df   : > { %v7763_v34 = vmax.f32 %v7270_v32, 0.0  ;;  %v7398_v31 = vadd.f32 %v7397_v33, %v15828_v38 }
0x16e0   : > { %10868 = vmatmul.msk.bf16.vlgmr.msrb.gmra.mxu1 %vm608_vm0, %v15460_v49  ;;  %10872 = vmatmul.msk.bf16.vlgmr.msrb.gmra.mxu2 %vm608_vm0, %v15460_v49  ;;  %v15826_v37 = vpack.c.bf16 %v7762_v48, %v7746_v43  ;;  %v11876_v48 = vld [vmem:[%s16869_s13 + $0x430] sm:$0xff] }
0x16e1   : > { %10876 = vmatmul.msk.bf16.vlgmr.msra.gmra.mxu3 %vm608_vm0, %v15460_v49  ;;  %10880 = vmatmul.msk.bf16.vlgmr.msrb.gmra.mxu0 %vm608_vm0, %v15460_v49  ;;  %v15843_v26 = vpack.c.bf16 %v7763_v34, %v7747_v45  ;;  %v7311_v49 = vadd.f32 %v7310_v57, %v15820_v20  ;;  %v11884_v45 = vld [vmem:[%s16869_s13 + $0x470] sm:$0xff]  ;;  %v15862_v34 = vperm.slane %v10690_v60, 6  ;;  %v7656_v4 = vmax.f32 %v7398_v31, 0.0  ;;  %v11883_v60 = vld [vmem:[%s16869_s13 + $0x468] sm:$0xff] }
0x16e2   : > { %v11892_v57 = vld [vmem:[%s16869_s13 + $0x4b0] sm:$0xff]  ;;  %8872 = vmatpush.bf16.msra.mxu1 %v11876_v48  ;;  %8901 = vmatpush.bf16.msra.mxu2 %v11884_v45  ;;  %v11899_v31 = vld [vmem:[%s16869_s13 + $0x4e8] sm:$0xff] }
0x16e3   : > { %v7339_v11 = vpop.f32.mrf.mxu2  ;;  %v7653_v53 = vmax.f32 %v7311_v49, 0.0  ;;  %8930 = vmatpush.bf16.msrb.mxu3 %v11892_v57  ;;  %8959 = vmatpush.bf16.msra.mxu0 %v11900_v27 }
0x16e4   : > { %v7368_v39 = vpop.f32.mrf.mxu3  ;;  %v7340_v49 = vadd.f32 %v7339_v11, %v15850_v52 }
0x16e5   : > { %v7312_v17 = vpop.f32.mrf.mxu1  ;;  %v7369_v48 = vadd.f32 %v7368_v39, %v15862_v34  ;;  %v11874_v39 = vld [vmem:[%s16869_s13 + $0x420] sm:$0xff] }
0x16e6   : > { %v7313_v32 = vadd.f32 %v7312_v17, %v15820_v20  ;;  %v7399_v43 = vpop.f32.mrf.mxu0  ;;  %8873 = vmatpush.bf16.msra.mxu1 %v11875_v19  ;;  %8902 = vmatpush.bf16.msra.mxu2 %v11883_v60  ;;  %v7654_v11 = vmax.f32 %v7340_v49, 0.0  ;;  %v11890_v19 = vld [vmem:[%s16869_s13 + $0x4a0] sm:$0xff] }
0x16e7   : > { %v7400_v33 = vadd.f32 %v7399_v43, %v15828_v38  ;;  %v11891_v43 = vld [vmem:[%s16869_s13 + $0x4a8] sm:$0xff]  ;;  %8960 = vmatpush.bf16.msra.mxu0 %v11899_v31  ;;  %v11898_v60 = vld [vmem:[%s16869_s13 + $0x4e0] sm:$0xff]  ;;  %v11881_v31 = vld [vmem:[%s16869_s13 + $0x458] sm:$0xff] }
0x16e8   : > { %v7669_v10 = vmax.f32 %v7313_v32, 0.0  ;;  %8931 = vmatpush.bf16.msrb.mxu3 %v11891_v43 }
0x16e9   : > { %v7672_v17 = vmax.f32 %v7400_v33, 0.0 }
0x16ea   : > { %v15878_v32 = vpack.c.bf16 %v7669_v10, %v7653_v53  ;;  %8874 = vmatpush.bf16.msra.mxu1 %v11874_v39 }
0x16eb   : > { %v15884_v45 = vpack.c.bf16 %v7672_v17, %v7656_v4  ;;  %v7341_v57 = vpop.f32.mrf.mxu2  ;;  %v11882_v4 = vld [vmem:[%s16869_s13 + $0x460] sm:$0xff]  ;;  %v7655_v17 = vmax.f32 %v7369_v48, 0.0  ;;  %8961 = vmatpush.bf16.msra.mxu0 %v11898_v60 }
0x16ec   : > { %v7342_v33 = vadd.f32 %v7341_v57, %v15850_v52  ;;  %v7370_v27 = vpop.f32.mrf.mxu3  ;;  %8903 = vmatpush.bf16.msra.mxu2 %v11882_v4  ;;  %8932 = vmatpush.bf16.msrb.mxu3 %v11890_v19  ;;  %v11880_v19 = vld [vmem:[%s16869_s13 + $0x450] sm:$0xff] }
0x16ed   : > { %v7371_v29 = vadd.f32 %v7370_v27, %v15862_v34  ;;  %v7315_v56 = vpop.f32.mrf.mxu1 }
0x16ee   : > { %v7670_v53 = vmax.f32 %v7342_v33, 0.0  ;;  %v7402_v10 = vpop.f32.mrf.mxu0  ;;  %v11889_v33 = vld [vmem:[%s16869_s13 + $0x498] sm:$0xff]  ;;  %v7316_v27 = vadd.f32 %v7315_v56, %v15820_v20  ;;  %v11888_v56 = vld [vmem:[%s16869_s13 + $0x490] sm:$0xff] }
0x16ef   : > { %v7671_v57 = vmax.f32 %v7371_v29, 0.0  ;;  %v11873_v29 = vld [vmem:[%s16869_s13 + $0x418] sm:$0xff] }
0x16f0   : > { %v15900_v43 = vpack.c.bf16 %v7670_v53, %v7654_v11  ;;  %10869 = vmatmul.msk.bf16.gmra.mxu1 %vm608_vm0, %v15484_v28  ;;  %10873 = vmatmul.msk.bf16.gmra.mxu2 %vm608_vm0, %v15484_v28  ;;  %v7403_v53 = vadd.f32 %v7402_v10, %v15828_v38  ;;  %v11896_v10 = vld [vmem:[%s16869_s13 + $0x4d0] sm:$0xff] }
0x16f1   : > { %v15906_v49 = vpack.c.bf16 %v7671_v57, %v7655_v17  ;;  %10877 = vmatmul.msk.bf16.gmra.mxu3 %vm608_vm0, %v15484_v28  ;;  %10881 = vmatmul.msk.bf16.gmra.mxu0 %vm608_vm0, %v15484_v28  ;;  %v11897_v28 = vld [vmem:[%s16869_s13 + $0x4d8] sm:$0xff]  ;;  %v11872_v57 = vld [vmem:[%s16869_s13 + $0x410] sm:$0xff] }
0x16f2   : > { %8875 = vmatpush.bf16.msra.mxu1 %v11873_v29  ;;  %8904 = vmatpush.bf16.msra.mxu2 %v11881_v31  ;;  %v7685_v29 = vmax.f32 %v7316_v27, 0.0 }
0x16f3   : > { %v7344_v48 = vpop.f32.mrf.mxu2  ;;  %8933 = vmatpush.bf16.msrb.mxu3 %v11889_v33  ;;  %8962 = vmatpush.bf16.msra.mxu0 %v11897_v28  ;;  %v11871_v33 = vld [vmem:[%s16869_s13 + $0x408] sm:$0xff] }
0x16f4   : > { %v7373_v11 = vpop.f32.mrf.mxu3  ;;  %v7345_v13 = vadd.f32 %v7344_v48, %v15850_v52  ;;  %v11879_v28 = vld [vmem:[%s16869_s13 + $0x448] sm:$0xff] }
0x16f5   : > { %v7317_v39 = vpop.f32.mrf.mxu1  ;;  %v7374_v5 = vadd.f32 %v7373_v11, %v15862_v34  ;;  %v11887_v48 = vld [vmem:[%s16869_s13 + $0x488] sm:$0xff] }
0x16f6   : > { %v7318_v4 = vadd.f32 %v7317_v39, %v15820_v20  ;;  %v7404_v17 = vpop.f32.mrf.mxu0  ;;  %v7688_v39 = vmax.f32 %v7403_v53, 0.0  ;;  %8876 = vmatpush.bf16.msra.mxu1 %v11872_v57  ;;  %8905 = vmatpush.bf16.msra.mxu2 %v11880_v19  ;;  %v11895_v53 = vld [vmem:[%s16869_s13 + $0x4c8] sm:$0xff]  ;;  %v7686_v11 = vmax.f32 %v7345_v13, 0.0  ;;  %v11886_v13 = vld [vmem:[%s16869_s13 + $0x480] sm:$0xff] }
0x16f7   : > { %v7405_v60 = vadd.f32 %v7404_v17, %v15828_v38  ;;  %8934 = vmatpush.bf16.msrb.mxu3 %v11888_v56  ;;  %8963 = vmatpush.bf16.msra.mxu0 %v11896_v10  ;;  %v11870_v10 = vld [vmem:[%s16869_s13 + $0x400] sm:$0xff] }
0x16f8   : > { %v7701_v31 = vmax.f32 %v7318_v4, 0.0 }
0x16f9   : > { %v7704_v44 = vmax.f32 %v7405_v60, 0.0 }
0x16fa   : > { %v15947_v17 = vpack.c.bf16 %v7701_v31, %v7685_v29  ;;  %8877 = vmatpush.bf16.msra.mxu1 %v11871_v33  ;;  %8906 = vmatpush.bf16.msra.mxu2 %v11879_v28  ;;  %v11894_v33 = vld [vmem:[%s16869_s13 + $0x4c0] sm:$0xff] }
0x16fb   : > { %v7346_v27 = vpop.f32.mrf.mxu2  ;;  %v15956_v4 = vpack.c.bf16 %v7704_v44, %v7688_v39  ;;  %v11878_v44 = vld [vmem:[%s16869_s13 + $0x440] sm:$0xff]  ;;  %v7687_v39 = vmax.f32 %v7374_v5, 0.0  ;;  %8935 = vmatpush.bf16.msrb.mxu3 %v11887_v48  ;;  %8964 = vmatpush.bf16.msra.mxu0 %v11895_v53 }
0x16fc   : > { %v7347_v57 = vadd.f32 %v7346_v27, %v15850_v52  ;;  %v7375_v19 = vpop.f32.mrf.mxu3 }
0x16fd   : > { %16998 = vst [vmem:[#allocation24_spill] sm:$0xff] %v15956_v4  ;;  %v7376_v60 = vadd.f32 %v7375_v19, %v15862_v34  ;;  %v7320_v29 = vpop.f32.mrf.mxu1 }
0x16fe   : > { %v7702_v31 = vmax.f32 %v7347_v57, 0.0  ;;  %v7407_v56 = vpop.f32.mrf.mxu0  ;;  %8878 = vmatpush.bf16.msra.mxu1 %v11870_v10  ;;  %8907 = vmatpush.bf16.msra.mxu2 %v11878_v44  ;;  %v7321_v48 = vadd.f32 %v7320_v29, %v15820_v20 }
0x16ff   : > { %v7703_v47 = vmax.f32 %v7376_v60, 0.0  ;;  %8936 = vmatpush.bf16.msrb.mxu3 %v11886_v13  ;;  %8965 = vmatpush.bf16.msra.mxu0 %v11894_v33  ;;  %v7408_v57 = vadd.f32 %v7407_v56, %v15828_v38 }
0x1700   : > { %10870 = vmatmul.msk.bf16.gmra.mxu1 %vm608_vm0, %v15506_v14  ;;  %10874 = vmatmul.msk.bf16.gmra.mxu2 %vm608_vm0, %v15506_v14  ;;  %v15976_v28 = vpack.c.bf16 %v7702_v31, %v7686_v11  ;;  %v7717_v9 = vmax.f32 %v7321_v48, 0.0 }
0x1701   : > { %10878 = vmatmul.msk.bf16.gmra.mxu3 %vm608_vm0, %v15506_v14  ;;  %10882 = vmatmul.msk.bf16.gmra.mxu0 %vm608_vm0, %v15506_v14  ;;  %v15982_v5 = vpack.c.bf16 %v7703_v47, %v7687_v39  ;;  %v7720_v47 = vmax.f32 %v7408_v57, 0.0 }
0x1703   : > { %v7349_v27 = vpop.f32.mrf.mxu2 }
0x1704   : > { %v7378_v53 = vpop.f32.mrf.mxu3  ;;  %v7350_v10 = vadd.f32 %v7349_v27, %v15850_v52 }
0x1705   : > { %v7322_v19 = vpop.f32.mrf.mxu1  ;;  %v7379_v13 = vadd.f32 %v7378_v53, %v15862_v34 }
0x1706   : > { %v7323_v60 = vadd.f32 %v7322_v19, %v15820_v20  ;;  %v7409_v11 = vpop.f32.mrf.mxu0 }
0x1707   : > { %v7410_v31 = vadd.f32 %v7409_v11, %v15828_v38  ;;  %v7718_v11 = vmax.f32 %v7350_v10, 0.0  ;;  %v7719_v57 = vmax.f32 %v7379_v13, 0.0  ;;  %v7197_v10 = vadd.f32 %v15681_v23, %v15800_v7 }
0x1708   : > { %v7733_v14 = vmax.f32 %v7323_v60, 0.0  ;;  %v7226_v13 = vadd.f32 %v15689_v35, %v15808_v2  ;;  %v7224_v23 = vadd.f32 %v15673_v16, %v15808_v2  ;;  %v7282_v35 = vadd.f32 %v15671_v18, %v15802_v42 }
0x1709   : > { %v7736_v39 = vmax.f32 %v7410_v31, 0.0 }
0x170a   : > { %v15989_v44 = vpack.c.bf16 %v7733_v14, %v7717_v9  ;;  %v7650_v18 = vmax.f32 %v7224_v23, 0.0 }
0x170b   : > { %v7351_v29 = vpop.f32.mrf.mxu2  ;;  %v15992_v33 = vpack.c.bf16 %v7736_v39, %v7720_v47 }
0x170c   : > { %v7352_v56 = vadd.f32 %v7351_v29, %v15850_v52  ;;  %v7380_v41 = vpop.f32.mrf.mxu3 }
0x170d   : > { %16999 = vst [vmem:[#allocation28_spill] sm:$0xff] %v15992_v33  ;;  %v7381_v19 = vadd.f32 %v7380_v41, %v15862_v34  ;;  %v7325_v4 = vpop.f32.mrf.mxu1 }
0x170e   : > { %v7734_v48 = vmax.f32 %v7352_v56, 0.0  ;;  %v7412_v60 = vpop.f32.mrf.mxu0  ;;  %v7326_v53 = vadd.f32 %v7325_v4, %v15820_v20 }
0x170f   : > { %v7735_v31 = vmax.f32 %v7381_v19, 0.0  ;;  %v7413_v47 = vadd.f32 %v7412_v60, %v15828_v38  ;;  %v7255_v19 = vadd.f32 %v15691_v63, %v15810_v6  ;;  %v7666_v63 = vmax.f32 %v7226_v13, 0.0 }
0x1710   : > { %10871 = vmatmul.msk.bf16.gmra.mxu1 %vm608_vm0, %v15579_v8  ;;  %10875 = vmatmul.msk.bf16.gmra.mxu2 %vm608_vm0, %v15579_v8  ;;  %v16000_v9 = vpack.c.bf16 %v7734_v48, %v7718_v11  ;;  %v7195_v11 = vadd.f32 %v15669_v40, %v15800_v7  ;;  %v7749_v48 = vmax.f32 %v7326_v53, 0.0 }
0x1711   : > { %10879 = vmatmul.msk.bf16.gmra.mxu3 %vm608_vm0, %v15579_v8  ;;  %10883 = vmatmul.msk.bf16.gmra.mxu0 %vm608_vm0, %v15579_v8  ;;  %v16006_v41 = vpack.c.bf16 %v7735_v31, %v7719_v57  ;;  %v7284_v8 = vadd.f32 %v15687_v0, %v15802_v42  ;;  %v7752_v0 = vmax.f32 %v7413_v47, 0.0  ;;  %v7665_v31 = vmax.f32 %v7197_v10, 0.0 }
0x1712   : > { %v7649_v33 = vmax.f32 %v7195_v11, 0.0  ;;  %v7652_v47 = vmax.f32 %v7282_v35, 0.0 }
0x1713   : > { %17000 = vst [vmem:[#allocation29_spill] sm:$0xff] %v16006_v41  ;;  %v7354_v27 = vpop.f32.mrf.mxu2  ;;  %v7668_v40 = vmax.f32 %v7284_v8, 0.0 }
0x1714   : > { %v7383_v14 = vpop.f32.mrf.mxu3  ;;  %v7777_v8 = vpack.c.bf16 %v7665_v31, %v7649_v33  ;;  %v11909_v33 = vld [vmem:[%s16869_s13 + $0x538] sm:$0xff] }
0x1715   : > { %v7327_v39 = vpop.f32.mrf.mxu1  ;;  %v7384_v16 = vadd.f32 %v7383_v14, %v15862_v34  ;;  %v7778_v14 = vpack.c.bf16 %v7666_v63, %v7650_v18  ;;  %v7780_v11 = vpack.c.bf16 %v7668_v40, %v7652_v47  ;;  %v11933_v63 = vld [vmem:[%s16869_s13 + $0x5f8] sm:$0xff]  ;;  %8987 = vmatpush.bf16.msrb.mxu1 %v11909_v33  ;;  %v7202_v18 = vadd.f32 %v15709_v25, %v15800_v7  ;;  %v11924_v25 = vld [vmem:[%s16869_s13 + $0x5b0] sm:$0xff] }
0x1716   : > { %v7328_v29 = vadd.f32 %v7327_v39, %v15820_v20  ;;  %v7414_v56 = vpop.f32.mrf.mxu0  ;;  %v7253_v20 = vadd.f32 %v15675_v51, %v15810_v6  ;;  %9074 = vmatpush.bf16.msrb.mxu0 %v11933_v63 }
0x1717   : > { %v7415_v4 = vadd.f32 %v7414_v56, %v15828_v38  ;;  %v7355_v38 = vadd.f32 %v7354_v27, %v15850_v52  ;;  %v7667_v56 = vmax.f32 %v7255_v19, 0.0  ;;  %v16039_v27 = vld [vmem:[%s16868_s12 + $0x18] sm:$0xff] }
0x1718   : > { %v7765_v60 = vmax.f32 %v7328_v29, 0.0  ;;  %v16042_v35 = vperm.slane %v16039_v27, 0  ;;  %v16070_v47 = vperm.slane %v16039_v27, 1 }
0x1719   : > { %v7768_v57 = vmax.f32 %v7415_v4, 0.0  ;;  %v7651_v4 = vmax.f32 %v7253_v20, 0.0  ;;  %v7750_v19 = vmax.f32 %v7355_v38, 0.0  ;;  %v16047_v20 = vperm.slane %v16039_v27, 3 }
0x171a   : > { %v16029_v39 = vpack.c.bf16 %v7765_v60, %v7749_v48 }
0x171b   : > { %v7356_v53 = vpop.f32.mrf.mxu2  ;;  %v16032_v29 = vpack.c.bf16 %v7768_v57, %v7752_v0  ;;  %v7779_v23 = vpack.c.bf16 %v7667_v56, %v7651_v4  ;;  %v7751_v0 = vmax.f32 %v7384_v16, 0.0  ;;  %v11925_v57 = vld [vmem:[%s16869_s13 + $0x5b8] sm:$0xff] }
0x171c   : > { %v7357_v41 = vadd.f32 %v7356_v53, %v15850_v52  ;;  %v7385_v51 = vpop.f32.mrf.mxu3  ;;  %9045 = vmatpush.bf16.msra.mxu3 %v11925_v57  ;;  %v11923_v57 = vld [vmem:[%s16869_s13 + $0x5a8] sm:$0xff] }
0x171d   : > { %v7386_v10 = vadd.f32 %v7385_v51, %v15862_v34  ;;  %v7426_v13 = vpop.f32.mrf.mxu1  ;;  %v7231_v51 = vadd.f32 %v15713_v46, %v15808_v2  ;;  %v7289_v46 = vadd.f32 %v15711_v54, %v15802_v42 }
0x171e   : > { %v7766_v48 = vmax.f32 %v7357_v41, 0.0  ;;  %v7513_v60 = vpop.f32.mrf.mxu0  ;;  %v11917_v41 = vld [vmem:[%s16869_s13 + $0x578] sm:$0xff]  ;;  %v7427_v40 = vadd.f32 %v7426_v13, %v16042_v35  ;;  %v11908_v13 = vld [vmem:[%s16869_s13 + $0x530] sm:$0xff] }
0x171f   : > { %v7767_v52 = vmax.f32 %v7386_v10, 0.0  ;;  %9016 = vmatpush.bf16.msrb.mxu2 %v11917_v41  ;;  %v7514_v16 = vadd.f32 %v7513_v60, %v16047_v20  ;;  %v11932_v60 = vld [vmem:[%s16869_s13 + $0x5f0] sm:$0xff]  ;;  %8988 = vmatpush.bf16.msrb.mxu1 %v11908_v13  ;;  %v7698_v63 = vmax.f32 %v7231_v51, 0.0 }
0x1720   : > { %8879 = vmatmul.bf16.vlgmr.msra.gmra.mxu1 %v7777_v8  ;;  %8908 = vmatmul.bf16.vlgmr.msra.gmra.mxu2 %v7778_v14  ;;  %v16044_v34 = vpack.c.bf16 %v7766_v48, %v7750_v19  ;;  %v11916_v8 = vld [vmem:[%s16869_s13 + $0x570] sm:$0xff]  ;;  %v7260_v14 = vadd.f32 %v15724_v21, %v15810_v6  ;;  %v16087_v19 = vperm.slane %v16039_v27, 2  ;;  %v7287_v21 = vadd.f32 %v15695_v22, %v15802_v42 }
0x1721   : > { %8937 = vmatmul.bf16.vlgmr.msrb.gmra.mxu3 %v7779_v23  ;;  %8966 = vmatmul.bf16.vlgmr.msra.gmra.mxu0 %v7780_v11  ;;  %v16058_v31 = vpack.c.bf16 %v7767_v52, %v7751_v0  ;;  %v7200_v11 = vadd.f32 %v15693_v59, %v15800_v7  ;;  %v7229_v23 = vadd.f32 %v15697_v15, %v15808_v2  ;;  %v7657_v0 = vmax.f32 %v7427_v40, 0.0  ;;  %v11907_v59 = vld [vmem:[%s16869_s13 + $0x528] sm:$0xff] }
0x1722   : > { %v7258_v52 = vadd.f32 %v15699_v1, %v15810_v6  ;;  %v7660_v33 = vmax.f32 %v7514_v16, 0.0  ;;  %9046 = vmatpush.bf16.msra.mxu3 %v11924_v25  ;;  %9075 = vmatpush.bf16.msrb.mxu0 %v11932_v60  ;;  %v11915_v15 = vld [vmem:[%s16869_s13 + $0x568] sm:$0xff]  ;;  %v7697_v22 = vmax.f32 %v7202_v18, 0.0 }
0x1723   : > { %v7455_v38 = vpop.f32.mrf.mxu2  ;;  %9017 = vmatpush.bf16.msrb.mxu2 %v11916_v8  ;;  %v11931_v16 = vld [vmem:[%s16869_s13 + $0x5e8] sm:$0xff]  ;;  %v7681_v25 = vmax.f32 %v7200_v11, 0.0  ;;  %8989 = vmatpush.bf16.msrb.mxu1 %v11907_v59  ;;  %v11906_v11 = vld [vmem:[%s16869_s13 + $0x520] sm:$0xff] }
0x1724   : > { %v7484_v56 = vpop.f32.mrf.mxu3  ;;  %v7456_v1 = vadd.f32 %v7455_v38, %v16070_v47  ;;  %v7684_v38 = vmax.f32 %v7287_v21, 0.0  ;;  %v7683_v60 = vmax.f32 %v7258_v52, 0.0 }
0x1725   : > { %v7428_v53 = vpop.f32.mrf.mxu1 }
0x1726   : > { %v7429_v4 = vadd.f32 %v7428_v53, %v16042_v35  ;;  %v7515_v10 = vpop.f32.mrf.mxu0  ;;  %v7700_v53 = vmax.f32 %v7289_v46, 0.0  ;;  %9047 = vmatpush.bf16.msra.mxu3 %v11923_v57  ;;  %9076 = vmatpush.bf16.msrb.mxu0 %v11931_v16  ;;  %v7658_v46 = vmax.f32 %v7456_v1, 0.0  ;;  %v11922_v57 = vld [vmem:[%s16869_s13 + $0x5a0] sm:$0xff]  ;;  %v11905_v16 = vld [vmem:[%s16869_s13 + $0x518] sm:$0xff] }
0x1727   : > { %v7516_v48 = vadd.f32 %v7515_v10, %v16047_v20  ;;  %v7485_v10 = vadd.f32 %v7484_v56, %v16087_v19  ;;  %9018 = vmatpush.bf16.msrb.mxu2 %v11915_v15  ;;  %8990 = vmatpush.bf16.msrb.mxu1 %v11906_v11  ;;  %v7205_v11 = vadd.f32 %v15735_v62, %v15800_v7  ;;  %v11903_v62 = vld [vmem:[%s16869_s13 + $0x508] sm:$0xff] }
0x1728   : > { %v7673_v54 = vmax.f32 %v7429_v4, 0.0  ;;  %v7699_v4 = vmax.f32 %v7260_v14, 0.0  ;;  %v7796_v15 = vpack.c.bf16 %v7700_v53, %v7684_v38  ;;  %v11913_v53 = vld [vmem:[%s16869_s13 + $0x558] sm:$0xff]  ;;  %v7207_v38 = vadd.f32 %v15781_v50, %v15800_v7 }
0x1729   : > { %v7676_v41 = vmax.f32 %v7516_v48, 0.0  ;;  %v7682_v48 = vmax.f32 %v7229_v23, 0.0  ;;  %v11914_v23 = vld [vmem:[%s16869_s13 + $0x560] sm:$0xff]  ;;  %v7659_v21 = vmax.f32 %v7485_v10, 0.0  ;;  %v11921_v10 = vld [vmem:[%s16869_s13 + $0x598] sm:$0xff]  ;;  %v7265_v50 = vadd.f32 %v15787_v24, %v15810_v6 }
0x172a   : > { %v16111_v40 = vpack.c.bf16 %v7673_v54, %v7657_v0  ;;  %v7795_v59 = vpack.c.bf16 %v7699_v4, %v7683_v60  ;;  %9048 = vmatpush.bf16.msra.mxu3 %v11922_v57  ;;  %v7236_v60 = vadd.f32 %v15785_v3, %v15808_v2  ;;  %v7729_v57 = vmax.f32 %v7207_v38, 0.0 }
0x172b   : > { %v16117_v13 = vpack.c.bf16 %v7676_v41, %v7660_v33  ;;  %v7457_v8 = vpop.f32.mrf.mxu2  ;;  %v7793_v33 = vpack.c.bf16 %v7697_v22, %v7681_v25  ;;  %v7794_v41 = vpack.c.bf16 %v7698_v63, %v7682_v48  ;;  %v11930_v22 = vld [vmem:[%s16869_s13 + $0x5e0] sm:$0xff]  ;;  %9019 = vmatpush.bf16.msrb.mxu2 %v11914_v23  ;;  %8991 = vmatpush.bf16.msrb.mxu1 %v11905_v16 }
0x172c   : > { %v7458_v18 = vadd.f32 %v7457_v8, %v16070_v47  ;;  %v7486_v51 = vpop.f32.mrf.mxu3  ;;  %9077 = vmatpush.bf16.msrb.mxu0 %v11930_v22  ;;  %v11929_v8 = vld [vmem:[%s16869_s13 + $0x5d8] sm:$0xff]  ;;  %v7730_v22 = vmax.f32 %v7236_v60, 0.0 }
0x172d   : > { %v7487_v0 = vadd.f32 %v7486_v51, %v16087_v19  ;;  %v7431_v54 = vpop.f32.mrf.mxu1 }
0x172e   : > { %v7674_v14 = vmax.f32 %v7458_v18, 0.0  ;;  %v7518_v56 = vpop.f32.mrf.mxu0  ;;  %v7432_v25 = vadd.f32 %v7431_v54, %v16042_v35  ;;  %v11912_v54 = vld [vmem:[%s16869_s13 + $0x550] sm:$0xff]  ;;  %9049 = vmatpush.bf16.msra.mxu3 %v11921_v10  ;;  %v7713_v10 = vmax.f32 %v7205_v11, 0.0 }
0x172f   : > { %v7675_v52 = vmax.f32 %v7487_v0, 0.0  ;;  %v7519_v18 = vadd.f32 %v7518_v56, %v16047_v20  ;;  %9020 = vmatpush.bf16.msrb.mxu2 %v11913_v53  ;;  %v7294_v56 = vadd.f32 %v15783_v12, %v15802_v42  ;;  %v7234_v12 = vadd.f32 %v15773_v58, %v15808_v2  ;;  %v11911_v58 = vld [vmem:[%s16869_s13 + $0x548] sm:$0xff] }
0x1730   : > { %v16133_v63 = vpack.c.bf16 %v7674_v14, %v7658_v46  ;;  %8884 = vmatmul.bf16.gmra.mxu1 %v7793_v33  ;;  %8913 = vmatmul.bf16.gmra.mxu2 %v7794_v41  ;;  %v11904_v14 = vld [vmem:[%s16869_s13 + $0x510] sm:$0xff]  ;;  %v7689_v23 = vmax.f32 %v7432_v25, 0.0  ;;  %v11927_v53 = vld [vmem:[%s16869_s13 + $0x5c8] sm:$0xff] }
0x1731   : > { %v16135_v1 = vpack.c.bf16 %v7675_v52, %v7659_v21  ;;  %8942 = vmatmul.bf16.gmra.mxu3 %v7795_v59  ;;  %8971 = vmatmul.bf16.gmra.mxu0 %v7796_v15  ;;  %v11920_v33 = vld [vmem:[%s16869_s13 + $0x590] sm:$0xff]  ;;  %v7292_v21 = vadd.f32 %v15743_v55, %v15802_v42  ;;  %v7263_v52 = vadd.f32 %v15779_v61, %v15810_v6  ;;  %v7692_v59 = vmax.f32 %v7519_v18, 0.0  ;;  %v11919_v6 = vld [vmem:[%s16869_s13 + $0x588] sm:$0xff] }
0x1732   : > { %9078 = vmatpush.bf16.msrb.mxu0 %v11929_v8  ;;  %v11928_v41 = vld [vmem:[%s16869_s13 + $0x5d0] sm:$0xff]  ;;  %8992 = vmatpush.bf16.msrb.mxu1 %v11904_v14  ;;  %v7732_v7 = vmax.f32 %v7294_v56, 0.0  ;;  %v7731_v61 = vmax.f32 %v7265_v50, 0.0  ;;  %v7714_v8 = vmax.f32 %v7234_v12, 0.0  ;;  %v11902_v50 = vld [vmem:[%s16869_s13 + $0x500] sm:$0xff] }
0x1733   : > { %v7460_v4 = vpop.f32.mrf.mxu2  ;;  %9021 = vmatpush.bf16.msrb.mxu2 %v11912_v54  ;;  %9050 = vmatpush.bf16.msra.mxu3 %v11920_v33  ;;  %v7809_v54 = vpack.c.bf16 %v7729_v57, %v7713_v10 }
0x1734   : > { %v7489_v48 = vpop.f32.mrf.mxu3  ;;  %v7461_v16 = vadd.f32 %v7460_v4, %v16070_v47  ;;  %v7810_v56 = vpack.c.bf16 %v7730_v22, %v7714_v8 }
0x1735   : > { %v7433_v51 = vpop.f32.mrf.mxu1  ;;  %v7490_v42 = vadd.f32 %v7489_v48, %v16087_v19  ;;  %v7715_v48 = vmax.f32 %v7263_v52, 0.0 }
0x1736   : > { %v7434_v0 = vadd.f32 %v7433_v51, %v16042_v35  ;;  %v7520_v46 = vpop.f32.mrf.mxu0  ;;  %9079 = vmatpush.bf16.msrb.mxu0 %v11928_v41  ;;  %v7716_v51 = vmax.f32 %v7292_v21, 0.0  ;;  %8993 = vmatpush.bf16.msrb.mxu1 %v11903_v62 }
0x1737   : > { %v7521_v3 = vadd.f32 %v7520_v46, %v16047_v20  ;;  %9022 = vmatpush.bf16.msrb.mxu2 %v11911_v58  ;;  %v7691_v33 = vmax.f32 %v7490_v42, 0.0  ;;  %v7811_v11 = vpack.c.bf16 %v7731_v61, %v7715_v48  ;;  %9051 = vmatpush.bf16.msra.mxu3 %v11919_v6 }
0x1738   : > { %v7705_v24 = vmax.f32 %v7434_v0, 0.0  ;;  %v7690_v0 = vmax.f32 %v7461_v16, 0.0  ;;  %v7812_v12 = vpack.c.bf16 %v7732_v7, %v7716_v51 }
0x1739   : > { %v7708_v15 = vmax.f32 %v7521_v3, 0.0  ;;  %v11910_v3 = vld [vmem:[%s16869_s13 + $0x540] sm:$0xff] }
0x173a   : > { %v16188_v55 = vpack.c.bf16 %v7705_v24, %v7689_v23  ;;  %9080 = vmatpush.bf16.msrb.mxu0 %v11927_v53  ;;  %v11918_v23 = vld [vmem:[%s16869_s13 + $0x580] sm:$0xff]  ;;  %8994 = vmatpush.bf16.msrb.mxu1 %v11902_v50 }
0x173b   : > { %v7462_v2 = vpop.f32.mrf.mxu2  ;;  %v16197_v4 = vpack.c.bf16 %v7708_v15, %v7692_v59  ;;  %v11926_v24 = vld [vmem:[%s16869_s13 + $0x5c0] sm:$0xff]  ;;  %9023 = vmatpush.bf16.msrb.mxu2 %v11910_v3  ;;  %9052 = vmatpush.bf16.msra.mxu3 %v11918_v23 }
0x173c   : > { %v7463_v25 = vadd.f32 %v7462_v2, %v16070_v47  ;;  %v7491_v18 = vpop.f32.mrf.mxu3 }
0x173d   : > { %v7492_v38 = vadd.f32 %v7491_v18, %v16087_v19  ;;  %v7436_v60 = vpop.f32.mrf.mxu1 }
0x173e   : > { %v7706_v46 = vmax.f32 %v7463_v25, 0.0  ;;  %v7523_v14 = vpop.f32.mrf.mxu0  ;;  %9081 = vmatpush.bf16.msrb.mxu0 %v11926_v24  ;;  %v7437_v15 = vadd.f32 %v7436_v60, %v16042_v35 }
0x173f   : > { %v7707_v41 = vmax.f32 %v7492_v38, 0.0  ;;  %v7524_v22 = vadd.f32 %v7523_v14, %v16047_v20 }
0x1740   : > { %8889 = vmatmul.bf16.gmra.mxu1 %v7809_v54  ;;  %8918 = vmatmul.bf16.gmra.mxu2 %v7810_v56  ;;  %v16213_v21 = vpack.c.bf16 %v7706_v46, %v7690_v0  ;;  %v7721_v61 = vmax.f32 %v7437_v15, 0.0 }
0x1741   : > { %8947 = vmatmul.bf16.gmra.mxu3 %v7811_v11  ;;  %8976 = vmatmul.bf16.gmra.mxu0 %v7812_v12  ;;  %v16215_v52 = vpack.c.bf16 %v7707_v41, %v7691_v33  ;;  %v7724_v2 = vmax.f32 %v7524_v22, 0.0 }
0x1743   : > { %v7465_v59 = vpop.f32.mrf.mxu2 }
0x1744   : > { %v7494_v57 = vpop.f32.mrf.mxu3  ;;  %v7466_v53 = vadd.f32 %v7465_v59, %v16070_v47 }
0x1745   : > { %v7438_v16 = vpop.f32.mrf.mxu1  ;;  %v7495_v8 = vadd.f32 %v7494_v57, %v16087_v19 }
0x1746   : > { %v7439_v62 = vadd.f32 %v7438_v16, %v16042_v35  ;;  %v7525_v58 = vpop.f32.mrf.mxu0  ;;  %v7722_v0 = vmax.f32 %v7466_v53, 0.0 }
0x1747   : > { %v7526_v7 = vadd.f32 %v7525_v58, %v16047_v20  ;;  %v7723_v54 = vmax.f32 %v7495_v8, 0.0 }
0x1748   : > { %v7737_v42 = vmax.f32 %v7439_v62, 0.0 }
0x1749   : > { %v7740_v6 = vmax.f32 %v7526_v7, 0.0 }
0x174a   : > { %v16222_v10 = vpack.c.bf16 %v7737_v42, %v7721_v61 }
0x174b   : > { %v7467_v25 = vpop.f32.mrf.mxu2  ;;  %v16225_v18 = vpack.c.bf16 %v7740_v6, %v7724_v2 }
0x174c   : > { %v7468_v51 = vadd.f32 %v7467_v25, %v16070_v47  ;;  %v7496_v48 = vpop.f32.mrf.mxu3  ;;  %v16250_v25 = vperm.slane %v16039_v27, 4 }
0x174d   : > { %v7497_v38 = vadd.f32 %v7496_v48, %v16087_v19  ;;  %v7441_v60 = vpop.f32.mrf.mxu1  ;;  %v11949_v48 = vld [vmem:[%s16869_s13 + $0x678] sm:$0xff] }
0x174e   : > { %v7738_v46 = vmax.f32 %v7468_v51, 0.0  ;;  %v7528_v14 = vpop.f32.mrf.mxu0  ;;  %v7442_v41 = vadd.f32 %v7441_v60, %v16042_v35  ;;  %9132 = vmatpush.bf16.msra.mxu2 %v11949_v48  ;;  %v11938_v48 = vld [vmem:[%s16869_s13 + $0x620] sm:$0xff] }
0x174f   : > { %v7739_v56 = vmax.f32 %v7497_v38, 0.0  ;;  %v7529_v12 = vadd.f32 %v7528_v14, %v16047_v20  ;;  %v16278_v14 = vperm.slane %v16039_v27, 5 }
0x1750   : > { %8894 = vmatmul.bf16.gmra.mxu1 %v15813_v36  ;;  %8923 = vmatmul.bf16.gmra.mxu2 %v15826_v37  ;;  %v16231_v50 = vpack.c.bf16 %v7738_v46, %v7722_v0  ;;  %v7753_v59 = vmax.f32 %v7442_v41, 0.0  ;;  %v11948_v41 = vld [vmem:[%s16869_s13 + $0x670] sm:$0xff] }
0x1751   : > { %8952 = vmatmul.bf16.gmra.mxu3 %v15843_v26  ;;  %8981 = vmatmul.bf16.gmra.mxu0 %v15816_v30  ;;  %v16235_v3 = vpack.c.bf16 %v7739_v56, %v7723_v54  ;;  %v7756_v57 = vmax.f32 %v7529_v12, 0.0  ;;  %v16291_v12 = vperm.slane %v16039_v27, 6 }
0x1752   : > { %9133 = vmatpush.bf16.msra.mxu2 %v11948_v41 }
0x1753   : > { %v7470_v33 = vpop.f32.mrf.mxu2 }
0x1754   : > { %v7499_v11 = vpop.f32.mrf.mxu3  ;;  %v7471_v30 = vadd.f32 %v7470_v33, %v16070_v47  ;;  %v11940_v33 = vld [vmem:[%s16869_s13 + $0x630] sm:$0xff] }
0x1755   : > { %v7443_v23 = vpop.f32.mrf.mxu1  ;;  %v7500_v16 = vadd.f32 %v7499_v11, %v16087_v19  ;;  %v11956_v11 = vld [vmem:[%s16869_s13 + $0x6b0] sm:$0xff] }
0x1756   : > { %v7444_v24 = vadd.f32 %v7443_v23, %v16042_v35  ;;  %v7530_v36 = vpop.f32.mrf.mxu0 }
0x1757   : > { %v7531_v37 = vadd.f32 %v7530_v36, %v16047_v20  ;;  %v7754_v20 = vmax.f32 %v7471_v30, 0.0  ;;  %v7755_v53 = vmax.f32 %v7500_v16, 0.0 }
0x1758   : > { %v7769_v15 = vmax.f32 %v7444_v24, 0.0  ;;  %v11964_v24 = vld [vmem:[%s16869_s13 + $0x6f0] sm:$0xff] }
0x1759   : > { %v7772_v26 = vmax.f32 %v7531_v37, 0.0 }
0x175a   : > { %v16242_v22 = vpack.c.bf16 %v7769_v15, %v7753_v59 }
0x175b   : > { %v7472_v62 = vpop.f32.mrf.mxu2  ;;  %v16245_v58 = vpack.c.bf16 %v7772_v26, %v7756_v57  ;;  %v11939_v57 = vld [vmem:[%s16869_s13 + $0x628] sm:$0xff] }
0x175c   : > { %v7473_v7 = vadd.f32 %v7472_v62, %v16070_v47  ;;  %v7501_v61 = vpop.f32.mrf.mxu3  ;;  %v16257_v47 = vperm.slane %v16039_v27, 7  ;;  %v11947_v27 = vld [vmem:[%s16869_s13 + $0x668] sm:$0xff] }
0x175d   : > { %v7502_v35 = vadd.f32 %v7501_v61, %v16087_v19  ;;  %v7542_v42 = vpop.f32.mrf.mxu1  ;;  %v11941_v19 = vld [vmem:[%s16869_s13 + $0x638] sm:$0xff]  ;;  %v11955_v26 = vld [vmem:[%s16869_s13 + $0x6a8] sm:$0xff]  ;;  %9134 = vmatpush.bf16.msra.mxu2 %v11947_v27  ;;  %v11952_v27 = vld [vmem:[%s16869_s13 + $0x690] sm:$0xff] }
0x175e   : > { %v7770_v2 = vmax.f32 %v7473_v7, 0.0  ;;  %v7629_v6 = vpop.f32.mrf.mxu0  ;;  %9103 = vmatpush.bf16.msra.mxu1 %v11941_v19  ;;  %v11963_v62 = vld [vmem:[%s16869_s13 + $0x6e8] sm:$0xff] }
0x175f   : > { %v7771_v8 = vmax.f32 %v7502_v35, 0.0  ;;  %v7630_v0 = vadd.f32 %v7629_v6, %v16257_v47 }
0x1760   : > { %8995 = vmatmul.bf16.vlgmr.msrb.gmra.mxu1 %v15878_v32  ;;  %9024 = vmatmul.bf16.vlgmr.msrb.gmra.mxu2 %v15900_v43  ;;  %v16254_v51 = vpack.c.bf16 %v7770_v2, %v7754_v20  ;;  %v11957_v32 = vld [vmem:[%s16869_s13 + $0x6b8] sm:$0xff] }
0x1761   : > { %9053 = vmatmul.bf16.vlgmr.msra.gmra.mxu3 %v15906_v49  ;;  %9082 = vmatmul.bf16.vlgmr.msrb.gmra.mxu0 %v15884_v45  ;;  %v16270_v43 = vpack.c.bf16 %v7771_v8, %v7755_v53  ;;  %v11965_v49 = vld [vmem:[%s16869_s13 + $0x6f8] sm:$0xff]  ;;  %v7543_v45 = vadd.f32 %v7542_v42, %v16250_v25  ;;  %v7664_v59 = vmax.f32 %v7630_v0, 0.0 }
0x1762   : > { %9161 = vmatpush.bf16.msrb.mxu3 %v11957_v32  ;;  %9190 = vmatpush.bf16.msra.mxu0 %v11965_v49  ;;  %v11946_v32 = vld [vmem:[%s16869_s13 + $0x660] sm:$0xff] }
0x1763   : > { %v7571_v38 = vpop.f32.mrf.mxu2  ;;  %v7661_v36 = vmax.f32 %v7543_v45, 0.0  ;;  %9104 = vmatpush.bf16.msra.mxu1 %v11940_v33  ;;  %v11954_v45 = vld [vmem:[%s16869_s13 + $0x6a0] sm:$0xff]  ;;  %9135 = vmatpush.bf16.msra.mxu2 %v11946_v32  ;;  %v11945_v33 = vld [vmem:[%s16869_s13 + $0x658] sm:$0xff] }
0x1764   : > { %v7600_v60 = vpop.f32.mrf.mxu3  ;;  %v7572_v30 = vadd.f32 %v7571_v38, %v16278_v14 }
0x1765   : > { %v7544_v46 = vpop.f32.mrf.mxu1  ;;  %v7601_v7 = vadd.f32 %v7600_v60, %v16291_v12  ;;  %v11962_v60 = vld [vmem:[%s16869_s13 + $0x6e0] sm:$0xff] }
0x1766   : > { %v7545_v54 = vadd.f32 %v7544_v46, %v16250_v25  ;;  %v7631_v56 = vpop.f32.mrf.mxu0  ;;  %9162 = vmatpush.bf16.msrb.mxu3 %v11956_v11  ;;  %9191 = vmatpush.bf16.msra.mxu0 %v11964_v24  ;;  %v7662_v53 = vmax.f32 %v7572_v30, 0.0 }
0x1767   : > { %v7632_v23 = vadd.f32 %v7631_v56, %v16257_v47  ;;  %9105 = vmatpush.bf16.msra.mxu1 %v11939_v57  ;;  %v7663_v49 = vmax.f32 %v7601_v7, 0.0  ;;  %v11937_v56 = vld [vmem:[%s16869_s13 + $0x618] sm:$0xff]  ;;  %9136 = vmatpush.bf16.msra.mxu2 %v11945_v33 }
0x1768   : > { %v7677_v37 = vmax.f32 %v7545_v54, 0.0  ;;  %v17001_v54 = vld [vmem:[#allocation24_spill] sm:$0xff] }
0x1769   : > { %v7680_v15 = vmax.f32 %v7632_v23, 0.0 }
0x176a   : > { %v16307_v16 = vpack.c.bf16 %v7677_v37, %v7661_v36  ;;  %9163 = vmatpush.bf16.msrb.mxu3 %v11955_v26  ;;  %9192 = vmatpush.bf16.msra.mxu0 %v11963_v62  ;;  %v11960_v26 = vld [vmem:[%s16869_s13 + $0x6d0] sm:$0xff] }
0x176b   : > { %v16313_v61 = vpack.c.bf16 %v7680_v15, %v7664_v59  ;;  %v7573_v35 = vpop.f32.mrf.mxu2  ;;  %9106 = vmatpush.bf16.msra.mxu1 %v11938_v48  ;;  %v11936_v59 = vld [vmem:[%s16869_s13 + $0x610] sm:$0xff]  ;;  %v11959_v48 = vld [vmem:[%s16869_s13 + $0x6c8] sm:$0xff] }
0x176c   : > { %v7574_v42 = vadd.f32 %v7573_v35, %v16278_v14  ;;  %v7602_v20 = vpop.f32.mrf.mxu3  ;;  %v11944_v15 = vld [vmem:[%s16869_s13 + $0x650] sm:$0xff] }
0x176d   : > { %v7603_v2 = vadd.f32 %v7602_v20, %v16291_v12  ;;  %v7547_v6 = vpop.f32.mrf.mxu1  ;;  %9137 = vmatpush.bf16.msra.mxu2 %v11944_v15  ;;  %v11935_v20 = vld [vmem:[%s16869_s13 + $0x608] sm:$0xff] }
0x176e   : > { %v7678_v8 = vmax.f32 %v7574_v42, 0.0  ;;  %v7634_v19 = vpop.f32.mrf.mxu0  ;;  %9164 = vmatpush.bf16.msrb.mxu3 %v11954_v45  ;;  %9193 = vmatpush.bf16.msra.mxu0 %v11962_v60 }
0x176f   : > { %v7679_v38 = vmax.f32 %v7603_v2, 0.0  ;;  %v7635_v23 = vadd.f32 %v7634_v19, %v16257_v47  ;;  %9107 = vmatpush.bf16.msra.mxu1 %v11937_v56  ;;  %v11943_v2 = vld [vmem:[%s16869_s13 + $0x648] sm:$0xff] }
0x1770   : > { %v16329_v0 = vpack.c.bf16 %v7678_v8, %v7662_v53  ;;  %9000 = vmatmul.bf16.gmra.mxu1 %v15947_v17  ;;  %9029 = vmatmul.bf16.gmra.mxu2 %v15976_v28  ;;  %v11953_v17 = vld [vmem:[%s16869_s13 + $0x698] sm:$0xff]  ;;  %v11951_v19 = vld [vmem:[%s16869_s13 + $0x688] sm:$0xff] }
0x1771   : > { %v16333_v46 = vpack.c.bf16 %v7679_v38, %v7663_v49  ;;  %9058 = vmatmul.bf16.gmra.mxu3 %v15982_v5  ;;  %9087 = vmatmul.bf16.gmra.mxu0 %v17001_v54  ;;  %v11961_v28 = vld [vmem:[%s16869_s13 + $0x6d8] sm:$0xff]  ;;  %v7548_v5 = vadd.f32 %v7547_v6, %v16250_v25  ;;  %v7696_v7 = vmax.f32 %v7635_v23, 0.0  ;;  %v11958_v23 = vld [vmem:[%s16869_s13 + $0x6c0] sm:$0xff] }
0x1772   : > { %9165 = vmatpush.bf16.msrb.mxu3 %v11953_v17  ;;  %9194 = vmatpush.bf16.msra.mxu0 %v11961_v28  ;;  %v11942_v17 = vld [vmem:[%s16869_s13 + $0x640] sm:$0xff] }
0x1773   : > { %v7576_v41 = vpop.f32.mrf.mxu2  ;;  %v7693_v30 = vmax.f32 %v7548_v5, 0.0  ;;  %9108 = vmatpush.bf16.msra.mxu1 %v11936_v59  ;;  %9138 = vmatpush.bf16.msra.mxu2 %v11943_v2 }
0x1774   : > { %v7605_v11 = vpop.f32.mrf.mxu3  ;;  %v7577_v42 = vadd.f32 %v7576_v41, %v16278_v14  ;;  %v11934_v41 = vld [vmem:[%s16869_s13 + $0x600] sm:$0xff] }
0x1775   : > { %v7549_v24 = vpop.f32.mrf.mxu1  ;;  %v7606_v53 = vadd.f32 %v7605_v11, %v16291_v12  ;;  %v11950_v11 = vld [vmem:[%s16869_s13 + $0x680] sm:$0xff] }
0x1776   : > { %v7550_v36 = vadd.f32 %v7549_v24, %v16250_v25  ;;  %v7636_v37 = vpop.f32.mrf.mxu0  ;;  %9166 = vmatpush.bf16.msrb.mxu3 %v11952_v27  ;;  %9195 = vmatpush.bf16.msra.mxu0 %v11960_v26  ;;  %v7694_v54 = vmax.f32 %v7577_v42, 0.0 }
0x1777   : > { %v7637_v57 = vadd.f32 %v7636_v37, %v16257_v47  ;;  %9109 = vmatpush.bf16.msra.mxu1 %v11935_v20  ;;  %v7695_v28 = vmax.f32 %v7606_v53, 0.0  ;;  %v17003_v37 = vld [vmem:[#allocation28_spill] sm:$0xff]  ;;  %9139 = vmatpush.bf16.msra.mxu2 %v11942_v17 }
0x1778   : > { %v7709_v62 = vmax.f32 %v7550_v36, 0.0  ;;  %v17002_v36 = vld [vmem:[#allocation29_spill] sm:$0xff] }
0x1779   : > { %v7712_v35 = vmax.f32 %v7637_v57, 0.0 }
0x177a   : > { %v16372_v6 = vpack.c.bf16 %v7709_v62, %v7693_v30  ;;  %9167 = vmatpush.bf16.msrb.mxu3 %v11951_v19  ;;  %9196 = vmatpush.bf16.msra.mxu0 %v11959_v48 }
0x177b   : > { %v7578_v8 = vpop.f32.mrf.mxu2  ;;  %v16381_v32 = vpack.c.bf16 %v7712_v35, %v7696_v7  ;;  %9110 = vmatpush.bf16.msra.mxu1 %v11934_v41 }
0x177c   : > { %v7579_v49 = vadd.f32 %v7578_v8, %v16278_v14  ;;  %v7607_v38 = vpop.f32.mrf.mxu3 }
0x177d   : > { %v7608_v45 = vadd.f32 %v7607_v38, %v16291_v12  ;;  %v7552_v60 = vpop.f32.mrf.mxu1 }
0x177e   : > { %v7710_v56 = vmax.f32 %v7579_v49, 0.0  ;;  %v7639_v33 = vpop.f32.mrf.mxu0  ;;  %9168 = vmatpush.bf16.msrb.mxu3 %v11950_v11  ;;  %9197 = vmatpush.bf16.msra.mxu0 %v11958_v23  ;;  %v7553_v57 = vadd.f32 %v7552_v60, %v16250_v25 }
0x177f   : > { %v7711_v5 = vmax.f32 %v7608_v45, 0.0 }
0x1780   : > { %9005 = vmatmul.bf16.gmra.mxu1 %v15989_v44  ;;  %9034 = vmatmul.bf16.gmra.mxu2 %v16000_v9  ;;  %v16399_v24 = vpack.c.bf16 %v7710_v56, %v7694_v54  ;;  %v7640_v44 = vadd.f32 %v7639_v33, %v16257_v47  ;;  %v7725_v7 = vmax.f32 %v7553_v57, 0.0 }
0x1781   : > { %9063 = vmatmul.bf16.gmra.mxu3 %v17002_v36  ;;  %9092 = vmatmul.bf16.gmra.mxu0 %v17003_v37  ;;  %v16403_v59 = vpack.c.bf16 %v7711_v5, %v7695_v28 }
0x1782   : > { %v7728_v42 = vmax.f32 %v7640_v44, 0.0 }
0x1783   : > { %v7581_v15 = vpop.f32.mrf.mxu2 }
0x1784   : > { %v7610_v27 = vpop.f32.mrf.mxu3  ;;  %v7582_v2 = vadd.f32 %v7581_v15, %v16278_v14 }
0x1785   : > { %v7554_v26 = vpop.f32.mrf.mxu1  ;;  %v7611_v8 = vadd.f32 %v7610_v27, %v16291_v12 }
0x1786   : > { %v7555_v9 = vadd.f32 %v7554_v26, %v16250_v25  ;;  %v7641_v30 = vpop.f32.mrf.mxu0  ;;  %v7726_v54 = vmax.f32 %v7582_v2, 0.0 }
0x1787   : > { %v7642_v62 = vadd.f32 %v7641_v30, %v16257_v47  ;;  %v7727_v41 = vmax.f32 %v7611_v8, 0.0  ;;  %v16440_v8 = vld [vmem:[%s16870_s14 + $0x1] ss:$0 sm:$0xff] }
0x1788   : > { %v7741_v35 = vmax.f32 %v7555_v9, 0.0 }
0x1789   : > { %v7744_v20 = vmax.f32 %v7642_v62, 0.0 }
0x178a   : > { %v16410_v53 = vpack.c.bf16 %v7741_v35, %v7725_v7 }
0x178b   : > { %v7583_v19 = vpop.f32.mrf.mxu2  ;;  %v16413_v48 = vpack.c.bf16 %v7744_v20, %v7728_v42 }
0x178c   : > { %v7584_v49 = vadd.f32 %v7583_v19, %v16278_v14  ;;  %v7612_v38 = vpop.f32.mrf.mxu3 }
0x178d   : > { %v7613_v45 = vadd.f32 %v7612_v38, %v16291_v12  ;;  %v7557_v60 = vpop.f32.mrf.mxu1 }
0x178e   : > { %v7742_v56 = vmax.f32 %v7584_v49, 0.0  ;;  %v7644_v33 = vpop.f32.mrf.mxu0  ;;  %v7558_v23 = vadd.f32 %v7557_v60, %v16250_v25 }
0x178f   : > { %v7743_v17 = vmax.f32 %v7613_v45, 0.0  ;;  %v7645_v37 = vadd.f32 %v7644_v33, %v16257_v47 }
0x1790   : > { %9010 = vmatmul.bf16.gmra.mxu1 %v16029_v39  ;;  %9039 = vmatmul.bf16.gmra.mxu2 %v16044_v34  ;;  %v16419_v28 = vpack.c.bf16 %v7742_v56, %v7726_v54  ;;  %v7757_v27 = vmax.f32 %v7558_v23, 0.0  ;;  %v11980_v23 = vld [vmem:[%s16869_s13 + $0x770] sm:$0xff] }
0x1791   : > { %9068 = vmatmul.bf16.gmra.mxu3 %v16058_v31  ;;  %9097 = vmatmul.bf16.gmra.mxu0 %v16032_v29  ;;  %v16423_v5 = vpack.c.bf16 %v7743_v17, %v7727_v41  ;;  %v7760_v26 = vmax.f32 %v7645_v37, 0.0  ;;  %v11996_v37 = vld [vmem:[%s16869_s13 + $0x7f0] sm:$0xff] }
0x1793   : > { %v7586_v11 = vpop.f32.mrf.mxu2 }
0x1794   : > { %v7615_v36 = vpop.f32.mrf.mxu3  ;;  %v7587_v29 = vadd.f32 %v7586_v11, %v16278_v14  ;;  %v11972_v11 = vld [vmem:[%s16869_s13 + $0x730] sm:$0xff] }
0x1795   : > { %v7559_v15 = vpop.f32.mrf.mxu1  ;;  %v7616_v30 = vadd.f32 %v7615_v36, %v16291_v12  ;;  %v11988_v36 = vld [vmem:[%s16869_s13 + $0x7b0] sm:$0xff] }
0x1796   : > { %v7560_v57 = vadd.f32 %v7559_v15, %v16250_v25  ;;  %v7646_v39 = vpop.f32.mrf.mxu0  ;;  %v11971_v15 = vld [vmem:[%s16869_s13 + $0x728] sm:$0xff] }
0x1797   : > { %v7647_v34 = vadd.f32 %v7646_v39, %v16257_v47  ;;  %v7758_v47 = vmax.f32 %v7587_v29, 0.0  ;;  %v7759_v49 = vmax.f32 %v7616_v30, 0.0 }
0x1798   : > { %v7773_v44 = vmax.f32 %v7560_v57, 0.0  ;;  %v11979_v57 = vld [vmem:[%s16869_s13 + $0x768] sm:$0xff] }
0x1799   : > { %v7776_v31 = vmax.f32 %v7647_v34, 0.0  ;;  %v11987_v34 = vld [vmem:[%s16869_s13 + $0x7a8] sm:$0xff] }
0x179a   : > { %v16430_v9 = vpack.c.bf16 %v7773_v44, %v7757_v27  ;;  %v11995_v27 = vld [vmem:[%s16869_s13 + $0x7e8] sm:$0xff] }
0x179b   : > { %v7588_v62 = vpop.f32.mrf.mxu2  ;;  %v16433_v7 = vpack.c.bf16 %v7776_v31, %v7760_v26 }
0x179c   : > { %v7589_v35 = vadd.f32 %v7588_v62, %v16278_v14  ;;  %v7617_v42 = vpop.f32.mrf.mxu3  ;;  %v11973_v14 = vld [vmem:[%s16869_s13 + $0x738] sm:$0xff] }
0x179d   : > { %v7618_v25 = vadd.f32 %v7617_v42, %v16291_v12  ;;  %v8880_v20 = vpop.f32.mrf.mxu1  ;;  %v11981_v12 = vld [vmem:[%s16869_s13 + $0x778] sm:$0xff]  ;;  %9219 = vmatpush.bf16.msrb.mxu1 %v11973_v14  ;;  %v11970_v42 = vld [vmem:[%s16869_s13 + $0x720] sm:$0xff] }
0x179e   : > { %v7774_v2 = vmax.f32 %v7589_v35, 0.0  ;;  %v8967_v19 = vpop.f32.mrf.mxu0  ;;  %9248 = vmatpush.bf16.msrb.mxu2 %v11981_v12 }
0x179f   : > { %v7775_v38 = vmax.f32 %v7618_v25, 0.0  ;;  %v11978_v25 = vld [vmem:[%s16869_s13 + $0x760] sm:$0xff] }
0x17a0   : > { %9111 = vmatmul.bf16.vlgmr.msra.gmra.mxu1 %v16111_v40  ;;  %9140 = vmatmul.bf16.vlgmr.msra.gmra.mxu2 %v16133_v63  ;;  %v16444_v45 = vpack.c.bf16 %v7774_v2, %v7758_v47  ;;  %v11989_v40 = vld [vmem:[%s16869_s13 + $0x7b8] sm:$0xff]  ;;  %v8881_v63 = vadd.f32 %v16440_v8, %v8880_v20  ;;  %v11986_v20 = vld [vmem:[%s16869_s13 + $0x7a0] sm:$0xff] }
0x17a1   : > { %9169 = vmatmul.bf16.vlgmr.msrb.gmra.mxu3 %v16135_v1  ;;  %9198 = vmatmul.bf16.vlgmr.msra.gmra.mxu0 %v16117_v13  ;;  %v16457_v60 = vpack.c.bf16 %v7775_v38, %v7759_v49  ;;  %v11997_v13 = vld [vmem:[%s16869_s13 + $0x7f8] sm:$0xff]  ;;  %v11994_v47 = vld [vmem:[%s16869_s13 + $0x7e0] sm:$0xff] }
0x17a2   : > { %9277 = vmatpush.bf16.msra.mxu3 %v11989_v40  ;;  %9306 = vmatpush.bf16.msrb.mxu0 %v11997_v13  ;;  %v11969_v49 = vld [vmem:[%s16869_s13 + $0x718] sm:$0xff]  ;;  %v11968_v13 = vld [vmem:[%s16869_s13 + $0x710] sm:$0xff] }
0x17a3   : > { %v8909_v1 = vpop.f32.mrf.mxu2  ;;  %9220 = vmatpush.bf16.msrb.mxu1 %v11972_v11  ;;  %9249 = vmatpush.bf16.msrb.mxu2 %v11980_v23  ;;  %v11975_v11 = vld [vmem:[%s16869_s13 + $0x748] sm:$0xff] }
0x17a4   : > { %v8910_v54 = vadd.f32 %v8909_v1, %v8881_v63  ;;  %v8938_v56 = vpop.f32.mrf.mxu3  ;;  %v11976_v1 = vld [vmem:[%s16869_s13 + $0x750] sm:$0xff] }
0x17a5   : > { %v8882_v33 = vpop.f32.mrf.mxu1 }
0x17a6   : > { %v8939_v41 = vadd.f32 %v8938_v56, %v8910_v54  ;;  %v8969_v17 = vpop.f32.mrf.mxu0  ;;  %9278 = vmatpush.bf16.msra.mxu3 %v11988_v36  ;;  %9307 = vmatpush.bf16.msrb.mxu0 %v11996_v37  ;;  %v8883_v44 = vadd.f32 %v16440_v8, %v8882_v33  ;;  %v11984_v54 = vld [vmem:[%s16869_s13 + $0x790] sm:$0xff]  ;;  %v11983_v36 = vld [vmem:[%s16869_s13 + $0x788] sm:$0xff] }
0x17a7   : > { %9221 = vmatpush.bf16.msrb.mxu1 %v11971_v15  ;;  %9250 = vmatpush.bf16.msrb.mxu2 %v11979_v57  ;;  %v11992_v56 = vld [vmem:[%s16869_s13 + $0x7d0] sm:$0xff]  ;;  %v11991_v37 = vld [vmem:[%s16869_s13 + $0x7c8] sm:$0xff] }
0x17a8   : > { %v16481_v39 = vadd.f32 %v8967_v19, %v8939_v41 }
0x17aa   : > { %9279 = vmatpush.bf16.msra.mxu3 %v11987_v34  ;;  %9308 = vmatpush.bf16.msrb.mxu0 %v11995_v27 }
0x17ab   : > { %v8911_v26 = vpop.f32.mrf.mxu2  ;;  %9222 = vmatpush.bf16.msrb.mxu1 %v11970_v42  ;;  %9251 = vmatpush.bf16.msrb.mxu2 %v11978_v25 }
0x17ac   : > { %v8912_v31 = vadd.f32 %v8911_v26, %v8883_v44  ;;  %v8940_v29 = vpop.f32.mrf.mxu3  ;;  %v11966_v26 = vld [vmem:[%s16869_s13 + $0x700] sm:$0xff] }
0x17ad   : > { %v8885_v30 = vpop.f32.mrf.mxu1 }
0x17ae   : > { %v8941_v62 = vadd.f32 %v8940_v29, %v8912_v31  ;;  %v8972_v35 = vpop.f32.mrf.mxu0  ;;  %v8886_v19 = vadd.f32 %v16440_v8, %v8885_v30  ;;  %9280 = vmatpush.bf16.msra.mxu3 %v11986_v20  ;;  %9309 = vmatpush.bf16.msrb.mxu0 %v11994_v47  ;;  %v11974_v31 = vld [vmem:[%s16869_s13 + $0x740] sm:$0xff] }
0x17af   : > { %9223 = vmatpush.bf16.msrb.mxu1 %v11969_v49  ;;  %v11982_v29 = vld [vmem:[%s16869_s13 + $0x780] sm:$0xff] }
0x17b0   : > { %9116 = vmatmul.bf16.gmra.mxu1 %v16188_v55  ;;  %9145 = vmatmul.bf16.gmra.mxu2 %v16213_v21  ;;  %v16504_v2 = vadd.f32 %v8969_v17, %v8941_v62  ;;  %v11977_v55 = vld [vmem:[%s16869_s13 + $0x758] sm:$0xff]  ;;  %v11967_v17 = vld [vmem:[%s16869_s13 + $0x708] sm:$0xff]  ;;  %v11990_v30 = vld [vmem:[%s16869_s13 + $0x7c0] sm:$0xff] }
0x17b1   : > { %9174 = vmatmul.bf16.gmra.mxu3 %v16215_v52  ;;  %9203 = vmatmul.bf16.gmra.mxu0 %v16197_v4  ;;  %v11985_v21 = vld [vmem:[%s16869_s13 + $0x798] sm:$0xff] }
0x17b2   : > { %v11993_v4 = vld [vmem:[%s16869_s13 + $0x7d8] sm:$0xff]  ;;  %9252 = vmatpush.bf16.msrb.mxu2 %v11977_v55  ;;  %9281 = vmatpush.bf16.msra.mxu3 %v11985_v21 }
0x17b3   : > { %v8914_v38 = vpop.f32.mrf.mxu2  ;;  %9310 = vmatpush.bf16.msrb.mxu0 %v11993_v4  ;;  %9224 = vmatpush.bf16.msrb.mxu1 %v11968_v13 }
0x17b4   : > { %v8915_v52 = vadd.f32 %v8914_v38, %v8886_v19  ;;  %v8943_v14 = vpop.f32.mrf.mxu3 }
0x17b5   : > { %v8887_v12 = vpop.f32.mrf.mxu1 }
0x17b6   : > { %v8944_v40 = vadd.f32 %v8943_v14, %v8915_v52  ;;  %v8974_v63 = vpop.f32.mrf.mxu0  ;;  %v8888_v41 = vadd.f32 %v16440_v8, %v8887_v12  ;;  %9253 = vmatpush.bf16.msrb.mxu2 %v11976_v1  ;;  %9282 = vmatpush.bf16.msra.mxu3 %v11984_v54 }
0x17b7   : > { %9311 = vmatpush.bf16.msrb.mxu0 %v11992_v56  ;;  %9225 = vmatpush.bf16.msrb.mxu1 %v11967_v17 }
0x17b8   : > { %v16533_v33 = vadd.f32 %v8972_v35, %v8944_v40 }
0x17ba   : > { %9254 = vmatpush.bf16.msrb.mxu2 %v11975_v11  ;;  %9283 = vmatpush.bf16.msra.mxu3 %v11983_v36 }
0x17bb   : > { %v8916_v23 = vpop.f32.mrf.mxu2  ;;  %9312 = vmatpush.bf16.msrb.mxu0 %v11991_v37  ;;  %9226 = vmatpush.bf16.msrb.mxu1 %v11966_v26 }
0x17bc   : > { %v8917_v15 = vadd.f32 %v8916_v23, %v8888_v41  ;;  %v8945_v57 = vpop.f32.mrf.mxu3 }
0x17bd   : > { %v8890_v34 = vpop.f32.mrf.mxu1 }
0x17be   : > { %v8946_v27 = vadd.f32 %v8945_v57, %v8917_v15  ;;  %v8977_v44 = vpop.f32.mrf.mxu0  ;;  %v8891_v35 = vadd.f32 %v16440_v8, %v8890_v34  ;;  %9255 = vmatpush.bf16.msrb.mxu2 %v11974_v31  ;;  %9284 = vmatpush.bf16.msra.mxu3 %v11982_v29 }
0x17bf   : > { %9313 = vmatpush.bf16.msrb.mxu0 %v11990_v30 }
0x17c0   : > { %9121 = vmatmul.bf16.gmra.mxu1 %v16222_v10  ;;  %9150 = vmatmul.bf16.gmra.mxu2 %v16231_v50  ;;  %v16562_v62 = vadd.f32 %v8974_v63, %v8946_v27 }
0x17c1   : > { %9179 = vmatmul.bf16.gmra.mxu3 %v16235_v3  ;;  %9208 = vmatmul.bf16.gmra.mxu0 %v16225_v18 }
0x17c3   : > { %v8919_v42 = vpop.f32.mrf.mxu2 }
0x17c4   : > { %v8920_v25 = vadd.f32 %v8919_v42, %v8891_v35  ;;  %v8948_v20 = vpop.f32.mrf.mxu3 }
0x17c5   : > { %v8892_v47 = vpop.f32.mrf.mxu1 }
0x17c6   : > { %v8949_v19 = vadd.f32 %v8948_v20, %v8920_v25  ;;  %v8979_v10 = vpop.f32.mrf.mxu0  ;;  %v8893_v50 = vadd.f32 %v16440_v8, %v8892_v47 }
0x17c8   : > { %v16567_v49 = vadd.f32 %v8977_v44, %v8949_v19 }
0x17cb   : > { %v8921_v55 = vpop.f32.mrf.mxu2 }
0x17cc   : > { %v8922_v3 = vadd.f32 %v8921_v55, %v8893_v50  ;;  %v8950_v38 = vpop.f32.mrf.mxu3 }
0x17cd   : > { %v8895_v18 = vpop.f32.mrf.mxu1 }
0x17ce   : > { %v8951_v21 = vadd.f32 %v8950_v38, %v8922_v3  ;;  %v8982_v4 = vpop.f32.mrf.mxu0  ;;  %v8896_v14 = vadd.f32 %v16440_v8, %v8895_v18 }
0x17d0   : > { %9126 = vmatmul.bf16.gmra.mxu1 %v16242_v22  ;;  %9155 = vmatmul.bf16.gmra.mxu2 %v16254_v51  ;;  %v16572_v52 = vadd.f32 %v8979_v10, %v8951_v21 }
0x17d1   : > { %9184 = vmatmul.bf16.gmra.mxu3 %v16270_v43  ;;  %9213 = vmatmul.bf16.gmra.mxu0 %v16245_v58 }
0x17d3   : > { %v8924_v12 = vpop.f32.mrf.mxu2 }
0x17d4   : > { %v8925_v40 = vadd.f32 %v8924_v12, %v8896_v14  ;;  %v8953_v63 = vpop.f32.mrf.mxu3 }
0x17d5   : > { %v8897_v13 = vpop.f32.mrf.mxu1 }
0x17d6   : > { %v8954_v1 = vadd.f32 %v8953_v63, %v8925_v40  ;;  %v8984_v54 = vpop.f32.mrf.mxu0  ;;  %v8898_v22 = vadd.f32 %v16440_v8, %v8897_v13 }
0x17d8   : > { %v16577_v56 = vadd.f32 %v8982_v4, %v8954_v1 }
0x17db   : > { %v8926_v41 = vpop.f32.mrf.mxu2 }
0x17dc   : > { %v8927_v51 = vadd.f32 %v8926_v41, %v8898_v22  ;;  %v8955_v17 = vpop.f32.mrf.mxu3 }
0x17dd   : > { %v8996_v11 = vpop.f32.mrf.mxu1 }
0x17de   : > { %v8956_v23 = vadd.f32 %v8955_v17, %v8927_v51  ;;  %v8997_v43 = vadd.f32 %v8996_v11, %v16481_v39  ;;  %v9083_v58 = vpop.f32.mrf.mxu0 }
0x17e0   : > { %9227 = vmatmul.bf16.vlgmr.msrb.gmra.mxu1 %v16307_v16  ;;  %9256 = vmatmul.bf16.vlgmr.msrb.gmra.mxu2 %v16329_v0  ;;  %v16583_v36 = vadd.f32 %v8984_v54, %v8956_v23 }
0x17e1   : > { %9285 = vmatmul.bf16.vlgmr.msra.gmra.mxu3 %v16333_v46  ;;  %9314 = vmatmul.bf16.vlgmr.msrb.gmra.mxu0 %v16313_v61 }
0x17e3   : > { %v9025_v37 = vpop.f32.mrf.mxu2 }
0x17e4   : > { %v9026_v8 = vadd.f32 %v9025_v37, %v8997_v43  ;;  %v9054_v15 = vpop.f32.mrf.mxu3 }
0x17e5   : > { %v8998_v57 = vpop.f32.mrf.mxu1 }
0x17e6   : > { %v9055_v34 = vadd.f32 %v9054_v15, %v9026_v8  ;;  %v8999_v27 = vadd.f32 %v8998_v57, %v16504_v2  ;;  %v9085_v44 = vpop.f32.mrf.mxu0 }
0x17e8   : > { %v16588_v39 = vadd.f32 %v9083_v58, %v9055_v34 }
0x17eb   : > { %v9027_v26 = vpop.f32.mrf.mxu2 }
0x17ec   : > { %v9028_v16 = vadd.f32 %v9027_v26, %v8999_v27  ;;  %v9056_v31 = vpop.f32.mrf.mxu3 }
0x17ed   : > { %v9001_v0 = vpop.f32.mrf.mxu1 }
0x17ee   : > { %v9057_v29 = vadd.f32 %v9056_v31, %v9028_v16  ;;  %v9002_v30 = vadd.f32 %v9001_v0, %v16533_v33  ;;  %v9088_v46 = vpop.f32.mrf.mxu0 }
0x17f0   : > { %9232 = vmatmul.bf16.gmra.mxu1 %v16372_v6  ;;  %9261 = vmatmul.bf16.gmra.mxu2 %v16399_v24  ;;  %v16593_v61 = vadd.f32 %v9085_v44, %v9057_v29 }
0x17f1   : > { %9290 = vmatmul.bf16.gmra.mxu3 %v16403_v59  ;;  %9319 = vmatmul.bf16.gmra.mxu0 %v16381_v32 }
0x17f3   : > { %v9030_v2 = vpop.f32.mrf.mxu2 }
0x17f4   : > { %v9031_v35 = vadd.f32 %v9030_v2, %v9002_v30  ;;  %v9059_v42 = vpop.f32.mrf.mxu3 }
0x17f5   : > { %v9003_v25 = vpop.f32.mrf.mxu1 }
0x17f6   : > { %v9060_v20 = vadd.f32 %v9059_v42, %v9031_v35  ;;  %v9004_v47 = vadd.f32 %v9003_v25, %v16562_v62  ;;  %v9090_v19 = vpop.f32.mrf.mxu0 }
0x17f8   : > { %v16598_v33 = vadd.f32 %v9088_v46, %v9060_v20 }
0x17fb   : > { %v9032_v10 = vpop.f32.mrf.mxu2 }
0x17fc   : > { %v9033_v6 = vadd.f32 %v9032_v10, %v9004_v47  ;;  %v9061_v50 = vpop.f32.mrf.mxu3 }
0x17fd   : > { %v9006_v24 = vpop.f32.mrf.mxu1 }
0x17fe   : > { %v9062_v55 = vadd.f32 %v9061_v50, %v9033_v6  ;;  %v9007_v3 = vadd.f32 %v9006_v24, %v16567_v49  ;;  %v9093_v59 = vpop.f32.mrf.mxu0 }
0x1800   : > { %9237 = vmatmul.bf16.gmra.mxu1 %v16410_v53  ;;  %9266 = vmatmul.bf16.gmra.mxu2 %v16419_v28  ;;  %v16603_v32 = vadd.f32 %v9090_v19, %v9062_v55 }
0x1801   : > { %9295 = vmatmul.bf16.gmra.mxu3 %v16423_v5  ;;  %9324 = vmatmul.bf16.gmra.mxu0 %v16413_v48 }
0x1803   : > { %v9035_v62 = vpop.f32.mrf.mxu2 }
0x1804   : > { %v9036_v38 = vadd.f32 %v9035_v62, %v9007_v3  ;;  %v9064_v18 = vpop.f32.mrf.mxu3 }
0x1805   : > { %v9008_v21 = vpop.f32.mrf.mxu1 }
0x1806   : > { %v9065_v4 = vadd.f32 %v9064_v18, %v9036_v38  ;;  %v9009_v14 = vadd.f32 %v9008_v21, %v16572_v52  ;;  %v9095_v12 = vpop.f32.mrf.mxu0 }
0x1808   : > { %v16608_v49 = vadd.f32 %v9093_v59, %v9065_v4 }
0x180b   : > { %v9037_v40 = vpop.f32.mrf.mxu2 }
0x180c   : > { %v9038_v53 = vadd.f32 %v9037_v40, %v9009_v14  ;;  %v9066_v63 = vpop.f32.mrf.mxu3 }
0x180d   : > { %v9011_v28 = vpop.f32.mrf.mxu1 }
0x180e   : > { %v9067_v13 = vadd.f32 %v9066_v63, %v9038_v53  ;;  %v9012_v1 = vadd.f32 %v9011_v28, %v16577_v56  ;;  %v9098_v5 = vpop.f32.mrf.mxu0 }
0x1810   : > { %9242 = vmatmul.bf16.gmra.mxu1 %v16430_v9  ;;  %9271 = vmatmul.bf16.gmra.mxu2 %v16444_v45  ;;  %v16613_v48 = vadd.f32 %v9095_v12, %v9067_v13 }
0x1811   : > { %9300 = vmatmul.bf16.gmra.mxu3 %v16457_v60  ;;  %9329 = vmatmul.bf16.gmra.mxu0 %v16433_v7 }
0x1813   : > { %v9040_v52 = vpop.f32.mrf.mxu2 }
0x1814   : > { %v9041_v54 = vadd.f32 %v9040_v52, %v9012_v1  ;;  %v9069_v22 = vpop.f32.mrf.mxu3 }
0x1815   : > { %v9013_v41 = vpop.f32.mrf.mxu1 }
0x1816   : > { %v9070_v51 = vadd.f32 %v9069_v22, %v9041_v54  ;;  %v9014_v17 = vadd.f32 %v9013_v41, %v16583_v36  ;;  %v9100_v11 = vpop.f32.mrf.mxu0 }
0x1818   : > { %v16618_v56 = vadd.f32 %v9098_v5, %v9070_v51 }
0x181b   : > { %v9042_v23 = vpop.f32.mrf.mxu2 }
0x181c   : > { %v9043_v9 = vadd.f32 %v9042_v23, %v9014_v17  ;;  %v9071_v43 = vpop.f32.mrf.mxu3  ;;  %v17004_v23 = vld [vmem:[#allocation18_spill] sm:$0xff] }
0x181d   : > { %v9112_v45 = vpop.f32.mrf.mxu1 }
0x181e   : > { %v9072_v58 = vadd.f32 %v9071_v43, %v9043_v9  ;;  %v9199_v37 = vpop.f32.mrf.mxu0  ;;  %v9113_v3 = vadd.f32 %v9112_v45, %v16588_v39 }
0x1820   : > { %v16620_v8 = vadd.f32 %v9100_v11, %v9072_v58 }
0x1823   : > { %v9141_v60 = vpop.f32.mrf.mxu2 }
0x1824   : > { %v9170_v7 = vpop.f32.mrf.mxu3  ;;  %v9142_v62 = vadd.f32 %v9141_v60, %v9113_v3 }
0x1825   : > { %v9114_v15 = vpop.f32.mrf.mxu1 }
0x1826   : > { %v9201_v57 = vpop.f32.mrf.mxu0  ;;  %v9171_v18 = vadd.f32 %v9170_v7, %v9142_v62  ;;  %v9115_v14 = vadd.f32 %v9114_v15, %v16593_v61 }
0x1828   : > { %v9200_v53 = vadd.f32 %v9199_v37, %v9171_v18 }
0x182b   : > { %v9143_v34 = vpop.f32.mrf.mxu2 }
0x182c   : > { %v9172_v27 = vpop.f32.mrf.mxu3  ;;  %v9144_v40 = vadd.f32 %v9143_v34, %v9115_v14 }
0x182d   : > { %v9117_v44 = vpop.f32.mrf.mxu1 }
0x182e   : > { %v9204_v26 = vpop.f32.mrf.mxu0  ;;  %v9173_v13 = vadd.f32 %v9172_v27, %v9144_v40  ;;  %v9118_v52 = vadd.f32 %v9117_v44, %v16598_v33 }
0x1830   : > { %v9202_v17 = vadd.f32 %v9201_v57, %v9173_v13 }
0x1833   : > { %v9146_v36 = vpop.f32.mrf.mxu2 }
0x1834   : > { %v9175_v16 = vpop.f32.mrf.mxu3  ;;  %v9147_v41 = vadd.f32 %v9146_v36, %v9118_v52  ;;  %v17005_v36 = vld [vmem:[#allocation19_spill] sm:$0xff] }
0x1835   : > { %v9119_v31 = vpop.f32.mrf.mxu1 }
0x1836   : > { %v16622_v0 = vpop.f32.mrf.mxu0  ;;  %v9176_v43 = vadd.f32 %v9175_v16, %v9147_v41  ;;  %v9120_v33 = vadd.f32 %v9119_v31, %v16603_v32 }
0x1838   : > { %v9205_v57 = vadd.f32 %v9204_v26, %v9176_v43 }
0x183b   : > { %v9148_v29 = vpop.f32.mrf.mxu2 }
0x183c   : > { %v9177_v30 = vpop.f32.mrf.mxu3  ;;  %v9149_v34 = vadd.f32 %v9148_v29, %v9120_v33  ;;  %v17008_v33 = vld [vmem:[#allocation21_spill] sm:$0xff] }
0x183d   : > { %v9122_v46 = vpop.f32.mrf.mxu1 }
0x183e   : > { %v16624_v2 = vpop.f32.mrf.mxu0  ;;  %v9178_v16 = vadd.f32 %v9177_v30, %v9149_v34  ;;  %v9123_v32 = vadd.f32 %v9122_v46, %v16608_v49 }
0x1840   : > { %v9207_v26 = vadd.f32 %v16622_v0, %v9178_v16 }
0x1843   : > { %v9151_v35 = vpop.f32.mrf.mxu2 }
0x1844   : > { %v16626_v42 = vpop.f32.mrf.mxu3  ;;  %v9152_v29 = vadd.f32 %v9151_v35, %v9123_v32 }
0x1845   : > { %v16628_v25 = vpop.f32.mrf.mxu1 }
0x1846   : > { %v16630_v20 = vpop.f32.mrf.mxu0  ;;  %v9125_v49 = vadd.f32 %v16628_v25, %v16613_v48 }
0x184b   : > { %v16632_v47 = vpop.f32.mrf.mxu2 }
0x184c   : > { %v16634_v19 = vpop.f32.mrf.mxu3  ;;  %v9154_v0 = vadd.f32 %v16632_v47, %v9125_v49 }
0x184d   : > { %v16636_v10 = vpop.f32.mrf.mxu1 }
0x184e   : > { %v16638_v6 = vpop.f32.mrf.mxu0  ;;  %v9128_v25 = vadd.f32 %v16636_v10, %v16618_v56 }
0x1853   : > { %v16640_v50 = vpop.f32.mrf.mxu2 }
0x1854   : > { %v16642_v24 = vpop.f32.mrf.mxu3 }
0x1855   : > { %v16644_v55 = vpop.f32.mrf.mxu1 }
0x1856   : > { %v16647_v59 = vpop.f32.mrf.mxu0  ;;  %v9130_v10 = vadd.f32 %v16644_v55, %v16620_v8 }
0x185b   : > { %v16649_v38 = vpop.f32.mrf.mxu2 }
0x185c   : > { %v16651_v21 = vpop.f32.mrf.mxu3 }
0x185d   : > { %v9228_v4 = vpop.f32.mrf.mxu1 }
0x185e   : > { %v9315_v12 = vpop.f32.mrf.mxu0  ;;  %v9229_v63 = vadd.f32 %v9228_v4, %v9200_v53 }
0x1863   : > { %v9257_v28 = vpop.f32.mrf.mxu2 }
0x1864   : > { %v9258_v1 = vadd.f32 %v9257_v28, %v9229_v63  ;;  %v9286_v5 = vpop.f32.mrf.mxu3  ;;  %v17006_v28 = vld [vmem:[#allocation20_spill] sm:$0xff] }
0x1865   : > { %v9230_v39 = vpop.f32.mrf.mxu1 }
0x1866   : > { %v9287_v54 = vadd.f32 %v9286_v5, %v9258_v1  ;;  %v9317_v22 = vpop.f32.mrf.mxu0  ;;  %v9231_v11 = vadd.f32 %v9230_v39, %v9202_v17  ;;  %v9181_v1 = vadd.f32 %v16626_v42, %v9152_v29  ;;  %v17007_v17 = vld [vmem:[#allocation27_spill] sm:$0xff] }
0x1868   : > { %v9316_v51 = vadd.f32 %v9315_v12, %v9287_v54 }
0x186a   : > { %v16656_v9 = vadd.f32 %v9316_v51, %v17004_v23  ;;  %v9183_v23 = vadd.f32 %v16634_v19, %v9154_v0  ;;  %v17012_v0 = vld [vmem:[#allocation15_spill] sm:$0xff] }
0x186b   : > { %v9259_v61 = vpop.f32.mrf.mxu2 }
0x186c   : > { %v9260_v45 = vadd.f32 %v9259_v61, %v9231_v11  ;;  %v9288_v58 = vpop.f32.mrf.mxu3  ;;  %v9347_v37 = vsel %vm608_vm0, %v16656_v9, 0.0 }
0x186d   : > { %v9233_v60 = vpop.f32.mrf.mxu1  ;;  %9348 = vadd.xlane.f32.xlu2 %v9347_v37  ;;  %v9212_v37 = vadd.f32 %v16630_v20, %v9183_v23  ;;  %v9159_v20 = vadd.f32 %v16649_v38, %v9130_v10 }
0x186e   : > { %v9289_v7 = vadd.f32 %v9288_v58, %v9260_v45  ;;  %v9320_v15 = vpop.f32.mrf.mxu0  ;;  %v9234_v44 = vadd.f32 %v9233_v60, %v9205_v57 }
0x1870   : > { %v9318_v27 = vadd.f32 %v9317_v22, %v9289_v7  ;;  %v9210_v22 = vadd.f32 %v16624_v2, %v9181_v1  ;;  %v9157_v2 = vadd.f32 %v16640_v50, %v9128_v25 }
0x1872   : > { %v16662_v3 = vadd.f32 %v9318_v27, %v17005_v36  ;;  %v9186_v34 = vadd.f32 %v16642_v24, %v9157_v2 }
0x1873   : > { %v9262_v62 = vpop.f32.mrf.mxu2 }
0x1874   : > { %v9263_v18 = vadd.f32 %v9262_v62, %v9234_v44  ;;  %v9291_v4 = vpop.f32.mrf.mxu3  ;;  %v9350_v14 = vsel %vm608_vm0, %v16662_v3, 0.0  ;;  %v9215_v62 = vadd.f32 %v16638_v6, %v9186_v34 }
0x1875   : > { %v9235_v12 = vpop.f32.mrf.mxu1  ;;  %9351 = vadd.xlane.f32.xlu0 %v9350_v14  ;;  %v9188_v14 = vadd.f32 %v16651_v21, %v9159_v20 }
0x1876   : > { %v9292_v31 = vadd.f32 %v9291_v4, %v9263_v18  ;;  %v9322_v40 = vpop.f32.mrf.mxu0  ;;  %v9236_v63 = vadd.f32 %v9235_v12, %v9207_v26  ;;  %v17009_v18 = vld [vmem:[#allocation22_spill] sm:$0xff] }
0x1877   : > { %v9217_v38 = vadd.f32 %v16647_v59, %v9188_v14  ;;  %v17010_v26 = vld [vmem:[#allocation26_spill] sm:$0xff] }
0x1878   : > { %v9321_v53 = vadd.f32 %v9320_v15, %v9292_v31 }
0x187a   : > { %v16669_v13 = vadd.f32 %v9321_v53, %v17006_v28 }
0x187b   : > { %v9264_v30 = vpop.f32.mrf.mxu2 }
0x187c   : > { %v9265_v5 = vadd.f32 %v9264_v30, %v9236_v63  ;;  %v9293_v39 = vpop.f32.mrf.mxu3  ;;  %v9353_v52 = vsel %vm608_vm0, %v16669_v13, 0.0 }
0x187d   : > { %v9238_v54 = vpop.f32.mrf.mxu1  ;;  %9354 = vadd.xlane.f32.xlu1 %v9353_v52  ;;  %v17011_v52 = vld [vmem:[#allocation25_spill] sm:$0xff] }
0x187e   : > { %v9294_v46 = vadd.f32 %v9293_v39, %v9265_v5  ;;  %v9325_v41 = vpop.f32.mrf.mxu0  ;;  %v9239_v51 = vadd.f32 %v9238_v54, %v9210_v22 }
0x1880   : > { %v9323_v35 = vadd.f32 %v9322_v40, %v9294_v46 }
0x1882   : > { %v16679_v42 = vadd.f32 %v9323_v35, %v17007_v17 }
0x1883   : > { %v9267_v11 = vpop.f32.mrf.mxu2 }
0x1884   : > { %v9268_v61 = vadd.f32 %v9267_v11, %v9239_v51  ;;  %v9296_v43 = vpop.f32.mrf.mxu3  ;;  %v9356_v45 = vsel %vm608_vm0, %v16679_v42, 0.0 }
0x1885   : > { %v9240_v48 = vpop.f32.mrf.mxu1  ;;  %9357 = vadd.xlane.f32.xlu2 %v9356_v45 }
0x1886   : > { %v9297_v47 = vadd.f32 %v9296_v43, %v9268_v61  ;;  %v9241_v60 = vadd.f32 %v9240_v48, %v9212_v37  ;;  %v9327_v19 = vpop.f32.mrf.mxu0 }
0x1888   : > { %v9326_v58 = vadd.f32 %v9325_v41, %v9297_v47 }
0x188a   : > { %v16689_v7 = vadd.f32 %v9326_v58, %v17008_v33 }
0x188b   : > { %v9269_v15 = vpop.f32.mrf.mxu2 }
0x188c   : > { %v9270_v27 = vadd.f32 %v9269_v15, %v9241_v60  ;;  %v9298_v57 = vpop.f32.mrf.mxu3  ;;  %v9359_v44 = vsel %vm608_vm0, %v16689_v7, 0.0 }
0x188d   : > { %v9243_v56 = vpop.f32.mrf.mxu1  ;;  %9360 = vadd.xlane.f32.xlu0 %v9359_v44 }
0x188e   : > { %v9299_v50 = vadd.f32 %v9298_v57, %v9270_v27  ;;  %v9244_v16 = vadd.f32 %v9243_v56, %v9215_v62  ;;  %v9330_v40 = vpop.f32.mrf.mxu0 }
0x1890   : > { %v9328_v36 = vadd.f32 %v9327_v19, %v9299_v50 }
0x1892   : > { %v9340_v4 = vadd.f32 %v9328_v36, %v17009_v18 }
0x1893   : > { %v9272_v24 = vpop.f32.mrf.mxu2 }
0x1894   : > { %v9273_v12 = vadd.f32 %v9272_v24, %v9244_v16  ;;  %v9301_v32 = vpop.f32.mrf.mxu3  ;;  %v9362_v31 = vsel %vm608_vm0, %v9340_v4, 0.0 }
0x1895   : > { %9363 = vadd.xlane.f32.xlu1 %v9362_v31  ;;  %v9245_v8 = vpop.f32.mrf.mxu1 }
0x1896   : > { %v9302_v29 = vadd.f32 %v9301_v32, %v9273_v12  ;;  %v9246_v53 = vadd.f32 %v9245_v8, %v9217_v38  ;;  %v9332_v5 = vpop.f32.mrf.mxu0 }
0x1898   : > { %v9331_v55 = vadd.f32 %v9330_v40, %v9302_v29 }
0x189a   : > { %v9341_v6 = vadd.f32 %v9331_v55, %v17010_v26 }
0x189b   : > { %v9274_v63 = vpop.f32.mrf.mxu2 }
0x189c   : > { %v9275_v28 = vadd.f32 %v9274_v63, %v9246_v53  ;;  %v9365_v30 = vsel %vm608_vm0, %v9341_v6, 0.0  ;;  %v9303_v1 = vpop.f32.mrf.mxu3 }
0x189d   : > { %9366 = vadd.xlane.f32.xlu2 %v9365_v30 }
0x189e   : > { %v9304_v21 = vadd.f32 %v9303_v1, %v9275_v28 }
0x18a0   : > { %v9333_v39 = vadd.f32 %v9332_v5, %v9304_v21  ;;  %v16766_v21 = vld [vmem:[%s16871_s15 + $0x1] ss:$0 sm:$0xff] }
0x18a2   : > { %v9342_v54 = vadd.f32 %v9333_v39, %v17011_v52  ;;  %v16771_v52 = vld [vmem:[%s16872_s16 + $0x1] ss:$0 sm:$0xff] }
0x18a4   : > { %v9368_v49 = vsel %vm608_vm0, %v9342_v54, 0.0 }
0x18a5   : > { %9369 = vadd.xlane.f32.xlu0 %v9368_v49 }
0x18e0   : > { %v9349_v46 = vpop.xlane.xlu2 %9348 }
0x18e1   : > { %v9371_v59 = vmul.f32 %v9349_v46, %v17012_v0 }
0x18e3   : > { %v16708_v35 = vsub.f32 %v16656_v9, %v9371_v59 }
0x18e5   : > { %v9387_v22 = vmul.f32 %v16708_v35, %v16708_v35 }
0x18e7   : > { %v9395_v41 = vsel %vm608_vm0, %v9387_v22, 0.0 }
0x18e8   : > { %v9352_v51 = vpop.xlane.xlu0 %9351  ;;  %9396 = vadd.xlane.f32.xlu1 %v9395_v41 }
0x18e9   : > { %v9372_v17 = vmul.f32 %v9352_v51, %v17012_v0 }
0x18eb   : > { %v16715_v11 = vsub.f32 %v16662_v3, %v9372_v17 }
0x18ed   : > { %v9388_v23 = vmul.f32 %v16715_v11, %v16715_v11 }
0x18ef   : > { %v9398_v61 = vsel %vm608_vm0, %v9388_v23, 0.0 }
0x18f0   : > { %v9355_v43 = vpop.xlane.xlu1 %9354  ;;  %9399 = vadd.xlane.f32.xlu2 %v9398_v61 }
0x18f1   : > { %v9373_v9 = vmul.f32 %v9355_v43, %v17012_v0 }
0x18f3   : > { %v16722_v45 = vsub.f32 %v16669_v13, %v9373_v9 }
0x18f5   : > { %v9389_v48 = vmul.f32 %v16722_v45, %v16722_v45 }
0x18f7   : > { %v9401_v25 = vsel %vm608_vm0, %v9389_v48, 0.0 }
0x18f8   : > { %v9358_v47 = vpop.xlane.xlu2 %9357  ;;  %9402 = vadd.xlane.f32.xlu0 %v9401_v25 }
0x18f9   : > { %v9374_v3 = vmul.f32 %v9358_v47, %v17012_v0 }
0x18fb   : > { %v16729_v2 = vsub.f32 %v16679_v42, %v9374_v3 }
0x18fd   : > { %v9390_v58 = vmul.f32 %v16729_v2, %v16729_v2 }
0x18ff   : > { %v9404_v37 = vsel %vm608_vm0, %v9390_v58, 0.0 }
0x1900   : > { %v9361_v60 = vpop.xlane.xlu0 %9360  ;;  %9405 = vadd.xlane.f32.xlu1 %v9404_v37 }
0x1901   : > { %v9375_v13 = vmul.f32 %v9361_v60, %v17012_v0 }
0x1903   : > { %v16736_v33 = vsub.f32 %v16689_v7, %v9375_v13 }
0x1905   : > { %v9391_v19 = vmul.f32 %v16736_v33, %v16736_v33 }
0x1907   : > { %v9407_v15 = vsel %vm608_vm0, %v9391_v19, 0.0 }
0x1908   : > { %v9364_v34 = vpop.xlane.xlu1 %9363  ;;  %9408 = vadd.xlane.f32.xlu2 %v9407_v15 }
0x1909   : > { %v9376_v42 = vmul.f32 %v9364_v34, %v17012_v0 }
0x190b   : > { %v16742_v27 = vsub.f32 %v9340_v4, %v9376_v42 }
0x190d   : > { %v9392_v57 = vmul.f32 %v16742_v27, %v16742_v27 }
0x190f   : > { %v9410_v44 = vsel %vm608_vm0, %v9392_v57, 0.0 }
0x1910   : > { %9411 = vadd.xlane.f32.xlu0 %v9410_v44  ;;  %v9367_v56 = vpop.xlane.xlu2 %9366 }
0x1911   : > { %v9377_v7 = vmul.f32 %v9367_v56, %v17012_v0 }
0x1913   : > { %v16748_v10 = vsub.f32 %v9341_v6, %v9377_v7 }
0x1915   : > { %v9393_v50 = vmul.f32 %v16748_v10, %v16748_v10 }
0x1917   : > { %v9413_v20 = vsel %vm608_vm0, %v9393_v50, 0.0 }
0x1918   : > { %v9370_v36 = vpop.xlane.xlu0 %9369  ;;  %9414 = vadd.xlane.f32.xlu1 %v9413_v20 }
0x1919   : > { %v9378_v62 = vmul.f32 %v9370_v36, %v17012_v0 }
0x191b   : > { %v16754_v16 = vsub.f32 %v9342_v54, %v9378_v62 }
0x191d   : > { %v9394_v18 = vmul.f32 %v16754_v16, %v16754_v16 }
0x191f   : > { %v9416_v4 = vsel %vm608_vm0, %v9394_v18, 0.0 }
0x1920   : > { %9417 = vadd.xlane.f32.xlu2 %v9416_v4 }
0x195b   : > { %v9397_v24 = vpop.xlane.xlu1 %9396 }
0x195c   : > { %v9419_v14 = vmul.f32 %v9397_v24, %v17012_v0 }
0x195e   : > { %v9427_v12 = vadd.f32 1e-05, %v9419_v14 }
0x1960   : > { %12373 = vrsqrt.f32 %v9427_v12  ;;  %vm9441_vm14 = vweird.f32 %v9427_v12 }
0x1963   : > { %v9400_v32 = vpop.xlane.xlu2 %9399 }
0x1964   : > { %v9420_v31 = vmul.f32 %v9400_v32, %v17012_v0 }
0x1966   : > { %v12374_v40 = vpop.eup %12373  ;;  %v9428_v29 = vadd.f32 1e-05, %v9420_v31 }
0x1967   : > { %v9436_v8 = vmul.f32 %v12374_v40, %v9427_v12  ;;  %vm9442_vm13 = vweird.f32 %v12374_v40 }
0x1968   : > { %12375 = vrsqrt.f32 %v9428_v29  ;;  %vm9443_vm15 = vmor %vm9441_vm14, %vm9442_vm13  ;;  %vm9451_vm2 = vweird.f32 %v9428_v29 }
0x1969   : > { %v9437_v55 = vmul.f32 %v12374_v40, %v9436_v8 }
0x196b   : > { %v9438_v38 = vmul.f32 0.5, %v9437_v55  ;;  %v9403_v53 = vpop.xlane.xlu0 %9402 }
0x196c   : > { %v9421_v26 = vmul.f32 %v9403_v53, %v17012_v0 }
0x196d   : > { %v9439_v6 = vsub.f32 1.5, %v9438_v38 }
0x196e   : > { %v12376_v63 = vpop.eup %12375  ;;  %v9429_v28 = vadd.f32 1e-05, %v9421_v26 }
0x196f   : > { %v9440_v30 = vmul.f32 %v12374_v40, %v9439_v6  ;;  %v9446_v1 = vmul.f32 %v12376_v63, %v9428_v29  ;;  %vm9452_vm1 = vweird.f32 %v12376_v63 }
0x1970   : > { %12377 = vrsqrt.f32 %v9429_v28  ;;  %vm9453_vm3 = vmor %vm9451_vm2, %vm9452_vm1  ;;  %vm9461_vm4 = vweird.f32 %v9429_v28 }
0x1971   : > { %v9444_v5 = vsel %vm9443_vm15, %v12374_v40, %v9440_v30  ;;  %v9447_v39 = vmul.f32 %v12376_v63, %v9446_v1 }
0x1972   : > { %v9515_v54 = vmul.f32 %v9444_v5, %v16708_v35 }
0x1973   : > { %v9448_v49 = vmul.f32 0.5, %v9447_v39  ;;  %v9406_v46 = vpop.xlane.xlu1 %9405 }
0x1974   : > { %v9526_v59 = vmul.f32 %v16766_v21, %v9515_v54  ;;  %v9422_v22 = vmul.f32 %v9406_v46, %v17012_v0 }
0x1975   : > { %v9449_v41 = vsub.f32 1.5, %v9448_v49 }
0x1976   : > { %v12378_v51 = vpop.eup %12377  ;;  %v9537_v17 = vadd.f32 %v16771_v52, %v9526_v59  ;;  %v9430_v23 = vadd.f32 1e-05, %v9422_v22 }
0x1977   : > { %v9450_v61 = vmul.f32 %v12376_v63, %v9449_v41  ;;  %v9456_v43 = vmul.f32 %v12378_v51, %v9429_v28  ;;  %vm9462_vm11 = vweird.f32 %v12378_v51 }
0x1978   : > { %9545 = vst.msk [vmem:[%s16779_s19] sm:$0xff] %vm608_vm0, %v9537_v17  ;;  %12379 = vrsqrt.f32 %v9430_v23  ;;  %vm9463_vm5 = vmor %vm9461_vm4, %vm9462_vm11  ;;  %vm9471_vm7 = vweird.f32 %v9430_v23 }
0x1979   : > { %v9454_v35 = vsel %vm9453_vm3, %v12376_v63, %v9450_v61  ;;  %v9457_v9 = vmul.f32 %v12378_v51, %v9456_v43 }
0x197a   : > { %v9516_v48 = vmul.f32 %v9454_v35, %v16715_v11 }
0x197b   : > { %v9458_v25 = vmul.f32 0.5, %v9457_v9  ;;  %v9409_v47 = vpop.xlane.xlu2 %9408 }
0x197c   : > { %v9527_v3 = vmul.f32 %v16766_v21, %v9516_v48  ;;  %v9423_v58 = vmul.f32 %v9409_v47, %v17012_v0 }
0x197d   : > { %v9459_v37 = vsub.f32 1.5, %v9458_v25 }
0x197e   : > { %v12380_v60 = vpop.eup %12379  ;;  %v9538_v13 = vadd.f32 %v16771_v52, %v9527_v3  ;;  %v9431_v19 = vadd.f32 1e-05, %v9423_v58 }
0x197f   : > { %v9460_v15 = vmul.f32 %v12378_v51, %v9459_v37  ;;  %v9466_v34 = vmul.f32 %v12380_v60, %v9430_v23  ;;  %vm9472_vm6 = vweird.f32 %v12380_v60 }
0x1980   : > { %9546 = vst.msk [vmem:[%s16779_s19 + $0x8] sm:$0xff] %vm608_vm0, %v9538_v13  ;;  %12381 = vrsqrt.f32 %v9431_v19  ;;  %vm9473_vm8 = vmor %vm9471_vm7, %vm9472_vm6  ;;  %vm9481_vm10 = vweird.f32 %v9431_v19 }
0x1981   : > { %v9464_v11 = vsel %vm9463_vm5, %v12378_v51, %v9460_v15  ;;  %v9467_v42 = vmul.f32 %v12380_v60, %v9466_v34 }
0x1982   : > { %v9517_v57 = vmul.f32 %v9464_v11, %v16722_v45 }
0x1983   : > { %v9468_v44 = vmul.f32 0.5, %v9467_v42  ;;  %v9412_v56 = vpop.xlane.xlu0 %9411 }
0x1984   : > { %v9528_v7 = vmul.f32 %v16766_v21, %v9517_v57  ;;  %v9424_v50 = vmul.f32 %v9412_v56, %v17012_v0 }
0x1985   : > { %v9469_v20 = vsub.f32 1.5, %v9468_v44 }
0x1986   : > { %v12382_v36 = vpop.eup %12381  ;;  %v9539_v62 = vadd.f32 %v16771_v52, %v9528_v7  ;;  %v9432_v18 = vadd.f32 1e-05, %v9424_v50 }
0x1987   : > { %v9470_v4 = vmul.f32 %v12380_v60, %v9469_v20  ;;  %v9476_v24 = vmul.f32 %v12382_v36, %v9431_v19  ;;  %vm9482_vm9 = vweird.f32 %v12382_v36 }
0x1988   : > { %9547 = vst.msk [vmem:[%s16779_s19 + $0x10] sm:$0xff] %vm608_vm0, %v9539_v62  ;;  %12383 = vrsqrt.f32 %v9432_v18  ;;  %vm9483_vm12 = vmor %vm9481_vm10, %vm9482_vm9  ;;  %vm9491_vm14 = vweird.f32 %v9432_v18 }
0x1989   : > { %v9474_v45 = vsel %vm9473_vm8, %v12380_v60, %v9470_v4  ;;  %v9477_v14 = vmul.f32 %v12382_v36, %v9476_v24 }
0x198a   : > { %v9518_v12 = vmul.f32 %v9474_v45, %v16729_v2 }
0x198b   : > { %v9478_v32 = vmul.f32 0.5, %v9477_v14  ;;  %v9415_v31 = vpop.xlane.xlu1 %9414 }
0x198c   : > { %v9529_v40 = vmul.f32 %v16766_v21, %v9518_v12  ;;  %v9425_v29 = vmul.f32 %v9415_v31, %v17012_v0 }
0x198d   : > { %v9479_v8 = vsub.f32 1.5, %v9478_v32 }
0x198e   : > { %v12384_v55 = vpop.eup %12383  ;;  %v9540_v38 = vadd.f32 %v16771_v52, %v9529_v40  ;;  %v9433_v53 = vadd.f32 1e-05, %v9425_v29 }
0x198f   : > { %v9480_v26 = vmul.f32 %v12382_v36, %v9479_v8  ;;  %v9486_v6 = vmul.f32 %v12384_v55, %v9432_v18  ;;  %vm9492_vm13 = vweird.f32 %v12384_v55 }
0x1990   : > { %9548 = vst.msk [vmem:[%s16779_s19 + $0x18] sm:$0xff] %vm608_vm0, %v9540_v38  ;;  %12385 = vrsqrt.f32 %v9433_v53  ;;  %vm9493_vm15 = vmor %vm9491_vm14, %vm9492_vm13  ;;  %vm9501_vm2 = vweird.f32 %v9433_v53 }
0x1991   : > { %v9484_v2 = vsel %vm9483_vm12, %v12382_v36, %v9480_v26  ;;  %v9487_v63 = vmul.f32 %v12384_v55, %v9486_v6 }
0x1992   : > { %v9519_v28 = vmul.f32 %v9484_v2, %v16736_v33 }
0x1993   : > { %v9488_v30 = vmul.f32 0.5, %v9487_v63  ;;  %v9418_v1 = vpop.xlane.xlu2 %9417 }
0x1994   : > { %v9530_v5 = vmul.f32 %v16766_v21, %v9519_v28  ;;  %v9426_v39 = vmul.f32 %v9418_v1, %v17012_v0 }
0x1995   : > { %v9489_v54 = vsub.f32 1.5, %v9488_v30 }
0x1996   : > { %v12386_v49 = vpop.eup %12385  ;;  %v9541_v46 = vadd.f32 %v16771_v52, %v9530_v5  ;;  %v9434_v59 = vadd.f32 1e-05, %v9426_v39 }
0x1997   : > { %v9490_v22 = vmul.f32 %v12384_v55, %v9489_v54  ;;  %v9496_v41 = vmul.f32 %v12386_v49, %v9433_v53  ;;  %vm9502_vm1 = vweird.f32 %v12386_v49 }
0x1998   : > { %9549 = vst.msk [vmem:[%s16779_s19 + $0x20] sm:$0xff] %vm608_vm0, %v9541_v46  ;;  %12387 = vrsqrt.f32 %v9434_v59  ;;  %vm9503_vm3 = vmor %vm9501_vm2, %vm9502_vm1  ;;  %vm9511_vm4 = vweird.f32 %v9434_v59 }
0x1999   : > { %v9494_v33 = vsel %vm9493_vm15, %v12384_v55, %v9490_v22  ;;  %v9497_v51 = vmul.f32 %v12386_v49, %v9496_v41 }
0x199a   : > { %v9520_v17 = vmul.f32 %v9494_v33, %v16742_v27 }
0x199b   : > { %v9498_v23 = vmul.f32 0.5, %v9497_v51 }
0x199c   : > { %v9531_v0 = vmul.f32 %v16766_v21, %v9520_v17 }
0x199d   : > { %v9499_v61 = vsub.f32 1.5, %v9498_v23 }
0x199e   : > { %v12388_v43 = vpop.eup %12387  ;;  %v9542_v35 = vadd.f32 %v16771_v52, %v9531_v0 }
0x199f   : > { %v9500_v9 = vmul.f32 %v12386_v49, %v9499_v61  ;;  %v9506_v48 = vmul.f32 %v12388_v43, %v9434_v59  ;;  %vm9512_vm11 = vweird.f32 %v12388_v43 }
0x19a0   : > { %9550 = vst.msk [vmem:[%s16779_s19 + $0x28] sm:$0xff] %vm608_vm0, %v9542_v35  ;;  %vm9513_vm5 = vmor %vm9511_vm4, %vm9512_vm11 }
0x19a1   : > { %v9504_v25 = vsel %vm9503_vm3, %v12386_v49, %v9500_v9  ;;  %v9507_v47 = vmul.f32 %v12388_v43, %v9506_v48 }
0x19a2   : > { %v9521_v27 = vmul.f32 %v9504_v25, %v16748_v10 }
0x19a3   : > { %v9508_v3 = vmul.f32 0.5, %v9507_v47 }
0x19a4   : > { %v9532_v58 = vmul.f32 %v16766_v21, %v9521_v27 }
0x19a5   : > { %v9509_v37 = vsub.f32 1.5, %v9508_v3 }
0x19a6   : > { %v9543_v60 = vadd.f32 %v16771_v52, %v9532_v58 }
0x19a7   : > { %v9510_v13 = vmul.f32 %v12388_v43, %v9509_v37 }
0x19a8   : > { %9551 = vst.msk [vmem:[%s16779_s19 + $0x30] sm:$0xff] %vm608_vm0, %v9543_v60 }
0x19a9   : > { %v9514_v10 = vsel %vm9513_vm5, %v12388_v43, %v9510_v13 }
0x19aa   : > { %v9522_v19 = vmul.f32 %v9514_v10, %v16754_v16 }
0x19ac   : > { %v9533_v15 = vmul.f32 %v16766_v21, %v9522_v19 }
0x19ae   : > { %v9544_v34 = vadd.f32 %v16771_v52, %v9533_v15 }
0x19b0   : > { %9552 = vst.msk [vmem:[%s16779_s19 + $0x38] sm:$0xff] %vm608_vm0, %v9544_v34 }
0x19b1   : > { %12424 = shalt.err (!%p12421_p3)
}
0x19b2   : > { %s12463_s21 = smov 128   ;;  %s12464_s19 = smov 8  }
0x19b3   : > { %12006 = dma.vmem_to_hbm [thread:$0]  (%p12593_p5), %s9568_s22, 1024, %s9570_s24, %s9554_s28, %s12463_s21, %s12463_s21, %s12464_s19  }
0x19b4 PF: > { %s17013_s2 = sld [smem:[#allocation7_spill]] }
0x19b5   : > { %s17014_s3 = sld [smem:[#allocation5_spill]] }
0x19ba   : > { %p12012_p4 = scmp.ge.s32.totalorder %s17013_s2, 2 }
0x19bb   : > { %s9584_s26 = sand.u32 1, %s17014_s3  }
0x19bc   : > { %p12009_p7 = pnand %p12012_p4, %p12597_p6  ;;  %s9585_s27 = scalar_lea.sflag [#allocation3], %s9584_s26 }
0x19be   : > { %p12010_p8 = pneg %p12009_p7 }
0x19c0   : > { %12442 = dma.done.wait (%p12010_p8), %s9585_s27, 1024  }
0x19c1   : > { %12444 = vsyncadd (%p12010_p8), %s9585_s27, 4294966272  ;;  %s17016_s27 = sld [smem:[#allocation8_spill]]  ;;  %s17019_s24 = smov %s12451_s25 }
0x19c2   : > { %s17017_s29 = sld [smem:[#allocation6_spill]] }
0x19c3   : > { %s17018_s26 = sld [smem:[#allocation9_spill]] }
0x19c7   : > { %p27_p9 = scmp.ge.s32.totalorder %s17016_s27, 4  }
0x19c8   : > { %s17020_s25 = smov %s17017_s29 }
0x19c9   :  { %29 = sbr.rel (!%p27_p9) target bundleno = 9 (0x9), region = 139 }
0x19ce   :  { %9591 = vsyncpa [#allocation3], 1 }
0x19cf   :  { %9593 = vsyncpa [#allocation3 + $0x1], 1 }

</bundles_post_ra>
